<compile_context>
chip_gen: v5e
topology: v5e:2x2
jax: 0.10.0
libtpu: 0.0.40
codegen_flags: <defaults>
</compile_context>

<pallas_src>
import functools
import math

import jax
import jax.numpy as jnp
from jax import lax
from jax.experimental import pallas as pl
from jax.experimental.pallas import tpu as pltpu


def _round_up(x, m):
    return ((x + m - 1) // m) * m


# ----------------------------------------------------------------------------
# Generic tiled matmul kernel: C = act(A @ B + bias [+ residual])
# ----------------------------------------------------------------------------

def _mm_kernel(a_ref, b_ref, bias_ref, *rest, act, has_res):
    if has_res:
        res_ref, o_ref, acc_ref = rest
    else:
        res_ref = None
        o_ref, acc_ref = rest

    k = pl.program_id(2)

    @pl.when(k == 0)
    def _init():
        acc_ref[...] = jnp.zeros_like(acc_ref)

    acc_ref[...] += jnp.dot(a_ref[...], b_ref[...],
                            preferred_element_type=jnp.float32)

    @pl.when(k == pl.num_programs(2) - 1)
    def _finalize():
        out = acc_ref[...] + bias_ref[...]
        if has_res:
            out = out + res_ref[...]
        if act == "relu":
            out = jnp.maximum(out, 0.0)
        o_ref[...] = out


def pallas_matmul(a, b, bias=None, act=None, residual=None):
    """act((M,K) @ (K,N) + bias [+ residual]) with lane-dense padded tiles."""
    M, K = a.shape
    K2, N = b.shape
    assert K == K2
    if bias is None:
        bias = jnp.zeros((N,), jnp.float32)

    # --- tile selection -------------------------------------------------
    if M >= 1024 and M % 256 == 0:
        TM = 256                      # fill the 256x256 MXU on v6e/v7x
    elif M >= 128:
        TM = 128
    else:
        TM = max(8, _round_up(M, 8))  # don't pad tiny M up to 128
    Mp = _round_up(M, TM)

    Np = _round_up(N, 128)            # lane-dense stores
    TN = 256 if (Np % 256 == 0) else 128

    if K <= 512:
        TK, Kp = K, K                 # full-K block (legal: equals full dim)
    else:
        TK = 512                      # K-tiled reduction keeps VMEM bounded
        Kp = _round_up(K, TK)

    # --- operand padding / casts (bf16 on the MXU, f32 accumulate) -------
    a_p = jnp.pad(a.astype(jnp.bfloat16), ((0, Mp - M), (0, Kp - K)))
    b_p = jnp.pad(b.astype(jnp.bfloat16), ((0, Kp - K), (0, Np - N)))
    bias_p = jnp.pad(bias.astype(jnp.float32), (0, Np - N)).reshape(1, Np)

    in_specs = [
        pl.BlockSpec((TM, TK), lambda i, j, k: (i, k)),
        pl.BlockSpec((TK, TN), lambda i, j, k: (k, j)),
        pl.BlockSpec((1, TN), lambda i, j, k: (0, j)),
    ]
    inputs = [a_p, b_p, bias_p]

    has_res = residual is not None
    if has_res:
        res_p = jnp.pad(residual.astype(jnp.float32),
                        ((0, Mp - M), (0, Np - N)))
        in_specs.append(pl.BlockSpec((TM, TN), lambda i, j, k: (i, j)))
        inputs.append(res_p)

    grid = (Mp // TM, Np // TN, Kp // TK)

    flops = 2 * M * K * N
    bytes_accessed = ((Mp * Kp + Kp * Np) * 2
                      + Mp * Np * 4 * (2 if has_res else 1))

    # Raise the scoped-VMEM limit only if the block working set needs it
    # (never at these toy sizes; kicks in at production layer widths).
    blk_bytes = (2 * (TM * TK + TK * TN) * 2      # double-buffered bf16 inputs
                 + 3 * TM * TN * 4                # out (x2) + accumulator
                 + (2 * TM * TN * 4 if has_res else 0))
    vmem_limit = 48 * 1024 * 1024 if blk_bytes > 24 * 1024 * 1024 else None

    out = pl.pallas_call(
        functools.partial(_mm_kernel, act=act, has_res=has_res),
        out_shape=jax.ShapeDtypeStruct((Mp, Np), jnp.float32),
        grid=grid,
        in_specs=in_specs,
        out_specs=pl.BlockSpec((TM, TN), lambda i, j, k: (i, j)),
        scratch_shapes=[pltpu.VMEM((TM, TN), jnp.float32)],
        compiler_params=pltpu.CompilerParams(
            dimension_semantics=("parallel", "parallel", "arbitrary"),
            vmem_limit_bytes=vmem_limit),
        cost_estimate=pl.CostEstimate(flops=flops, transcendentals=0,
                                      bytes_accessed=bytes_accessed),
    )(*inputs)

    if Mp == M and Np == N:
        return out
    return out[:M, :N]


# ----------------------------------------------------------------------------
# Bidirectional LSTM: whole time loop inside one pallas_call.
# State (h, c) lives in VMEM scratch; both directions stacked on axis 0.
# ----------------------------------------------------------------------------

def _bilstm_kernel(xp_ref, whh_ref, hs_ref, h_sc, c_sc, *, Hp):
    t = pl.program_id(0)

    @pl.when(t == 0)
    def _init():
        h_sc[...] = jnp.zeros_like(h_sc)
        c_sc[...] = jnp.zeros_like(c_sc)

    h = h_sc[...]
    c = c_sc[...]
    # one fused recurrent matmul per direction (batched over direction axis)
    gates = xp_ref[0] + jnp.einsum("dbh,dhg->dbg", h, whh_ref[...],
                                   preferred_element_type=jnp.float32)
    i = jax.nn.sigmoid(gates[:, :, 0 * Hp:1 * Hp])
    f = jax.nn.sigmoid(gates[:, :, 1 * Hp:2 * Hp])
    g = jnp.tanh(gates[:, :, 2 * Hp:3 * Hp])
    o = jax.nn.sigmoid(gates[:, :, 3 * Hp:4 * Hp])
    c_new = f * c + i * g
    h_new = o * jnp.tanh(c_new)
    h_sc[...] = h_new
    c_sc[...] = c_new
    hs_ref[0] = h_new


def pallas_bilstm(xp, whh, Hp):
    T, D, Bp, G = xp.shape            # D = 2 directions, G = 4*Hp
    return pl.pallas_call(
        functools.partial(_bilstm_kernel, Hp=Hp),
        out_shape=jax.ShapeDtypeStruct((T, D, Bp, Hp), jnp.float32),
        grid=(T,),
        in_specs=[
            pl.BlockSpec((1, D, Bp, G), lambda t: (t, 0, 0, 0)),
            pl.BlockSpec((D, Hp, G), lambda t: (0, 0, 0)),   # resident weights
        ],
        out_specs=pl.BlockSpec((1, D, Bp, Hp), lambda t: (t, 0, 0, 0)),
        scratch_shapes=[pltpu.VMEM((D, Bp, Hp), jnp.float32),
                        pltpu.VMEM((D, Bp, Hp), jnp.float32)],
        compiler_params=pltpu.CompilerParams(
            dimension_semantics=("arbitrary",)),
    )(xp, whh)


def bilstm_forward(x_tbc, feat_len, params, H):
    # TODO(synk): pack_padded_sequence-style per-sample length masking omitted
    # (example lengths are all equal to the full sequence length).
    T, B, In = x_tbc.shape
    Hp = _round_up(max(H, 128), 128)

    def pad_dir(p):
        w, b, whh = p["w_ih"], p["b"], p["w_hh"]
        wp = jnp.zeros((In, 4 * Hp), jnp.float32)
        bp = jnp.zeros((4 * Hp,), jnp.float32)
        whhp = jnp.zeros((Hp, 4 * Hp), jnp.float32)
        for g in range(4):
            wp = wp.at[:, g * Hp:g * Hp + H].set(w[:, g * H:(g + 1) * H])
            bp = bp.at[g * Hp:g * Hp + H].set(b[g * H:(g + 1) * H])
            whhp = whhp.at[:H, g * Hp:g * Hp + H].set(whh[:, g * H:(g + 1) * H])
        return wp, bp, whhp

    wf, bf, whhf = pad_dir(params["fwd"])
    wb, bb, whhb = pad_dir(params["bwd"])

    # Input projections of both directions in ONE matmul (weights concatenated
    # along N); the backward direction just gets its time axis reversed.
    w_cat = jnp.concatenate([wf, wb], axis=1)          # (In, 8*Hp)
    b_cat = jnp.concatenate([bf, bb], axis=0)
    xp_all = pallas_matmul(x_tbc.reshape(T * B, In), w_cat, b_cat)
    xp_all = xp_all.reshape(T, B, 2, 4 * Hp)
    xp_f = xp_all[:, :, 0, :]
    xp_b = xp_all[:, :, 1, :][::-1]
    xp = jnp.stack([xp_f, xp_b], axis=1)               # (T, 2, B, 4*Hp)

    Bp = _round_up(B, 8)
    xp = jnp.pad(xp, ((0, 0), (0, 0), (0, Bp - B), (0, 0)))
    whh = jnp.stack([whhf, whhb], axis=0)              # (2, Hp, 4*Hp)

    hs = pallas_bilstm(xp, whh, Hp)                    # (T, 2, Bp, Hp)

    hf = hs[:, 0, :B, :H]
    hb = hs[:, 1, :B, :H][::-1]
    predictions = jnp.concatenate([hf, hb], axis=-1)   # (T, B, hidden)
    hidden = jnp.stack([hs[T - 1, 0, :B, :H], hs[T - 1, 1, :B, :H]], axis=0)
    return {"predictions": predictions, "hidden": hidden}


# ----------------------------------------------------------------------------
# Conv / BN helpers (im2col -> Pallas matmul with fused epilogue)
# ----------------------------------------------------------------------------

def _im2col(x_nhwc, kh, kw, stride, pad):
    x = jnp.pad(x_nhwc, ((0, 0), (pad, pad), (pad, pad), (0, 0)))
    N, H, W, C = x.shape
    Ho = (H - kh) // stride + 1
    Wo = (W - kw) // stride + 1
    cols = []
    for i in range(kh):
        for j in range(kw):
            cols.append(x[:, i:i + stride * (Ho - 1) + 1:stride,
                          j:j + stride * (Wo - 1) + 1:stride, :])
    patches = jnp.stack(cols, axis=-2)                 # (N, Ho, Wo, kh*kw, C)
    return patches.reshape(N * Ho * Wo, kh * kw * C), Ho, Wo


def _fold_conv_bn(p, eps=1e-5):
    w = p["w"]                                          # (O, I, kh, kw)
    scale = p["gamma"] / jnp.sqrt(p["var"] + eps)
    w = w * scale[:, None, None, None]
    b = p["beta"] - p["mean"] * scale
    O, I, kh, kw = p["w"].shape
    w2 = jnp.transpose(w, (2, 3, 1, 0)).reshape(kh * kw * I, O)
    return w2, b


def conv2d_bn_act(x_nhwc, p, stride, pad, act, residual=None):
    O, I, kh, kw = p["w"].shape
    patches, Ho, Wo = _im2col(x_nhwc, kh, kw, stride, pad)
    w2, b = _fold_conv_bn(p)
    res2 = residual.reshape(-1, O) if residual is not None else None
    y = pallas_matmul(patches, w2, b, act=act, residual=res2)
    return y.reshape(x_nhwc.shape[0], Ho, Wo, O)


def maxpool2d_3x3s2p1(x_nhwc):
    return lax.reduce_window(x_nhwc, -jnp.inf, lax.max,
                             (1, 3, 3, 1), (1, 2, 2, 1),
                             [(0, 0), (1, 1), (1, 1), (0, 0)])


def basic_block(x_nhwc, blk, stride):
    out = conv2d_bn_act(x_nhwc, blk["conv1"], stride, 1, "relu")
    if "down" in blk:
        identity = conv2d_bn_act(x_nhwc, blk["down"], stride, 0, None)
    else:
        identity = x_nhwc
    # conv2 + BN + residual-add + ReLU fused into one matmul epilogue
    return conv2d_bn_act(out, blk["conv2"], 1, 1, "relu", residual=identity)


# ----------------------------------------------------------------------------
# CorrNet: ResNet(BasicBlock, [2,2,2,2]) applied per frame (eval BN folded)
# ----------------------------------------------------------------------------

def resnet_forward(x_nchw, params):
    x = jnp.transpose(x_nchw, (0, 2, 3, 1))             # -> NHWC
    x = conv2d_bn_act(x, params["stem"], 2, 3, "relu")
    x = maxpool2d_3x3s2p1(x)
    for li, blocks in enumerate(params["layers"]):
        for bi, blk in enumerate(blocks):
            stride = 2 if (li > 0 and bi == 0) else 1
            x = basic_block(x, blk, stride)
    x = jnp.mean(x, axis=(1, 2))                         # global avg pool
    return pallas_matmul(x, params["fc_w"], params["fc_b"])


# ----------------------------------------------------------------------------
# Convolution1D (temporal K5-P2-K5-P2 + fc logits)
# ----------------------------------------------------------------------------

def conv1d(x_btc, w_oik, b, act):
    B, T, Cin = x_btc.shape
    O, I, K = w_oik.shape
    To = T - K + 1
    cols = [x_btc[:, k:k + To, :] for k in range(K)]
    patches = jnp.stack(cols, axis=2).reshape(B * To, K * Cin)
    w2 = jnp.transpose(w_oik, (2, 1, 0)).reshape(K * I, O)
    y = pallas_matmul(patches, w2, b, act=act)
    return y.reshape(B, To, O)


def maxpool1d_k2(x_btc):
    B, T, C = x_btc.shape
    return x_btc[:, :(T // 2) * 2, :].reshape(B, T // 2, 2, C).max(axis=2)


def convnet_forward(feat_bct, vid_len, params, kernel_size):
    x = jnp.transpose(feat_bct, (0, 2, 1))               # (B, T, C)
    x = conv1d(x, params["c1_w"], params["c1_b"], "relu")
    x = maxpool1d_k2(x)
    x = conv1d(x, params["c2_w"], params["c2_b"], "relu")
    x = maxpool1d_k2(x)
    feat_len = ((vid_len - (kernel_size - 1)) // 2 - (kernel_size - 1)) // 2
    feature = jnp.transpose(x, (0, 2, 1))                 # (B, hidden, T')
    B, Tp, H = x.shape
    logits = pallas_matmul(x.reshape(B * Tp, H),
                           params["fc_w"], params["fc_b"]).reshape(B, Tp, -1)
    logits = jnp.transpose(logits, (1, 0, 2))              # (T', B, num_classes)
    return {"feature": feature, "logits": logits, "feat_len": feat_len}


# ----------------------------------------------------------------------------
# Full SLR_Network forward
# ----------------------------------------------------------------------------

def slr_forward(feat, vid_len, params):
    batch, temp, channel, height, width = feat.shape
    # feat.permute(0, 2, 1, 3, 4)  -> (B, C, T, H, W)
    x = jnp.transpose(feat, (0, 2, 1, 3, 4))
    # CorrNet runs the 2-D ResNet per frame: fold time into the batch axis.
    frames = jnp.transpose(x, (0, 2, 1, 3, 4)).reshape(
        batch * temp, channel, height, width)
    frame_feats = resnet_forward(frames, params["corrnet"])   # (B*T, n_cls)
    # feat.view(batch, temp, -1).permute(0, 2, 1)
    feat2 = frame_feats.reshape(batch, temp, -1).transpose(0, 2, 1)
    out_conv = convnet_forward(feat2, vid_len, params["convnet"],
                               params["kernel_size"])
    # out_conv['feature'].permute(2, 0, 1)  -> (T', B, hidden)
    feat3 = jnp.transpose(out_conv["feature"], (2, 0, 1))
    out_lstm = bilstm_forward(feat3, out_conv["feat_len"],
                              params["bilstm"], params["H"])
    Tp, B, Hd = feat3.shape
    preds = out_lstm["predictions"]
    seq_logits = pallas_matmul(preds.reshape(Tp * B, Hd),
                               params["cls_w"], params["cls_b"]
                               ).reshape(Tp, B, -1)
    return {
        "feat_len": out_conv["feat_len"],
        "conv_logits": out_conv["logits"],
        "lstm_predictions": out_lstm["predictions"],
        "lstm_hidden": out_lstm["hidden"],
        "sequence_logits": seq_logits,
    }


# ----------------------------------------------------------------------------
# Deterministic parameter construction
# ----------------------------------------------------------------------------

def _init_conv_bn(key, cin, cout, k):
    k1, k2, k3, k4 = jax.random.split(key, 4)
    fan_in = cin * k * k
    return {
        "w": jax.random.normal(k1, (cout, cin, k, k), jnp.float32)
             * (1.0 / math.sqrt(fan_in)),
        "gamma": 1.0 + 0.1 * jax.random.normal(k2, (cout,), jnp.float32),
        "beta": 0.1 * jax.random.normal(k3, (cout,), jnp.float32),
        "mean": 0.05 * jax.random.normal(k4, (cout,), jnp.float32),
        "var": jnp.ones((cout,), jnp.float32),
    }


def _init_resnet(key, base, num_classes, in_ch=3):
    keys = list(jax.random.split(key, 64))
    it = iter(keys)
    params = {"stem": _init_conv_bn(next(it), in_ch, base, 7)}
    widths = [base, base * 2, base * 4, base * 8]
    inplanes = base
    layers = []
    for li, planes in enumerate(widths):
        blocks = []
        for bi in range(2):
            stride = 2 if (li > 0 and bi == 0) else 1
            blk = {"conv1": _init_conv_bn(next(it), inplanes, planes, 3),
                   "conv2": _init_conv_bn(next(it), planes, planes, 3)}
            if stride != 1 or inplanes != planes:
                blk["down"] = _init_conv_bn(next(it), inplanes, planes, 1)
            blocks.append(blk)
            inplanes = planes
        layers.append(blocks)
    params["layers"] = layers
    kf = next(it)
    params["fc_w"] = jax.random.normal(kf, (base * 8, num_classes),
                                       jnp.float32) / math.sqrt(base * 8)
    params["fc_b"] = jnp.zeros((num_classes,), jnp.float32)
    return params


def _init_convnet(key, input_size, hidden_size, num_classes, k):
    k1, k2, k3, k4, k5, k6 = jax.random.split(key, 6)
    s1 = 1.0 / math.sqrt(input_size * k)
    s2 = 1.0 / math.sqrt(hidden_size * k)
    return {
        "c1_w": jax.random.normal(k1, (hidden_size, input_size, k), jnp.float32) * s1,
        "c1_b": 0.01 * jax.random.normal(k2, (hidden_size,), jnp.float32),
        "c2_w": jax.random.normal(k3, (hidden_size, hidden_size, k), jnp.float32) * s2,
        "c2_b": 0.01 * jax.random.normal(k4, (hidden_size,), jnp.float32),
        "fc_w": jax.random.normal(k5, (hidden_size, num_classes), jnp.float32)
                / math.sqrt(hidden_size),
        "fc_b": 0.01 * jax.random.normal(k6, (num_classes,), jnp.float32),
    }


def _init_lstm_dir(key, in_size, H):
    k1, k2, k3 = jax.random.split(key, 3)
    s = 1.0 / math.sqrt(H)
    return {
        "w_ih": jax.random.uniform(k1, (in_size, 4 * H), jnp.float32, -s, s),
        "w_hh": jax.random.uniform(k2, (H, 4 * H), jnp.float32, -s, s),
        "b": jax.random.uniform(k3, (4 * H,), jnp.float32, -s, s),
    }


def init_slr_params(key, hidden_size, kernel_size, num_classes, dict_size,
                    resnet_base=8):
    k1, k2, k3, k4, k5 = jax.random.split(key, 5)
    H = hidden_size // 2
    return {
        "kernel_size": kernel_size,
        "H": H,
        "corrnet": _init_resnet(k1, resnet_base, num_classes),
        "convnet": _init_convnet(k2, num_classes, hidden_size, num_classes,
                                 kernel_size),
        "bilstm": {"fwd": _init_lstm_dir(k3, hidden_size, H),
                   "bwd": _init_lstm_dir(k4, hidden_size, H)},
        "cls_w": jax.random.normal(k5, (hidden_size, dict_size), jnp.float32)
                 / math.sqrt(hidden_size),
        "cls_b": jnp.zeros((dict_size,), jnp.float32),
    }


# ----------------------------------------------------------------------------
# Main
# ----------------------------------------------------------------------------

if __name__ == "__main__":
    hidden_size, kernel_size, num_classes, dict_size = 32, 5, 32, 40
    B, T, C, Hh, W = 2, 24, 3, 16, 16

    key = jax.random.PRNGKey(0)
    k_feat, k_par = jax.random.split(key)
    feat = jax.random.normal(k_feat, (B, T, C, Hh, W), jnp.float32)
    vid_len = jnp.array([T, T], jnp.int32)

    params = init_slr_params(k_par, hidden_size, kernel_size,
                             num_classes, dict_size)

    fwd = jax.jit(lambda f, v: slr_forward(f, v, params))
    out = fwd(feat, vid_len)
    jax.block_until_ready(out)

    # light sanity checks on shapes
    assert out["lstm_predictions"].shape == (3, B, hidden_size)
    assert out["sequence_logits"].shape == (3, B, dict_size)
    assert out["conv_logits"].shape == (3, B, num_classes)
    assert out["lstm_hidden"].shape == (2, B, hidden_size // 2)
    print("KERNEL_OK")
</pallas_src>

<mosaic_0001>
module attributes {stable_mosaic.version = 11 : i64} {
  func.func @_mm_kernel(%arg0: i32, %arg1: i32, %arg2: i32, %arg3: memref<256x147xbf16, #tpu.memory_space<vmem>>, %arg4: memref<147x128xbf16, #tpu.memory_space<vmem>>, %arg5: memref<1x128xf32, #tpu.memory_space<vmem>>, %arg6: memref<256x128xf32, #tpu.memory_space<vmem>>, %arg7: memref<256x128xf32, #tpu.memory_space<vmem>>) attributes {dimension_semantics = [#tpu.dimension_semantics<parallel>, #tpu.dimension_semantics<parallel>, #tpu.dimension_semantics<arbitrary>], iteration_bounds = array<i64: 12, 1, 1>, scalar_prefetch = 0 : i64, scratch_operands = 1 : i64, tpu.core_type = #tpu.core_type<tc>, window_params = [{transform_indices = @transform_0, window_bounds = array<i64: 256, 147>}, {transform_indices = @transform_1, window_bounds = array<i64: 147, 128>}, {transform_indices = @transform_2, window_bounds = array<i64: 1, 128>}, {transform_indices = @transform_3, window_bounds = array<i64: 256, 128>}]} {
    %c0_i32 = arith.constant 0 : i32
    %0 = arith.cmpi eq, %arg2, %c0_i32 : i32
    %1 = arith.extui %0 : i1 to i32
    %c0_i32_0 = arith.constant 0 : i32
    %2 = arith.cmpi ne, %1, %c0_i32_0 : i32
    scf.if %2 {
      %cst_10 = arith.constant 0.000000e+00 : f32
      %12 = vector.broadcast %cst_10 : f32 to vector<256x128xf32>
      %c0_11 = arith.constant 0 : index
      %c0_12 = arith.constant 0 : index
      %13 = vector.load %arg7[%c0_11, %c0_12] : memref<256x128xf32, #tpu.memory_space<vmem>>, vector<256x128xf32>
      tpu.vector_store %arg7[%c0_11, %c0_12], %12 {strides = array<i32>} : memref<256x128xf32, #tpu.memory_space<vmem>>, vector<256x128xf32>,
    } else {
    }
    %c0 = arith.constant 0 : index
    %c0_1 = arith.constant 0 : index
    %3 = vector.load %arg7[%c0, %c0_1] : memref<256x128xf32, #tpu.memory_space<vmem>>, vector<256x128xf32>
    %c0_2 = arith.constant 0 : index
    %c0_3 = arith.constant 0 : index
    %4 = vector.load %arg3[%c0_2, %c0_3] : memref<256x147xbf16, #tpu.memory_space<vmem>>, vector<256x147xbf16>
    %c0_4 = arith.constant 0 : index
    %c0_5 = arith.constant 0 : index
    %5 = vector.load %arg4[%c0_4, %c0_5] : memref<147x128xbf16, #tpu.memory_space<vmem>>, vector<147x128xbf16>
    %cst = arith.constant dense<0.000000e+00> : vector<256x128xf32>
    %6 = tpu.matmul %4, %5, %cst {dimension_numbers = #tpu.dot_dimension_numbers<[1], [0], [0], [1], [0, 0, 1, 1], [], []>} : vector<256x147xbf16>, vector<147x128xbf16>, vector<256x128xf32> -> vector<256x128xf32>
    %7 = arith.addf %3, %6 : vector<256x128xf32>
    %c0_6 = arith.constant 0 : index
    %c0_7 = arith.constant 0 : index
    %8 = vector.load %arg7[%c0_6, %c0_7] : memref<256x128xf32, #tpu.memory_space<vmem>>, vector<256x128xf32>
    tpu.vector_store %arg7[%c0_6, %c0_7], %7 {strides = array<i32>} : memref<256x128xf32, #tpu.memory_space<vmem>>, vector<256x128xf32>,
    %c0_i32_8 = arith.constant 0 : i32
    %9 = arith.cmpi eq, %arg2, %c0_i32_8 : i32
    %10 = arith.extui %9 : i1 to i32
    %c0_i32_9 = arith.constant 0 : i32
    %11 = arith.cmpi ne, %10, %c0_i32_9 : i32
    scf.if %11 {
      %c0_10 = arith.constant 0 : index
      %c0_11 = arith.constant 0 : index
      %12 = vector.load %arg7[%c0_10, %c0_11] : memref<256x128xf32, #tpu.memory_space<vmem>>, vector<256x128xf32>
      %c0_12 = arith.constant 0 : index
      %c0_13 = arith.constant 0 : index
      %13 = vector.load %arg5[%c0_12, %c0_13] : memref<1x128xf32, #tpu.memory_space<vmem>>, vector<1x128xf32>
      %14 = vector.broadcast %13 : vector<1x128xf32> to vector<256x128xf32>
      %15 = arith.addf %12, %14 : vector<256x128xf32>
      %cst_14 = arith.constant 0.000000e+00 : f32
      %16 = vector.broadcast %cst_14 : f32 to vector<256x128xf32>
      %17 = arith.maximumf %15, %16 : vector<256x128xf32>
      %c0_15 = arith.constant 0 : index
      %c0_16 = arith.constant 0 : index
      %18 = vector.load %arg6[%c0_15, %c0_16] : memref<256x128xf32, #tpu.memory_space<vmem>>, vector<256x128xf32>
      tpu.vector_store %arg6[%c0_15, %c0_16], %17 {strides = array<i32>} : memref<256x128xf32, #tpu.memory_space<vmem>>, vector<256x128xf32>,
    } else {
    }
    return
  }
  func.func @transform_0(%arg0: i32, %arg1: i32, %arg2: i32) -> (i32, i32) {
    %c0_i32 = arith.constant 0 : i32
    return %arg0, %arg2 : i32, i32
  }
  func.func @transform_1(%arg0: i32, %arg1: i32, %arg2: i32) -> (i32, i32) {
    %c0_i32 = arith.constant 0 : i32
    return %arg2, %arg1 : i32, i32
  }
  func.func @transform_2(%arg0: i32, %arg1: i32, %arg2: i32) -> (i32, i32) {
    %c0_i32 = arith.constant 0 : i32
    %c0_i32_0 = arith.constant 0 : i32
    return %c0_i32, %arg1 : i32, i32
  }
  func.func @transform_3(%arg0: i32, %arg1: i32, %arg2: i32) -> (i32, i32) {
    %c0_i32 = arith.constant 0 : i32
    return %arg0, %arg1 : i32, i32
  }
}

module attributes {stable_mosaic.version = 11 : i64} {
  func.func @_mm_kernel(%arg0: i32, %arg1: i32, %arg2: i32, %arg3: memref<128x72xbf16, #tpu.memory_space<vmem>>, %arg4: memref<72x128xbf16, #tpu.memory_space<vmem>>, %arg5: memref<1x128xf32, #tpu.memory_space<vmem>>, %arg6: memref<128x128xf32, #tpu.memory_space<vmem>>, %arg7: memref<128x128xf32, #tpu.memory_space<vmem>>) attributes {dimension_semantics = [#tpu.dimension_semantics<parallel>, #tpu.dimension_semantics<parallel>, #tpu.dimension_semantics<arbitrary>], iteration_bounds = array<i64: 6, 1, 1>, scalar_prefetch = 0 : i64, scratch_operands = 1 : i64, tpu.core_type = #tpu.core_type<tc>, window_params = [{transform_indices = @transform_0, window_bounds = array<i64: 128, 72>}, {transform_indices = @transform_1, window_bounds = array<i64: 72, 128>}, {transform_indices = @transform_2, window_bounds = array<i64: 1, 128>}, {transform_indices = @transform_3, window_bounds = array<i64: 128, 128>}]} {
    %c0_i32 = arith.constant 0 : i32
    %0 = arith.cmpi eq, %arg2, %c0_i32 : i32
    %1 = arith.extui %0 : i1 to i32
    %c0_i32_0 = arith.constant 0 : i32
    %2 = arith.cmpi ne, %1, %c0_i32_0 : i32
    scf.if %2 {
      %cst_10 = arith.constant 0.000000e+00 : f32
      %12 = vector.broadcast %cst_10 : f32 to vector<128x128xf32>
      %c0_11 = arith.constant 0 : index
      %c0_12 = arith.constant 0 : index
      %13 = vector.load %arg7[%c0_11, %c0_12] : memref<128x128xf32, #tpu.memory_space<vmem>>, vector<128x128xf32>
      tpu.vector_store %arg7[%c0_11, %c0_12], %12 {strides = array<i32>} : memref<128x128xf32, #tpu.memory_space<vmem>>, vector<128x128xf32>,
    } else {
    }
    %c0 = arith.constant 0 : index
    %c0_1 = arith.constant 0 : index
    %3 = vector.load %arg7[%c0, %c0_1] : memref<128x128xf32, #tpu.memory_space<vmem>>, vector<128x128xf32>
    %c0_2 = arith.constant 0 : index
    %c0_3 = arith.constant 0 : index
    %4 = vector.load %arg3[%c0_2, %c0_3] : memref<128x72xbf16, #tpu.memory_space<vmem>>, vector<128x72xbf16>
    %c0_4 = arith.constant 0 : index
    %c0_5 = arith.constant 0 : index
    %5 = vector.load %arg4[%c0_4, %c0_5] : memref<72x128xbf16, #tpu.memory_space<vmem>>, vector<72x128xbf16>
    %cst = arith.constant dense<0.000000e+00> : vector<128x128xf32>
    %6 = tpu.matmul %4, %5, %cst {dimension_numbers = #tpu.dot_dimension_numbers<[1], [0], [0], [1], [0, 0, 1, 1], [], []>} : vector<128x72xbf16>, vector<72x128xbf16>, vector<128x128xf32> -> vector<128x128xf32>
    %7 = arith.addf %3, %6 : vector<128x128xf32>
    %c0_6 = arith.constant 0 : index
    %c0_7 = arith.constant 0 : index
    %8 = vector.load %arg7[%c0_6, %c0_7] : memref<128x128xf32, #tpu.memory_space<vmem>>, vector<128x128xf32>
    tpu.vector_store %arg7[%c0_6, %c0_7], %7 {strides = array<i32>} : memref<128x128xf32, #tpu.memory_space<vmem>>, vector<128x128xf32>,
    %c0_i32_8 = arith.constant 0 : i32
    %9 = arith.cmpi eq, %arg2, %c0_i32_8 : i32
    %10 = arith.extui %9 : i1 to i32
    %c0_i32_9 = arith.constant 0 : i32
    %11 = arith.cmpi ne, %10, %c0_i32_9 : i32
    scf.if %11 {
      %c0_10 = arith.constant 0 : index
      %c0_11 = arith.constant 0 : index
      %12 = vector.load %arg7[%c0_10, %c0_11] : memref<128x128xf32, #tpu.memory_space<vmem>>, vector<128x128xf32>
      %c0_12 = arith.constant 0 : index
      %c0_13 = arith.constant 0 : index
      %13 = vector.load %arg5[%c0_12, %c0_13] : memref<1x128xf32, #tpu.memory_space<vmem>>, vector<1x128xf32>
      %14 = vector.broadcast %13 : vector<1x128xf32> to vector<128x128xf32>
      %15 = arith.addf %12, %14 : vector<128x128xf32>
      %cst_14 = arith.constant 0.000000e+00 : f32
      %16 = vector.broadcast %cst_14 : f32 to vector<128x128xf32>
      %17 = arith.maximumf %15, %16 : vector<128x128xf32>
      %c0_15 = arith.constant 0 : index
      %c0_16 = arith.constant 0 : index
      %18 = vector.load %arg6[%c0_15, %c0_16] : memref<128x128xf32, #tpu.memory_space<vmem>>, vector<128x128xf32>
      tpu.vector_store %arg6[%c0_15, %c0_16], %17 {strides = array<i32>} : memref<128x128xf32, #tpu.memory_space<vmem>>, vector<128x128xf32>,
    } else {
    }
    return
  }
  func.func @transform_0(%arg0: i32, %arg1: i32, %arg2: i32) -> (i32, i32) {
    %c0_i32 = arith.constant 0 : i32
    return %arg0, %arg2 : i32, i32
  }
  func.func @transform_1(%arg0: i32, %arg1: i32, %arg2: i32) -> (i32, i32) {
    %c0_i32 = arith.constant 0 : i32
    return %arg2, %arg1 : i32, i32
  }
  func.func @transform_2(%arg0: i32, %arg1: i32, %arg2: i32) -> (i32, i32) {
    %c0_i32 = arith.constant 0 : i32
    %c0_i32_0 = arith.constant 0 : i32
    return %c0_i32, %arg1 : i32, i32
  }
  func.func @transform_3(%arg0: i32, %arg1: i32, %arg2: i32) -> (i32, i32) {
    %c0_i32 = arith.constant 0 : i32
    return %arg0, %arg1 : i32, i32
  }
}

module attributes {stable_mosaic.version = 11 : i64} {
  func.func @_mm_kernel(%arg0: i32, %arg1: i32, %arg2: i32, %arg3: memref<128x72xbf16, #tpu.memory_space<vmem>>, %arg4: memref<72x128xbf16, #tpu.memory_space<vmem>>, %arg5: memref<1x128xf32, #tpu.memory_space<vmem>>, %arg6: memref<128x128xf32, #tpu.memory_space<vmem>>, %arg7: memref<128x128xf32, #tpu.memory_space<vmem>>, %arg8: memref<128x128xf32, #tpu.memory_space<vmem>>) attributes {dimension_semantics = [#tpu.dimension_semantics<parallel>, #tpu.dimension_semantics<parallel>, #tpu.dimension_semantics<arbitrary>], iteration_bounds = array<i64: 6, 1, 1>, scalar_prefetch = 0 : i64, scratch_operands = 1 : i64, tpu.core_type = #tpu.core_type<tc>, window_params = [{transform_indices = @transform_0, window_bounds = array<i64: 128, 72>}, {transform_indices = @transform_1, window_bounds = array<i64: 72, 128>}, {transform_indices = @transform_2, window_bounds = array<i64: 1, 128>}, {transform_indices = @transform_3, window_bounds = array<i64: 128, 128>}, {transform_indices = @transform_4, window_bounds = array<i64: 128, 128>}]} {
    %c0_i32 = arith.constant 0 : i32
    %0 = arith.cmpi eq, %arg2, %c0_i32 : i32
    %1 = arith.extui %0 : i1 to i32
    %c0_i32_0 = arith.constant 0 : i32
    %2 = arith.cmpi ne, %1, %c0_i32_0 : i32
    scf.if %2 {
      %cst_10 = arith.constant 0.000000e+00 : f32
      %12 = vector.broadcast %cst_10 : f32 to vector<128x128xf32>
      %c0_11 = arith.constant 0 : index
      %c0_12 = arith.constant 0 : index
      %13 = vector.load %arg8[%c0_11, %c0_12] : memref<128x128xf32, #tpu.memory_space<vmem>>, vector<128x128xf32>
      tpu.vector_store %arg8[%c0_11, %c0_12], %12 {strides = array<i32>} : memref<128x128xf32, #tpu.memory_space<vmem>>, vector<128x128xf32>,
    } else {
    }
    %c0 = arith.constant 0 : index
    %c0_1 = arith.constant 0 : index
    %3 = vector.load %arg8[%c0, %c0_1] : memref<128x128xf32, #tpu.memory_space<vmem>>, vector<128x128xf32>
    %c0_2 = arith.constant 0 : index
    %c0_3 = arith.constant 0 : index
    %4 = vector.load %arg3[%c0_2, %c0_3] : memref<128x72xbf16, #tpu.memory_space<vmem>>, vector<128x72xbf16>
    %c0_4 = arith.constant 0 : index
    %c0_5 = arith.constant 0 : index
    %5 = vector.load %arg4[%c0_4, %c0_5] : memref<72x128xbf16, #tpu.memory_space<vmem>>, vector<72x128xbf16>
    %cst = arith.constant dense<0.000000e+00> : vector<128x128xf32>
    %6 = tpu.matmul %4, %5, %cst {dimension_numbers = #tpu.dot_dimension_numbers<[1], [0], [0], [1], [0, 0, 1, 1], [], []>} : vector<128x72xbf16>, vector<72x128xbf16>, vector<128x128xf32> -> vector<128x128xf32>
    %7 = arith.addf %3, %6 : vector<128x128xf32>
    %c0_6 = arith.constant 0 : index
    %c0_7 = arith.constant 0 : index
    %8 = vector.load %arg8[%c0_6, %c0_7] : memref<128x128xf32, #tpu.memory_space<vmem>>, vector<128x128xf32>
    tpu.vector_store %arg8[%c0_6, %c0_7], %7 {strides = array<i32>} : memref<128x128xf32, #tpu.memory_space<vmem>>, vector<128x128xf32>,
    %c0_i32_8 = arith.constant 0 : i32
    %9 = arith.cmpi eq, %arg2, %c0_i32_8 : i32
    %10 = arith.extui %9 : i1 to i32
    %c0_i32_9 = arith.constant 0 : i32
    %11 = arith.cmpi ne, %10, %c0_i32_9 : i32
    scf.if %11 {
      %c0_10 = arith.constant 0 : index
      %c0_11 = arith.constant 0 : index
      %12 = vector.load %arg8[%c0_10, %c0_11] : memref<128x128xf32, #tpu.memory_space<vmem>>, vector<128x128xf32>
      %c0_12 = arith.constant 0 : index
      %c0_13 = arith.constant 0 : index
      %13 = vector.load %arg5[%c0_12, %c0_13] : memref<1x128xf32, #tpu.memory_space<vmem>>, vector<1x128xf32>
      %14 = vector.broadcast %13 : vector<1x128xf32> to vector<128x128xf32>
      %15 = arith.addf %12, %14 : vector<128x128xf32>
      %c0_14 = arith.constant 0 : index
      %c0_15 = arith.constant 0 : index
      %16 = vector.load %arg6[%c0_14, %c0_15] : memref<128x128xf32, #tpu.memory_space<vmem>>, vector<128x128xf32>
      %17 = arith.addf %15, %16 : vector<128x128xf32>
      %cst_16 = arith.constant 0.000000e+00 : f32
      %18 = vector.broadcast %cst_16 : f32 to vector<128x128xf32>
      %19 = arith.maximumf %17, %18 : vector<128x128xf32>
      %c0_17 = arith.constant 0 : index
      %c0_18 = arith.constant 0 : index
      %20 = vector.load %arg7[%c0_17, %c0_18] : memref<128x128xf32, #tpu.memory_space<vmem>>, vector<128x128xf32>
      tpu.vector_store %arg7[%c0_17, %c0_18], %19 {strides = array<i32>} : memref<128x128xf32, #tpu.memory_space<vmem>>, vector<128x128xf32>,
    } else {
    }
    return
  }
  func.func @transform_0(%arg0: i32, %arg1: i32, %arg2: i32) -> (i32, i32) {
    %c0_i32 = arith.constant 0 : i32
    return %arg0, %arg2 : i32, i32
  }
  func.func @transform_1(%arg0: i32, %arg1: i32, %arg2: i32) -> (i32, i32) {
    %c0_i32 = arith.constant 0 : i32
    return %arg2, %arg1 : i32, i32
  }
  func.func @transform_2(%arg0: i32, %arg1: i32, %arg2: i32) -> (i32, i32) {
    %c0_i32 = arith.constant 0 : i32
    %c0_i32_0 = arith.constant 0 : i32
    return %c0_i32, %arg1 : i32, i32
  }
  func.func @transform_3(%arg0: i32, %arg1: i32, %arg2: i32) -> (i32, i32) {
    %c0_i32 = arith.constant 0 : i32
    return %arg0, %arg1 : i32, i32
  }
  func.func @transform_4(%arg0: i32, %arg1: i32, %arg2: i32) -> (i32, i32) {
    %c0_i32 = arith.constant 0 : i32
    return %arg0, %arg1 : i32, i32
  }
}

module attributes {stable_mosaic.version = 11 : i64} {
  func.func @_mm_kernel(%arg0: i32, %arg1: i32, %arg2: i32, %arg3: memref<128x72xbf16, #tpu.memory_space<vmem>>, %arg4: memref<72x128xbf16, #tpu.memory_space<vmem>>, %arg5: memref<1x128xf32, #tpu.memory_space<vmem>>, %arg6: memref<128x128xf32, #tpu.memory_space<vmem>>, %arg7: memref<128x128xf32, #tpu.memory_space<vmem>>) attributes {dimension_semantics = [#tpu.dimension_semantics<parallel>, #tpu.dimension_semantics<parallel>, #tpu.dimension_semantics<arbitrary>], iteration_bounds = array<i64: 2, 1, 1>, scalar_prefetch = 0 : i64, scratch_operands = 1 : i64, tpu.core_type = #tpu.core_type<tc>, window_params = [{transform_indices = @transform_0, window_bounds = array<i64: 128, 72>}, {transform_indices = @transform_1, window_bounds = array<i64: 72, 128>}, {transform_indices = @transform_2, window_bounds = array<i64: 1, 128>}, {transform_indices = @transform_3, window_bounds = array<i64: 128, 128>}]} {
    %c0_i32 = arith.constant 0 : i32
    %0 = arith.cmpi eq, %arg2, %c0_i32 : i32
    %1 = arith.extui %0 : i1 to i32
    %c0_i32_0 = arith.constant 0 : i32
    %2 = arith.cmpi ne, %1, %c0_i32_0 : i32
    scf.if %2 {
      %cst_10 = arith.constant 0.000000e+00 : f32
      %12 = vector.broadcast %cst_10 : f32 to vector<128x128xf32>
      %c0_11 = arith.constant 0 : index
      %c0_12 = arith.constant 0 : index
      %13 = vector.load %arg7[%c0_11, %c0_12] : memref<128x128xf32, #tpu.memory_space<vmem>>, vector<128x128xf32>
      tpu.vector_store %arg7[%c0_11, %c0_12], %12 {strides = array<i32>} : memref<128x128xf32, #tpu.memory_space<vmem>>, vector<128x128xf32>,
    } else {
    }
    %c0 = arith.constant 0 : index
    %c0_1 = arith.constant 0 : index
    %3 = vector.load %arg7[%c0, %c0_1] : memref<128x128xf32, #tpu.memory_space<vmem>>, vector<128x128xf32>
    %c0_2 = arith.constant 0 : index
    %c0_3 = arith.constant 0 : index
    %4 = vector.load %arg3[%c0_2, %c0_3] : memref<128x72xbf16, #tpu.memory_space<vmem>>, vector<128x72xbf16>
    %c0_4 = arith.constant 0 : index
    %c0_5 = arith.constant 0 : index
    %5 = vector.load %arg4[%c0_4, %c0_5] : memref<72x128xbf16, #tpu.memory_space<vmem>>, vector<72x128xbf16>
    %cst = arith.constant dense<0.000000e+00> : vector<128x128xf32>
    %6 = tpu.matmul %4, %5, %cst {dimension_numbers = #tpu.dot_dimension_numbers<[1], [0], [0], [1], [0, 0, 1, 1], [], []>} : vector<128x72xbf16>, vector<72x128xbf16>, vector<128x128xf32> -> vector<128x128xf32>
    %7 = arith.addf %3, %6 : vector<128x128xf32>
    %c0_6 = arith.constant 0 : index
    %c0_7 = arith.constant 0 : index
    %8 = vector.load %arg7[%c0_6, %c0_7] : memref<128x128xf32, #tpu.memory_space<vmem>>, vector<128x128xf32>
    tpu.vector_store %arg7[%c0_6, %c0_7], %7 {strides = array<i32>} : memref<128x128xf32, #tpu.memory_space<vmem>>, vector<128x128xf32>,
    %c0_i32_8 = arith.constant 0 : i32
    %9 = arith.cmpi eq, %arg2, %c0_i32_8 : i32
    %10 = arith.extui %9 : i1 to i32
    %c0_i32_9 = arith.constant 0 : i32
    %11 = arith.cmpi ne, %10, %c0_i32_9 : i32
    scf.if %11 {
      %c0_10 = arith.constant 0 : index
      %c0_11 = arith.constant 0 : index
      %12 = vector.load %arg7[%c0_10, %c0_11] : memref<128x128xf32, #tpu.memory_space<vmem>>, vector<128x128xf32>
      %c0_12 = arith.constant 0 : index
      %c0_13 = arith.constant 0 : index
      %13 = vector.load %arg5[%c0_12, %c0_13] : memref<1x128xf32, #tpu.memory_space<vmem>>, vector<1x128xf32>
      %14 = vector.broadcast %13 : vector<1x128xf32> to vector<128x128xf32>
      %15 = arith.addf %12, %14 : vector<128x128xf32>
      %cst_14 = arith.constant 0.000000e+00 : f32
      %16 = vector.broadcast %cst_14 : f32 to vector<128x128xf32>
      %17 = arith.maximumf %15, %16 : vector<128x128xf32>
      %c0_15 = arith.constant 0 : index
      %c0_16 = arith.constant 0 : index
      %18 = vector.load %arg6[%c0_15, %c0_16] : memref<128x128xf32, #tpu.memory_space<vmem>>, vector<128x128xf32>
      tpu.vector_store %arg6[%c0_15, %c0_16], %17 {strides = array<i32>} : memref<128x128xf32, #tpu.memory_space<vmem>>, vector<128x128xf32>,
    } else {
    }
    return
  }
  func.func @transform_0(%arg0: i32, %arg1: i32, %arg2: i32) -> (i32, i32) {
    %c0_i32 = arith.constant 0 : i32
    return %arg0, %arg2 : i32, i32
  }
  func.func @transform_1(%arg0: i32, %arg1: i32, %arg2: i32) -> (i32, i32) {
    %c0_i32 = arith.constant 0 : i32
    return %arg2, %arg1 : i32, i32
  }
  func.func @transform_2(%arg0: i32, %arg1: i32, %arg2: i32) -> (i32, i32) {
    %c0_i32 = arith.constant 0 : i32
    %c0_i32_0 = arith.constant 0 : i32
    return %c0_i32, %arg1 : i32, i32
  }
  func.func @transform_3(%arg0: i32, %arg1: i32, %arg2: i32) -> (i32, i32) {
    %c0_i32 = arith.constant 0 : i32
    return %arg0, %arg1 : i32, i32
  }
}

module attributes {stable_mosaic.version = 11 : i64} {
  func.func @_mm_kernel(%arg0: i32, %arg1: i32, %arg2: i32, %arg3: memref<128x8xbf16, #tpu.memory_space<vmem>>, %arg4: memref<8x128xbf16, #tpu.memory_space<vmem>>, %arg5: memref<1x128xf32, #tpu.memory_space<vmem>>, %arg6: memref<128x128xf32, #tpu.memory_space<vmem>>, %arg7: memref<128x128xf32, #tpu.memory_space<vmem>>) attributes {dimension_semantics = [#tpu.dimension_semantics<parallel>, #tpu.dimension_semantics<parallel>, #tpu.dimension_semantics<arbitrary>], iteration_bounds = array<i64: 2, 1, 1>, scalar_prefetch = 0 : i64, scratch_operands = 1 : i64, tpu.core_type = #tpu.core_type<tc>, window_params = [{transform_indices = @transform_0, window_bounds = array<i64: 128, 8>}, {transform_indices = @transform_1, window_bounds = array<i64: 8, 128>}, {transform_indices = @transform_2, window_bounds = array<i64: 1, 128>}, {transform_indices = @transform_3, window_bounds = array<i64: 128, 128>}]} {
    %c0_i32 = arith.constant 0 : i32
    %0 = arith.cmpi eq, %arg2, %c0_i32 : i32
    %1 = arith.extui %0 : i1 to i32
    %c0_i32_0 = arith.constant 0 : i32
    %2 = arith.cmpi ne, %1, %c0_i32_0 : i32
    scf.if %2 {
      %cst_10 = arith.constant 0.000000e+00 : f32
      %12 = vector.broadcast %cst_10 : f32 to vector<128x128xf32>
      %c0_11 = arith.constant 0 : index
      %c0_12 = arith.constant 0 : index
      %13 = vector.load %arg7[%c0_11, %c0_12] : memref<128x128xf32, #tpu.memory_space<vmem>>, vector<128x128xf32>
      tpu.vector_store %arg7[%c0_11, %c0_12], %12 {strides = array<i32>} : memref<128x128xf32, #tpu.memory_space<vmem>>, vector<128x128xf32>,
    } else {
    }
    %c0 = arith.constant 0 : index
    %c0_1 = arith.constant 0 : index
    %3 = vector.load %arg7[%c0, %c0_1] : memref<128x128xf32, #tpu.memory_space<vmem>>, vector<128x128xf32>
    %c0_2 = arith.constant 0 : index
    %c0_3 = arith.constant 0 : index
    %4 = vector.load %arg3[%c0_2, %c0_3] : memref<128x8xbf16, #tpu.memory_space<vmem>>, vector<128x8xbf16>
    %c0_4 = arith.constant 0 : index
    %c0_5 = arith.constant 0 : index
    %5 = vector.load %arg4[%c0_4, %c0_5] : memref<8x128xbf16, #tpu.memory_space<vmem>>, vector<8x128xbf16>
    %cst = arith.constant dense<0.000000e+00> : vector<128x128xf32>
    %6 = tpu.matmul %4, %5, %cst {dimension_numbers = #tpu.dot_dimension_numbers<[1], [0], [0], [1], [0, 0, 1, 1], [], []>} : vector<128x8xbf16>, vector<8x128xbf16>, vector<128x128xf32> -> vector<128x128xf32>
    %7 = arith.addf %3, %6 : vector<128x128xf32>
    %c0_6 = arith.constant 0 : index
    %c0_7 = arith.constant 0 : index
    %8 = vector.load %arg7[%c0_6, %c0_7] : memref<128x128xf32, #tpu.memory_space<vmem>>, vector<128x128xf32>
    tpu.vector_store %arg7[%c0_6, %c0_7], %7 {strides = array<i32>} : memref<128x128xf32, #tpu.memory_space<vmem>>, vector<128x128xf32>,
    %c0_i32_8 = arith.constant 0 : i32
    %9 = arith.cmpi eq, %arg2, %c0_i32_8 : i32
    %10 = arith.extui %9 : i1 to i32
    %c0_i32_9 = arith.constant 0 : i32
    %11 = arith.cmpi ne, %10, %c0_i32_9 : i32
    scf.if %11 {
      %c0_10 = arith.constant 0 : index
      %c0_11 = arith.constant 0 : index
      %12 = vector.load %arg7[%c0_10, %c0_11] : memref<128x128xf32, #tpu.memory_space<vmem>>, vector<128x128xf32>
      %c0_12 = arith.constant 0 : index
      %c0_13 = arith.constant 0 : index
      %13 = vector.load %arg5[%c0_12, %c0_13] : memref<1x128xf32, #tpu.memory_space<vmem>>, vector<1x128xf32>
      %14 = vector.broadcast %13 : vector<1x128xf32> to vector<128x128xf32>
      %15 = arith.addf %12, %14 : vector<128x128xf32>
      %c0_14 = arith.constant 0 : index
      %c0_15 = arith.constant 0 : index
      %16 = vector.load %arg6[%c0_14, %c0_15] : memref<128x128xf32, #tpu.memory_space<vmem>>, vector<128x128xf32>
      tpu.vector_store %arg6[%c0_14, %c0_15], %15 {strides = array<i32>} : memref<128x128xf32, #tpu.memory_space<vmem>>, vector<128x128xf32>,
    } else {
    }
    return
  }
  func.func @transform_0(%arg0: i32, %arg1: i32, %arg2: i32) -> (i32, i32) {
    %c0_i32 = arith.constant 0 : i32
    return %arg0, %arg2 : i32, i32
  }
  func.func @transform_1(%arg0: i32, %arg1: i32, %arg2: i32) -> (i32, i32) {
    %c0_i32 = arith.constant 0 : i32
    return %arg2, %arg1 : i32, i32
  }
  func.func @transform_2(%arg0: i32, %arg1: i32, %arg2: i32) -> (i32, i32) {
    %c0_i32 = arith.constant 0 : i32
    %c0_i32_0 = arith.constant 0 : i32
    return %c0_i32, %arg1 : i32, i32
  }
  func.func @transform_3(%arg0: i32, %arg1: i32, %arg2: i32) -> (i32, i32) {
    %c0_i32 = arith.constant 0 : i32
    return %arg0, %arg1 : i32, i32
  }
}

module attributes {stable_mosaic.version = 11 : i64} {
  func.func @_mm_kernel(%arg0: i32, %arg1: i32, %arg2: i32, %arg3: memref<128x144xbf16, #tpu.memory_space<vmem>>, %arg4: memref<144x128xbf16, #tpu.memory_space<vmem>>, %arg5: memref<1x128xf32, #tpu.memory_space<vmem>>, %arg6: memref<128x128xf32, #tpu.memory_space<vmem>>, %arg7: memref<128x128xf32, #tpu.memory_space<vmem>>, %arg8: memref<128x128xf32, #tpu.memory_space<vmem>>) attributes {dimension_semantics = [#tpu.dimension_semantics<parallel>, #tpu.dimension_semantics<parallel>, #tpu.dimension_semantics<arbitrary>], iteration_bounds = array<i64: 2, 1, 1>, scalar_prefetch = 0 : i64, scratch_operands = 1 : i64, tpu.core_type = #tpu.core_type<tc>, window_params = [{transform_indices = @transform_0, window_bounds = array<i64: 128, 144>}, {transform_indices = @transform_1, window_bounds = array<i64: 144, 128>}, {transform_indices = @transform_2, window_bounds = array<i64: 1, 128>}, {transform_indices = @transform_3, window_bounds = array<i64: 128, 128>}, {transform_indices = @transform_4, window_bounds = array<i64: 128, 128>}]} {
    %c0_i32 = arith.constant 0 : i32
    %0 = arith.cmpi eq, %arg2, %c0_i32 : i32
    %1 = arith.extui %0 : i1 to i32
    %c0_i32_0 = arith.constant 0 : i32
    %2 = arith.cmpi ne, %1, %c0_i32_0 : i32
    scf.if %2 {
      %cst_10 = arith.constant 0.000000e+00 : f32
      %12 = vector.broadcast %cst_10 : f32 to vector<128x128xf32>
      %c0_11 = arith.constant 0 : index
      %c0_12 = arith.constant 0 : index
      %13 = vector.load %arg8[%c0_11, %c0_12] : memref<128x128xf32, #tpu.memory_space<vmem>>, vector<128x128xf32>
      tpu.vector_store %arg8[%c0_11, %c0_12], %12 {strides = array<i32>} : memref<128x128xf32, #tpu.memory_space<vmem>>, vector<128x128xf32>,
    } else {
    }
    %c0 = arith.constant 0 : index
    %c0_1 = arith.constant 0 : index
    %3 = vector.load %arg8[%c0, %c0_1] : memref<128x128xf32, #tpu.memory_space<vmem>>, vector<128x128xf32>
    %c0_2 = arith.constant 0 : index
    %c0_3 = arith.constant 0 : index
    %4 = vector.load %arg3[%c0_2, %c0_3] : memref<128x144xbf16, #tpu.memory_space<vmem>>, vector<128x144xbf16>
    %c0_4 = arith.constant 0 : index
    %c0_5 = arith.constant 0 : index
    %5 = vector.load %arg4[%c0_4, %c0_5] : memref<144x128xbf16, #tpu.memory_space<vmem>>, vector<144x128xbf16>
    %cst = arith.constant dense<0.000000e+00> : vector<128x128xf32>
    %6 = tpu.matmul %4, %5, %cst {dimension_numbers = #tpu.dot_dimension_numbers<[1], [0], [0], [1], [0, 0, 1, 1], [], []>} : vector<128x144xbf16>, vector<144x128xbf16>, vector<128x128xf32> -> vector<128x128xf32>
    %7 = arith.addf %3, %6 : vector<128x128xf32>
    %c0_6 = arith.constant 0 : index
    %c0_7 = arith.constant 0 : index
    %8 = vector.load %arg8[%c0_6, %c0_7] : memref<128x128xf32, #tpu.memory_space<vmem>>, vector<128x128xf32>
    tpu.vector_store %arg8[%c0_6, %c0_7], %7 {strides = array<i32>} : memref<128x128xf32, #tpu.memory_space<vmem>>, vector<128x128xf32>,
    %c0_i32_8 = arith.constant 0 : i32
    %9 = arith.cmpi eq, %arg2, %c0_i32_8 : i32
    %10 = arith.extui %9 : i1 to i32
    %c0_i32_9 = arith.constant 0 : i32
    %11 = arith.cmpi ne, %10, %c0_i32_9 : i32
    scf.if %11 {
      %c0_10 = arith.constant 0 : index
      %c0_11 = arith.constant 0 : index
      %12 = vector.load %arg8[%c0_10, %c0_11] : memref<128x128xf32, #tpu.memory_space<vmem>>, vector<128x128xf32>
      %c0_12 = arith.constant 0 : index
      %c0_13 = arith.constant 0 : index
      %13 = vector.load %arg5[%c0_12, %c0_13] : memref<1x128xf32, #tpu.memory_space<vmem>>, vector<1x128xf32>
      %14 = vector.broadcast %13 : vector<1x128xf32> to vector<128x128xf32>
      %15 = arith.addf %12, %14 : vector<128x128xf32>
      %c0_14 = arith.constant 0 : index
      %c0_15 = arith.constant 0 : index
      %16 = vector.load %arg6[%c0_14, %c0_15] : memref<128x128xf32, #tpu.memory_space<vmem>>, vector<128x128xf32>
      %17 = arith.addf %15, %16 : vector<128x128xf32>
      %cst_16 = arith.constant 0.000000e+00 : f32
      %18 = vector.broadcast %cst_16 : f32 to vector<128x128xf32>
      %19 = arith.maximumf %17, %18 : vector<128x128xf32>
      %c0_17 = arith.constant 0 : index
      %c0_18 = arith.constant 0 : index
      %20 = vector.load %arg7[%c0_17, %c0_18] : memref<128x128xf32, #tpu.memory_space<vmem>>, vector<128x128xf32>
      tpu.vector_store %arg7[%c0_17, %c0_18], %19 {strides = array<i32>} : memref<128x128xf32, #tpu.memory_space<vmem>>, vector<128x128xf32>,
    } else {
    }
    return
  }
  func.func @transform_0(%arg0: i32, %arg1: i32, %arg2: i32) -> (i32, i32) {
    %c0_i32 = arith.constant 0 : i32
    return %arg0, %arg2 : i32, i32
  }
  func.func @transform_1(%arg0: i32, %arg1: i32, %arg2: i32) -> (i32, i32) {
    %c0_i32 = arith.constant 0 : i32
    return %arg2, %arg1 : i32, i32
  }
  func.func @transform_2(%arg0: i32, %arg1: i32, %arg2: i32) -> (i32, i32) {
    %c0_i32 = arith.constant 0 : i32
    %c0_i32_0 = arith.constant 0 : i32
    return %c0_i32, %arg1 : i32, i32
  }
  func.func @transform_3(%arg0: i32, %arg1: i32, %arg2: i32) -> (i32, i32) {
    %c0_i32 = arith.constant 0 : i32
    return %arg0, %arg1 : i32, i32
  }
  func.func @transform_4(%arg0: i32, %arg1: i32, %arg2: i32) -> (i32, i32) {
    %c0_i32 = arith.constant 0 : i32
    return %arg0, %arg1 : i32, i32
  }
}

module attributes {stable_mosaic.version = 11 : i64} {
  func.func @_mm_kernel(%arg0: i32, %arg1: i32, %arg2: i32, %arg3: memref<128x144xbf16, #tpu.memory_space<vmem>>, %arg4: memref<144x128xbf16, #tpu.memory_space<vmem>>, %arg5: memref<1x128xf32, #tpu.memory_space<vmem>>, %arg6: memref<128x128xf32, #tpu.memory_space<vmem>>, %arg7: memref<128x128xf32, #tpu.memory_space<vmem>>) attributes {dimension_semantics = [#tpu.dimension_semantics<parallel>, #tpu.dimension_semantics<parallel>, #tpu.dimension_semantics<arbitrary>], iteration_bounds = array<i64: 2, 1, 1>, scalar_prefetch = 0 : i64, scratch_operands = 1 : i64, tpu.core_type = #tpu.core_type<tc>, window_params = [{transform_indices = @transform_0, window_bounds = array<i64: 128, 144>}, {transform_indices = @transform_1, window_bounds = array<i64: 144, 128>}, {transform_indices = @transform_2, window_bounds = array<i64: 1, 128>}, {transform_indices = @transform_3, window_bounds = array<i64: 128, 128>}]} {
    %c0_i32 = arith.constant 0 : i32
    %0 = arith.cmpi eq, %arg2, %c0_i32 : i32
    %1 = arith.extui %0 : i1 to i32
    %c0_i32_0 = arith.constant 0 : i32
    %2 = arith.cmpi ne, %1, %c0_i32_0 : i32
    scf.if %2 {
      %cst_10 = arith.constant 0.000000e+00 : f32
      %12 = vector.broadcast %cst_10 : f32 to vector<128x128xf32>
      %c0_11 = arith.constant 0 : index
      %c0_12 = arith.constant 0 : index
      %13 = vector.load %arg7[%c0_11, %c0_12] : memref<128x128xf32, #tpu.memory_space<vmem>>, vector<128x128xf32>
      tpu.vector_store %arg7[%c0_11, %c0_12], %12 {strides = array<i32>} : memref<128x128xf32, #tpu.memory_space<vmem>>, vector<128x128xf32>,
    } else {
    }
    %c0 = arith.constant 0 : index
    %c0_1 = arith.constant 0 : index
    %3 = vector.load %arg7[%c0, %c0_1] : memref<128x128xf32, #tpu.memory_space<vmem>>, vector<128x128xf32>
    %c0_2 = arith.constant 0 : index
    %c0_3 = arith.constant 0 : index
    %4 = vector.load %arg3[%c0_2, %c0_3] : memref<128x144xbf16, #tpu.memory_space<vmem>>, vector<128x144xbf16>
    %c0_4 = arith.constant 0 : index
    %c0_5 = arith.constant 0 : index
    %5 = vector.load %arg4[%c0_4, %c0_5] : memref<144x128xbf16, #tpu.memory_space<vmem>>, vector<144x128xbf16>
    %cst = arith.constant dense<0.000000e+00> : vector<128x128xf32>
    %6 = tpu.matmul %4, %5, %cst {dimension_numbers = #tpu.dot_dimension_numbers<[1], [0], [0], [1], [0, 0, 1, 1], [], []>} : vector<128x144xbf16>, vector<144x128xbf16>, vector<128x128xf32> -> vector<128x128xf32>
    %7 = arith.addf %3, %6 : vector<128x128xf32>
    %c0_6 = arith.constant 0 : index
    %c0_7 = arith.constant 0 : index
    %8 = vector.load %arg7[%c0_6, %c0_7] : memref<128x128xf32, #tpu.memory_space<vmem>>, vector<128x128xf32>
    tpu.vector_store %arg7[%c0_6, %c0_7], %7 {strides = array<i32>} : memref<128x128xf32, #tpu.memory_space<vmem>>, vector<128x128xf32>,
    %c0_i32_8 = arith.constant 0 : i32
    %9 = arith.cmpi eq, %arg2, %c0_i32_8 : i32
    %10 = arith.extui %9 : i1 to i32
    %c0_i32_9 = arith.constant 0 : i32
    %11 = arith.cmpi ne, %10, %c0_i32_9 : i32
    scf.if %11 {
      %c0_10 = arith.constant 0 : index
      %c0_11 = arith.constant 0 : index
      %12 = vector.load %arg7[%c0_10, %c0_11] : memref<128x128xf32, #tpu.memory_space<vmem>>, vector<128x128xf32>
      %c0_12 = arith.constant 0 : index
      %c0_13 = arith.constant 0 : index
      %13 = vector.load %arg5[%c0_12, %c0_13] : memref<1x128xf32, #tpu.memory_space<vmem>>, vector<1x128xf32>
      %14 = vector.broadcast %13 : vector<1x128xf32> to vector<128x128xf32>
      %15 = arith.addf %12, %14 : vector<128x128xf32>
      %cst_14 = arith.constant 0.000000e+00 : f32
      %16 = vector.broadcast %cst_14 : f32 to vector<128x128xf32>
      %17 = arith.maximumf %15, %16 : vector<128x128xf32>
      %c0_15 = arith.constant 0 : index
      %c0_16 = arith.constant 0 : index
      %18 = vector.load %arg6[%c0_15, %c0_16] : memref<128x128xf32, #tpu.memory_space<vmem>>, vector<128x128xf32>
      tpu.vector_store %arg6[%c0_15, %c0_16], %17 {strides = array<i32>} : memref<128x128xf32, #tpu.memory_space<vmem>>, vector<128x128xf32>,
    } else {
    }
    return
  }
  func.func @transform_0(%arg0: i32, %arg1: i32, %arg2: i32) -> (i32, i32) {
    %c0_i32 = arith.constant 0 : i32
    return %arg0, %arg2 : i32, i32
  }
  func.func @transform_1(%arg0: i32, %arg1: i32, %arg2: i32) -> (i32, i32) {
    %c0_i32 = arith.constant 0 : i32
    return %arg2, %arg1 : i32, i32
  }
  func.func @transform_2(%arg0: i32, %arg1: i32, %arg2: i32) -> (i32, i32) {
    %c0_i32 = arith.constant 0 : i32
    %c0_i32_0 = arith.constant 0 : i32
    return %c0_i32, %arg1 : i32, i32
  }
  func.func @transform_3(%arg0: i32, %arg1: i32, %arg2: i32) -> (i32, i32) {
    %c0_i32 = arith.constant 0 : i32
    return %arg0, %arg1 : i32, i32
  }
}

module attributes {stable_mosaic.version = 11 : i64} {
  func.func @_mm_kernel(%arg0: i32, %arg1: i32, %arg2: i32, %arg3: memref<48x144xbf16, #tpu.memory_space<vmem>>, %arg4: memref<144x128xbf16, #tpu.memory_space<vmem>>, %arg5: memref<1x128xf32, #tpu.memory_space<vmem>>, %arg6: memref<48x128xf32, #tpu.memory_space<vmem>>, %arg7: memref<48x128xf32, #tpu.memory_space<vmem>>) attributes {dimension_semantics = [#tpu.dimension_semantics<parallel>, #tpu.dimension_semantics<parallel>, #tpu.dimension_semantics<arbitrary>], iteration_bounds = array<i64: 1, 1, 1>, scalar_prefetch = 0 : i64, scratch_operands = 1 : i64, tpu.core_type = #tpu.core_type<tc>, window_params = [{transform_indices = @transform_0, window_bounds = array<i64: 48, 144>}, {transform_indices = @transform_1, window_bounds = array<i64: 144, 128>}, {transform_indices = @transform_2, window_bounds = array<i64: 1, 128>}, {transform_indices = @transform_3, window_bounds = array<i64: 48, 128>}]} {
    %c0_i32 = arith.constant 0 : i32
    %0 = arith.cmpi eq, %arg2, %c0_i32 : i32
    %1 = arith.extui %0 : i1 to i32
    %c0_i32_0 = arith.constant 0 : i32
    %2 = arith.cmpi ne, %1, %c0_i32_0 : i32
    scf.if %2 {
      %cst_10 = arith.constant 0.000000e+00 : f32
      %12 = vector.broadcast %cst_10 : f32 to vector<48x128xf32>
      %c0_11 = arith.constant 0 : index
      %c0_12 = arith.constant 0 : index
      %13 = vector.load %arg7[%c0_11, %c0_12] : memref<48x128xf32, #tpu.memory_space<vmem>>, vector<48x128xf32>
      tpu.vector_store %arg7[%c0_11, %c0_12], %12 {strides = array<i32>} : memref<48x128xf32, #tpu.memory_space<vmem>>, vector<48x128xf32>,
    } else {
    }
    %c0 = arith.constant 0 : index
    %c0_1 = arith.constant 0 : index
    %3 = vector.load %arg7[%c0, %c0_1] : memref<48x128xf32, #tpu.memory_space<vmem>>, vector<48x128xf32>
    %c0_2 = arith.constant 0 : index
    %c0_3 = arith.constant 0 : index
    %4 = vector.load %arg3[%c0_2, %c0_3] : memref<48x144xbf16, #tpu.memory_space<vmem>>, vector<48x144xbf16>
    %c0_4 = arith.constant 0 : index
    %c0_5 = arith.constant 0 : index
    %5 = vector.load %arg4[%c0_4, %c0_5] : memref<144x128xbf16, #tpu.memory_space<vmem>>, vector<144x128xbf16>
    %cst = arith.constant dense<0.000000e+00> : vector<48x128xf32>
    %6 = tpu.matmul %4, %5, %cst {dimension_numbers = #tpu.dot_dimension_numbers<[1], [0], [0], [1], [0, 0, 1, 1], [], []>} : vector<48x144xbf16>, vector<144x128xbf16>, vector<48x128xf32> -> vector<48x128xf32>
    %7 = arith.addf %3, %6 : vector<48x128xf32>
    %c0_6 = arith.constant 0 : index
    %c0_7 = arith.constant 0 : index
    %8 = vector.load %arg7[%c0_6, %c0_7] : memref<48x128xf32, #tpu.memory_space<vmem>>, vector<48x128xf32>
    tpu.vector_store %arg7[%c0_6, %c0_7], %7 {strides = array<i32>} : memref<48x128xf32, #tpu.memory_space<vmem>>, vector<48x128xf32>,
    %c0_i32_8 = arith.constant 0 : i32
    %9 = arith.cmpi eq, %arg2, %c0_i32_8 : i32
    %10 = arith.extui %9 : i1 to i32
    %c0_i32_9 = arith.constant 0 : i32
    %11 = arith.cmpi ne, %10, %c0_i32_9 : i32
    scf.if %11 {
      %c0_10 = arith.constant 0 : index
      %c0_11 = arith.constant 0 : index
      %12 = vector.load %arg7[%c0_10, %c0_11] : memref<48x128xf32, #tpu.memory_space<vmem>>, vector<48x128xf32>
      %c0_12 = arith.constant 0 : index
      %c0_13 = arith.constant 0 : index
      %13 = vector.load %arg5[%c0_12, %c0_13] : memref<1x128xf32, #tpu.memory_space<vmem>>, vector<1x128xf32>
      %14 = vector.broadcast %13 : vector<1x128xf32> to vector<48x128xf32>
      %15 = arith.addf %12, %14 : vector<48x128xf32>
      %cst_14 = arith.constant 0.000000e+00 : f32
      %16 = vector.broadcast %cst_14 : f32 to vector<48x128xf32>
      %17 = arith.maximumf %15, %16 : vector<48x128xf32>
      %c0_15 = arith.constant 0 : index
      %c0_16 = arith.constant 0 : index
      %18 = vector.load %arg6[%c0_15, %c0_16] : memref<48x128xf32, #tpu.memory_space<vmem>>, vector<48x128xf32>
      tpu.vector_store %arg6[%c0_15, %c0_16], %17 {strides = array<i32>} : memref<48x128xf32, #tpu.memory_space<vmem>>, vector<48x128xf32>,
    } else {
    }
    return
  }
  func.func @transform_0(%arg0: i32, %arg1: i32, %arg2: i32) -> (i32, i32) {
    %c0_i32 = arith.constant 0 : i32
    return %arg0, %arg2 : i32, i32
  }
  func.func @transform_1(%arg0: i32, %arg1: i32, %arg2: i32) -> (i32, i32) {
    %c0_i32 = arith.constant 0 : i32
    return %arg2, %arg1 : i32, i32
  }
  func.func @transform_2(%arg0: i32, %arg1: i32, %arg2: i32) -> (i32, i32) {
    %c0_i32 = arith.constant 0 : i32
    %c0_i32_0 = arith.constant 0 : i32
    return %c0_i32, %arg1 : i32, i32
  }
  func.func @transform_3(%arg0: i32, %arg1: i32, %arg2: i32) -> (i32, i32) {
    %c0_i32 = arith.constant 0 : i32
    return %arg0, %arg1 : i32, i32
  }
}

module attributes {stable_mosaic.version = 11 : i64} {
  func.func @_mm_kernel(%arg0: i32, %arg1: i32, %arg2: i32, %arg3: memref<48x16xbf16, #tpu.memory_space<vmem>>, %arg4: memref<16x128xbf16, #tpu.memory_space<vmem>>, %arg5: memref<1x128xf32, #tpu.memory_space<vmem>>, %arg6: memref<48x128xf32, #tpu.memory_space<vmem>>, %arg7: memref<48x128xf32, #tpu.memory_space<vmem>>) attributes {dimension_semantics = [#tpu.dimension_semantics<parallel>, #tpu.dimension_semantics<parallel>, #tpu.dimension_semantics<arbitrary>], iteration_bounds = array<i64: 1, 1, 1>, scalar_prefetch = 0 : i64, scratch_operands = 1 : i64, tpu.core_type = #tpu.core_type<tc>, window_params = [{transform_indices = @transform_0, window_bounds = array<i64: 48, 16>}, {transform_indices = @transform_1, window_bounds = array<i64: 16, 128>}, {transform_indices = @transform_2, window_bounds = array<i64: 1, 128>}, {transform_indices = @transform_3, window_bounds = array<i64: 48, 128>}]} {
    %c0_i32 = arith.constant 0 : i32
    %0 = arith.cmpi eq, %arg2, %c0_i32 : i32
    %1 = arith.extui %0 : i1 to i32
    %c0_i32_0 = arith.constant 0 : i32
    %2 = arith.cmpi ne, %1, %c0_i32_0 : i32
    scf.if %2 {
      %cst_10 = arith.constant 0.000000e+00 : f32
      %12 = vector.broadcast %cst_10 : f32 to vector<48x128xf32>
      %c0_11 = arith.constant 0 : index
      %c0_12 = arith.constant 0 : index
      %13 = vector.load %arg7[%c0_11, %c0_12] : memref<48x128xf32, #tpu.memory_space<vmem>>, vector<48x128xf32>
      tpu.vector_store %arg7[%c0_11, %c0_12], %12 {strides = array<i32>} : memref<48x128xf32, #tpu.memory_space<vmem>>, vector<48x128xf32>,
    } else {
    }
    %c0 = arith.constant 0 : index
    %c0_1 = arith.constant 0 : index
    %3 = vector.load %arg7[%c0, %c0_1] : memref<48x128xf32, #tpu.memory_space<vmem>>, vector<48x128xf32>
    %c0_2 = arith.constant 0 : index
    %c0_3 = arith.constant 0 : index
    %4 = vector.load %arg3[%c0_2, %c0_3] : memref<48x16xbf16, #tpu.memory_space<vmem>>, vector<48x16xbf16>
    %c0_4 = arith.constant 0 : index
    %c0_5 = arith.constant 0 : index
    %5 = vector.load %arg4[%c0_4, %c0_5] : memref<16x128xbf16, #tpu.memory_space<vmem>>, vector<16x128xbf16>
    %cst = arith.constant dense<0.000000e+00> : vector<48x128xf32>
    %6 = tpu.matmul %4, %5, %cst {dimension_numbers = #tpu.dot_dimension_numbers<[1], [0], [0], [1], [0, 0, 1, 1], [], []>} : vector<48x16xbf16>, vector<16x128xbf16>, vector<48x128xf32> -> vector<48x128xf32>
    %7 = arith.addf %3, %6 : vector<48x128xf32>
    %c0_6 = arith.constant 0 : index
    %c0_7 = arith.constant 0 : index
    %8 = vector.load %arg7[%c0_6, %c0_7] : memref<48x128xf32, #tpu.memory_space<vmem>>, vector<48x128xf32>
    tpu.vector_store %arg7[%c0_6, %c0_7], %7 {strides = array<i32>} : memref<48x128xf32, #tpu.memory_space<vmem>>, vector<48x128xf32>,
    %c0_i32_8 = arith.constant 0 : i32
    %9 = arith.cmpi eq, %arg2, %c0_i32_8 : i32
    %10 = arith.extui %9 : i1 to i32
    %c0_i32_9 = arith.constant 0 : i32
    %11 = arith.cmpi ne, %10, %c0_i32_9 : i32
    scf.if %11 {
      %c0_10 = arith.constant 0 : index
      %c0_11 = arith.constant 0 : index
      %12 = vector.load %arg7[%c0_10, %c0_11] : memref<48x128xf32, #tpu.memory_space<vmem>>, vector<48x128xf32>
      %c0_12 = arith.constant 0 : index
      %c0_13 = arith.constant 0 : index
      %13 = vector.load %arg5[%c0_12, %c0_13] : memref<1x128xf32, #tpu.memory_space<vmem>>, vector<1x128xf32>
      %14 = vector.broadcast %13 : vector<1x128xf32> to vector<48x128xf32>
      %15 = arith.addf %12, %14 : vector<48x128xf32>
      %c0_14 = arith.constant 0 : index
      %c0_15 = arith.constant 0 : index
      %16 = vector.load %arg6[%c0_14, %c0_15] : memref<48x128xf32, #tpu.memory_space<vmem>>, vector<48x128xf32>
      tpu.vector_store %arg6[%c0_14, %c0_15], %15 {strides = array<i32>} : memref<48x128xf32, #tpu.memory_space<vmem>>, vector<48x128xf32>,
    } else {
    }
    return
  }
  func.func @transform_0(%arg0: i32, %arg1: i32, %arg2: i32) -> (i32, i32) {
    %c0_i32 = arith.constant 0 : i32
    return %arg0, %arg2 : i32, i32
  }
  func.func @transform_1(%arg0: i32, %arg1: i32, %arg2: i32) -> (i32, i32) {
    %c0_i32 = arith.constant 0 : i32
    return %arg2, %arg1 : i32, i32
  }
  func.func @transform_2(%arg0: i32, %arg1: i32, %arg2: i32) -> (i32, i32) {
    %c0_i32 = arith.constant 0 : i32
    %c0_i32_0 = arith.constant 0 : i32
    return %c0_i32, %arg1 : i32, i32
  }
  func.func @transform_3(%arg0: i32, %arg1: i32, %arg2: i32) -> (i32, i32) {
    %c0_i32 = arith.constant 0 : i32
    return %arg0, %arg1 : i32, i32
  }
}

module attributes {stable_mosaic.version = 11 : i64} {
  func.func @_mm_kernel(%arg0: i32, %arg1: i32, %arg2: i32, %arg3: memref<48x288xbf16, #tpu.memory_space<vmem>>, %arg4: memref<288x128xbf16, #tpu.memory_space<vmem>>, %arg5: memref<1x128xf32, #tpu.memory_space<vmem>>, %arg6: memref<48x128xf32, #tpu.memory_space<vmem>>, %arg7: memref<48x128xf32, #tpu.memory_space<vmem>>, %arg8: memref<48x128xf32, #tpu.memory_space<vmem>>) attributes {dimension_semantics = [#tpu.dimension_semantics<parallel>, #tpu.dimension_semantics<parallel>, #tpu.dimension_semantics<arbitrary>], iteration_bounds = array<i64: 1, 1, 1>, scalar_prefetch = 0 : i64, scratch_operands = 1 : i64, tpu.core_type = #tpu.core_type<tc>, window_params = [{transform_indices = @transform_0, window_bounds = array<i64: 48, 288>}, {transform_indices = @transform_1, window_bounds = array<i64: 288, 128>}, {transform_indices = @transform_2, window_bounds = array<i64: 1, 128>}, {transform_indices = @transform_3, window_bounds = array<i64: 48, 128>}, {transform_indices = @transform_4, window_bounds = array<i64: 48, 128>}]} {
    %c0_i32 = arith.constant 0 : i32
    %0 = arith.cmpi eq, %arg2, %c0_i32 : i32
    %1 = arith.extui %0 : i1 to i32
    %c0_i32_0 = arith.constant 0 : i32
    %2 = arith.cmpi ne, %1, %c0_i32_0 : i32
    scf.if %2 {
      %cst_10 = arith.constant 0.000000e+00 : f32
      %12 = vector.broadcast %cst_10 : f32 to vector<48x128xf32>
      %c0_11 = arith.constant 0 : index
      %c0_12 = arith.constant 0 : index
      %13 = vector.load %arg8[%c0_11, %c0_12] : memref<48x128xf32, #tpu.memory_space<vmem>>, vector<48x128xf32>
      tpu.vector_store %arg8[%c0_11, %c0_12], %12 {strides = array<i32>} : memref<48x128xf32, #tpu.memory_space<vmem>>, vector<48x128xf32>,
    } else {
    }
    %c0 = arith.constant 0 : index
    %c0_1 = arith.constant 0 : index
    %3 = vector.load %arg8[%c0, %c0_1] : memref<48x128xf32, #tpu.memory_space<vmem>>, vector<48x128xf32>
    %c0_2 = arith.constant 0 : index
    %c0_3 = arith.constant 0 : index
    %4 = vector.load %arg3[%c0_2, %c0_3] : memref<48x288xbf16, #tpu.memory_space<vmem>>, vector<48x288xbf16>
    %c0_4 = arith.constant 0 : index
    %c0_5 = arith.constant 0 : index
    %5 = vector.load %arg4[%c0_4, %c0_5] : memref<288x128xbf16, #tpu.memory_space<vmem>>, vector<288x128xbf16>
    %cst = arith.constant dense<0.000000e+00> : vector<48x128xf32>
    %6 = tpu.matmul %4, %5, %cst {dimension_numbers = #tpu.dot_dimension_numbers<[1], [0], [0], [1], [0, 0, 1, 1], [], []>} : vector<48x288xbf16>, vector<288x128xbf16>, vector<48x128xf32> -> vector<48x128xf32>
    %7 = arith.addf %3, %6 : vector<48x128xf32>
    %c0_6 = arith.constant 0 : index
    %c0_7 = arith.constant 0 : index
    %8 = vector.load %arg8[%c0_6, %c0_7] : memref<48x128xf32, #tpu.memory_space<vmem>>, vector<48x128xf32>
    tpu.vector_store %arg8[%c0_6, %c0_7], %7 {strides = array<i32>} : memref<48x128xf32, #tpu.memory_space<vmem>>, vector<48x128xf32>,
    %c0_i32_8 = arith.constant 0 : i32
    %9 = arith.cmpi eq, %arg2, %c0_i32_8 : i32
    %10 = arith.extui %9 : i1 to i32
    %c0_i32_9 = arith.constant 0 : i32
    %11 = arith.cmpi ne, %10, %c0_i32_9 : i32
    scf.if %11 {
      %c0_10 = arith.constant 0 : index
      %c0_11 = arith.constant 0 : index
      %12 = vector.load %arg8[%c0_10, %c0_11] : memref<48x128xf32, #tpu.memory_space<vmem>>, vector<48x128xf32>
      %c0_12 = arith.constant 0 : index
      %c0_13 = arith.constant 0 : index
      %13 = vector.load %arg5[%c0_12, %c0_13] : memref<1x128xf32, #tpu.memory_space<vmem>>, vector<1x128xf32>
      %14 = vector.broadcast %13 : vector<1x128xf32> to vector<48x128xf32>
      %15 = arith.addf %12, %14 : vector<48x128xf32>
      %c0_14 = arith.constant 0 : index
      %c0_15 = arith.constant 0 : index
      %16 = vector.load %arg6[%c0_14, %c0_15] : memref<48x128xf32, #tpu.memory_space<vmem>>, vector<48x128xf32>
      %17 = arith.addf %15, %16 : vector<48x128xf32>
      %cst_16 = arith.constant 0.000000e+00 : f32
      %18 = vector.broadcast %cst_16 : f32 to vector<48x128xf32>
      %19 = arith.maximumf %17, %18 : vector<48x128xf32>
      %c0_17 = arith.constant 0 : index
      %c0_18 = arith.constant 0 : index
      %20 = vector.load %arg7[%c0_17, %c0_18] : memref<48x128xf32, #tpu.memory_space<vmem>>, vector<48x128xf32>
      tpu.vector_store %arg7[%c0_17, %c0_18], %19 {strides = array<i32>} : memref<48x128xf32, #tpu.memory_space<vmem>>, vector<48x128xf32>,
    } else {
    }
    return
  }
  func.func @transform_0(%arg0: i32, %arg1: i32, %arg2: i32) -> (i32, i32) {
    %c0_i32 = arith.constant 0 : i32
    return %arg0, %arg2 : i32, i32
  }
  func.func @transform_1(%arg0: i32, %arg1: i32, %arg2: i32) -> (i32, i32) {
    %c0_i32 = arith.constant 0 : i32
    return %arg2, %arg1 : i32, i32
  }
  func.func @transform_2(%arg0: i32, %arg1: i32, %arg2: i32) -> (i32, i32) {
    %c0_i32 = arith.constant 0 : i32
    %c0_i32_0 = arith.constant 0 : i32
    return %c0_i32, %arg1 : i32, i32
  }
  func.func @transform_3(%arg0: i32, %arg1: i32, %arg2: i32) -> (i32, i32) {
    %c0_i32 = arith.constant 0 : i32
    return %arg0, %arg1 : i32, i32
  }
  func.func @transform_4(%arg0: i32, %arg1: i32, %arg2: i32) -> (i32, i32) {
    %c0_i32 = arith.constant 0 : i32
    return %arg0, %arg1 : i32, i32
  }
}

module attributes {stable_mosaic.version = 11 : i64} {
  func.func @_mm_kernel(%arg0: i32, %arg1: i32, %arg2: i32, %arg3: memref<48x288xbf16, #tpu.memory_space<vmem>>, %arg4: memref<288x128xbf16, #tpu.memory_space<vmem>>, %arg5: memref<1x128xf32, #tpu.memory_space<vmem>>, %arg6: memref<48x128xf32, #tpu.memory_space<vmem>>, %arg7: memref<48x128xf32, #tpu.memory_space<vmem>>) attributes {dimension_semantics = [#tpu.dimension_semantics<parallel>, #tpu.dimension_semantics<parallel>, #tpu.dimension_semantics<arbitrary>], iteration_bounds = array<i64: 1, 1, 1>, scalar_prefetch = 0 : i64, scratch_operands = 1 : i64, tpu.core_type = #tpu.core_type<tc>, window_params = [{transform_indices = @transform_0, window_bounds = array<i64: 48, 288>}, {transform_indices = @transform_1, window_bounds = array<i64: 288, 128>}, {transform_indices = @transform_2, window_bounds = array<i64: 1, 128>}, {transform_indices = @transform_3, window_bounds = array<i64: 48, 128>}]} {
    %c0_i32 = arith.constant 0 : i32
    %0 = arith.cmpi eq, %arg2, %c0_i32 : i32
    %1 = arith.extui %0 : i1 to i32
    %c0_i32_0 = arith.constant 0 : i32
    %2 = arith.cmpi ne, %1, %c0_i32_0 : i32
    scf.if %2 {
      %cst_10 = arith.constant 0.000000e+00 : f32
      %12 = vector.broadcast %cst_10 : f32 to vector<48x128xf32>
      %c0_11 = arith.constant 0 : index
      %c0_12 = arith.constant 0 : index
      %13 = vector.load %arg7[%c0_11, %c0_12] : memref<48x128xf32, #tpu.memory_space<vmem>>, vector<48x128xf32>
      tpu.vector_store %arg7[%c0_11, %c0_12], %12 {strides = array<i32>} : memref<48x128xf32, #tpu.memory_space<vmem>>, vector<48x128xf32>,
    } else {
    }
    %c0 = arith.constant 0 : index
    %c0_1 = arith.constant 0 : index
    %3 = vector.load %arg7[%c0, %c0_1] : memref<48x128xf32, #tpu.memory_space<vmem>>, vector<48x128xf32>
    %c0_2 = arith.constant 0 : index
    %c0_3 = arith.constant 0 : index
    %4 = vector.load %arg3[%c0_2, %c0_3] : memref<48x288xbf16, #tpu.memory_space<vmem>>, vector<48x288xbf16>
    %c0_4 = arith.constant 0 : index
    %c0_5 = arith.constant 0 : index
    %5 = vector.load %arg4[%c0_4, %c0_5] : memref<288x128xbf16, #tpu.memory_space<vmem>>, vector<288x128xbf16>
    %cst = arith.constant dense<0.000000e+00> : vector<48x128xf32>
    %6 = tpu.matmul %4, %5, %cst {dimension_numbers = #tpu.dot_dimension_numbers<[1], [0], [0], [1], [0, 0, 1, 1], [], []>} : vector<48x288xbf16>, vector<288x128xbf16>, vector<48x128xf32> -> vector<48x128xf32>
    %7 = arith.addf %3, %6 : vector<48x128xf32>
    %c0_6 = arith.constant 0 : index
    %c0_7 = arith.constant 0 : index
    %8 = vector.load %arg7[%c0_6, %c0_7] : memref<48x128xf32, #tpu.memory_space<vmem>>, vector<48x128xf32>
    tpu.vector_store %arg7[%c0_6, %c0_7], %7 {strides = array<i32>} : memref<48x128xf32, #tpu.memory_space<vmem>>, vector<48x128xf32>,
    %c0_i32_8 = arith.constant 0 : i32
    %9 = arith.cmpi eq, %arg2, %c0_i32_8 : i32
    %10 = arith.extui %9 : i1 to i32
    %c0_i32_9 = arith.constant 0 : i32
    %11 = arith.cmpi ne, %10, %c0_i32_9 : i32
    scf.if %11 {
      %c0_10 = arith.constant 0 : index
      %c0_11 = arith.constant 0 : index
      %12 = vector.load %arg7[%c0_10, %c0_11] : memref<48x128xf32, #tpu.memory_space<vmem>>, vector<48x128xf32>
      %c0_12 = arith.constant 0 : index
      %c0_13 = arith.constant 0 : index
      %13 = vector.load %arg5[%c0_12, %c0_13] : memref<1x128xf32, #tpu.memory_space<vmem>>, vector<1x128xf32>
      %14 = vector.broadcast %13 : vector<1x128xf32> to vector<48x128xf32>
      %15 = arith.addf %12, %14 : vector<48x128xf32>
      %cst_14 = arith.constant 0.000000e+00 : f32
      %16 = vector.broadcast %cst_14 : f32 to vector<48x128xf32>
      %17 = arith.maximumf %15, %16 : vector<48x128xf32>
      %c0_15 = arith.constant 0 : index
      %c0_16 = arith.constant 0 : index
      %18 = vector.load %arg6[%c0_15, %c0_16] : memref<48x128xf32, #tpu.memory_space<vmem>>, vector<48x128xf32>
      tpu.vector_store %arg6[%c0_15, %c0_16], %17 {strides = array<i32>} : memref<48x128xf32, #tpu.memory_space<vmem>>, vector<48x128xf32>,
    } else {
    }
    return
  }
  func.func @transform_0(%arg0: i32, %arg1: i32, %arg2: i32) -> (i32, i32) {
    %c0_i32 = arith.constant 0 : i32
    return %arg0, %arg2 : i32, i32
  }
  func.func @transform_1(%arg0: i32, %arg1: i32, %arg2: i32) -> (i32, i32) {
    %c0_i32 = arith.constant 0 : i32
    return %arg2, %arg1 : i32, i32
  }
  func.func @transform_2(%arg0: i32, %arg1: i32, %arg2: i32) -> (i32, i32) {
    %c0_i32 = arith.constant 0 : i32
    %c0_i32_0 = arith.constant 0 : i32
    return %c0_i32, %arg1 : i32, i32
  }
  func.func @transform_3(%arg0: i32, %arg1: i32, %arg2: i32) -> (i32, i32) {
    %c0_i32 = arith.constant 0 : i32
    return %arg0, %arg1 : i32, i32
  }
}

module attributes {stable_mosaic.version = 11 : i64} {
  func.func @_mm_kernel(%arg0: i32, %arg1: i32, %arg2: i32, %arg3: memref<48x288xbf16, #tpu.memory_space<vmem>>, %arg4: memref<288x128xbf16, #tpu.memory_space<vmem>>, %arg5: memref<1x128xf32, #tpu.memory_space<vmem>>, %arg6: memref<48x128xf32, #tpu.memory_space<vmem>>, %arg7: memref<48x128xf32, #tpu.memory_space<vmem>>) attributes {dimension_semantics = [#tpu.dimension_semantics<parallel>, #tpu.dimension_semantics<parallel>, #tpu.dimension_semantics<arbitrary>], iteration_bounds = array<i64: 1, 1, 1>, scalar_prefetch = 0 : i64, scratch_operands = 1 : i64, tpu.core_type = #tpu.core_type<tc>, window_params = [{transform_indices = @transform_0, window_bounds = array<i64: 48, 288>}, {transform_indices = @transform_1, window_bounds = array<i64: 288, 128>}, {transform_indices = @transform_2, window_bounds = array<i64: 1, 128>}, {transform_indices = @transform_3, window_bounds = array<i64: 48, 128>}]} {
    %c0_i32 = arith.constant 0 : i32
    %0 = arith.cmpi eq, %arg2, %c0_i32 : i32
    %1 = arith.extui %0 : i1 to i32
    %c0_i32_0 = arith.constant 0 : i32
    %2 = arith.cmpi ne, %1, %c0_i32_0 : i32
    scf.if %2 {
      %cst_10 = arith.constant 0.000000e+00 : f32
      %12 = vector.broadcast %cst_10 : f32 to vector<48x128xf32>
      %c0_11 = arith.constant 0 : index
      %c0_12 = arith.constant 0 : index
      %13 = vector.load %arg7[%c0_11, %c0_12] : memref<48x128xf32, #tpu.memory_space<vmem>>, vector<48x128xf32>
      tpu.vector_store %arg7[%c0_11, %c0_12], %12 {strides = array<i32>} : memref<48x128xf32, #tpu.memory_space<vmem>>, vector<48x128xf32>,
    } else {
    }
    %c0 = arith.constant 0 : index
    %c0_1 = arith.constant 0 : index
    %3 = vector.load %arg7[%c0, %c0_1] : memref<48x128xf32, #tpu.memory_space<vmem>>, vector<48x128xf32>
    %c0_2 = arith.constant 0 : index
    %c0_3 = arith.constant 0 : index
    %4 = vector.load %arg3[%c0_2, %c0_3] : memref<48x288xbf16, #tpu.memory_space<vmem>>, vector<48x288xbf16>
    %c0_4 = arith.constant 0 : index
    %c0_5 = arith.constant 0 : index
    %5 = vector.load %arg4[%c0_4, %c0_5] : memref<288x128xbf16, #tpu.memory_space<vmem>>, vector<288x128xbf16>
    %cst = arith.constant dense<0.000000e+00> : vector<48x128xf32>
    %6 = tpu.matmul %4, %5, %cst {dimension_numbers = #tpu.dot_dimension_numbers<[1], [0], [0], [1], [0, 0, 1, 1], [], []>} : vector<48x288xbf16>, vector<288x128xbf16>, vector<48x128xf32> -> vector<48x128xf32>
    %7 = arith.addf %3, %6 : vector<48x128xf32>
    %c0_6 = arith.constant 0 : index
    %c0_7 = arith.constant 0 : index
    %8 = vector.load %arg7[%c0_6, %c0_7] : memref<48x128xf32, #tpu.memory_space<vmem>>, vector<48x128xf32>
    tpu.vector_store %arg7[%c0_6, %c0_7], %7 {strides = array<i32>} : memref<48x128xf32, #tpu.memory_space<vmem>>, vector<48x128xf32>,
    %c0_i32_8 = arith.constant 0 : i32
    %9 = arith.cmpi eq, %arg2, %c0_i32_8 : i32
    %10 = arith.extui %9 : i1 to i32
    %c0_i32_9 = arith.constant 0 : i32
    %11 = arith.cmpi ne, %10, %c0_i32_9 : i32
    scf.if %11 {
      %c0_10 = arith.constant 0 : index
      %c0_11 = arith.constant 0 : index
      %12 = vector.load %arg7[%c0_10, %c0_11] : memref<48x128xf32, #tpu.memory_space<vmem>>, vector<48x128xf32>
      %c0_12 = arith.constant 0 : index
      %c0_13 = arith.constant 0 : index
      %13 = vector.load %arg5[%c0_12, %c0_13] : memref<1x128xf32, #tpu.memory_space<vmem>>, vector<1x128xf32>
      %14 = vector.broadcast %13 : vector<1x128xf32> to vector<48x128xf32>
      %15 = arith.addf %12, %14 : vector<48x128xf32>
      %cst_14 = arith.constant 0.000000e+00 : f32
      %16 = vector.broadcast %cst_14 : f32 to vector<48x128xf32>
      %17 = arith.maximumf %15, %16 : vector<48x128xf32>
      %c0_15 = arith.constant 0 : index
      %c0_16 = arith.constant 0 : index
      %18 = vector.load %arg6[%c0_15, %c0_16] : memref<48x128xf32, #tpu.memory_space<vmem>>, vector<48x128xf32>
      tpu.vector_store %arg6[%c0_15, %c0_16], %17 {strides = array<i32>} : memref<48x128xf32, #tpu.memory_space<vmem>>, vector<48x128xf32>,
    } else {
    }
    return
  }
  func.func @transform_0(%arg0: i32, %arg1: i32, %arg2: i32) -> (i32, i32) {
    %c0_i32 = arith.constant 0 : i32
    return %arg0, %arg2 : i32, i32
  }
  func.func @transform_1(%arg0: i32, %arg1: i32, %arg2: i32) -> (i32, i32) {
    %c0_i32 = arith.constant 0 : i32
    return %arg2, %arg1 : i32, i32
  }
  func.func @transform_2(%arg0: i32, %arg1: i32, %arg2: i32) -> (i32, i32) {
    %c0_i32 = arith.constant 0 : i32
    %c0_i32_0 = arith.constant 0 : i32
    return %c0_i32, %arg1 : i32, i32
  }
  func.func @transform_3(%arg0: i32, %arg1: i32, %arg2: i32) -> (i32, i32) {
    %c0_i32 = arith.constant 0 : i32
    return %arg0, %arg1 : i32, i32
  }
}

module attributes {stable_mosaic.version = 11 : i64} {
  func.func @_mm_kernel(%arg0: i32, %arg1: i32, %arg2: i32, %arg3: memref<48x32xbf16, #tpu.memory_space<vmem>>, %arg4: memref<32x128xbf16, #tpu.memory_space<vmem>>, %arg5: memref<1x128xf32, #tpu.memory_space<vmem>>, %arg6: memref<48x128xf32, #tpu.memory_space<vmem>>, %arg7: memref<48x128xf32, #tpu.memory_space<vmem>>) attributes {dimension_semantics = [#tpu.dimension_semantics<parallel>, #tpu.dimension_semantics<parallel>, #tpu.dimension_semantics<arbitrary>], iteration_bounds = array<i64: 1, 1, 1>, scalar_prefetch = 0 : i64, scratch_operands = 1 : i64, tpu.core_type = #tpu.core_type<tc>, window_params = [{transform_indices = @transform_0, window_bounds = array<i64: 48, 32>}, {transform_indices = @transform_1, window_bounds = array<i64: 32, 128>}, {transform_indices = @transform_2, window_bounds = array<i64: 1, 128>}, {transform_indices = @transform_3, window_bounds = array<i64: 48, 128>}]} {
    %c0_i32 = arith.constant 0 : i32
    %0 = arith.cmpi eq, %arg2, %c0_i32 : i32
    %1 = arith.extui %0 : i1 to i32
    %c0_i32_0 = arith.constant 0 : i32
    %2 = arith.cmpi ne, %1, %c0_i32_0 : i32
    scf.if %2 {
      %cst_10 = arith.constant 0.000000e+00 : f32
      %12 = vector.broadcast %cst_10 : f32 to vector<48x128xf32>
      %c0_11 = arith.constant 0 : index
      %c0_12 = arith.constant 0 : index
      %13 = vector.load %arg7[%c0_11, %c0_12] : memref<48x128xf32, #tpu.memory_space<vmem>>, vector<48x128xf32>
      tpu.vector_store %arg7[%c0_11, %c0_12], %12 {strides = array<i32>} : memref<48x128xf32, #tpu.memory_space<vmem>>, vector<48x128xf32>,
    } else {
    }
    %c0 = arith.constant 0 : index
    %c0_1 = arith.constant 0 : index
    %3 = vector.load %arg7[%c0, %c0_1] : memref<48x128xf32, #tpu.memory_space<vmem>>, vector<48x128xf32>
    %c0_2 = arith.constant 0 : index
    %c0_3 = arith.constant 0 : index
    %4 = vector.load %arg3[%c0_2, %c0_3] : memref<48x32xbf16, #tpu.memory_space<vmem>>, vector<48x32xbf16>
    %c0_4 = arith.constant 0 : index
    %c0_5 = arith.constant 0 : index
    %5 = vector.load %arg4[%c0_4, %c0_5] : memref<32x128xbf16, #tpu.memory_space<vmem>>, vector<32x128xbf16>
    %cst = arith.constant dense<0.000000e+00> : vector<48x128xf32>
    %6 = tpu.matmul %4, %5, %cst {dimension_numbers = #tpu.dot_dimension_numbers<[1], [0], [0], [1], [0, 0, 1, 1], [], []>} : vector<48x32xbf16>, vector<32x128xbf16>, vector<48x128xf32> -> vector<48x128xf32>
    %7 = arith.addf %3, %6 : vector<48x128xf32>
    %c0_6 = arith.constant 0 : index
    %c0_7 = arith.constant 0 : index
    %8 = vector.load %arg7[%c0_6, %c0_7] : memref<48x128xf32, #tpu.memory_space<vmem>>, vector<48x128xf32>
    tpu.vector_store %arg7[%c0_6, %c0_7], %7 {strides = array<i32>} : memref<48x128xf32, #tpu.memory_space<vmem>>, vector<48x128xf32>,
    %c0_i32_8 = arith.constant 0 : i32
    %9 = arith.cmpi eq, %arg2, %c0_i32_8 : i32
    %10 = arith.extui %9 : i1 to i32
    %c0_i32_9 = arith.constant 0 : i32
    %11 = arith.cmpi ne, %10, %c0_i32_9 : i32
    scf.if %11 {
      %c0_10 = arith.constant 0 : index
      %c0_11 = arith.constant 0 : index
      %12 = vector.load %arg7[%c0_10, %c0_11] : memref<48x128xf32, #tpu.memory_space<vmem>>, vector<48x128xf32>
      %c0_12 = arith.constant 0 : index
      %c0_13 = arith.constant 0 : index
      %13 = vector.load %arg5[%c0_12, %c0_13] : memref<1x128xf32, #tpu.memory_space<vmem>>, vector<1x128xf32>
      %14 = vector.broadcast %13 : vector<1x128xf32> to vector<48x128xf32>
      %15 = arith.addf %12, %14 : vector<48x128xf32>
      %c0_14 = arith.constant 0 : index
      %c0_15 = arith.constant 0 : index
      %16 = vector.load %arg6[%c0_14, %c0_15] : memref<48x128xf32, #tpu.memory_space<vmem>>, vector<48x128xf32>
      tpu.vector_store %arg6[%c0_14, %c0_15], %15 {strides = array<i32>} : memref<48x128xf32, #tpu.memory_space<vmem>>, vector<48x128xf32>,
    } else {
    }
    return
  }
  func.func @transform_0(%arg0: i32, %arg1: i32, %arg2: i32) -> (i32, i32) {
    %c0_i32 = arith.constant 0 : i32
    return %arg0, %arg2 : i32, i32
  }
  func.func @transform_1(%arg0: i32, %arg1: i32, %arg2: i32) -> (i32, i32) {
    %c0_i32 = arith.constant 0 : i32
    return %arg2, %arg1 : i32, i32
  }
  func.func @transform_2(%arg0: i32, %arg1: i32, %arg2: i32) -> (i32, i32) {
    %c0_i32 = arith.constant 0 : i32
    %c0_i32_0 = arith.constant 0 : i32
    return %c0_i32, %arg1 : i32, i32
  }
  func.func @transform_3(%arg0: i32, %arg1: i32, %arg2: i32) -> (i32, i32) {
    %c0_i32 = arith.constant 0 : i32
    return %arg0, %arg1 : i32, i32
  }
}

module attributes {stable_mosaic.version = 11 : i64} {
  func.func @_mm_kernel(%arg0: i32, %arg1: i32, %arg2: i32, %arg3: memref<48x512xbf16, #tpu.memory_space<vmem>>, %arg4: memref<512x128xbf16, #tpu.memory_space<vmem>>, %arg5: memref<1x128xf32, #tpu.memory_space<vmem>>, %arg6: memref<48x128xf32, #tpu.memory_space<vmem>>, %arg7: memref<48x128xf32, #tpu.memory_space<vmem>>, %arg8: memref<48x128xf32, #tpu.memory_space<vmem>>) attributes {dimension_semantics = [#tpu.dimension_semantics<parallel>, #tpu.dimension_semantics<parallel>, #tpu.dimension_semantics<arbitrary>], iteration_bounds = array<i64: 1, 1, 2>, scalar_prefetch = 0 : i64, scratch_operands = 1 : i64, tpu.core_type = #tpu.core_type<tc>, window_params = [{transform_indices = @transform_0, window_bounds = array<i64: 48, 512>}, {transform_indices = @transform_1, window_bounds = array<i64: 512, 128>}, {transform_indices = @transform_2, window_bounds = array<i64: 1, 128>}, {transform_indices = @transform_3, window_bounds = array<i64: 48, 128>}, {transform_indices = @transform_4, window_bounds = array<i64: 48, 128>}]} {
    %c0_i32 = arith.constant 0 : i32
    %0 = arith.cmpi eq, %arg2, %c0_i32 : i32
    %1 = arith.extui %0 : i1 to i32
    %c0_i32_0 = arith.constant 0 : i32
    %2 = arith.cmpi ne, %1, %c0_i32_0 : i32
    scf.if %2 {
      %cst_9 = arith.constant 0.000000e+00 : f32
      %12 = vector.broadcast %cst_9 : f32 to vector<48x128xf32>
      %c0_10 = arith.constant 0 : index
      %c0_11 = arith.constant 0 : index
      %13 = vector.load %arg8[%c0_10, %c0_11] : memref<48x128xf32, #tpu.memory_space<vmem>>, vector<48x128xf32>
      tpu.vector_store %arg8[%c0_10, %c0_11], %12 {strides = array<i32>} : memref<48x128xf32, #tpu.memory_space<vmem>>, vector<48x128xf32>,
    } else {
    }
    %c0 = arith.constant 0 : index
    %c0_1 = arith.constant 0 : index
    %3 = vector.load %arg8[%c0, %c0_1] : memref<48x128xf32, #tpu.memory_space<vmem>>, vector<48x128xf32>
    %c0_2 = arith.constant 0 : index
    %c0_3 = arith.constant 0 : index
    %4 = vector.load %arg3[%c0_2, %c0_3] : memref<48x512xbf16, #tpu.memory_space<vmem>>, vector<48x512xbf16>
    %c0_4 = arith.constant 0 : index
    %c0_5 = arith.constant 0 : index
    %5 = vector.load %arg4[%c0_4, %c0_5] : memref<512x128xbf16, #tpu.memory_space<vmem>>, vector<512x128xbf16>
    %cst = arith.constant dense<0.000000e+00> : vector<48x128xf32>
    %6 = tpu.matmul %4, %5, %cst {dimension_numbers = #tpu.dot_dimension_numbers<[1], [0], [0], [1], [0, 0, 1, 1], [], []>} : vector<48x512xbf16>, vector<512x128xbf16>, vector<48x128xf32> -> vector<48x128xf32>
    %7 = arith.addf %3, %6 : vector<48x128xf32>
    %c0_6 = arith.constant 0 : index
    %c0_7 = arith.constant 0 : index
    %8 = vector.load %arg8[%c0_6, %c0_7] : memref<48x128xf32, #tpu.memory_space<vmem>>, vector<48x128xf32>
    tpu.vector_store %arg8[%c0_6, %c0_7], %7 {strides = array<i32>} : memref<48x128xf32, #tpu.memory_space<vmem>>, vector<48x128xf32>,
    %c1_i32 = arith.constant 1 : i32
    %9 = arith.cmpi eq, %arg2, %c1_i32 : i32
    %10 = arith.extui %9 : i1 to i32
    %c0_i32_8 = arith.constant 0 : i32
    %11 = arith.cmpi ne, %10, %c0_i32_8 : i32
    scf.if %11 {
      %c0_9 = arith.constant 0 : index
      %c0_10 = arith.constant 0 : index
      %12 = vector.load %arg8[%c0_9, %c0_10] : memref<48x128xf32, #tpu.memory_space<vmem>>, vector<48x128xf32>
      %c0_11 = arith.constant 0 : index
      %c0_12 = arith.constant 0 : index
      %13 = vector.load %arg5[%c0_11, %c0_12] : memref<1x128xf32, #tpu.memory_space<vmem>>, vector<1x128xf32>
      %14 = vector.broadcast %13 : vector<1x128xf32> to vector<48x128xf32>
      %15 = arith.addf %12, %14 : vector<48x128xf32>
      %c0_13 = arith.constant 0 : index
      %c0_14 = arith.constant 0 : index
      %16 = vector.load %arg6[%c0_13, %c0_14] : memref<48x128xf32, #tpu.memory_space<vmem>>, vector<48x128xf32>
      %17 = arith.addf %15, %16 : vector<48x128xf32>
      %cst_15 = arith.constant 0.000000e+00 : f32
      %18 = vector.broadcast %cst_15 : f32 to vector<48x128xf32>
      %19 = arith.maximumf %17, %18 : vector<48x128xf32>
      %c0_16 = arith.constant 0 : index
      %c0_17 = arith.constant 0 : index
      %20 = vector.load %arg7[%c0_16, %c0_17] : memref<48x128xf32, #tpu.memory_space<vmem>>, vector<48x128xf32>
      tpu.vector_store %arg7[%c0_16, %c0_17], %19 {strides = array<i32>} : memref<48x128xf32, #tpu.memory_space<vmem>>, vector<48x128xf32>,
    } else {
    }
    return
  }
  func.func @transform_0(%arg0: i32, %arg1: i32, %arg2: i32) -> (i32, i32) {
    %c0_i32 = arith.constant 0 : i32
    return %arg0, %arg2 : i32, i32
  }
  func.func @transform_1(%arg0: i32, %arg1: i32, %arg2: i32) -> (i32, i32) {
    %c0_i32 = arith.constant 0 : i32
    return %arg2, %arg1 : i32, i32
  }
  func.func @transform_2(%arg0: i32, %arg1: i32, %arg2: i32) -> (i32, i32) {
    %c0_i32 = arith.constant 0 : i32
    %c0_i32_0 = arith.constant 0 : i32
    return %c0_i32, %arg1 : i32, i32
  }
  func.func @transform_3(%arg0: i32, %arg1: i32, %arg2: i32) -> (i32, i32) {
    %c0_i32 = arith.constant 0 : i32
    return %arg0, %arg1 : i32, i32
  }
  func.func @transform_4(%arg0: i32, %arg1: i32, %arg2: i32) -> (i32, i32) {
    %c0_i32 = arith.constant 0 : i32
    return %arg0, %arg1 : i32, i32
  }
}

module attributes {stable_mosaic.version = 11 : i64} {
  func.func @_mm_kernel(%arg0: i32, %arg1: i32, %arg2: i32, %arg3: memref<48x512xbf16, #tpu.memory_space<vmem>>, %arg4: memref<512x128xbf16, #tpu.memory_space<vmem>>, %arg5: memref<1x128xf32, #tpu.memory_space<vmem>>, %arg6: memref<48x128xf32, #tpu.memory_space<vmem>>, %arg7: memref<48x128xf32, #tpu.memory_space<vmem>>) attributes {dimension_semantics = [#tpu.dimension_semantics<parallel>, #tpu.dimension_semantics<parallel>, #tpu.dimension_semantics<arbitrary>], iteration_bounds = array<i64: 1, 1, 2>, scalar_prefetch = 0 : i64, scratch_operands = 1 : i64, tpu.core_type = #tpu.core_type<tc>, window_params = [{transform_indices = @transform_0, window_bounds = array<i64: 48, 512>}, {transform_indices = @transform_1, window_bounds = array<i64: 512, 128>}, {transform_indices = @transform_2, window_bounds = array<i64: 1, 128>}, {transform_indices = @transform_3, window_bounds = array<i64: 48, 128>}]} {
    %c0_i32 = arith.constant 0 : i32
    %0 = arith.cmpi eq, %arg2, %c0_i32 : i32
    %1 = arith.extui %0 : i1 to i32
    %c0_i32_0 = arith.constant 0 : i32
    %2 = arith.cmpi ne, %1, %c0_i32_0 : i32
    scf.if %2 {
      %cst_9 = arith.constant 0.000000e+00 : f32
      %12 = vector.broadcast %cst_9 : f32 to vector<48x128xf32>
      %c0_10 = arith.constant 0 : index
      %c0_11 = arith.constant 0 : index
      %13 = vector.load %arg7[%c0_10, %c0_11] : memref<48x128xf32, #tpu.memory_space<vmem>>, vector<48x128xf32>
      tpu.vector_store %arg7[%c0_10, %c0_11], %12 {strides = array<i32>} : memref<48x128xf32, #tpu.memory_space<vmem>>, vector<48x128xf32>,
    } else {
    }
    %c0 = arith.constant 0 : index
    %c0_1 = arith.constant 0 : index
    %3 = vector.load %arg7[%c0, %c0_1] : memref<48x128xf32, #tpu.memory_space<vmem>>, vector<48x128xf32>
    %c0_2 = arith.constant 0 : index
    %c0_3 = arith.constant 0 : index
    %4 = vector.load %arg3[%c0_2, %c0_3] : memref<48x512xbf16, #tpu.memory_space<vmem>>, vector<48x512xbf16>
    %c0_4 = arith.constant 0 : index
    %c0_5 = arith.constant 0 : index
    %5 = vector.load %arg4[%c0_4, %c0_5] : memref<512x128xbf16, #tpu.memory_space<vmem>>, vector<512x128xbf16>
    %cst = arith.constant dense<0.000000e+00> : vector<48x128xf32>
    %6 = tpu.matmul %4, %5, %cst {dimension_numbers = #tpu.dot_dimension_numbers<[1], [0], [0], [1], [0, 0, 1, 1], [], []>} : vector<48x512xbf16>, vector<512x128xbf16>, vector<48x128xf32> -> vector<48x128xf32>
    %7 = arith.addf %3, %6 : vector<48x128xf32>
    %c0_6 = arith.constant 0 : index
    %c0_7 = arith.constant 0 : index
    %8 = vector.load %arg7[%c0_6, %c0_7] : memref<48x128xf32, #tpu.memory_space<vmem>>, vector<48x128xf32>
    tpu.vector_store %arg7[%c0_6, %c0_7], %7 {strides = array<i32>} : memref<48x128xf32, #tpu.memory_space<vmem>>, vector<48x128xf32>,
    %c1_i32 = arith.constant 1 : i32
    %9 = arith.cmpi eq, %arg2, %c1_i32 : i32
    %10 = arith.extui %9 : i1 to i32
    %c0_i32_8 = arith.constant 0 : i32
    %11 = arith.cmpi ne, %10, %c0_i32_8 : i32
    scf.if %11 {
      %c0_9 = arith.constant 0 : index
      %c0_10 = arith.constant 0 : index
      %12 = vector.load %arg7[%c0_9, %c0_10] : memref<48x128xf32, #tpu.memory_space<vmem>>, vector<48x128xf32>
      %c0_11 = arith.constant 0 : index
      %c0_12 = arith.constant 0 : index
      %13 = vector.load %arg5[%c0_11, %c0_12] : memref<1x128xf32, #tpu.memory_space<vmem>>, vector<1x128xf32>
      %14 = vector.broadcast %13 : vector<1x128xf32> to vector<48x128xf32>
      %15 = arith.addf %12, %14 : vector<48x128xf32>
      %cst_13 = arith.constant 0.000000e+00 : f32
      %16 = vector.broadcast %cst_13 : f32 to vector<48x128xf32>
      %17 = arith.maximumf %15, %16 : vector<48x128xf32>
      %c0_14 = arith.constant 0 : index
      %c0_15 = arith.constant 0 : index
      %18 = vector.load %arg6[%c0_14, %c0_15] : memref<48x128xf32, #tpu.memory_space<vmem>>, vector<48x128xf32>
      tpu.vector_store %arg6[%c0_14, %c0_15], %17 {strides = array<i32>} : memref<48x128xf32, #tpu.memory_space<vmem>>, vector<48x128xf32>,
    } else {
    }
    return
  }
  func.func @transform_0(%arg0: i32, %arg1: i32, %arg2: i32) -> (i32, i32) {
    %c0_i32 = arith.constant 0 : i32
    return %arg0, %arg2 : i32, i32
  }
  func.func @transform_1(%arg0: i32, %arg1: i32, %arg2: i32) -> (i32, i32) {
    %c0_i32 = arith.constant 0 : i32
    return %arg2, %arg1 : i32, i32
  }
  func.func @transform_2(%arg0: i32, %arg1: i32, %arg2: i32) -> (i32, i32) {
    %c0_i32 = arith.constant 0 : i32
    %c0_i32_0 = arith.constant 0 : i32
    return %c0_i32, %arg1 : i32, i32
  }
  func.func @transform_3(%arg0: i32, %arg1: i32, %arg2: i32) -> (i32, i32) {
    %c0_i32 = arith.constant 0 : i32
    return %arg0, %arg1 : i32, i32
  }
}

module attributes {stable_mosaic.version = 11 : i64} {
  func.func @_mm_kernel(%arg0: i32, %arg1: i32, %arg2: i32, %arg3: memref<48x64xbf16, #tpu.memory_space<vmem>>, %arg4: memref<64x128xbf16, #tpu.memory_space<vmem>>, %arg5: memref<1x128xf32, #tpu.memory_space<vmem>>, %arg6: memref<48x128xf32, #tpu.memory_space<vmem>>, %arg7: memref<48x128xf32, #tpu.memory_space<vmem>>) attributes {dimension_semantics = [#tpu.dimension_semantics<parallel>, #tpu.dimension_semantics<parallel>, #tpu.dimension_semantics<arbitrary>], iteration_bounds = array<i64: 1, 1, 1>, scalar_prefetch = 0 : i64, scratch_operands = 1 : i64, tpu.core_type = #tpu.core_type<tc>, window_params = [{transform_indices = @transform_0, window_bounds = array<i64: 48, 64>}, {transform_indices = @transform_1, window_bounds = array<i64: 64, 128>}, {transform_indices = @transform_2, window_bounds = array<i64: 1, 128>}, {transform_indices = @transform_3, window_bounds = array<i64: 48, 128>}]} {
    %c0_i32 = arith.constant 0 : i32
    %0 = arith.cmpi eq, %arg2, %c0_i32 : i32
    %1 = arith.extui %0 : i1 to i32
    %c0_i32_0 = arith.constant 0 : i32
    %2 = arith.cmpi ne, %1, %c0_i32_0 : i32
    scf.if %2 {
      %cst_10 = arith.constant 0.000000e+00 : f32
      %12 = vector.broadcast %cst_10 : f32 to vector<48x128xf32>
      %c0_11 = arith.constant 0 : index
      %c0_12 = arith.constant 0 : index
      %13 = vector.load %arg7[%c0_11, %c0_12] : memref<48x128xf32, #tpu.memory_space<vmem>>, vector<48x128xf32>
      tpu.vector_store %arg7[%c0_11, %c0_12], %12 {strides = array<i32>} : memref<48x128xf32, #tpu.memory_space<vmem>>, vector<48x128xf32>,
    } else {
    }
    %c0 = arith.constant 0 : index
    %c0_1 = arith.constant 0 : index
    %3 = vector.load %arg7[%c0, %c0_1] : memref<48x128xf32, #tpu.memory_space<vmem>>, vector<48x128xf32>
    %c0_2 = arith.constant 0 : index
    %c0_3 = arith.constant 0 : index
    %4 = vector.load %arg3[%c0_2, %c0_3] : memref<48x64xbf16, #tpu.memory_space<vmem>>, vector<48x64xbf16>
    %c0_4 = arith.constant 0 : index
    %c0_5 = arith.constant 0 : index
    %5 = vector.load %arg4[%c0_4, %c0_5] : memref<64x128xbf16, #tpu.memory_space<vmem>>, vector<64x128xbf16>
    %cst = arith.constant dense<0.000000e+00> : vector<48x128xf32>
    %6 = tpu.matmul %4, %5, %cst {dimension_numbers = #tpu.dot_dimension_numbers<[1], [0], [0], [1], [0, 0, 1, 1], [], []>} : vector<48x64xbf16>, vector<64x128xbf16>, vector<48x128xf32> -> vector<48x128xf32>
    %7 = arith.addf %3, %6 : vector<48x128xf32>
    %c0_6 = arith.constant 0 : index
    %c0_7 = arith.constant 0 : index
    %8 = vector.load %arg7[%c0_6, %c0_7] : memref<48x128xf32, #tpu.memory_space<vmem>>, vector<48x128xf32>
    tpu.vector_store %arg7[%c0_6, %c0_7], %7 {strides = array<i32>} : memref<48x128xf32, #tpu.memory_space<vmem>>, vector<48x128xf32>,
    %c0_i32_8 = arith.constant 0 : i32
    %9 = arith.cmpi eq, %arg2, %c0_i32_8 : i32
    %10 = arith.extui %9 : i1 to i32
    %c0_i32_9 = arith.constant 0 : i32
    %11 = arith.cmpi ne, %10, %c0_i32_9 : i32
    scf.if %11 {
      %c0_10 = arith.constant 0 : index
      %c0_11 = arith.constant 0 : index
      %12 = vector.load %arg7[%c0_10, %c0_11] : memref<48x128xf32, #tpu.memory_space<vmem>>, vector<48x128xf32>
      %c0_12 = arith.constant 0 : index
      %c0_13 = arith.constant 0 : index
      %13 = vector.load %arg5[%c0_12, %c0_13] : memref<1x128xf32, #tpu.memory_space<vmem>>, vector<1x128xf32>
      %14 = vector.broadcast %13 : vector<1x128xf32> to vector<48x128xf32>
      %15 = arith.addf %12, %14 : vector<48x128xf32>
      %c0_14 = arith.constant 0 : index
      %c0_15 = arith.constant 0 : index
      %16 = vector.load %arg6[%c0_14, %c0_15] : memref<48x128xf32, #tpu.memory_space<vmem>>, vector<48x128xf32>
      tpu.vector_store %arg6[%c0_14, %c0_15], %15 {strides = array<i32>} : memref<48x128xf32, #tpu.memory_space<vmem>>, vector<48x128xf32>,
    } else {
    }
    return
  }
  func.func @transform_0(%arg0: i32, %arg1: i32, %arg2: i32) -> (i32, i32) {
    %c0_i32 = arith.constant 0 : i32
    return %arg0, %arg2 : i32, i32
  }
  func.func @transform_1(%arg0: i32, %arg1: i32, %arg2: i32) -> (i32, i32) {
    %c0_i32 = arith.constant 0 : i32
    return %arg2, %arg1 : i32, i32
  }
  func.func @transform_2(%arg0: i32, %arg1: i32, %arg2: i32) -> (i32, i32) {
    %c0_i32 = arith.constant 0 : i32
    %c0_i32_0 = arith.constant 0 : i32
    return %c0_i32, %arg1 : i32, i32
  }
  func.func @transform_3(%arg0: i32, %arg1: i32, %arg2: i32) -> (i32, i32) {
    %c0_i32 = arith.constant 0 : i32
    return %arg0, %arg1 : i32, i32
  }
}

module attributes {stable_mosaic.version = 11 : i64} {
  func.func @_mm_kernel(%arg0: i32, %arg1: i32, %arg2: i32, %arg3: memref<40x160xbf16, #tpu.memory_space<vmem>>, %arg4: memref<160x128xbf16, #tpu.memory_space<vmem>>, %arg5: memref<1x128xf32, #tpu.memory_space<vmem>>, %arg6: memref<40x128xf32, #tpu.memory_space<vmem>>, %arg7: memref<40x128xf32, #tpu.memory_space<vmem>>) attributes {dimension_semantics = [#tpu.dimension_semantics<parallel>, #tpu.dimension_semantics<parallel>, #tpu.dimension_semantics<arbitrary>], iteration_bounds = array<i64: 1, 1, 1>, scalar_prefetch = 0 : i64, scratch_operands = 1 : i64, tpu.core_type = #tpu.core_type<tc>, window_params = [{transform_indices = @transform_0, window_bounds = array<i64: 40, 160>}, {transform_indices = @transform_1, window_bounds = array<i64: 160, 128>}, {transform_indices = @transform_2, window_bounds = array<i64: 1, 128>}, {transform_indices = @transform_3, window_bounds = array<i64: 40, 128>}]} {
    %c0_i32 = arith.constant 0 : i32
    %0 = arith.cmpi eq, %arg2, %c0_i32 : i32
    %1 = arith.extui %0 : i1 to i32
    %c0_i32_0 = arith.constant 0 : i32
    %2 = arith.cmpi ne, %1, %c0_i32_0 : i32
    scf.if %2 {
      %cst_10 = arith.constant 0.000000e+00 : f32
      %12 = vector.broadcast %cst_10 : f32 to vector<40x128xf32>
      %c0_11 = arith.constant 0 : index
      %c0_12 = arith.constant 0 : index
      %13 = vector.load %arg7[%c0_11, %c0_12] : memref<40x128xf32, #tpu.memory_space<vmem>>, vector<40x128xf32>
      tpu.vector_store %arg7[%c0_11, %c0_12], %12 {strides = array<i32>} : memref<40x128xf32, #tpu.memory_space<vmem>>, vector<40x128xf32>,
    } else {
    }
    %c0 = arith.constant 0 : index
    %c0_1 = arith.constant 0 : index
    %3 = vector.load %arg7[%c0, %c0_1] : memref<40x128xf32, #tpu.memory_space<vmem>>, vector<40x128xf32>
    %c0_2 = arith.constant 0 : index
    %c0_3 = arith.constant 0 : index
    %4 = vector.load %arg3[%c0_2, %c0_3] : memref<40x160xbf16, #tpu.memory_space<vmem>>, vector<40x160xbf16>
    %c0_4 = arith.constant 0 : index
    %c0_5 = arith.constant 0 : index
    %5 = vector.load %arg4[%c0_4, %c0_5] : memref<160x128xbf16, #tpu.memory_space<vmem>>, vector<160x128xbf16>
    %cst = arith.constant dense<0.000000e+00> : vector<40x128xf32>
    %6 = tpu.matmul %4, %5, %cst {dimension_numbers = #tpu.dot_dimension_numbers<[1], [0], [0], [1], [0, 0, 1, 1], [], []>} : vector<40x160xbf16>, vector<160x128xbf16>, vector<40x128xf32> -> vector<40x128xf32>
    %7 = arith.addf %3, %6 : vector<40x128xf32>
    %c0_6 = arith.constant 0 : index
    %c0_7 = arith.constant 0 : index
    %8 = vector.load %arg7[%c0_6, %c0_7] : memref<40x128xf32, #tpu.memory_space<vmem>>, vector<40x128xf32>
    tpu.vector_store %arg7[%c0_6, %c0_7], %7 {strides = array<i32>} : memref<40x128xf32, #tpu.memory_space<vmem>>, vector<40x128xf32>,
    %c0_i32_8 = arith.constant 0 : i32
    %9 = arith.cmpi eq, %arg2, %c0_i32_8 : i32
    %10 = arith.extui %9 : i1 to i32
    %c0_i32_9 = arith.constant 0 : i32
    %11 = arith.cmpi ne, %10, %c0_i32_9 : i32
    scf.if %11 {
      %c0_10 = arith.constant 0 : index
      %c0_11 = arith.constant 0 : index
      %12 = vector.load %arg7[%c0_10, %c0_11] : memref<40x128xf32, #tpu.memory_space<vmem>>, vector<40x128xf32>
      %c0_12 = arith.constant 0 : index
      %c0_13 = arith.constant 0 : index
      %13 = vector.load %arg5[%c0_12, %c0_13] : memref<1x128xf32, #tpu.memory_space<vmem>>, vector<1x128xf32>
      %14 = vector.broadcast %13 : vector<1x128xf32> to vector<40x128xf32>
      %15 = arith.addf %12, %14 : vector<40x128xf32>
      %cst_14 = arith.constant 0.000000e+00 : f32
      %16 = vector.broadcast %cst_14 : f32 to vector<40x128xf32>
      %17 = arith.maximumf %15, %16 : vector<40x128xf32>
      %c0_15 = arith.constant 0 : index
      %c0_16 = arith.constant 0 : index
      %18 = vector.load %arg6[%c0_15, %c0_16] : memref<40x128xf32, #tpu.memory_space<vmem>>, vector<40x128xf32>
      tpu.vector_store %arg6[%c0_15, %c0_16], %17 {strides = array<i32>} : memref<40x128xf32, #tpu.memory_space<vmem>>, vector<40x128xf32>,
    } else {
    }
    return
  }
  func.func @transform_0(%arg0: i32, %arg1: i32, %arg2: i32) -> (i32, i32) {
    %c0_i32 = arith.constant 0 : i32
    return %arg0, %arg2 : i32, i32
  }
  func.func @transform_1(%arg0: i32, %arg1: i32, %arg2: i32) -> (i32, i32) {
    %c0_i32 = arith.constant 0 : i32
    return %arg2, %arg1 : i32, i32
  }
  func.func @transform_2(%arg0: i32, %arg1: i32, %arg2: i32) -> (i32, i32) {
    %c0_i32 = arith.constant 0 : i32
    %c0_i32_0 = arith.constant 0 : i32
    return %c0_i32, %arg1 : i32, i32
  }
  func.func @transform_3(%arg0: i32, %arg1: i32, %arg2: i32) -> (i32, i32) {
    %c0_i32 = arith.constant 0 : i32
    return %arg0, %arg1 : i32, i32
  }
}

module attributes {stable_mosaic.version = 11 : i64} {
  func.func @_mm_kernel(%arg0: i32, %arg1: i32, %arg2: i32, %arg3: memref<16x160xbf16, #tpu.memory_space<vmem>>, %arg4: memref<160x128xbf16, #tpu.memory_space<vmem>>, %arg5: memref<1x128xf32, #tpu.memory_space<vmem>>, %arg6: memref<16x128xf32, #tpu.memory_space<vmem>>, %arg7: memref<16x128xf32, #tpu.memory_space<vmem>>) attributes {dimension_semantics = [#tpu.dimension_semantics<parallel>, #tpu.dimension_semantics<parallel>, #tpu.dimension_semantics<arbitrary>], iteration_bounds = array<i64: 1, 1, 1>, scalar_prefetch = 0 : i64, scratch_operands = 1 : i64, tpu.core_type = #tpu.core_type<tc>, window_params = [{transform_indices = @transform_0, window_bounds = array<i64: 16, 160>}, {transform_indices = @transform_1, window_bounds = array<i64: 160, 128>}, {transform_indices = @transform_2, window_bounds = array<i64: 1, 128>}, {transform_indices = @transform_3, window_bounds = array<i64: 16, 128>}]} {
    %c0_i32 = arith.constant 0 : i32
    %0 = arith.cmpi eq, %arg2, %c0_i32 : i32
    %1 = arith.extui %0 : i1 to i32
    %c0_i32_0 = arith.constant 0 : i32
    %2 = arith.cmpi ne, %1, %c0_i32_0 : i32
    scf.if %2 {
      %cst_10 = arith.constant 0.000000e+00 : f32
      %12 = vector.broadcast %cst_10 : f32 to vector<16x128xf32>
      %c0_11 = arith.constant 0 : index
      %c0_12 = arith.constant 0 : index
      %13 = vector.load %arg7[%c0_11, %c0_12] : memref<16x128xf32, #tpu.memory_space<vmem>>, vector<16x128xf32>
      tpu.vector_store %arg7[%c0_11, %c0_12], %12 {strides = array<i32>} : memref<16x128xf32, #tpu.memory_space<vmem>>, vector<16x128xf32>,
    } else {
    }
    %c0 = arith.constant 0 : index
    %c0_1 = arith.constant 0 : index
    %3 = vector.load %arg7[%c0, %c0_1] : memref<16x128xf32, #tpu.memory_space<vmem>>, vector<16x128xf32>
    %c0_2 = arith.constant 0 : index
    %c0_3 = arith.constant 0 : index
    %4 = vector.load %arg3[%c0_2, %c0_3] : memref<16x160xbf16, #tpu.memory_space<vmem>>, vector<16x160xbf16>
    %c0_4 = arith.constant 0 : index
    %c0_5 = arith.constant 0 : index
    %5 = vector.load %arg4[%c0_4, %c0_5] : memref<160x128xbf16, #tpu.memory_space<vmem>>, vector<160x128xbf16>
    %cst = arith.constant dense<0.000000e+00> : vector<16x128xf32>
    %6 = tpu.matmul %4, %5, %cst {dimension_numbers = #tpu.dot_dimension_numbers<[1], [0], [0], [1], [0, 0, 1, 1], [], []>} : vector<16x160xbf16>, vector<160x128xbf16>, vector<16x128xf32> -> vector<16x128xf32>
    %7 = arith.addf %3, %6 : vector<16x128xf32>
    %c0_6 = arith.constant 0 : index
    %c0_7 = arith.constant 0 : index
    %8 = vector.load %arg7[%c0_6, %c0_7] : memref<16x128xf32, #tpu.memory_space<vmem>>, vector<16x128xf32>
    tpu.vector_store %arg7[%c0_6, %c0_7], %7 {strides = array<i32>} : memref<16x128xf32, #tpu.memory_space<vmem>>, vector<16x128xf32>,
    %c0_i32_8 = arith.constant 0 : i32
    %9 = arith.cmpi eq, %arg2, %c0_i32_8 : i32
    %10 = arith.extui %9 : i1 to i32
    %c0_i32_9 = arith.constant 0 : i32
    %11 = arith.cmpi ne, %10, %c0_i32_9 : i32
    scf.if %11 {
      %c0_10 = arith.constant 0 : index
      %c0_11 = arith.constant 0 : index
      %12 = vector.load %arg7[%c0_10, %c0_11] : memref<16x128xf32, #tpu.memory_space<vmem>>, vector<16x128xf32>
      %c0_12 = arith.constant 0 : index
      %c0_13 = arith.constant 0 : index
      %13 = vector.load %arg5[%c0_12, %c0_13] : memref<1x128xf32, #tpu.memory_space<vmem>>, vector<1x128xf32>
      %14 = vector.broadcast %13 : vector<1x128xf32> to vector<16x128xf32>
      %15 = arith.addf %12, %14 : vector<16x128xf32>
      %cst_14 = arith.constant 0.000000e+00 : f32
      %16 = vector.broadcast %cst_14 : f32 to vector<16x128xf32>
      %17 = arith.maximumf %15, %16 : vector<16x128xf32>
      %c0_15 = arith.constant 0 : index
      %c0_16 = arith.constant 0 : index
      %18 = vector.load %arg6[%c0_15, %c0_16] : memref<16x128xf32, #tpu.memory_space<vmem>>, vector<16x128xf32>
      tpu.vector_store %arg6[%c0_15, %c0_16], %17 {strides = array<i32>} : memref<16x128xf32, #tpu.memory_space<vmem>>, vector<16x128xf32>,
    } else {
    }
    return
  }
  func.func @transform_0(%arg0: i32, %arg1: i32, %arg2: i32) -> (i32, i32) {
    %c0_i32 = arith.constant 0 : i32
    return %arg0, %arg2 : i32, i32
  }
  func.func @transform_1(%arg0: i32, %arg1: i32, %arg2: i32) -> (i32, i32) {
    %c0_i32 = arith.constant 0 : i32
    return %arg2, %arg1 : i32, i32
  }
  func.func @transform_2(%arg0: i32, %arg1: i32, %arg2: i32) -> (i32, i32) {
    %c0_i32 = arith.constant 0 : i32
    %c0_i32_0 = arith.constant 0 : i32
    return %c0_i32, %arg1 : i32, i32
  }
  func.func @transform_3(%arg0: i32, %arg1: i32, %arg2: i32) -> (i32, i32) {
    %c0_i32 = arith.constant 0 : i32
    return %arg0, %arg1 : i32, i32
  }
}

module attributes {stable_mosaic.version = 11 : i64} {
  func.func @_mm_kernel(%arg0: i32, %arg1: i32, %arg2: i32, %arg3: memref<8x32xbf16, #tpu.memory_space<vmem>>, %arg4: memref<32x256xbf16, #tpu.memory_space<vmem>>, %arg5: memref<1x256xf32, #tpu.memory_space<vmem>>, %arg6: memref<8x256xf32, #tpu.memory_space<vmem>>, %arg7: memref<8x256xf32, #tpu.memory_space<vmem>>) attributes {dimension_semantics = [#tpu.dimension_semantics<parallel>, #tpu.dimension_semantics<parallel>, #tpu.dimension_semantics<arbitrary>], iteration_bounds = array<i64: 1, 4, 1>, scalar_prefetch = 0 : i64, scratch_operands = 1 : i64, tpu.core_type = #tpu.core_type<tc>, window_params = [{transform_indices = @transform_0, window_bounds = array<i64: 8, 32>}, {transform_indices = @transform_1, window_bounds = array<i64: 32, 256>}, {transform_indices = @transform_2, window_bounds = array<i64: 1, 256>}, {transform_indices = @transform_3, window_bounds = array<i64: 8, 256>}]} {
    %c0_i32 = arith.constant 0 : i32
    %0 = arith.cmpi eq, %arg2, %c0_i32 : i32
    %1 = arith.extui %0 : i1 to i32
    %c0_i32_0 = arith.constant 0 : i32
    %2 = arith.cmpi ne, %1, %c0_i32_0 : i32
    scf.if %2 {
      %cst_10 = arith.constant 0.000000e+00 : f32
      %12 = vector.broadcast %cst_10 : f32 to vector<8x256xf32>
      %c0_11 = arith.constant 0 : index
      %c0_12 = arith.constant 0 : index
      %13 = vector.load %arg7[%c0_11, %c0_12] : memref<8x256xf32, #tpu.memory_space<vmem>>, vector<8x256xf32>
      tpu.vector_store %arg7[%c0_11, %c0_12], %12 {strides = array<i32>} : memref<8x256xf32, #tpu.memory_space<vmem>>, vector<8x256xf32>,
    } else {
    }
    %c0 = arith.constant 0 : index
    %c0_1 = arith.constant 0 : index
    %3 = vector.load %arg7[%c0, %c0_1] : memref<8x256xf32, #tpu.memory_space<vmem>>, vector<8x256xf32>
    %c0_2 = arith.constant 0 : index
    %c0_3 = arith.constant 0 : index
    %4 = vector.load %arg3[%c0_2, %c0_3] : memref<8x32xbf16, #tpu.memory_space<vmem>>, vector<8x32xbf16>
    %c0_4 = arith.constant 0 : index
    %c0_5 = arith.constant 0 : index
    %5 = vector.load %arg4[%c0_4, %c0_5] : memref<32x256xbf16, #tpu.memory_space<vmem>>, vector<32x256xbf16>
    %cst = arith.constant dense<0.000000e+00> : vector<8x256xf32>
    %6 = tpu.matmul %4, %5, %cst {dimension_numbers = #tpu.dot_dimension_numbers<[1], [0], [0], [1], [0, 0, 1, 1], [], []>} : vector<8x32xbf16>, vector<32x256xbf16>, vector<8x256xf32> -> vector<8x256xf32>
    %7 = arith.addf %3, %6 : vector<8x256xf32>
    %c0_6 = arith.constant 0 : index
    %c0_7 = arith.constant 0 : index
    %8 = vector.load %arg7[%c0_6, %c0_7] : memref<8x256xf32, #tpu.memory_space<vmem>>, vector<8x256xf32>
    tpu.vector_store %arg7[%c0_6, %c0_7], %7 {strides = array<i32>} : memref<8x256xf32, #tpu.memory_space<vmem>>, vector<8x256xf32>,
    %c0_i32_8 = arith.constant 0 : i32
    %9 = arith.cmpi eq, %arg2, %c0_i32_8 : i32
    %10 = arith.extui %9 : i1 to i32
    %c0_i32_9 = arith.constant 0 : i32
    %11 = arith.cmpi ne, %10, %c0_i32_9 : i32
    scf.if %11 {
      %c0_10 = arith.constant 0 : index
      %c0_11 = arith.constant 0 : index
      %12 = vector.load %arg7[%c0_10, %c0_11] : memref<8x256xf32, #tpu.memory_space<vmem>>, vector<8x256xf32>
      %c0_12 = arith.constant 0 : index
      %c0_13 = arith.constant 0 : index
      %13 = vector.load %arg5[%c0_12, %c0_13] : memref<1x256xf32, #tpu.memory_space<vmem>>, vector<1x256xf32>
      %14 = vector.broadcast %13 : vector<1x256xf32> to vector<8x256xf32>
      %15 = arith.addf %12, %14 : vector<8x256xf32>
      %c0_14 = arith.constant 0 : index
      %c0_15 = arith.constant 0 : index
      %16 = vector.load %arg6[%c0_14, %c0_15] : memref<8x256xf32, #tpu.memory_space<vmem>>, vector<8x256xf32>
      tpu.vector_store %arg6[%c0_14, %c0_15], %15 {strides = array<i32>} : memref<8x256xf32, #tpu.memory_space<vmem>>, vector<8x256xf32>,
    } else {
    }
    return
  }
  func.func @transform_0(%arg0: i32, %arg1: i32, %arg2: i32) -> (i32, i32) {
    %c0_i32 = arith.constant 0 : i32
    return %arg0, %arg2 : i32, i32
  }
  func.func @transform_1(%arg0: i32, %arg1: i32, %arg2: i32) -> (i32, i32) {
    %c0_i32 = arith.constant 0 : i32
    return %arg2, %arg1 : i32, i32
  }
  func.func @transform_2(%arg0: i32, %arg1: i32, %arg2: i32) -> (i32, i32) {
    %c0_i32 = arith.constant 0 : i32
    %c0_i32_0 = arith.constant 0 : i32
    return %c0_i32, %arg1 : i32, i32
  }
  func.func @transform_3(%arg0: i32, %arg1: i32, %arg2: i32) -> (i32, i32) {
    %c0_i32 = arith.constant 0 : i32
    return %arg0, %arg1 : i32, i32
  }
}

module attributes {stable_mosaic.version = 11 : i64} {
  func.func @_bilstm_kernel(%arg0: i32, %arg1: memref<1x2x8x512xf32, #tpu.memory_space<vmem>>, %arg2: memref<2x128x512xf32, #tpu.memory_space<vmem>>, %arg3: memref<1x2x8x128xf32, #tpu.memory_space<vmem>>, %arg4: memref<2x8x128xf32, #tpu.memory_space<vmem>>, %arg5: memref<2x8x128xf32, #tpu.memory_space<vmem>>) attributes {dimension_semantics = [#tpu.dimension_semantics<arbitrary>], iteration_bounds = array<i64: 3>, scalar_prefetch = 0 : i64, scratch_operands = 2 : i64, tpu.core_type = #tpu.core_type<tc>, window_params = [{transform_indices = @transform_0, window_bounds = array<i64: 1, 2, 8, 512>}, {pipeline_mode = #tpu.pipeline_mode<synchronous>, transform_indices = @transform_1, window_bounds = array<i64: 2, 128, 512>}, {transform_indices = @transform_2, window_bounds = array<i64: 1, 2, 8, 128>}]} {
    %c0_i32 = arith.constant 0 : i32
    %0 = arith.cmpi eq, %arg0, %c0_i32 : i32
    %1 = arith.extui %0 : i1 to i32
    %c0_i32_0 = arith.constant 0 : i32
    %2 = arith.cmpi ne, %1, %c0_i32_0 : i32
    scf.if %2 {
      %cst_26 = arith.constant 0.000000e+00 : f32
      %40 = vector.broadcast %cst_26 : f32 to vector<2x8x128xf32>
      %c0_27 = arith.constant 0 : index
      %c0_28 = arith.constant 0 : index
      %c0_29 = arith.constant 0 : index
      %41 = vector.load %arg4[%c0_27, %c0_28, %c0_29] : memref<2x8x128xf32, #tpu.memory_space<vmem>>, vector<2x8x128xf32>
      tpu.vector_store %arg4[%c0_27, %c0_28, %c0_29], %40 {strides = array<i32>} : memref<2x8x128xf32, #tpu.memory_space<vmem>>, vector<2x8x128xf32>,
      %cst_30 = arith.constant 0.000000e+00 : f32
      %42 = vector.broadcast %cst_30 : f32 to vector<2x8x128xf32>
      %c0_31 = arith.constant 0 : index
      %c0_32 = arith.constant 0 : index
      %c0_33 = arith.constant 0 : index
      %43 = vector.load %arg5[%c0_31, %c0_32, %c0_33] : memref<2x8x128xf32, #tpu.memory_space<vmem>>, vector<2x8x128xf32>
      tpu.vector_store %arg5[%c0_31, %c0_32, %c0_33], %42 {strides = array<i32>} : memref<2x8x128xf32, #tpu.memory_space<vmem>>, vector<2x8x128xf32>,
    } else {
    }
    %c0 = arith.constant 0 : index
    %c0_1 = arith.constant 0 : index
    %c0_2 = arith.constant 0 : index
    %3 = vector.load %arg4[%c0, %c0_1, %c0_2] : memref<2x8x128xf32, #tpu.memory_space<vmem>>, vector<2x8x128xf32>
    %c0_3 = arith.constant 0 : index
    %c0_4 = arith.constant 0 : index
    %c0_5 = arith.constant 0 : index
    %4 = vector.load %arg5[%c0_3, %c0_4, %c0_5] : memref<2x8x128xf32, #tpu.memory_space<vmem>>, vector<2x8x128xf32>
    %c0_6 = arith.constant 0 : index
    %c0_7 = arith.constant 0 : index
    %c0_8 = arith.constant 0 : index
    %c0_9 = arith.constant 0 : index
    %5 = vector.load %arg1[%c0_6, %c0_7, %c0_8, %c0_9] : memref<1x2x8x512xf32, #tpu.memory_space<vmem>>, vector<1x2x8x512xf32>
    %6 = vector.shape_cast %5 : vector<1x2x8x512xf32> to vector<2x8x512xf32>
    %c0_10 = arith.constant 0 : index
    %c0_11 = arith.constant 0 : index
    %c0_12 = arith.constant 0 : index
    %7 = vector.load %arg2[%c0_10, %c0_11, %c0_12] : memref<2x128x512xf32, #tpu.memory_space<vmem>>, vector<2x128x512xf32>
    "tpu.trace_start"() <{level = 10 : i32, message = "dbh,dhg->dbg"}> : () -> ()
    %cst = arith.constant dense<0.000000e+00> : vector<2x8x512xf32>
    %8 = tpu.matmul %3, %7, %cst {dimension_numbers = #tpu.dot_dimension_numbers<[2], [1], [1], [2], [0, 0, 0, 1, 1, 2], [0], [0]>} : vector<2x8x128xf32>, vector<2x128x512xf32>, vector<2x8x512xf32> -> vector<2x8x512xf32>
    "tpu.trace_stop"() : () -> ()
    %9 = arith.addf %6, %8 : vector<2x8x512xf32>
    %10 = vector.extract_strided_slice %9 {offsets = [0, 0, 0], sizes = [2, 8, 128], strides = [1, 1, 1]} : vector<2x8x512xf32> to vector<2x8x128xf32>
    %11 = arith.negf %10 : vector<2x8x128xf32>
    %12 = math.exp %11 : vector<2x8x128xf32>
    %cst_13 = arith.constant 1.000000e+00 : f32
    %13 = vector.broadcast %cst_13 : f32 to vector<2x8x128xf32>
    %14 = arith.addf %13, %12 : vector<2x8x128xf32>
    %15 = arith.divf %13, %14 : vector<2x8x128xf32>
    %16 = vector.extract_strided_slice %9 {offsets = [0, 0, 128], sizes = [2, 8, 128], strides = [1, 1, 1]} : vector<2x8x512xf32> to vector<2x8x128xf32>
    %17 = arith.negf %16 : vector<2x8x128xf32>
    %18 = math.exp %17 : vector<2x8x128xf32>
    %cst_14 = arith.constant 1.000000e+00 : f32
    %19 = vector.broadcast %cst_14 : f32 to vector<2x8x128xf32>
    %20 = arith.addf %19, %18 : vector<2x8x128xf32>
    %21 = arith.divf %19, %20 : vector<2x8x128xf32>
    %22 = vector.extract_strided_slice %9 {offsets = [0, 0, 256], sizes = [2, 8, 128], strides = [1, 1, 1]} : vector<2x8x512xf32> to vector<2x8x128xf32>
    %23 = math.tanh %22 : vector<2x8x128xf32>
    %24 = vector.extract_strided_slice %9 {offsets = [0, 0, 384], sizes = [2, 8, 128], strides = [1, 1, 1]} : vector<2x8x512xf32> to vector<2x8x128xf32>
    %25 = arith.negf %24 : vector<2x8x128xf32>
    %26 = math.exp %25 : vector<2x8x128xf32>
    %cst_15 = arith.constant 1.000000e+00 : f32
    %27 = vector.broadcast %cst_15 : f32 to vector<2x8x128xf32>
    %28 = arith.addf %27, %26 : vector<2x8x128xf32>
    %29 = arith.divf %27, %28 : vector<2x8x128xf32>
    %30 = arith.mulf %21, %4 : vector<2x8x128xf32>
    %31 = arith.mulf %15, %23 : vector<2x8x128xf32>
    %32 = arith.addf %30, %31 : vector<2x8x128xf32>
    %33 = math.tanh %32 : vector<2x8x128xf32>
    %34 = arith.mulf %29, %33 : vector<2x8x128xf32>
    %c0_16 = arith.constant 0 : index
    %c0_17 = arith.constant 0 : index
    %c0_18 = arith.constant 0 : index
    %35 = vector.load %arg4[%c0_16, %c0_17, %c0_18] : memref<2x8x128xf32, #tpu.memory_space<vmem>>, vector<2x8x128xf32>
    tpu.vector_store %arg4[%c0_16, %c0_17, %c0_18], %34 {strides = array<i32>} : memref<2x8x128xf32, #tpu.memory_space<vmem>>, vector<2x8x128xf32>,
    %c0_19 = arith.constant 0 : index
    %c0_20 = arith.constant 0 : index
    %c0_21 = arith.constant 0 : index
    %36 = vector.load %arg5[%c0_19, %c0_20, %c0_21] : memref<2x8x128xf32, #tpu.memory_space<vmem>>, vector<2x8x128xf32>
    tpu.vector_store %arg5[%c0_19, %c0_20, %c0_21], %32 {strides = array<i32>} : memref<2x8x128xf32, #tpu.memory_space<vmem>>, vector<2x8x128xf32>,
    %c0_22 = arith.constant 0 : index
    %c0_23 = arith.constant 0 : index
    %c0_24 = arith.constant 0 : index
    %c0_25 = arith.constant 0 : index
    %37 = vector.load %arg3[%c0_22, %c0_23, %c0_24, %c0_25] : memref<1x2x8x128xf32, #tpu.memory_space<vmem>>, vector<1x2x8x128xf32>
    %38 = vector.shape_cast %37 : vector<1x2x8x128xf32> to vector<2x8x128xf32>
    %39 = vector.shape_cast %34 : vector<2x8x128xf32> to vector<1x2x8x128xf32>
    tpu.vector_store %arg3[%c0_22, %c0_23, %c0_24, %c0_25], %39 {strides = array<i32>} : memref<1x2x8x128xf32, #tpu.memory_space<vmem>>, vector<1x2x8x128xf32>,
    return
  }
  func.func @transform_0(%arg0: i32) -> (i32, i32, i32, i32) {
    %c0_i32 = arith.constant 0 : i32
    %c0_i32_0 = arith.constant 0 : i32
    %c0_i32_1 = arith.constant 0 : i32
    %c0_i32_2 = arith.constant 0 : i32
    return %arg0, %c0_i32, %c0_i32_0, %c0_i32_1 : i32, i32, i32, i32
  }
  func.func @transform_1(%arg0: i32) -> (i32, i32, i32) {
    %c0_i32 = arith.constant 0 : i32
    %c0_i32_0 = arith.constant 0 : i32
    %c0_i32_1 = arith.constant 0 : i32
    %c0_i32_2 = arith.constant 0 : i32
    return %c0_i32, %c0_i32_0, %c0_i32_1 : i32, i32, i32
  }
  func.func @transform_2(%arg0: i32) -> (i32, i32, i32, i32) {
    %c0_i32 = arith.constant 0 : i32
    %c0_i32_0 = arith.constant 0 : i32
    %c0_i32_1 = arith.constant 0 : i32
    %c0_i32_2 = arith.constant 0 : i32
    return %arg0, %c0_i32, %c0_i32_0, %c0_i32_1 : i32, i32, i32, i32
  }
}

module attributes {stable_mosaic.version = 11 : i64} {
  func.func @_mm_kernel(%arg0: i32, %arg1: i32, %arg2: i32, %arg3: memref<8x32xbf16, #tpu.memory_space<vmem>>, %arg4: memref<32x128xbf16, #tpu.memory_space<vmem>>, %arg5: memref<1x128xf32, #tpu.memory_space<vmem>>, %arg6: memref<8x128xf32, #tpu.memory_space<vmem>>, %arg7: memref<8x128xf32, #tpu.memory_space<vmem>>) attributes {dimension_semantics = [#tpu.dimension_semantics<parallel>, #tpu.dimension_semantics<parallel>, #tpu.dimension_semantics<arbitrary>], iteration_bounds = array<i64: 1, 1, 1>, scalar_prefetch = 0 : i64, scratch_operands = 1 : i64, tpu.core_type = #tpu.core_type<tc>, window_params = [{transform_indices = @transform_0, window_bounds = array<i64: 8, 32>}, {transform_indices = @transform_1, window_bounds = array<i64: 32, 128>}, {transform_indices = @transform_2, window_bounds = array<i64: 1, 128>}, {transform_indices = @transform_3, window_bounds = array<i64: 8, 128>}]} {
    %c0_i32 = arith.constant 0 : i32
    %0 = arith.cmpi eq, %arg2, %c0_i32 : i32
    %1 = arith.extui %0 : i1 to i32
    %c0_i32_0 = arith.constant 0 : i32
    %2 = arith.cmpi ne, %1, %c0_i32_0 : i32
    scf.if %2 {
      %cst_10 = arith.constant 0.000000e+00 : f32
      %12 = vector.broadcast %cst_10 : f32 to vector<8x128xf32>
      %c0_11 = arith.constant 0 : index
      %c0_12 = arith.constant 0 : index
      %13 = vector.load %arg7[%c0_11, %c0_12] : memref<8x128xf32, #tpu.memory_space<vmem>>, vector<8x128xf32>
      tpu.vector_store %arg7[%c0_11, %c0_12], %12 {strides = array<i32>} : memref<8x128xf32, #tpu.memory_space<vmem>>, vector<8x128xf32>,
    } else {
    }
    %c0 = arith.constant 0 : index
    %c0_1 = arith.constant 0 : index
    %3 = vector.load %arg7[%c0, %c0_1] : memref<8x128xf32, #tpu.memory_space<vmem>>, vector<8x128xf32>
    %c0_2 = arith.constant 0 : index
    %c0_3 = arith.constant 0 : index
    %4 = vector.load %arg3[%c0_2, %c0_3] : memref<8x32xbf16, #tpu.memory_space<vmem>>, vector<8x32xbf16>
    %c0_4 = arith.constant 0 : index
    %c0_5 = arith.constant 0 : index
    %5 = vector.load %arg4[%c0_4, %c0_5] : memref<32x128xbf16, #tpu.memory_space<vmem>>, vector<32x128xbf16>
    %cst = arith.constant dense<0.000000e+00> : vector<8x128xf32>
    %6 = tpu.matmul %4, %5, %cst {dimension_numbers = #tpu.dot_dimension_numbers<[1], [0], [0], [1], [0, 0, 1, 1], [], []>} : vector<8x32xbf16>, vector<32x128xbf16>, vector<8x128xf32> -> vector<8x128xf32>
    %7 = arith.addf %3, %6 : vector<8x128xf32>
    %c0_6 = arith.constant 0 : index
    %c0_7 = arith.constant 0 : index
    %8 = vector.load %arg7[%c0_6, %c0_7] : memref<8x128xf32, #tpu.memory_space<vmem>>, vector<8x128xf32>
    tpu.vector_store %arg7[%c0_6, %c0_7], %7 {strides = array<i32>} : memref<8x128xf32, #tpu.memory_space<vmem>>, vector<8x128xf32>,
    %c0_i32_8 = arith.constant 0 : i32
    %9 = arith.cmpi eq, %arg2, %c0_i32_8 : i32
    %10 = arith.extui %9 : i1 to i32
    %c0_i32_9 = arith.constant 0 : i32
    %11 = arith.cmpi ne, %10, %c0_i32_9 : i32
    scf.if %11 {
      %c0_10 = arith.constant 0 : index
      %c0_11 = arith.constant 0 : index
      %12 = vector.load %arg7[%c0_10, %c0_11] : memref<8x128xf32, #tpu.memory_space<vmem>>, vector<8x128xf32>
      %c0_12 = arith.constant 0 : index
      %c0_13 = arith.constant 0 : index
      %13 = vector.load %arg5[%c0_12, %c0_13] : memref<1x128xf32, #tpu.memory_space<vmem>>, vector<1x128xf32>
      %14 = vector.broadcast %13 : vector<1x128xf32> to vector<8x128xf32>
      %15 = arith.addf %12, %14 : vector<8x128xf32>
      %c0_14 = arith.constant 0 : index
      %c0_15 = arith.constant 0 : index
      %16 = vector.load %arg6[%c0_14, %c0_15] : memref<8x128xf32, #tpu.memory_space<vmem>>, vector<8x128xf32>
      tpu.vector_store %arg6[%c0_14, %c0_15], %15 {strides = array<i32>} : memref<8x128xf32, #tpu.memory_space<vmem>>, vector<8x128xf32>,
    } else {
    }
    return
  }
  func.func @transform_0(%arg0: i32, %arg1: i32, %arg2: i32) -> (i32, i32) {
    %c0_i32 = arith.constant 0 : i32
    return %arg0, %arg2 : i32, i32
  }
  func.func @transform_1(%arg0: i32, %arg1: i32, %arg2: i32) -> (i32, i32) {
    %c0_i32 = arith.constant 0 : i32
    return %arg2, %arg1 : i32, i32
  }
  func.func @transform_2(%arg0: i32, %arg1: i32, %arg2: i32) -> (i32, i32) {
    %c0_i32 = arith.constant 0 : i32
    %c0_i32_0 = arith.constant 0 : i32
    return %c0_i32, %arg1 : i32, i32
  }
  func.func @transform_3(%arg0: i32, %arg1: i32, %arg2: i32) -> (i32, i32) {
    %c0_i32 = arith.constant 0 : i32
    return %arg0, %arg1 : i32, i32
  }
}

module attributes {stable_mosaic.version = 11 : i64} {
  func.func @_mm_kernel(%arg0: i32, %arg1: i32, %arg2: i32, %arg3: memref<8x32xbf16, #tpu.memory_space<vmem>>, %arg4: memref<32x128xbf16, #tpu.memory_space<vmem>>, %arg5: memref<1x128xf32, #tpu.memory_space<vmem>>, %arg6: memref<8x128xf32, #tpu.memory_space<vmem>>, %arg7: memref<8x128xf32, #tpu.memory_space<vmem>>) attributes {dimension_semantics = [#tpu.dimension_semantics<parallel>, #tpu.dimension_semantics<parallel>, #tpu.dimension_semantics<arbitrary>], iteration_bounds = array<i64: 1, 1, 1>, scalar_prefetch = 0 : i64, scratch_operands = 1 : i64, tpu.core_type = #tpu.core_type<tc>, window_params = [{transform_indices = @transform_0, window_bounds = array<i64: 8, 32>}, {transform_indices = @transform_1, window_bounds = array<i64: 32, 128>}, {transform_indices = @transform_2, window_bounds = array<i64: 1, 128>}, {transform_indices = @transform_3, window_bounds = array<i64: 8, 128>}]} {
    %c0_i32 = arith.constant 0 : i32
    %0 = arith.cmpi eq, %arg2, %c0_i32 : i32
    %1 = arith.extui %0 : i1 to i32
    %c0_i32_0 = arith.constant 0 : i32
    %2 = arith.cmpi ne, %1, %c0_i32_0 : i32
    scf.if %2 {
      %cst_10 = arith.constant 0.000000e+00 : f32
      %12 = vector.broadcast %cst_10 : f32 to vector<8x128xf32>
      %c0_11 = arith.constant 0 : index
      %c0_12 = arith.constant 0 : index
      %13 = vector.load %arg7[%c0_11, %c0_12] : memref<8x128xf32, #tpu.memory_space<vmem>>, vector<8x128xf32>
      tpu.vector_store %arg7[%c0_11, %c0_12], %12 {strides = array<i32>} : memref<8x128xf32, #tpu.memory_space<vmem>>, vector<8x128xf32>,
    } else {
    }
    %c0 = arith.constant 0 : index
    %c0_1 = arith.constant 0 : index
    %3 = vector.load %arg7[%c0, %c0_1] : memref<8x128xf32, #tpu.memory_space<vmem>>, vector<8x128xf32>
    %c0_2 = arith.constant 0 : index
    %c0_3 = arith.constant 0 : index
    %4 = vector.load %arg3[%c0_2, %c0_3] : memref<8x32xbf16, #tpu.memory_space<vmem>>, vector<8x32xbf16>
    %c0_4 = arith.constant 0 : index
    %c0_5 = arith.constant 0 : index
    %5 = vector.load %arg4[%c0_4, %c0_5] : memref<32x128xbf16, #tpu.memory_space<vmem>>, vector<32x128xbf16>
    %cst = arith.constant dense<0.000000e+00> : vector<8x128xf32>
    %6 = tpu.matmul %4, %5, %cst {dimension_numbers = #tpu.dot_dimension_numbers<[1], [0], [0], [1], [0, 0, 1, 1], [], []>} : vector<8x32xbf16>, vector<32x128xbf16>, vector<8x128xf32> -> vector<8x128xf32>
    %7 = arith.addf %3, %6 : vector<8x128xf32>
    %c0_6 = arith.constant 0 : index
    %c0_7 = arith.constant 0 : index
    %8 = vector.load %arg7[%c0_6, %c0_7] : memref<8x128xf32, #tpu.memory_space<vmem>>, vector<8x128xf32>
    tpu.vector_store %arg7[%c0_6, %c0_7], %7 {strides = array<i32>} : memref<8x128xf32, #tpu.memory_space<vmem>>, vector<8x128xf32>,
    %c0_i32_8 = arith.constant 0 : i32
    %9 = arith.cmpi eq, %arg2, %c0_i32_8 : i32
    %10 = arith.extui %9 : i1 to i32
    %c0_i32_9 = arith.constant 0 : i32
    %11 = arith.cmpi ne, %10, %c0_i32_9 : i32
    scf.if %11 {
      %c0_10 = arith.constant 0 : index
      %c0_11 = arith.constant 0 : index
      %12 = vector.load %arg7[%c0_10, %c0_11] : memref<8x128xf32, #tpu.memory_space<vmem>>, vector<8x128xf32>
      %c0_12 = arith.constant 0 : index
      %c0_13 = arith.constant 0 : index
      %13 = vector.load %arg5[%c0_12, %c0_13] : memref<1x128xf32, #tpu.memory_space<vmem>>, vector<1x128xf32>
      %14 = vector.broadcast %13 : vector<1x128xf32> to vector<8x128xf32>
      %15 = arith.addf %12, %14 : vector<8x128xf32>
      %c0_14 = arith.constant 0 : index
      %c0_15 = arith.constant 0 : index
      %16 = vector.load %arg6[%c0_14, %c0_15] : memref<8x128xf32, #tpu.memory_space<vmem>>, vector<8x128xf32>
      tpu.vector_store %arg6[%c0_14, %c0_15], %15 {strides = array<i32>} : memref<8x128xf32, #tpu.memory_space<vmem>>, vector<8x128xf32>,
    } else {
    }
    return
  }
  func.func @transform_0(%arg0: i32, %arg1: i32, %arg2: i32) -> (i32, i32) {
    %c0_i32 = arith.constant 0 : i32
    return %arg0, %arg2 : i32, i32
  }
  func.func @transform_1(%arg0: i32, %arg1: i32, %arg2: i32) -> (i32, i32) {
    %c0_i32 = arith.constant 0 : i32
    return %arg2, %arg1 : i32, i32
  }
  func.func @transform_2(%arg0: i32, %arg1: i32, %arg2: i32) -> (i32, i32) {
    %c0_i32 = arith.constant 0 : i32
    %c0_i32_0 = arith.constant 0 : i32
    return %c0_i32, %arg1 : i32, i32
  }
  func.func @transform_3(%arg0: i32, %arg1: i32, %arg2: i32) -> (i32, i32) {
    %c0_i32 = arith.constant 0 : i32
    return %arg0, %arg1 : i32, i32
  }
}

</mosaic_0001>

<bundles_post_ra>
// kernel: _lambda_.27
= control target key start
LH: loop header
LB: loop body
LE: loop exit
PB: predicated region body
PF: predicated region fallthrough
CT: control target
= control target key end

     0   :  { %s1452_s12 = smov 0   ;;  %s1454_s13 = smov 0   ;;  %s1681_s0 = inlined_call_operand.vmem [shape: bf16[3072,147], index: 0, kind: input, shape index: {}]   ;;  %s1682_s1 = inlined_call_operand.vmem [shape: bf16[147,128], index: 1, kind: input, shape index: {}]   ;;  %s1683_s2 = inlined_call_operand.vmem [shape: f32[1,128], index: 2, kind: input, shape index: {}]   ;;  %s1684_s3 = inlined_call_operand.vmem [shape: f32[3072,128], index: 3, kind: output, shape index: {}]  }
   0x1   :  { %s1456_s14 = smov 0  }
   0x2 LB: > { %s32_s15 = sadd.s32 1, %s1425_s13  ;;  %p1141_p0 = scmp.ge.s32.totalorder %s1429_s14, 1  ;;  %s1429_s14 = sphi %s1456_s14, %s13_s14   ;;  %s1425_s13 = sphi %s1454_s13, %s1686_s13   ;;  %s1421_s12 = sphi %s1452_s12, %s1685_s12  }
   0x3   : > { %p34_p1 = scmp.ge.s32.totalorder %s32_s15, 12  ;;  %p191_p2 = scmp.lt.s32.totalorder %s1429_s14, 13 }
   0x5   : > { %s1688_s15 = smov (%p34_p1, %s32_s15), 0  ;;  %p192_p3 = pnand %p1141_p0, %p191_p2 }
   0x6   : > { %s1142_s20 = sshll.u32 (!%p192_p3), %s1421_s12, 5 }
   0x7   : > { %195 = sbr.rel (%p192_p3) target bundleno = 303 (0x12f), region = 32  ;;  %p236_p4 = scmp.lt.s32.totalorder (!%p192_p3), %s1142_s20, 383 }
   0xc   : > { %v1369_v0 = vld [vmem:[%s1682_s1 + $0x38] sm:$0xff]  ;;  %v386_v1 = vld [vmem:[%s1682_s1 + $0x48] sm:$0x3]  ;;  %vm637_vm0 = vcmask 1040384   ;;  %vm638_vm1 = vcmask 1041408   ;;  %v1368_v3 = vld [vmem:[%s1682_s1 + $0x30] sm:$0xff] }
   0xd   : > { %v568_v2 = vunpack.c.l.b16 %v386_v1  ;;  %644 = vmatpush.bf16.msra.mxu0 %v1369_v0  ;;  %1371 = vmatpush.bf16.msra.mxu2 %v1369_v0  ;;  %v1431_v4 = vmov 65535   ;;  %s1690_s20 = smov (!%p236_p4, %s1142_s20), 383  ;;  %v1367_v9 = vld [vmem:[%s1682_s1 + $0x28] sm:$0xff]  ;;  %v1370_v10 = vld [vmem:[%s1682_s1 + $0x40] sm:$0xff]  ;;  %vm588_vm2 = vcmask 154624   ;;  %v1365_v18 = vld [vmem:[%s1682_s1 + $0x18] sm:$0xff] }
   0xe   : > { %v639_v5 = vsel %vm637_vm0, 4294967295, %v1431_v4  ;;  %s1329_s25 = sshll.u32 %s1690_s20, 3  ;;  %v1366_v14 = vld [vmem:[%s1682_s1 + $0x20] sm:$0xff]  ;;  %v1364_v19 = vld [vmem:[%s1682_s1 + $0x10] sm:$0xff]  ;;  %v1363_v20 = vld [vmem:[%s1682_s1 + $0x8] sm:$0xff] }
   0xf   : > { %v578_v6 = vpack.c.b16 %v568_v2, %v568_v2  ;;  %v640_v7 = vsel %vm638_vm1, %v639_v5, 0  ;;  %s1493_s30 = scalar_lea.vmem %s1681_s0, %s1329_s25  ;;  %v1362_v26 = vld [vmem:[%s1682_s1] sm:$0xff]  ;;  %s1601_s22 = scalar_lea.vmem %s1684_s3, %s1329_s25 }
  0x10   : > { %v1330_v11 = vld [vmem:[%s1493_s30 + $0x4] sm:$0xf]  ;;  %v1151_v12 = vld [vmem:[%s1493_s30 + $0x8] sm:$0xf0]  ;;  %v1348_v15 = vld [vmem:[%s1493_s30 + $0x94] sm:$0xf] }
  0x11   : > { %v642_v8 = vand.u32 %v640_v7, %v578_v6  ;;  %645 = vmatpush.bf16.msra.mxu0 %v1368_v3  ;;  %1372 = vmatpush.bf16.msra.mxu2 %v1368_v3  ;;  %v1154_v13 = vor.u32 %v1330_v11, %v1151_v12  ;;  %v1223_v16 = vld [vmem:[%s1493_s30 + $0x98] sm:$0xf0]  ;;  %v1332_v21 = vld [vmem:[%s1493_s30 + $0x14] sm:$0xf]  ;;  %v1350_v23 = vld [vmem:[%s1493_s30 + $0xa4] sm:$0xf] }
  0x12   : > { %v1226_v17 = vor.u32 %v1348_v15, %v1223_v16  ;;  %v1159_v22 = vld [vmem:[%s1493_s30 + $0x18] sm:$0xf0]  ;;  %v1231_v24 = vld [vmem:[%s1493_s30 + $0xa8] sm:$0xf0]  ;;  %v1149_v27 = vld [vmem:[%s1493_s30] sm:$0xf] }
  0x13   : > { %739 = vmatpush.bf16.msra.mxu1 %v642_v8  ;;  %1379 = vmatpush.bf16.msra.mxu3 %v642_v8  ;;  %v1162_v25 = vor.u32 %v1332_v21, %v1159_v22  ;;  %v1331_v28 = vld [vmem:[%s1493_s30 + $0x4] sm:$0xf0]  ;;  %v1213_v29 = vld [vmem:[%s1493_s30 + $0x80] sm:$0xf]  ;;  %v1234_v31 = vor.u32 %v1350_v23, %v1231_v24  ;;  %v1334_v34 = vld [vmem:[%s1493_s30 + $0x24] sm:$0xf] }
  0x14   : > { %v1347_v30 = vld [vmem:[%s1493_s30 + $0x84] sm:$0xf0]  ;;  %v1150_v32 = vor.u32 %v1331_v28, %v1149_v27  ;;  %v1167_v35 = vld [vmem:[%s1493_s30 + $0x28] sm:$0xf0]  ;;  %v1352_v36 = vld [vmem:[%s1493_s30 + $0xb4] sm:$0xf] }
  0x15   : > { %646 = vmatpush.bf16.msra.mxu0 %v1367_v9  ;;  %1373 = vmatpush.bf16.msra.mxu2 %v1367_v9  ;;  %v1214_v33 = vor.u32 %v1347_v30, %v1213_v29  ;;  %v1239_v37 = vld [vmem:[%s1493_s30 + $0xb8] sm:$0xf0]  ;;  %v1170_v38 = vor.u32 %v1334_v34, %v1167_v35  ;;  %v1157_v39 = vld [vmem:[%s1493_s30 + $0x10] sm:$0xf]  ;;  %v1333_v40 = vld [vmem:[%s1493_s30 + $0x14] sm:$0xf0] }
  0x16   : > { %v1221_v41 = vld [vmem:[%s1493_s30 + $0x90] sm:$0xf]  ;;  %v1349_v42 = vld [vmem:[%s1493_s30 + $0x94] sm:$0xf0]  ;;  %v1242_v43 = vor.u32 %v1352_v36, %v1239_v37  ;;  %v1158_v44 = vor.u32 %v1333_v40, %v1157_v39  ;;  %v1336_v46 = vld [vmem:[%s1493_s30 + $0x34] sm:$0xf] }
  0x17   : > { %740 = vmatpush.bf16.msra.mxu1 %v1370_v10  ;;  %1380 = vmatpush.bf16.msra.mxu3 %v1370_v10  ;;  %v1222_v45 = vor.u32 %v1349_v42, %v1221_v41  ;;  %v1175_v47 = vld [vmem:[%s1493_s30 + $0x38] sm:$0xf0]  ;;  %v1354_v48 = vld [vmem:[%s1493_s30 + $0xc4] sm:$0xf]  ;;  %v1247_v49 = vld [vmem:[%s1493_s30 + $0xc8] sm:$0xf0] }
  0x18   : > { %v1178_v50 = vor.u32 %v1336_v46, %v1175_v47  ;;  %v1165_v51 = vld [vmem:[%s1493_s30 + $0x20] sm:$0xf]  ;;  %v1335_v52 = vld [vmem:[%s1493_s30 + $0x24] sm:$0xf0]  ;;  %v1250_v55 = vor.u32 %v1354_v48, %v1247_v49  ;;  %v1338_v58 = vld [vmem:[%s1493_s30 + $0x44] sm:$0xf] }
  0x19   : > { %647 = vmatpush.bf16.msra.mxu0 %v1366_v14  ;;  %1374 = vmatpush.bf16.msra.mxu2 %v1366_v14  ;;  %v1229_v53 = vld [vmem:[%s1493_s30 + $0xa0] sm:$0xf]  ;;  %v1351_v54 = vld [vmem:[%s1493_s30 + $0xa4] sm:$0xf0]  ;;  %v1166_v56 = vor.u32 %v1335_v52, %v1165_v51  ;;  %v1183_v59 = vld [vmem:[%s1493_s30 + $0x48] sm:$0xf0] }
  0x1a   : > { %1311 = vmatmul.msk.bf16.vlgmr.msra.gmra.mxu1 %vm588_vm2, %v1154_v13  ;;  %1320 = vmatmul.msk.bf16.vlgmr.msra.gmra.mxu3 %vm588_vm2, %v1226_v17  ;;  %v1230_v57 = vor.u32 %v1351_v54, %v1229_v53  ;;  %v1356_v60 = vld [vmem:[%s1493_s30 + $0xd4] sm:$0xf]  ;;  %v1255_v61 = vld [vmem:[%s1493_s30 + $0xd8] sm:$0xf0]  ;;  %v1186_v62 = vor.u32 %v1338_v58, %v1183_v59  ;;  %v1173_v63 = vld [vmem:[%s1493_s30 + $0x30] sm:$0xf] }
  0x1b   : > { %v1337_v0 = vld [vmem:[%s1493_s30 + $0x34] sm:$0xf0]  ;;  %v1237_v1 = vld [vmem:[%s1493_s30 + $0xb0] sm:$0xf]  ;;  %v1258_v3 = vor.u32 %v1356_v60, %v1255_v61  ;;  %v1340_v6 = vld [vmem:[%s1493_s30 + $0x54] sm:$0xf] }
  0x1c   : > { %v1353_v2 = vld [vmem:[%s1493_s30 + $0xb4] sm:$0xf0]  ;;  %v1174_v4 = vor.u32 %v1337_v0, %v1173_v63  ;;  %v1191_v7 = vld [vmem:[%s1493_s30 + $0x58] sm:$0xf0]  ;;  %v1358_v8 = vld [vmem:[%s1493_s30 + $0xe4] sm:$0xf] }
  0x1d   : > { %648 = vmatpush.bf16.msra.mxu0 %v1365_v18  ;;  %1375 = vmatpush.bf16.msra.mxu2 %v1365_v18  ;;  %v1238_v5 = vor.u32 %v1353_v2, %v1237_v1  ;;  %v1263_v9 = vld [vmem:[%s1493_s30 + $0xe8] sm:$0xf0]  ;;  %v1194_v10 = vor.u32 %v1340_v6, %v1191_v7  ;;  %v1181_v11 = vld [vmem:[%s1493_s30 + $0x40] sm:$0xf]  ;;  %v1339_v12 = vld [vmem:[%s1493_s30 + $0x44] sm:$0xf0] }
  0x1e   : > { %v1245_v13 = vld [vmem:[%s1493_s30 + $0xc0] sm:$0xf]  ;;  %v1355_v14 = vld [vmem:[%s1493_s30 + $0xc4] sm:$0xf0]  ;;  %v1266_v15 = vor.u32 %v1358_v8, %v1263_v9  ;;  %v1182_v16 = vor.u32 %v1339_v12, %v1181_v11  ;;  %v1342_v18 = vld [vmem:[%s1493_s30 + $0x64] sm:$0xf] }
  0x1f   : > { %v1246_v17 = vor.u32 %v1355_v14, %v1245_v13  ;;  %v1271_v21 = vld [vmem:[%s1493_s30 + $0xf8] sm:$0xf0]  ;;  %v1189_v23 = vld [vmem:[%s1493_s30 + $0x50] sm:$0xf]  ;;  %v1341_v24 = vld [vmem:[%s1493_s30 + $0x54] sm:$0xf0] }
  0x20   : > { %v1190_v28 = vor.u32 %v1341_v24, %v1189_v23  ;;  %v1344_v30 = vld [vmem:[%s1493_s30 + $0x74] sm:$0xf]  ;;  %v1343_v34 = vld [vmem:[%s1493_s30 + $0x64] sm:$0xf0]  ;;  %v1261_v35 = vld [vmem:[%s1493_s30 + $0xe0] sm:$0xf] }
  0x21   : > { %649 = vmatpush.bf16.msra.mxu0 %v1364_v19  ;;  %1376 = vmatpush.bf16.msra.mxu2 %v1364_v19  ;;  %v1199_v19 = vld [vmem:[%s1493_s30 + $0x68] sm:$0xf0]  ;;  %v1359_v36 = vld [vmem:[%s1493_s30 + $0xe4] sm:$0xf0]  ;;  %v1346_v39 = vld [vmem:[%s1493_s30 + $0x84] sm:$0xf] }
  0x22   : > { %v1202_v22 = vor.u32 %v1342_v18, %v1199_v19  ;;  %v1215_v40 = vld [vmem:[%s1493_s30 + $0x88] sm:$0xf0]  ;;  %v1205_v42 = vld [vmem:[%s1493_s30 + $0x70] sm:$0xf]  ;;  %v1361_v46 = vld [vmem:[%s1493_s30 + $0xf4] sm:$0xf0] }
  0x23   : > { %v1218_v41 = vor.u32 %v1346_v39, %v1215_v40  ;;  %v1593_v52 = vld [vmem:[%s1683_s2] ss:$0 sm:$0xff] }
  0x25   : > { %650 = vmatpush.bf16.msra.mxu0 %v1363_v20  ;;  %1377 = vmatpush.bf16.msra.mxu2 %v1363_v20  ;;  %v1360_v20 = vld [vmem:[%s1493_s30 + $0xf4] sm:$0xf] }
  0x26   : > { %v1274_v27 = vor.u32 %v1360_v20, %v1271_v21 }
  0x29   : > { %651 = vmatpush.bf16.msra.mxu0 %v1362_v26  ;;  %1378 = vmatpush.bf16.msra.mxu2 %v1362_v26  ;;  %v1357_v26 = vld [vmem:[%s1493_s30 + $0xd4] sm:$0xf0] }
  0x2a   : > { %1312 = vmatmul.msk.bf16.gmra.mxu1 %vm588_vm2, %v1162_v25  ;;  %1321 = vmatmul.msk.bf16.gmra.mxu3 %vm588_vm2, %v1234_v31  ;;  %v1253_v25 = vld [vmem:[%s1493_s30 + $0xd0] sm:$0xf]  ;;  %v1207_v31 = vld [vmem:[%s1493_s30 + $0x78] sm:$0xf0] }
  0x2b   : > { %v1254_v29 = vor.u32 %v1357_v26, %v1253_v25 }
  0x2c   : > { %652 = vmatmul.bf16.vlgmr.msra.gmra.mxu0 %v1150_v32  ;;  %692 = vmatmul.bf16.vlgmr.msra.gmra.mxu2 %v1214_v33  ;;  %v1210_v32 = vor.u32 %v1344_v30, %v1207_v31  ;;  %v1197_v33 = vld [vmem:[%s1493_s30 + $0x60] sm:$0xf] }
  0x2d   : > { %v1198_v37 = vor.u32 %v1343_v34, %v1197_v33 }
  0x3a   : > { %1313 = vmatmul.msk.bf16.gmra.mxu1 %vm588_vm2, %v1170_v38  ;;  %1322 = vmatmul.msk.bf16.gmra.mxu3 %vm588_vm2, %v1242_v43  ;;  %v1262_v38 = vor.u32 %v1359_v36, %v1261_v35  ;;  %v1345_v43 = vld [vmem:[%s1493_s30 + $0x74] sm:$0xf0] }
  0x3b   : > { %v1206_v47 = vor.u32 %v1345_v43, %v1205_v42 }
  0x3c   : > { %657 = vmatmul.bf16.gmra.mxu0 %v1158_v44  ;;  %697 = vmatmul.bf16.gmra.mxu2 %v1222_v45  ;;  %v1269_v45 = vld [vmem:[%s1493_s30 + $0xf0] sm:$0xf] }
  0x3d   : > { %v1270_v48 = vor.u32 %v1361_v46, %v1269_v45 }
  0x4a   : > { %1314 = vmatmul.msk.bf16.gmra.mxu1 %vm588_vm2, %v1178_v50  ;;  %1323 = vmatmul.msk.bf16.gmra.mxu3 %vm588_vm2, %v1250_v55 }
  0x4c   : > { %662 = vmatmul.bf16.gmra.mxu0 %v1166_v56  ;;  %702 = vmatmul.bf16.gmra.mxu2 %v1230_v57 }
  0x5a   : > { %1315 = vmatmul.msk.bf16.gmra.mxu1 %vm588_vm2, %v1186_v62  ;;  %1324 = vmatmul.msk.bf16.gmra.mxu3 %vm588_vm2, %v1258_v3 }
  0x5c   : > { %667 = vmatmul.bf16.gmra.mxu0 %v1174_v4  ;;  %707 = vmatmul.bf16.gmra.mxu2 %v1238_v5 }
  0x6a   : > { %1316 = vmatmul.msk.bf16.gmra.mxu1 %vm588_vm2, %v1194_v10  ;;  %1325 = vmatmul.msk.bf16.gmra.mxu3 %vm588_vm2, %v1266_v15 }
  0x6c   : > { %672 = vmatmul.bf16.gmra.mxu0 %v1182_v16  ;;  %712 = vmatmul.bf16.gmra.mxu2 %v1246_v17 }
  0x7a   : > { %1317 = vmatmul.msk.bf16.gmra.mxu1 %vm588_vm2, %v1202_v22  ;;  %1326 = vmatmul.msk.bf16.gmra.mxu3 %vm588_vm2, %v1274_v27 }
  0x7c   : > { %677 = vmatmul.bf16.gmra.mxu0 %v1190_v28  ;;  %717 = vmatmul.bf16.gmra.mxu2 %v1254_v29 }
  0x8a   : > { %1318 = vmatmul.msk.bf16.gmra.mxu1 %vm588_vm2, %v1210_v32 }
  0x8c   : > { %682 = vmatmul.bf16.gmra.mxu0 %v1198_v37  ;;  %722 = vmatmul.bf16.gmra.mxu2 %v1262_v38 }
  0x97   : > { %v742_v44 = vpop.f32.mrf.mxu1 }
  0x9a   : > { %1319 = vmatmul.msk.bf16.gmra.mxu1 %vm588_vm2, %v1218_v41 }
  0x9c   : > { %687 = vmatmul.bf16.gmra.mxu0 %v1206_v47  ;;  %727 = vmatmul.bf16.gmra.mxu2 %v1270_v48 }
  0x9d   : > { %v787_v51 = vpop.f32.mrf.mxu3 }
  0x9f   : > { %v744_v49 = vpop.f32.mrf.mxu1 }
  0xa5   : > { %v789_v59 = vpop.f32.mrf.mxu3 }
  0xa7   : > { %v747_v50 = vpop.f32.mrf.mxu1 }
  0xa9   : > { %v653_v53 = vpop.f32.mrf.mxu0 }
  0xaa   : > { %v743_v54 = vadd.f32 %v742_v44, %v653_v53 }
  0xac   : > { %v925_v55 = vadd.f32 %v1593_v52, %v743_v54 }
  0xad   : > { %v792_v4 = vpop.f32.mrf.mxu3 }
  0xae   : > { %v957_v56 = vmax.f32 %v925_v55, 0.0 }
  0xaf   : > { %v749_v57 = vpop.f32.mrf.mxu1  ;;  %v1604_v58 = vpop.f32.mrf.mxu2 }
  0xb0   : > { %989 = vst [vmem:[%s1601_s22] sm:$0xff] %v957_v56 }
  0xb1   : > { %v655_v60 = vpop.f32.mrf.mxu0 }
  0xb2   : > { %v745_v61 = vadd.f32 %v744_v49, %v655_v60 }
  0xb4   : > { %v926_v62 = vadd.f32 %v1593_v52, %v745_v61 }
  0xb5   : > { %v794_v14 = vpop.f32.mrf.mxu3 }
  0xb6   : > { %v958_v63 = vmax.f32 %v926_v62, 0.0 }
  0xb7   : > { %v752_v0 = vpop.f32.mrf.mxu1  ;;  %v1608_v1 = vpop.f32.mrf.mxu2 }
  0xb8   : > { %990 = vst [vmem:[%s1601_s22 + $0x8] sm:$0xff] %v958_v63 }
  0xb9   : > { %v658_v2 = vpop.f32.mrf.mxu0 }
  0xba   : > { %v748_v3 = vadd.f32 %v747_v50, %v658_v2 }
  0xbc   : > { %v927_v5 = vadd.f32 %v1593_v52, %v748_v3 }
  0xbd   : > { %v797_v27 = vpop.f32.mrf.mxu3 }
  0xbe   : > { %v959_v6 = vmax.f32 %v927_v5, 0.0 }
  0xbf   : > { %v754_v7 = vpop.f32.mrf.mxu1  ;;  %v698_v8 = vpop.f32.mrf.mxu2 }
  0xc0   : > { %991 = vst [vmem:[%s1601_s22 + $0x10] sm:$0xff] %v959_v6  ;;  %v788_v9 = vadd.f32 %v787_v51, %v698_v8 }
  0xc1   : > { %v660_v10 = vpop.f32.mrf.mxu0 }
  0xc2   : > { %v750_v11 = vadd.f32 %v749_v57, %v660_v10  ;;  %v943_v12 = vadd.f32 %v1593_v52, %v788_v9 }
  0xc4   : > { %v928_v13 = vadd.f32 %v1593_v52, %v750_v11  ;;  %v975_v15 = vmax.f32 %v943_v12, 0.0 }
  0xc5   : > { %v799_v38 = vpop.f32.mrf.mxu3 }
  0xc6   : > { %v960_v16 = vmax.f32 %v928_v13, 0.0  ;;  %1007 = vst [vmem:[%s1601_s22 + $0x90] sm:$0xff] %v975_v15 }
  0xc7   : > { %v757_v17 = vpop.f32.mrf.mxu1  ;;  %v700_v18 = vpop.f32.mrf.mxu2 }
  0xc8   : > { %992 = vst [vmem:[%s1601_s22 + $0x18] sm:$0xff] %v960_v16  ;;  %v790_v19 = vadd.f32 %v789_v59, %v700_v18 }
  0xc9   : > { %v663_v20 = vpop.f32.mrf.mxu0 }
  0xca   : > { %v753_v21 = vadd.f32 %v752_v0, %v663_v20  ;;  %v944_v22 = vadd.f32 %v1593_v52, %v790_v19 }
  0xcc   : > { %v929_v23 = vadd.f32 %v1593_v52, %v753_v21  ;;  %v976_v24 = vmax.f32 %v944_v22, 0.0 }
  0xcd   : > { %v802_v51 = vpop.f32.mrf.mxu3 }
  0xce   : > { %v961_v25 = vmax.f32 %v929_v23, 0.0  ;;  %1008 = vst [vmem:[%s1601_s22 + $0x98] sm:$0xff] %v976_v24 }
  0xcf   : > { %v759_v26 = vpop.f32.mrf.mxu1  ;;  %v703_v28 = vpop.f32.mrf.mxu2 }
  0xd0   : > { %993 = vst [vmem:[%s1601_s22 + $0x20] sm:$0xff] %v961_v25  ;;  %v793_v29 = vadd.f32 %v792_v4, %v703_v28 }
  0xd1   : > { %v665_v30 = vpop.f32.mrf.mxu0 }
  0xd2   : > { %v755_v31 = vadd.f32 %v754_v7, %v665_v30  ;;  %v945_v32 = vadd.f32 %v1593_v52, %v793_v29 }
  0xd4   : > { %v930_v33 = vadd.f32 %v1593_v52, %v755_v31  ;;  %v977_v34 = vmax.f32 %v945_v32, 0.0 }
  0xd5   : > { %v804_v2 = vpop.f32.mrf.mxu3 }
  0xd6   : > { %v962_v35 = vmax.f32 %v930_v33, 0.0  ;;  %1009 = vst [vmem:[%s1601_s22 + $0xa0] sm:$0xff] %v977_v34 }
  0xd7   : > { %v762_v36 = vpop.f32.mrf.mxu1  ;;  %v705_v37 = vpop.f32.mrf.mxu2 }
  0xd8   : > { %994 = vst [vmem:[%s1601_s22 + $0x28] sm:$0xff] %v962_v35  ;;  %v795_v39 = vadd.f32 %v794_v14, %v705_v37 }
  0xd9   : > { %v668_v40 = vpop.f32.mrf.mxu0 }
  0xda   : > { %v758_v41 = vadd.f32 %v757_v17, %v668_v40  ;;  %v946_v42 = vadd.f32 %v1593_v52, %v795_v39 }
  0xdc   : > { %v931_v43 = vadd.f32 %v1593_v52, %v758_v41  ;;  %v978_v44 = vmax.f32 %v946_v42, 0.0 }
  0xdd   : > { %v807_v15 = vpop.f32.mrf.mxu3 }
  0xde   : > { %v963_v45 = vmax.f32 %v931_v43, 0.0  ;;  %1010 = vst [vmem:[%s1601_s22 + $0xa8] sm:$0xff] %v978_v44 }
  0xdf   : > { %v764_v46 = vpop.f32.mrf.mxu1  ;;  %v708_v47 = vpop.f32.mrf.mxu2 }
  0xe0   : > { %995 = vst [vmem:[%s1601_s22 + $0x30] sm:$0xff] %v963_v45  ;;  %v798_v48 = vadd.f32 %v797_v27, %v708_v47 }
  0xe1   : > { %v670_v49 = vpop.f32.mrf.mxu0 }
  0xe2   : > { %v760_v50 = vadd.f32 %v759_v26, %v670_v49  ;;  %v947_v53 = vadd.f32 %v1593_v52, %v798_v48 }
  0xe4   : > { %v932_v54 = vadd.f32 %v1593_v52, %v760_v50  ;;  %v979_v55 = vmax.f32 %v947_v53, 0.0 }
  0xe5   : > { %v809_v26 = vpop.f32.mrf.mxu3 }
  0xe6   : > { %v964_v56 = vmax.f32 %v932_v54, 0.0  ;;  %1011 = vst [vmem:[%s1601_s22 + $0xb0] sm:$0xff] %v979_v55 }
  0xe7   : > { %v767_v57 = vpop.f32.mrf.mxu1  ;;  %v710_v59 = vpop.f32.mrf.mxu2 }
  0xe8   : > { %996 = vst [vmem:[%s1601_s22 + $0x38] sm:$0xff] %v964_v56  ;;  %v800_v60 = vadd.f32 %v799_v38, %v710_v59 }
  0xe9   : > { %v673_v61 = vpop.f32.mrf.mxu0 }
  0xea   : > { %v763_v62 = vadd.f32 %v762_v36, %v673_v61  ;;  %v948_v63 = vadd.f32 %v1593_v52, %v800_v60 }
  0xec   : > { %v933_v0 = vadd.f32 %v1593_v52, %v763_v62  ;;  %v980_v3 = vmax.f32 %v948_v63, 0.0 }
  0xed   : > { %v812_v38 = vpop.f32.mrf.mxu3 }
  0xee   : > { %v965_v4 = vmax.f32 %v933_v0, 0.0  ;;  %1012 = vst [vmem:[%s1601_s22 + $0xb8] sm:$0xff] %v980_v3 }
  0xef   : > { %v769_v5 = vpop.f32.mrf.mxu1  ;;  %v713_v6 = vpop.f32.mrf.mxu2 }
  0xf0   : > { %997 = vst [vmem:[%s1601_s22 + $0x40] sm:$0xff] %v965_v4  ;;  %v803_v7 = vadd.f32 %v802_v51, %v713_v6 }
  0xf1   : > { %v675_v8 = vpop.f32.mrf.mxu0 }
  0xf2   : > { %v765_v9 = vadd.f32 %v764_v46, %v675_v8  ;;  %v949_v10 = vadd.f32 %v1593_v52, %v803_v7 }
  0xf4   : > { %v934_v11 = vadd.f32 %v1593_v52, %v765_v9  ;;  %v981_v12 = vmax.f32 %v949_v10, 0.0 }
  0xf5   : > { %v814_v50 = vpop.f32.mrf.mxu3 }
  0xf6   : > { %v966_v13 = vmax.f32 %v934_v11, 0.0  ;;  %1013 = vst [vmem:[%s1601_s22 + $0xc0] sm:$0xff] %v981_v12 }
  0xf7   : > { %v772_v14 = vpop.f32.mrf.mxu1  ;;  %v715_v16 = vpop.f32.mrf.mxu2 }
  0xf8   : > { %998 = vst [vmem:[%s1601_s22 + $0x48] sm:$0xff] %v966_v13  ;;  %v805_v17 = vadd.f32 %v804_v2, %v715_v16 }
  0xf9   : > { %v678_v18 = vpop.f32.mrf.mxu0 }
  0xfa   : > { %v768_v19 = vadd.f32 %v767_v57, %v678_v18  ;;  %v950_v20 = vadd.f32 %v1593_v52, %v805_v17 }
  0xfc   : > { %v935_v21 = vadd.f32 %v1593_v52, %v768_v19  ;;  %v982_v22 = vmax.f32 %v950_v20, 0.0 }
  0xfd   : > { %v817_v4 = vpop.f32.mrf.mxu3 }
  0xfe   : > { %v967_v23 = vmax.f32 %v935_v21, 0.0  ;;  %1014 = vst [vmem:[%s1601_s22 + $0xc8] sm:$0xff] %v982_v22 }
  0xff   : > { %v774_v24 = vpop.f32.mrf.mxu1  ;;  %v718_v25 = vpop.f32.mrf.mxu2 }
 0x100   : > { %999 = vst [vmem:[%s1601_s22 + $0x50] sm:$0xff] %v967_v23  ;;  %v808_v27 = vadd.f32 %v807_v15, %v718_v25 }
 0x101   : > { %v680_v28 = vpop.f32.mrf.mxu0 }
 0x102   : > { %v770_v29 = vadd.f32 %v769_v5, %v680_v28  ;;  %v951_v30 = vadd.f32 %v1593_v52, %v808_v27 }
 0x104   : > { %v936_v31 = vadd.f32 %v1593_v52, %v770_v29  ;;  %v983_v32 = vmax.f32 %v951_v30, 0.0 }
 0x105   : > { %v819_v17 = vpop.f32.mrf.mxu3 }
 0x106   : > { %v968_v33 = vmax.f32 %v936_v31, 0.0  ;;  %1015 = vst [vmem:[%s1601_s22 + $0xd0] sm:$0xff] %v983_v32 }
 0x107   : > { %v777_v34 = vpop.f32.mrf.mxu1  ;;  %v720_v35 = vpop.f32.mrf.mxu2 }
 0x108   : > { %1000 = vst [vmem:[%s1601_s22 + $0x58] sm:$0xff] %v968_v33  ;;  %v810_v36 = vadd.f32 %v809_v26, %v720_v35 }
 0x109   : > { %v683_v37 = vpop.f32.mrf.mxu0 }
 0x10a   : > { %v773_v39 = vadd.f32 %v772_v14, %v683_v37  ;;  %v952_v40 = vadd.f32 %v1593_v52, %v810_v36 }
 0x10c   : > { %v937_v41 = vadd.f32 %v1593_v52, %v773_v39  ;;  %v984_v42 = vmax.f32 %v952_v40, 0.0 }
 0x10e   : > { %v969_v43 = vmax.f32 %v937_v41, 0.0  ;;  %1016 = vst [vmem:[%s1601_s22 + $0xd8] sm:$0xff] %v984_v42 }
 0x10f   : > { %v779_v44 = vpop.f32.mrf.mxu1  ;;  %v723_v45 = vpop.f32.mrf.mxu2 }
 0x110   : > { %1001 = vst [vmem:[%s1601_s22 + $0x60] sm:$0xff] %v969_v43  ;;  %v813_v46 = vadd.f32 %v812_v38, %v723_v45 }
 0x111   : > { %v685_v47 = vpop.f32.mrf.mxu0 }
 0x112   : > { %v775_v48 = vadd.f32 %v774_v24, %v685_v47  ;;  %v953_v49 = vadd.f32 %v1593_v52, %v813_v46 }
 0x114   : > { %v938_v51 = vadd.f32 %v1593_v52, %v775_v48  ;;  %v985_v53 = vmax.f32 %v953_v49, 0.0 }
 0x116   : > { %v970_v54 = vmax.f32 %v938_v51, 0.0  ;;  %1017 = vst [vmem:[%s1601_s22 + $0xe0] sm:$0xff] %v985_v53 }
 0x117   : > { %v782_v55 = vpop.f32.mrf.mxu1  ;;  %v725_v57 = vpop.f32.mrf.mxu2 }
 0x118   : > { %v783_v56 = vadd.f32 %v782_v55, %v1604_v58  ;;  %1002 = vst [vmem:[%s1601_s22 + $0x68] sm:$0xff] %v970_v54  ;;  %v815_v60 = vadd.f32 %v814_v50, %v725_v57 }
 0x119   : > { %v688_v61 = vpop.f32.mrf.mxu0 }
 0x11a   : > { %v941_v59 = vadd.f32 %v1593_v52, %v783_v56  ;;  %v778_v62 = vadd.f32 %v777_v34, %v688_v61  ;;  %v954_v0 = vadd.f32 %v1593_v52, %v815_v60 }
 0x11c   : > { %v973_v63 = vmax.f32 %v941_v59, 0.0  ;;  %v939_v2 = vadd.f32 %v1593_v52, %v778_v62  ;;  %v986_v3 = vmax.f32 %v954_v0, 0.0 }
 0x11e   : > { %1005 = vst [vmem:[%s1601_s22 + $0x80] sm:$0xff] %v973_v63  ;;  %v971_v5 = vmax.f32 %v939_v2, 0.0 }
 0x11f   : > { %v784_v58 = vpop.f32.mrf.mxu1  ;;  %1018 = vst [vmem:[%s1601_s22 + $0xe8] sm:$0xff] %v986_v3  ;;  %v728_v7 = vpop.f32.mrf.mxu2 }
 0x120   : > { %v785_v6 = vadd.f32 %v784_v58, %v1608_v1  ;;  %1003 = vst [vmem:[%s1601_s22 + $0x70] sm:$0xff] %v971_v5  ;;  %v818_v9 = vadd.f32 %v817_v4, %v728_v7 }
 0x121   : > { %v690_v10 = vpop.f32.mrf.mxu0 }
 0x122   : > { %v942_v8 = vadd.f32 %v1593_v52, %v785_v6  ;;  %v780_v11 = vadd.f32 %v779_v44, %v690_v10  ;;  %v955_v13 = vadd.f32 %v1593_v52, %v818_v9 }
 0x124   : > { %v974_v12 = vmax.f32 %v942_v8, 0.0  ;;  %v940_v14 = vadd.f32 %v1593_v52, %v780_v11  ;;  %v987_v15 = vmax.f32 %v955_v13, 0.0 }
 0x126   : > { %1006 = vst [vmem:[%s1601_s22 + $0x88] sm:$0xff] %v974_v12  ;;  %v972_v16 = vmax.f32 %v940_v14, 0.0 }
 0x127   : > { %1019 = vst [vmem:[%s1601_s22 + $0xf0] sm:$0xff] %v987_v15  ;;  %v730_v1 = vpop.f32.mrf.mxu2 }
 0x128   : > { %1004 = vst [vmem:[%s1601_s22 + $0x78] sm:$0xff] %v972_v16  ;;  %v820_v18 = vadd.f32 %v819_v17, %v730_v1 }
 0x12a   : > { %v956_v19 = vadd.f32 %v1593_v52, %v820_v18 }
 0x12c   : > { %v988_v20 = vmax.f32 %v956_v19, 0.0 }
 0x12e   : > { %1020 = vst [vmem:[%s1601_s22 + $0xf8] sm:$0xff] %v988_v20 }
 0x12f PF: > { %s13_s14 = sadd.s32 1, %s1429_s14   ;;  %s1685_s12 = smov %s1425_s13 }
 0x130   : > { %p10_p5 = scmp.ge.s32.totalorder %s13_s14, 14   ;;  %s1686_s13 = smov %s1688_s15 }
 0x132   :  { %12 = sbr.rel (!%p10_p5) target bundleno = 2 (0x2), region = 76 }

// kernel: _lambda_.28
= control target key start
LH: loop header
LB: loop body
LE: loop exit
PB: predicated region body
PF: predicated region fallthrough
CT: control target
= control target key end

     0   :  { %s845_s12 = smov 0   ;;  %s847_s13 = smov 0   ;;  %s926_s0 = inlined_call_operand.vmem [shape: bf16[768,72], index: 0, kind: input, shape index: {}]   ;;  %s927_s1 = inlined_call_operand.vmem [shape: bf16[72,128], index: 1, kind: input, shape index: {}]   ;;  %s928_s2 = inlined_call_operand.vmem [shape: f32[1,128], index: 2, kind: input, shape index: {}]   ;;  %s929_s3 = inlined_call_operand.vmem [shape: f32[768,128], index: 3, kind: output, shape index: {}]  }
   0x1   :  { %s849_s14 = smov 0  }
   0x2 LB: > { %s32_s15 = sadd.s32 1, %s819_s13  ;;  %p686_p0 = scmp.ge.s32.totalorder %s823_s14, 1  ;;  %s823_s14 = sphi %s849_s14, %s13_s14   ;;  %s819_s13 = sphi %s847_s13, %s931_s13   ;;  %s815_s12 = sphi %s845_s12, %s930_s12  }
   0x3   : > { %p34_p1 = scmp.ge.s32.totalorder %s32_s15, 6  ;;  %p188_p2 = scmp.lt.s32.totalorder %s823_s14, 7 }
   0x5   : > { %s933_s15 = smov (%p34_p1, %s32_s15), 0  ;;  %p189_p3 = pnand %p686_p0, %p188_p2 }
   0x6   : > { %s687_s18 = sshll.u32 (!%p189_p3), %s815_s12, 4 }
   0x7   : > { %192 = sbr.rel (%p189_p3) target bundleno = 200 (0xc8), region = 32  ;;  %p230_p4 = scmp.lt.s32.totalorder (!%p189_p3), %s687_s18, 95 }
   0xc   : > { %v320_v0 = vld [vmem:[%s927_s1 + $0x20] sm:$0xf]  ;;  %vm413_vm0 = vcmask 1043456   ;;  %v760_v4 = vld [vmem:[%s927_s1 + $0x18] sm:$0xff]  ;;  %v759_v5 = vld [vmem:[%s927_s1 + $0x10] sm:$0xff]  ;;  %s935_s18 = smov (!%p230_p4, %s687_s18), 95 }
   0xd   : > { %v378_v1 = vunpack.c.l.b16 %v320_v0  ;;  %v758_v6 = vld [vmem:[%s927_s1 + $0x8] sm:$0xff]  ;;  %s688_s25 = sshll.u32 %s935_s18, 2  ;;  %v757_v7 = vld [vmem:[%s927_s1] sm:$0xff]  ;;  %vm388_vm1 = vcmask 588800   ;;  %s690_s6 = sshll.u32 %s935_s18, 3 }
   0xe   : > { %s236_s30 = scalar_lea.vmem %s926_s0, %s688_s25  ;;  %v800_v16 = vld [vmem:[%s928_s2] ss:$0 sm:$0xff]  ;;  %s899_s9 = scalar_lea.vmem %s929_s3, %s690_s6 }
   0xf   : > { %v383_v2 = vpack.c.b16 %v378_v1, %v378_v1  ;;  %v749_v8 = vld [vmem:[%s236_s30] sm:$0xff]  ;;  %v751_v9 = vld [vmem:[%s236_s30 + $0x10] sm:$0xff]  ;;  %v750_v12 = vld [vmem:[%s236_s30 + $0x8] sm:$0xff] }
  0x10   : > { %v753_v10 = vld [vmem:[%s236_s30 + $0x20] sm:$0xff]  ;;  %v755_v11 = vld [vmem:[%s236_s30 + $0x30] sm:$0xff]  ;;  %v752_v13 = vld [vmem:[%s236_s30 + $0x18] sm:$0xff] }
  0x11   : > { %v415_v3 = vsel %vm413_vm0, %v383_v2, 0  ;;  %v754_v14 = vld [vmem:[%s236_s30 + $0x28] sm:$0xff]  ;;  %v756_v15 = vld [vmem:[%s236_s30 + $0x38] sm:$0xff] }
  0x12   : > { %420 = vmatpush.bf16.msra.mxu0 %v415_v3  ;;  %761 = vmatpush.bf16.msra.mxu1 %v415_v3 }
  0x13   : > { %762 = vmatpush.bf16.msra.mxu2 %v415_v3  ;;  %763 = vmatpush.bf16.msra.mxu3 %v415_v3 }
  0x16   : > { %421 = vmatpush.bf16.msra.mxu0 %v760_v4  ;;  %764 = vmatpush.bf16.msra.mxu1 %v760_v4 }
  0x17   : > { %765 = vmatpush.bf16.msra.mxu2 %v760_v4  ;;  %766 = vmatpush.bf16.msra.mxu3 %v760_v4 }
  0x1a   : > { %422 = vmatpush.bf16.msra.mxu0 %v759_v5  ;;  %767 = vmatpush.bf16.msra.mxu1 %v759_v5 }
  0x1b   : > { %768 = vmatpush.bf16.msra.mxu2 %v759_v5  ;;  %769 = vmatpush.bf16.msra.mxu3 %v759_v5 }
  0x1e   : > { %423 = vmatpush.bf16.msra.mxu0 %v758_v6  ;;  %770 = vmatpush.bf16.msra.mxu1 %v758_v6 }
  0x1f   : > { %771 = vmatpush.bf16.msra.mxu2 %v758_v6  ;;  %772 = vmatpush.bf16.msra.mxu3 %v758_v6 }
  0x22   : > { %424 = vmatpush.bf16.msra.mxu0 %v757_v7  ;;  %773 = vmatpush.bf16.msra.mxu1 %v757_v7 }
  0x23   : > { %774 = vmatpush.bf16.msra.mxu2 %v757_v7  ;;  %775 = vmatpush.bf16.msra.mxu3 %v757_v7 }
  0x25   : > { %739 = vmatmul.msk.bf16.vlgmr.msra.gmra.mxu0 %vm388_vm1, %v749_v8  ;;  %741 = vmatmul.msk.bf16.vlgmr.msra.gmra.mxu1 %vm388_vm1, %v751_v9 }
  0x26   : > { %743 = vmatmul.msk.bf16.vlgmr.msra.gmra.mxu2 %vm388_vm1, %v753_v10  ;;  %745 = vmatmul.msk.bf16.vlgmr.msra.gmra.mxu3 %vm388_vm1, %v755_v11 }
  0x35   : > { %740 = vmatmul.msk.bf16.gmra.mxu0 %vm388_vm1, %v750_v12  ;;  %742 = vmatmul.msk.bf16.gmra.mxu1 %vm388_vm1, %v752_v13 }
  0x36   : > { %744 = vmatmul.msk.bf16.gmra.mxu2 %vm388_vm1, %v754_v14  ;;  %746 = vmatmul.msk.bf16.gmra.mxu3 %vm388_vm1, %v756_v15 }
  0xa2   : > { %v426_v17 = vpop.f32.mrf.mxu0  ;;  %v436_v18 = vpop.f32.mrf.mxu1 }
  0xa3   : > { %v521_v19 = vadd.f32 %v800_v16, %v426_v17  ;;  %v525_v20 = vadd.f32 %v800_v16, %v436_v18 }
  0xa5   : > { %v537_v21 = vmax.f32 %v521_v19, 0.0  ;;  %v541_v22 = vmax.f32 %v525_v20, 0.0 }
  0xa7   : > { %553 = vst [vmem:[%s899_s9] sm:$0xff] %v537_v21 }
  0xa8   : > { %557 = vst [vmem:[%s899_s9 + $0x20] sm:$0xff] %v541_v22 }
  0xa9   : > { %v446_v23 = vpop.f32.mrf.mxu2  ;;  %v456_v24 = vpop.f32.mrf.mxu3 }
  0xaa   : > { %v529_v25 = vadd.f32 %v800_v16, %v446_v23  ;;  %v533_v26 = vadd.f32 %v800_v16, %v456_v24  ;;  %v428_v27 = vpop.f32.mrf.mxu0  ;;  %v438_v28 = vpop.f32.mrf.mxu1 }
  0xab   : > { %v522_v29 = vadd.f32 %v800_v16, %v428_v27  ;;  %v526_v30 = vadd.f32 %v800_v16, %v438_v28 }
  0xac   : > { %v545_v31 = vmax.f32 %v529_v25, 0.0  ;;  %v549_v32 = vmax.f32 %v533_v26, 0.0 }
  0xad   : > { %v538_v33 = vmax.f32 %v522_v29, 0.0  ;;  %v542_v34 = vmax.f32 %v526_v30, 0.0 }
  0xae   : > { %561 = vst [vmem:[%s899_s9 + $0x40] sm:$0xff] %v545_v31 }
  0xaf   : > { %565 = vst [vmem:[%s899_s9 + $0x60] sm:$0xff] %v549_v32 }
  0xb0   : > { %554 = vst [vmem:[%s899_s9 + $0x8] sm:$0xff] %v538_v33 }
  0xb1   : > { %558 = vst [vmem:[%s899_s9 + $0x28] sm:$0xff] %v542_v34  ;;  %v448_v35 = vpop.f32.mrf.mxu2  ;;  %v458_v36 = vpop.f32.mrf.mxu3 }
  0xb2   : > { %v530_v37 = vadd.f32 %v800_v16, %v448_v35  ;;  %v534_v38 = vadd.f32 %v800_v16, %v458_v36  ;;  %v431_v39 = vpop.f32.mrf.mxu0  ;;  %v441_v40 = vpop.f32.mrf.mxu1 }
  0xb3   : > { %v523_v41 = vadd.f32 %v800_v16, %v431_v39  ;;  %v527_v42 = vadd.f32 %v800_v16, %v441_v40 }
  0xb4   : > { %v546_v43 = vmax.f32 %v530_v37, 0.0  ;;  %v550_v44 = vmax.f32 %v534_v38, 0.0 }
  0xb5   : > { %v539_v45 = vmax.f32 %v523_v41, 0.0  ;;  %v543_v46 = vmax.f32 %v527_v42, 0.0 }
  0xb6   : > { %562 = vst [vmem:[%s899_s9 + $0x48] sm:$0xff] %v546_v43 }
  0xb7   : > { %566 = vst [vmem:[%s899_s9 + $0x68] sm:$0xff] %v550_v44 }
  0xb8   : > { %555 = vst [vmem:[%s899_s9 + $0x10] sm:$0xff] %v539_v45 }
  0xb9   : > { %559 = vst [vmem:[%s899_s9 + $0x30] sm:$0xff] %v543_v46  ;;  %v451_v47 = vpop.f32.mrf.mxu2  ;;  %v461_v48 = vpop.f32.mrf.mxu3 }
  0xba   : > { %v531_v49 = vadd.f32 %v800_v16, %v451_v47  ;;  %v535_v50 = vadd.f32 %v800_v16, %v461_v48  ;;  %v433_v51 = vpop.f32.mrf.mxu0  ;;  %v443_v52 = vpop.f32.mrf.mxu1 }
  0xbb   : > { %v524_v53 = vadd.f32 %v800_v16, %v433_v51  ;;  %v528_v54 = vadd.f32 %v800_v16, %v443_v52 }
  0xbc   : > { %v547_v55 = vmax.f32 %v531_v49, 0.0  ;;  %v551_v56 = vmax.f32 %v535_v50, 0.0 }
  0xbd   : > { %v540_v57 = vmax.f32 %v524_v53, 0.0  ;;  %v544_v58 = vmax.f32 %v528_v54, 0.0 }
  0xbe   : > { %563 = vst [vmem:[%s899_s9 + $0x50] sm:$0xff] %v547_v55 }
  0xbf   : > { %567 = vst [vmem:[%s899_s9 + $0x70] sm:$0xff] %v551_v56 }
  0xc0   : > { %556 = vst [vmem:[%s899_s9 + $0x18] sm:$0xff] %v540_v57 }
  0xc1   : > { %560 = vst [vmem:[%s899_s9 + $0x38] sm:$0xff] %v544_v58  ;;  %v453_v59 = vpop.f32.mrf.mxu2  ;;  %v463_v60 = vpop.f32.mrf.mxu3 }
  0xc2   : > { %v532_v61 = vadd.f32 %v800_v16, %v453_v59  ;;  %v536_v62 = vadd.f32 %v800_v16, %v463_v60 }
  0xc4   : > { %v548_v63 = vmax.f32 %v532_v61, 0.0  ;;  %v552_v0 = vmax.f32 %v536_v62, 0.0 }
  0xc6   : > { %564 = vst [vmem:[%s899_s9 + $0x58] sm:$0xff] %v548_v63 }
  0xc7   : > { %568 = vst [vmem:[%s899_s9 + $0x78] sm:$0xff] %v552_v0 }
  0xc8 PF: > { %s13_s14 = sadd.s32 1, %s823_s14   ;;  %s930_s12 = smov %s819_s13 }
  0xc9   : > { %p10_p5 = scmp.ge.s32.totalorder %s13_s14, 8   ;;  %s931_s13 = smov %s933_s15 }
  0xcb   :  { %12 = sbr.rel (!%p10_p5) target bundleno = 2 (0x2), region = 76 }

// kernel: _lambda_.29
= control target key start
LH: loop header
LB: loop body
LE: loop exit
PB: predicated region body
PF: predicated region fallthrough
CT: control target
= control target key end

     0   :  { %s959_s15 = smov 0   ;;  %s961_s16 = smov 0   ;;  %s1079_s0 = inlined_call_operand.vmem [shape: bf16[768,72], index: 0, kind: input, shape index: {}]   ;;  %s1080_s1 = inlined_call_operand.vmem [shape: bf16[72,128], index: 1, kind: input, shape index: {}]   ;;  %s1081_s2 = inlined_call_operand.vmem [shape: f32[1,128], index: 2, kind: input, shape index: {}]   ;;  %s1082_s3 = inlined_call_operand.vmem [shape: f32[768,128], index: 3, kind: input, shape index: {}]   ;;  %s1083_s4 = inlined_call_operand.vmem [shape: f32[768,128], index: 4, kind: output, shape index: {}]  }
   0x1   :  { %s963_s17 = smov 0  }
   0x2 LB: > { %s33_s18 = sadd.s32 1, %s928_s16  ;;  %p793_p0 = scmp.ge.s32.totalorder %s932_s17, 1  ;;  %s932_s17 = sphi %s963_s17, %s14_s17   ;;  %s928_s16 = sphi %s961_s16, %s1085_s16   ;;  %s924_s15 = sphi %s959_s15, %s1084_s15  }
   0x3   : > { %p35_p1 = scmp.ge.s32.totalorder %s33_s18, 6  ;;  %p229_p2 = scmp.lt.s32.totalorder %s932_s17, 7 }
   0x5   : > { %s1087_s18 = smov (%p35_p1, %s33_s18), 0  ;;  %p230_p3 = pnand %p793_p0, %p229_p2 }
   0x6   : > { %s794_s21 = sshll.u32 (!%p230_p3), %s924_s15, 4 }
   0x7   : > { %233 = sbr.rel (%p230_p3) target bundleno = 202 (0xca), region = 36  ;;  %p281_p4 = scmp.lt.s32.totalorder (!%p230_p3), %s794_s21, 95 }
   0xc   : > { %v380_v0 = vld [vmem:[%s1080_s1 + $0x20] sm:$0xf]  ;;  %vm473_vm0 = vcmask 1043456   ;;  %v869_v4 = vld [vmem:[%s1080_s1 + $0x18] sm:$0xff]  ;;  %v868_v5 = vld [vmem:[%s1080_s1 + $0x10] sm:$0xff]  ;;  %s1089_s21 = smov (!%p281_p4, %s794_s21), 95 }
   0xd   : > { %v438_v1 = vunpack.c.l.b16 %v380_v0  ;;  %v867_v6 = vld [vmem:[%s1080_s1 + $0x8] sm:$0xff]  ;;  %s795_s28 = sshll.u32 %s1089_s21, 2  ;;  %v866_v7 = vld [vmem:[%s1080_s1] sm:$0xff]  ;;  %vm448_vm1 = vcmask 588800   ;;  %s797_s8 = sshll.u32 %s1089_s21, 3 }
   0xe   : > { %s287_s7 = scalar_lea.vmem %s1079_s0, %s795_s28  ;;  %s1010_s11 = scalar_lea.vmem %s1082_s3, %s797_s8  ;;  %v1015_v16 = vld [vmem:[%s1081_s2] ss:$0 sm:$0xff] }
   0xf   : > { %v443_v2 = vpack.c.b16 %v438_v1, %v438_v1  ;;  %v858_v8 = vld [vmem:[%s287_s7] sm:$0xff]  ;;  %v860_v9 = vld [vmem:[%s287_s7 + $0x10] sm:$0xff]  ;;  %v859_v12 = vld [vmem:[%s287_s7 + $0x8] sm:$0xff]  ;;  %s1024_s19 = scalar_lea.vmem %s1083_s4, %s797_s8 }
  0x10   : > { %v862_v10 = vld [vmem:[%s287_s7 + $0x20] sm:$0xff]  ;;  %v864_v11 = vld [vmem:[%s287_s7 + $0x30] sm:$0xff]  ;;  %v861_v13 = vld [vmem:[%s287_s7 + $0x18] sm:$0xff] }
  0x11   : > { %v475_v3 = vsel %vm473_vm0, %v443_v2, 0  ;;  %v863_v14 = vld [vmem:[%s287_s7 + $0x28] sm:$0xff]  ;;  %v865_v15 = vld [vmem:[%s287_s7 + $0x38] sm:$0xff]  ;;  %v597_v18 = vld [vmem:[%s1010_s11] sm:$0xff] }
  0x12   : > { %480 = vmatpush.bf16.msra.mxu0 %v475_v3  ;;  %870 = vmatpush.bf16.msra.mxu1 %v475_v3  ;;  %v601_v20 = vld [vmem:[%s1010_s11 + $0x20] sm:$0xff]  ;;  %v598_v34 = vld [vmem:[%s1010_s11 + $0x8] sm:$0xff]  ;;  %v599_v54 = vld [vmem:[%s1010_s11 + $0x10] sm:$0xff] }
  0x13   : > { %871 = vmatpush.bf16.msra.mxu2 %v475_v3  ;;  %872 = vmatpush.bf16.msra.mxu3 %v475_v3  ;;  %v605_v28 = vld [vmem:[%s1010_s11 + $0x40] sm:$0xff]  ;;  %v602_v36 = vld [vmem:[%s1010_s11 + $0x28] sm:$0xff]  ;;  %v603_v56 = vld [vmem:[%s1010_s11 + $0x30] sm:$0xff] }
  0x14   : > { %v609_v30 = vld [vmem:[%s1010_s11 + $0x60] sm:$0xff]  ;;  %v606_v48 = vld [vmem:[%s1010_s11 + $0x48] sm:$0xff] }
  0x15   : > { %v610_v50 = vld [vmem:[%s1010_s11 + $0x68] sm:$0xff] }
  0x16   : > { %481 = vmatpush.bf16.msra.mxu0 %v869_v4  ;;  %873 = vmatpush.bf16.msra.mxu1 %v869_v4 }
  0x17   : > { %874 = vmatpush.bf16.msra.mxu2 %v869_v4  ;;  %875 = vmatpush.bf16.msra.mxu3 %v869_v4  ;;  %v607_v4 = vld [vmem:[%s1010_s11 + $0x50] sm:$0xff] }
  0x1a   : > { %482 = vmatpush.bf16.msra.mxu0 %v868_v5  ;;  %876 = vmatpush.bf16.msra.mxu1 %v868_v5 }
  0x1b   : > { %877 = vmatpush.bf16.msra.mxu2 %v868_v5  ;;  %878 = vmatpush.bf16.msra.mxu3 %v868_v5 }
  0x1e   : > { %483 = vmatpush.bf16.msra.mxu0 %v867_v6  ;;  %879 = vmatpush.bf16.msra.mxu1 %v867_v6 }
  0x1f   : > { %880 = vmatpush.bf16.msra.mxu2 %v867_v6  ;;  %881 = vmatpush.bf16.msra.mxu3 %v867_v6  ;;  %v611_v6 = vld [vmem:[%s1010_s11 + $0x70] sm:$0xff] }
  0x22   : > { %484 = vmatpush.bf16.msra.mxu0 %v866_v7  ;;  %882 = vmatpush.bf16.msra.mxu1 %v866_v7 }
  0x23   : > { %883 = vmatpush.bf16.msra.mxu2 %v866_v7  ;;  %884 = vmatpush.bf16.msra.mxu3 %v866_v7 }
  0x25   : > { %848 = vmatmul.msk.bf16.vlgmr.msra.gmra.mxu0 %vm448_vm1, %v858_v8  ;;  %850 = vmatmul.msk.bf16.vlgmr.msra.gmra.mxu1 %vm448_vm1, %v860_v9 }
  0x26   : > { %852 = vmatmul.msk.bf16.vlgmr.msra.gmra.mxu2 %vm448_vm1, %v862_v10  ;;  %854 = vmatmul.msk.bf16.vlgmr.msra.gmra.mxu3 %vm448_vm1, %v864_v11  ;;  %v600_v10 = vld [vmem:[%s1010_s11 + $0x18] sm:$0xff] }
  0x35   : > { %849 = vmatmul.msk.bf16.gmra.mxu0 %vm448_vm1, %v859_v12  ;;  %851 = vmatmul.msk.bf16.gmra.mxu1 %vm448_vm1, %v861_v13  ;;  %v604_v12 = vld [vmem:[%s1010_s11 + $0x38] sm:$0xff] }
  0x36   : > { %853 = vmatmul.msk.bf16.gmra.mxu2 %vm448_vm1, %v863_v14  ;;  %855 = vmatmul.msk.bf16.gmra.mxu3 %vm448_vm1, %v865_v15 }
  0xa2   : > { %v486_v17 = vpop.f32.mrf.mxu0  ;;  %v496_v19 = vpop.f32.mrf.mxu1 }
  0xa3   : > { %v581_v21 = vadd.f32 %v1015_v16, %v486_v17  ;;  %v585_v22 = vadd.f32 %v1015_v16, %v496_v19 }
  0xa5   : > { %v613_v23 = vadd.f32 %v597_v18, %v581_v21  ;;  %v617_v24 = vadd.f32 %v601_v20, %v585_v22 }
  0xa7   : > { %v629_v25 = vmax.f32 %v613_v23, 0.0  ;;  %v633_v26 = vmax.f32 %v617_v24, 0.0 }
  0xa9   : > { %645 = vst [vmem:[%s1024_s19] sm:$0xff] %v629_v25  ;;  %v506_v27 = vpop.f32.mrf.mxu2  ;;  %v516_v29 = vpop.f32.mrf.mxu3  ;;  %v608_v25 = vld [vmem:[%s1010_s11 + $0x58] sm:$0xff] }
  0xaa   : > { %649 = vst [vmem:[%s1024_s19 + $0x20] sm:$0xff] %v633_v26  ;;  %v589_v31 = vadd.f32 %v1015_v16, %v506_v27  ;;  %v593_v32 = vadd.f32 %v1015_v16, %v516_v29  ;;  %v488_v33 = vpop.f32.mrf.mxu0  ;;  %v498_v35 = vpop.f32.mrf.mxu1  ;;  %v612_v27 = vld [vmem:[%s1010_s11 + $0x78] sm:$0xff] }
  0xab   : > { %v582_v37 = vadd.f32 %v1015_v16, %v488_v33  ;;  %v586_v38 = vadd.f32 %v1015_v16, %v498_v35 }
  0xac   : > { %v621_v39 = vadd.f32 %v605_v28, %v589_v31  ;;  %v625_v40 = vadd.f32 %v609_v30, %v593_v32 }
  0xad   : > { %v614_v41 = vadd.f32 %v598_v34, %v582_v37  ;;  %v618_v42 = vadd.f32 %v602_v36, %v586_v38 }
  0xae   : > { %v637_v43 = vmax.f32 %v621_v39, 0.0  ;;  %v641_v44 = vmax.f32 %v625_v40, 0.0 }
  0xaf   : > { %v630_v45 = vmax.f32 %v614_v41, 0.0  ;;  %v634_v46 = vmax.f32 %v618_v42, 0.0 }
  0xb0   : > { %653 = vst [vmem:[%s1024_s19 + $0x40] sm:$0xff] %v637_v43 }
  0xb1   : > { %657 = vst [vmem:[%s1024_s19 + $0x60] sm:$0xff] %v641_v44  ;;  %v508_v47 = vpop.f32.mrf.mxu2  ;;  %v518_v49 = vpop.f32.mrf.mxu3 }
  0xb2   : > { %646 = vst [vmem:[%s1024_s19 + $0x8] sm:$0xff] %v630_v45  ;;  %v590_v51 = vadd.f32 %v1015_v16, %v508_v47  ;;  %v594_v52 = vadd.f32 %v1015_v16, %v518_v49  ;;  %v491_v53 = vpop.f32.mrf.mxu0  ;;  %v501_v55 = vpop.f32.mrf.mxu1 }
  0xb3   : > { %650 = vst [vmem:[%s1024_s19 + $0x28] sm:$0xff] %v634_v46  ;;  %v583_v57 = vadd.f32 %v1015_v16, %v491_v53  ;;  %v587_v58 = vadd.f32 %v1015_v16, %v501_v55 }
  0xb4   : > { %v622_v59 = vadd.f32 %v606_v48, %v590_v51  ;;  %v626_v60 = vadd.f32 %v610_v50, %v594_v52 }
  0xb5   : > { %v615_v61 = vadd.f32 %v599_v54, %v583_v57  ;;  %v619_v62 = vadd.f32 %v603_v56, %v587_v58 }
  0xb6   : > { %v638_v63 = vmax.f32 %v622_v59, 0.0  ;;  %v642_v0 = vmax.f32 %v626_v60, 0.0 }
  0xb7   : > { %v631_v1 = vmax.f32 %v615_v61, 0.0  ;;  %v635_v2 = vmax.f32 %v619_v62, 0.0 }
  0xb8   : > { %654 = vst [vmem:[%s1024_s19 + $0x48] sm:$0xff] %v638_v63 }
  0xb9   : > { %658 = vst [vmem:[%s1024_s19 + $0x68] sm:$0xff] %v642_v0  ;;  %v511_v3 = vpop.f32.mrf.mxu2  ;;  %v521_v5 = vpop.f32.mrf.mxu3 }
  0xba   : > { %647 = vst [vmem:[%s1024_s19 + $0x10] sm:$0xff] %v631_v1  ;;  %v591_v7 = vadd.f32 %v1015_v16, %v511_v3  ;;  %v595_v8 = vadd.f32 %v1015_v16, %v521_v5  ;;  %v493_v9 = vpop.f32.mrf.mxu0  ;;  %v503_v11 = vpop.f32.mrf.mxu1 }
  0xbb   : > { %651 = vst [vmem:[%s1024_s19 + $0x30] sm:$0xff] %v635_v2  ;;  %v584_v13 = vadd.f32 %v1015_v16, %v493_v9  ;;  %v588_v14 = vadd.f32 %v1015_v16, %v503_v11 }
  0xbc   : > { %v623_v15 = vadd.f32 %v607_v4, %v591_v7  ;;  %v627_v17 = vadd.f32 %v611_v6, %v595_v8 }
  0xbd   : > { %v616_v18 = vadd.f32 %v600_v10, %v584_v13  ;;  %v620_v19 = vadd.f32 %v604_v12, %v588_v14 }
  0xbe   : > { %v639_v20 = vmax.f32 %v623_v15, 0.0  ;;  %v643_v21 = vmax.f32 %v627_v17, 0.0 }
  0xbf   : > { %v632_v22 = vmax.f32 %v616_v18, 0.0  ;;  %v636_v23 = vmax.f32 %v620_v19, 0.0 }
  0xc0   : > { %655 = vst [vmem:[%s1024_s19 + $0x50] sm:$0xff] %v639_v20 }
  0xc1   : > { %659 = vst [vmem:[%s1024_s19 + $0x70] sm:$0xff] %v643_v21  ;;  %v513_v24 = vpop.f32.mrf.mxu2  ;;  %v523_v26 = vpop.f32.mrf.mxu3 }
  0xc2   : > { %648 = vst [vmem:[%s1024_s19 + $0x18] sm:$0xff] %v632_v22  ;;  %v592_v28 = vadd.f32 %v1015_v16, %v513_v24  ;;  %v596_v29 = vadd.f32 %v1015_v16, %v523_v26 }
  0xc3   : > { %652 = vst [vmem:[%s1024_s19 + $0x38] sm:$0xff] %v636_v23 }
  0xc4   : > { %v624_v30 = vadd.f32 %v608_v25, %v592_v28  ;;  %v628_v31 = vadd.f32 %v612_v27, %v596_v29 }
  0xc6   : > { %v640_v32 = vmax.f32 %v624_v30, 0.0  ;;  %v644_v33 = vmax.f32 %v628_v31, 0.0 }
  0xc8   : > { %656 = vst [vmem:[%s1024_s19 + $0x58] sm:$0xff] %v640_v32 }
  0xc9   : > { %660 = vst [vmem:[%s1024_s19 + $0x78] sm:$0xff] %v644_v33 }
  0xca PF: > { %s14_s17 = sadd.s32 1, %s932_s17   ;;  %s1084_s15 = smov %s928_s16 }
  0xcb   : > { %p11_p5 = scmp.ge.s32.totalorder %s14_s17, 8   ;;  %s1085_s16 = smov %s1087_s18 }
  0xcd   :  { %13 = sbr.rel (!%p11_p5) target bundleno = 2 (0x2), region = 83 }

// kernel: _lambda_.32
= control target key start
LH: loop header
LB: loop body
LE: loop exit
PB: predicated region body
PF: predicated region fallthrough
CT: control target
= control target key end

     0   :  { %s845_s12 = smov 0   ;;  %s847_s13 = smov 0   ;;  %s926_s0 = inlined_call_operand.vmem [shape: bf16[256,72], index: 0, kind: input, shape index: {}]   ;;  %s927_s1 = inlined_call_operand.vmem [shape: bf16[72,128], index: 1, kind: input, shape index: {}]   ;;  %s928_s2 = inlined_call_operand.vmem [shape: f32[1,128], index: 2, kind: input, shape index: {}]   ;;  %s929_s3 = inlined_call_operand.vmem [shape: f32[256,128], index: 3, kind: output, shape index: {}]  }
   0x1   :  { %s849_s14 = smov 0  }
   0x2 LB: > { %s32_s15 = sadd.s32 1, %s819_s13  ;;  %p686_p0 = scmp.ge.s32.totalorder %s823_s14, 1  ;;  %s823_s14 = sphi %s849_s14, %s13_s14   ;;  %s819_s13 = sphi %s847_s13, %s931_s13   ;;  %s815_s12 = sphi %s845_s12, %s930_s12  }
   0x3   : > { %p34_p1 = scmp.ge.s32.totalorder %s32_s15, 2  ;;  %p188_p2 = scmp.lt.s32.totalorder %s823_s14, 3 }
   0x5   : > { %s933_s15 = smov (%p34_p1, %s32_s15), 0  ;;  %p189_p3 = pnand %p686_p0, %p188_p2 }
   0x6   : > { %s687_s18 = sshll.u32 (!%p189_p3), %s815_s12, 4 }
   0x7   : > { %192 = sbr.rel (%p189_p3) target bundleno = 200 (0xc8), region = 32  ;;  %p230_p4 = scmp.lt.s32.totalorder (!%p189_p3), %s687_s18, 31 }
   0xc   : > { %v320_v0 = vld [vmem:[%s927_s1 + $0x20] sm:$0xf]  ;;  %vm413_vm0 = vcmask 1043456   ;;  %v760_v4 = vld [vmem:[%s927_s1 + $0x18] sm:$0xff]  ;;  %v759_v5 = vld [vmem:[%s927_s1 + $0x10] sm:$0xff]  ;;  %s935_s18 = smov (!%p230_p4, %s687_s18), 31 }
   0xd   : > { %v378_v1 = vunpack.c.l.b16 %v320_v0  ;;  %v758_v6 = vld [vmem:[%s927_s1 + $0x8] sm:$0xff]  ;;  %s688_s25 = sshll.u32 %s935_s18, 2  ;;  %v757_v7 = vld [vmem:[%s927_s1] sm:$0xff]  ;;  %vm388_vm1 = vcmask 588800   ;;  %s690_s6 = sshll.u32 %s935_s18, 3 }
   0xe   : > { %s236_s30 = scalar_lea.vmem %s926_s0, %s688_s25  ;;  %v800_v16 = vld [vmem:[%s928_s2] ss:$0 sm:$0xff]  ;;  %s899_s9 = scalar_lea.vmem %s929_s3, %s690_s6 }
   0xf   : > { %v383_v2 = vpack.c.b16 %v378_v1, %v378_v1  ;;  %v749_v8 = vld [vmem:[%s236_s30] sm:$0xff]  ;;  %v751_v9 = vld [vmem:[%s236_s30 + $0x10] sm:$0xff]  ;;  %v750_v12 = vld [vmem:[%s236_s30 + $0x8] sm:$0xff] }
  0x10   : > { %v753_v10 = vld [vmem:[%s236_s30 + $0x20] sm:$0xff]  ;;  %v755_v11 = vld [vmem:[%s236_s30 + $0x30] sm:$0xff]  ;;  %v752_v13 = vld [vmem:[%s236_s30 + $0x18] sm:$0xff] }
  0x11   : > { %v415_v3 = vsel %vm413_vm0, %v383_v2, 0  ;;  %v754_v14 = vld [vmem:[%s236_s30 + $0x28] sm:$0xff]  ;;  %v756_v15 = vld [vmem:[%s236_s30 + $0x38] sm:$0xff] }
  0x12   : > { %420 = vmatpush.bf16.msra.mxu0 %v415_v3  ;;  %761 = vmatpush.bf16.msra.mxu1 %v415_v3 }
  0x13   : > { %762 = vmatpush.bf16.msra.mxu2 %v415_v3  ;;  %763 = vmatpush.bf16.msra.mxu3 %v415_v3 }
  0x16   : > { %421 = vmatpush.bf16.msra.mxu0 %v760_v4  ;;  %764 = vmatpush.bf16.msra.mxu1 %v760_v4 }
  0x17   : > { %765 = vmatpush.bf16.msra.mxu2 %v760_v4  ;;  %766 = vmatpush.bf16.msra.mxu3 %v760_v4 }
  0x1a   : > { %422 = vmatpush.bf16.msra.mxu0 %v759_v5  ;;  %767 = vmatpush.bf16.msra.mxu1 %v759_v5 }
  0x1b   : > { %768 = vmatpush.bf16.msra.mxu2 %v759_v5  ;;  %769 = vmatpush.bf16.msra.mxu3 %v759_v5 }
  0x1e   : > { %423 = vmatpush.bf16.msra.mxu0 %v758_v6  ;;  %770 = vmatpush.bf16.msra.mxu1 %v758_v6 }
  0x1f   : > { %771 = vmatpush.bf16.msra.mxu2 %v758_v6  ;;  %772 = vmatpush.bf16.msra.mxu3 %v758_v6 }
  0x22   : > { %424 = vmatpush.bf16.msra.mxu0 %v757_v7  ;;  %773 = vmatpush.bf16.msra.mxu1 %v757_v7 }
  0x23   : > { %774 = vmatpush.bf16.msra.mxu2 %v757_v7  ;;  %775 = vmatpush.bf16.msra.mxu3 %v757_v7 }
  0x25   : > { %739 = vmatmul.msk.bf16.vlgmr.msra.gmra.mxu0 %vm388_vm1, %v749_v8  ;;  %741 = vmatmul.msk.bf16.vlgmr.msra.gmra.mxu1 %vm388_vm1, %v751_v9 }
  0x26   : > { %743 = vmatmul.msk.bf16.vlgmr.msra.gmra.mxu2 %vm388_vm1, %v753_v10  ;;  %745 = vmatmul.msk.bf16.vlgmr.msra.gmra.mxu3 %vm388_vm1, %v755_v11 }
  0x35   : > { %740 = vmatmul.msk.bf16.gmra.mxu0 %vm388_vm1, %v750_v12  ;;  %742 = vmatmul.msk.bf16.gmra.mxu1 %vm388_vm1, %v752_v13 }
  0x36   : > { %744 = vmatmul.msk.bf16.gmra.mxu2 %vm388_vm1, %v754_v14  ;;  %746 = vmatmul.msk.bf16.gmra.mxu3 %vm388_vm1, %v756_v15 }
  0xa2   : > { %v426_v17 = vpop.f32.mrf.mxu0  ;;  %v436_v18 = vpop.f32.mrf.mxu1 }
  0xa3   : > { %v521_v19 = vadd.f32 %v800_v16, %v426_v17  ;;  %v525_v20 = vadd.f32 %v800_v16, %v436_v18 }
  0xa5   : > { %v537_v21 = vmax.f32 %v521_v19, 0.0  ;;  %v541_v22 = vmax.f32 %v525_v20, 0.0 }
  0xa7   : > { %553 = vst [vmem:[%s899_s9] sm:$0xff] %v537_v21 }
  0xa8   : > { %557 = vst [vmem:[%s899_s9 + $0x20] sm:$0xff] %v541_v22 }
  0xa9   : > { %v446_v23 = vpop.f32.mrf.mxu2  ;;  %v456_v24 = vpop.f32.mrf.mxu3 }
  0xaa   : > { %v529_v25 = vadd.f32 %v800_v16, %v446_v23  ;;  %v533_v26 = vadd.f32 %v800_v16, %v456_v24  ;;  %v428_v27 = vpop.f32.mrf.mxu0  ;;  %v438_v28 = vpop.f32.mrf.mxu1 }
  0xab   : > { %v522_v29 = vadd.f32 %v800_v16, %v428_v27  ;;  %v526_v30 = vadd.f32 %v800_v16, %v438_v28 }
  0xac   : > { %v545_v31 = vmax.f32 %v529_v25, 0.0  ;;  %v549_v32 = vmax.f32 %v533_v26, 0.0 }
  0xad   : > { %v538_v33 = vmax.f32 %v522_v29, 0.0  ;;  %v542_v34 = vmax.f32 %v526_v30, 0.0 }
  0xae   : > { %561 = vst [vmem:[%s899_s9 + $0x40] sm:$0xff] %v545_v31 }
  0xaf   : > { %565 = vst [vmem:[%s899_s9 + $0x60] sm:$0xff] %v549_v32 }
  0xb0   : > { %554 = vst [vmem:[%s899_s9 + $0x8] sm:$0xff] %v538_v33 }
  0xb1   : > { %558 = vst [vmem:[%s899_s9 + $0x28] sm:$0xff] %v542_v34  ;;  %v448_v35 = vpop.f32.mrf.mxu2  ;;  %v458_v36 = vpop.f32.mrf.mxu3 }
  0xb2   : > { %v530_v37 = vadd.f32 %v800_v16, %v448_v35  ;;  %v534_v38 = vadd.f32 %v800_v16, %v458_v36  ;;  %v431_v39 = vpop.f32.mrf.mxu0  ;;  %v441_v40 = vpop.f32.mrf.mxu1 }
  0xb3   : > { %v523_v41 = vadd.f32 %v800_v16, %v431_v39  ;;  %v527_v42 = vadd.f32 %v800_v16, %v441_v40 }
  0xb4   : > { %v546_v43 = vmax.f32 %v530_v37, 0.0  ;;  %v550_v44 = vmax.f32 %v534_v38, 0.0 }
  0xb5   : > { %v539_v45 = vmax.f32 %v523_v41, 0.0  ;;  %v543_v46 = vmax.f32 %v527_v42, 0.0 }
  0xb6   : > { %562 = vst [vmem:[%s899_s9 + $0x48] sm:$0xff] %v546_v43 }
  0xb7   : > { %566 = vst [vmem:[%s899_s9 + $0x68] sm:$0xff] %v550_v44 }
  0xb8   : > { %555 = vst [vmem:[%s899_s9 + $0x10] sm:$0xff] %v539_v45 }
  0xb9   : > { %559 = vst [vmem:[%s899_s9 + $0x30] sm:$0xff] %v543_v46  ;;  %v451_v47 = vpop.f32.mrf.mxu2  ;;  %v461_v48 = vpop.f32.mrf.mxu3 }
  0xba   : > { %v531_v49 = vadd.f32 %v800_v16, %v451_v47  ;;  %v535_v50 = vadd.f32 %v800_v16, %v461_v48  ;;  %v433_v51 = vpop.f32.mrf.mxu0  ;;  %v443_v52 = vpop.f32.mrf.mxu1 }
  0xbb   : > { %v524_v53 = vadd.f32 %v800_v16, %v433_v51  ;;  %v528_v54 = vadd.f32 %v800_v16, %v443_v52 }
  0xbc   : > { %v547_v55 = vmax.f32 %v531_v49, 0.0  ;;  %v551_v56 = vmax.f32 %v535_v50, 0.0 }
  0xbd   : > { %v540_v57 = vmax.f32 %v524_v53, 0.0  ;;  %v544_v58 = vmax.f32 %v528_v54, 0.0 }
  0xbe   : > { %563 = vst [vmem:[%s899_s9 + $0x50] sm:$0xff] %v547_v55 }
  0xbf   : > { %567 = vst [vmem:[%s899_s9 + $0x70] sm:$0xff] %v551_v56 }
  0xc0   : > { %556 = vst [vmem:[%s899_s9 + $0x18] sm:$0xff] %v540_v57 }
  0xc1   : > { %560 = vst [vmem:[%s899_s9 + $0x38] sm:$0xff] %v544_v58  ;;  %v453_v59 = vpop.f32.mrf.mxu2  ;;  %v463_v60 = vpop.f32.mrf.mxu3 }
  0xc2   : > { %v532_v61 = vadd.f32 %v800_v16, %v453_v59  ;;  %v536_v62 = vadd.f32 %v800_v16, %v463_v60 }
  0xc4   : > { %v548_v63 = vmax.f32 %v532_v61, 0.0  ;;  %v552_v0 = vmax.f32 %v536_v62, 0.0 }
  0xc6   : > { %564 = vst [vmem:[%s899_s9 + $0x58] sm:$0xff] %v548_v63 }
  0xc7   : > { %568 = vst [vmem:[%s899_s9 + $0x78] sm:$0xff] %v552_v0 }
  0xc8 PF: > { %s13_s14 = sadd.s32 1, %s823_s14   ;;  %s930_s12 = smov %s819_s13 }
  0xc9   : > { %p10_p5 = scmp.ge.s32.totalorder %s13_s14, 4   ;;  %s931_s13 = smov %s933_s15 }
  0xcb   :  { %12 = sbr.rel (!%p10_p5) target bundleno = 2 (0x2), region = 76 }

// kernel: _lambda_.33
= control target key start
LH: loop header
LB: loop body
LE: loop exit
PB: predicated region body
PF: predicated region fallthrough
CT: control target
= control target key end

     0   :  { %s757_s12 = smov 0   ;;  %s759_s13 = smov 0   ;;  %s822_s0 = inlined_call_operand.vmem [shape: bf16[256,8], index: 0, kind: input, shape index: {}]   ;;  %s823_s1 = inlined_call_operand.vmem [shape: bf16[8,128], index: 1, kind: input, shape index: {}]   ;;  %s824_s2 = inlined_call_operand.vmem [shape: f32[1,128], index: 2, kind: input, shape index: {}]   ;;  %s825_s3 = inlined_call_operand.vmem [shape: f32[256,128], index: 3, kind: output, shape index: {}]  }
   0x1   :  { %s761_s14 = smov 0  }
   0x2 LB: > { %s32_s15 = sadd.s32 1, %s731_s13  ;;  %p630_p0 = scmp.ge.s32.totalorder %s735_s14, 1  ;;  %s735_s14 = sphi %s761_s14, %s13_s14   ;;  %s731_s13 = sphi %s759_s13, %s827_s13   ;;  %s727_s12 = sphi %s757_s12, %s826_s12  }
   0x3   : > { %p34_p1 = scmp.ge.s32.totalorder %s32_s15, 2  ;;  %p186_p2 = scmp.lt.s32.totalorder %s735_s14, 3 }
   0x5   : > { %s829_s15 = smov (%p34_p1, %s32_s15), 0  ;;  %p187_p3 = pnand %p630_p0, %p186_p2 }
   0x6   : > { %s631_s18 = sshll.u32 (!%p187_p3), %s727_s12, 4 }
   0x7   : > { %190 = sbr.rel (%p187_p3) target bundleno = 178 (0xb2), region = 32  ;;  %p227_p4 = scmp.lt.s32.totalorder (!%p187_p3), %s631_s18, 31 }
   0xc   : > { %v307_v0 = vld [vmem:[%s823_s1] sm:$0xf]  ;;  %vm373_vm0 = vcmask 1043456   ;;  %s831_s18 = smov (!%p227_p4, %s631_s18), 31  ;;  %vm348_vm1 = vcmask 64512  }
   0xd   : > { %v375_v1 = vsel %vm373_vm0, %v307_v0, 0  ;;  %s632_s19 = sshll.u32 %s831_s18, 2  ;;  %s634_s23 = sshll.u32 %s831_s18, 3  ;;  %v712_v10 = vld [vmem:[%s824_s2] ss:$0 sm:$0xff] }
   0xe   : > { %384 = vmatpush.bf16.msra.mxu0 %v375_v1  ;;  %685 = vmatpush.bf16.msra.mxu1 %v375_v1  ;;  %s233_s22 = scalar_lea.vmem %s822_s0, %s632_s19  ;;  %s795_s28 = scalar_lea.vmem %s825_s3, %s634_s23 }
   0xf   : > { %686 = vmatpush.bf16.msra.mxu2 %v375_v1  ;;  %687 = vmatpush.bf16.msra.mxu3 %v375_v1  ;;  %v677_v2 = vld [vmem:[%s233_s22] sm:$0xff]  ;;  %v679_v3 = vld [vmem:[%s233_s22 + $0x10] sm:$0xff]  ;;  %v678_v6 = vld [vmem:[%s233_s22 + $0x8] sm:$0xff] }
  0x10   : > { %v681_v4 = vld [vmem:[%s233_s22 + $0x20] sm:$0xff]  ;;  %v683_v5 = vld [vmem:[%s233_s22 + $0x30] sm:$0xff]  ;;  %v680_v7 = vld [vmem:[%s233_s22 + $0x18] sm:$0xff] }
  0x11   : > { %667 = vmatmul.msk.bf16.vlgmr.msra.gmra.mxu0 %vm348_vm1, %v677_v2  ;;  %669 = vmatmul.msk.bf16.vlgmr.msra.gmra.mxu1 %vm348_vm1, %v679_v3  ;;  %v682_v8 = vld [vmem:[%s233_s22 + $0x28] sm:$0xff]  ;;  %v684_v9 = vld [vmem:[%s233_s22 + $0x38] sm:$0xff] }
  0x12   : > { %671 = vmatmul.msk.bf16.vlgmr.msra.gmra.mxu2 %vm348_vm1, %v681_v4  ;;  %673 = vmatmul.msk.bf16.vlgmr.msra.gmra.mxu3 %vm348_vm1, %v683_v5 }
  0x21   : > { %668 = vmatmul.msk.bf16.gmra.mxu0 %vm348_vm1, %v678_v6  ;;  %670 = vmatmul.msk.bf16.gmra.mxu1 %vm348_vm1, %v680_v7 }
  0x22   : > { %672 = vmatmul.msk.bf16.gmra.mxu2 %vm348_vm1, %v682_v8  ;;  %674 = vmatmul.msk.bf16.gmra.mxu3 %vm348_vm1, %v684_v9 }
  0x8e   : > { %v386_v11 = vpop.f32.mrf.mxu0  ;;  %v396_v12 = vpop.f32.mrf.mxu1 }
  0x8f   : > { %v481_v13 = vadd.f32 %v712_v10, %v386_v11  ;;  %v485_v14 = vadd.f32 %v712_v10, %v396_v12 }
  0x91   : > { %497 = vst [vmem:[%s795_s28] sm:$0xff] %v481_v13 }
  0x92   : > { %501 = vst [vmem:[%s795_s28 + $0x20] sm:$0xff] %v485_v14 }
  0x95   : > { %v406_v15 = vpop.f32.mrf.mxu2  ;;  %v416_v16 = vpop.f32.mrf.mxu3 }
  0x96   : > { %v489_v17 = vadd.f32 %v712_v10, %v406_v15  ;;  %v493_v18 = vadd.f32 %v712_v10, %v416_v16  ;;  %v388_v19 = vpop.f32.mrf.mxu0  ;;  %v398_v20 = vpop.f32.mrf.mxu1 }
  0x97   : > { %v482_v21 = vadd.f32 %v712_v10, %v388_v19  ;;  %v486_v22 = vadd.f32 %v712_v10, %v398_v20 }
  0x98   : > { %505 = vst [vmem:[%s795_s28 + $0x40] sm:$0xff] %v489_v17 }
  0x99   : > { %509 = vst [vmem:[%s795_s28 + $0x60] sm:$0xff] %v493_v18 }
  0x9a   : > { %498 = vst [vmem:[%s795_s28 + $0x8] sm:$0xff] %v482_v21 }
  0x9b   : > { %502 = vst [vmem:[%s795_s28 + $0x28] sm:$0xff] %v486_v22 }
  0x9d   : > { %v408_v23 = vpop.f32.mrf.mxu2  ;;  %v418_v24 = vpop.f32.mrf.mxu3 }
  0x9e   : > { %v490_v25 = vadd.f32 %v712_v10, %v408_v23  ;;  %v494_v26 = vadd.f32 %v712_v10, %v418_v24  ;;  %v391_v27 = vpop.f32.mrf.mxu0  ;;  %v401_v28 = vpop.f32.mrf.mxu1 }
  0x9f   : > { %v483_v29 = vadd.f32 %v712_v10, %v391_v27  ;;  %v487_v30 = vadd.f32 %v712_v10, %v401_v28 }
  0xa0   : > { %506 = vst [vmem:[%s795_s28 + $0x48] sm:$0xff] %v490_v25 }
  0xa1   : > { %510 = vst [vmem:[%s795_s28 + $0x68] sm:$0xff] %v494_v26 }
  0xa2   : > { %499 = vst [vmem:[%s795_s28 + $0x10] sm:$0xff] %v483_v29 }
  0xa3   : > { %503 = vst [vmem:[%s795_s28 + $0x30] sm:$0xff] %v487_v30 }
  0xa5   : > { %v411_v31 = vpop.f32.mrf.mxu2  ;;  %v421_v32 = vpop.f32.mrf.mxu3 }
  0xa6   : > { %v491_v33 = vadd.f32 %v712_v10, %v411_v31  ;;  %v495_v34 = vadd.f32 %v712_v10, %v421_v32  ;;  %v393_v35 = vpop.f32.mrf.mxu0  ;;  %v403_v36 = vpop.f32.mrf.mxu1 }
  0xa7   : > { %v484_v37 = vadd.f32 %v712_v10, %v393_v35  ;;  %v488_v38 = vadd.f32 %v712_v10, %v403_v36 }
  0xa8   : > { %507 = vst [vmem:[%s795_s28 + $0x50] sm:$0xff] %v491_v33 }
  0xa9   : > { %511 = vst [vmem:[%s795_s28 + $0x70] sm:$0xff] %v495_v34 }
  0xaa   : > { %500 = vst [vmem:[%s795_s28 + $0x18] sm:$0xff] %v484_v37 }
  0xab   : > { %504 = vst [vmem:[%s795_s28 + $0x38] sm:$0xff] %v488_v38 }
  0xad   : > { %v413_v39 = vpop.f32.mrf.mxu2  ;;  %v423_v40 = vpop.f32.mrf.mxu3 }
  0xae   : > { %v492_v41 = vadd.f32 %v712_v10, %v413_v39  ;;  %v496_v42 = vadd.f32 %v712_v10, %v423_v40 }
  0xb0   : > { %508 = vst [vmem:[%s795_s28 + $0x58] sm:$0xff] %v492_v41 }
  0xb1   : > { %512 = vst [vmem:[%s795_s28 + $0x78] sm:$0xff] %v496_v42 }
  0xb2 PF: > { %s13_s14 = sadd.s32 1, %s735_s14   ;;  %s826_s12 = smov %s731_s13 }
  0xb3   : > { %p10_p5 = scmp.ge.s32.totalorder %s13_s14, 4   ;;  %s827_s13 = smov %s829_s15 }
  0xb5   :  { %12 = sbr.rel (!%p10_p5) target bundleno = 2 (0x2), region = 76 }

// kernel: _lambda_.34
= control target key start
LH: loop header
LB: loop body
LE: loop exit
PB: predicated region body
PF: predicated region fallthrough
CT: control target
= control target key end

     0   :  { %s1144_s15 = smov 0   ;;  %s1146_s16 = smov 0   ;;  %s1314_s0 = inlined_call_operand.vmem [shape: bf16[256,144], index: 0, kind: input, shape index: {}]   ;;  %s1315_s1 = inlined_call_operand.vmem [shape: bf16[144,128], index: 1, kind: input, shape index: {}]   ;;  %s1316_s2 = inlined_call_operand.vmem [shape: f32[1,128], index: 2, kind: input, shape index: {}]   ;;  %s1317_s3 = inlined_call_operand.vmem [shape: f32[256,128], index: 3, kind: input, shape index: {}]   ;;  %s1318_s4 = inlined_call_operand.vmem [shape: f32[256,128], index: 4, kind: output, shape index: {}]  }
   0x1   :  { %s1148_s17 = smov 0  }
   0x2 LB: > { %s33_s18 = sadd.s32 1, %s1113_s16  ;;  %p917_p0 = scmp.ge.s32.totalorder %s1117_s17, 1  ;;  %s1117_s17 = sphi %s1148_s17, %s14_s17   ;;  %s1113_s16 = sphi %s1146_s16, %s1320_s16   ;;  %s1109_s15 = sphi %s1144_s15, %s1319_s15  }
   0x3   : > { %p35_p1 = scmp.ge.s32.totalorder %s33_s18, 2  ;;  %p232_p2 = scmp.lt.s32.totalorder %s1117_s17, 3 }
   0x5   : > { %s1322_s18 = smov (%p35_p1, %s33_s18), 0  ;;  %p233_p3 = pnand %p917_p0, %p232_p2 }
   0x6   : > { %s918_s23 = sshll.u32 (!%p233_p3), %s1109_s15, 4 }
   0x7   : > { %236 = sbr.rel (%p233_p3) target bundleno = 241 (0xf1), region = 36  ;;  %p287_p4 = scmp.lt.s32.totalorder (!%p233_p3), %s918_s23, 31 }
   0xc   : > { %v1059_v0 = vld [vmem:[%s1315_s1 + $0x38] sm:$0xff]  ;;  %v1060_v1 = vld [vmem:[%s1315_s1 + $0x40] sm:$0xff]  ;;  %v1058_v2 = vld [vmem:[%s1315_s1 + $0x30] sm:$0xff]  ;;  %s1324_s23 = smov (!%p287_p4, %s918_s23), 31  ;;  %vm524_vm0 = vcmask 130048  }
   0xd   : > { %549 = vmatpush.bf16.msra.mxu0 %v1059_v0  ;;  %1061 = vmatpush.bf16.msra.mxu2 %v1059_v0  ;;  %s1171_s26 = sshll.u32 %s1324_s23, 3  ;;  %v1057_v3 = vld [vmem:[%s1315_s1 + $0x28] sm:$0xff]  ;;  %v1056_v7 = vld [vmem:[%s1315_s1 + $0x20] sm:$0xff]  ;;  %v1055_v11 = vld [vmem:[%s1315_s1 + $0x18] sm:$0xff] }
   0xe   : > { %605 = vmatpush.bf16.msra.mxu1 %v1060_v1  ;;  %1069 = vmatpush.bf16.msra.mxu3 %v1060_v1  ;;  %s1177_s29 = scalar_lea.vmem %s1314_s0, %s1171_s26  ;;  %v1054_v12 = vld [vmem:[%s1315_s1 + $0x10] sm:$0xff]  ;;  %v1053_v16 = vld [vmem:[%s1315_s1 + $0x8] sm:$0xff]  ;;  %v1052_v20 = vld [vmem:[%s1315_s1] sm:$0xff]  ;;  %s1241_s21 = scalar_lea.vmem %s1317_s3, %s1171_s26 }
   0xf   : > { %v1036_v4 = vld [vmem:[%s1177_s29 + $0x4] sm:$0xf]  ;;  %v929_v5 = vld [vmem:[%s1177_s29 + $0x8] sm:$0xf0]  ;;  %v1046_v8 = vld [vmem:[%s1177_s29 + $0x54] sm:$0xf]  ;;  %s1254_s27 = scalar_lea.vmem %s1318_s4, %s1171_s26 }
  0x10   : > { %v932_v6 = vor.u32 %v1036_v4, %v929_v5  ;;  %v969_v9 = vld [vmem:[%s1177_s29 + $0x58] sm:$0xf0]  ;;  %v1038_v13 = vld [vmem:[%s1177_s29 + $0x14] sm:$0xf]  ;;  %v1048_v17 = vld [vmem:[%s1177_s29 + $0x64] sm:$0xf] }
  0x11   : > { %550 = vmatpush.bf16.msra.mxu0 %v1058_v2  ;;  %1062 = vmatpush.bf16.msra.mxu2 %v1058_v2  ;;  %v972_v10 = vor.u32 %v1046_v8, %v969_v9  ;;  %v937_v14 = vld [vmem:[%s1177_s29 + $0x18] sm:$0xf0]  ;;  %v977_v18 = vld [vmem:[%s1177_s29 + $0x68] sm:$0xf0]  ;;  %v927_v21 = vld [vmem:[%s1177_s29] sm:$0xf] }
  0x12   : > { %1025 = vmatmul.msk.bf16.vlgmr.msra.gmra.mxu1 %vm524_vm0, %v932_v6  ;;  %v940_v15 = vor.u32 %v1038_v13, %v937_v14  ;;  %v980_v19 = vor.u32 %v1048_v17, %v977_v18  ;;  %v1037_v22 = vld [vmem:[%s1177_s29 + $0x4] sm:$0xf0]  ;;  %v959_v23 = vld [vmem:[%s1177_s29 + $0x40] sm:$0xf]  ;;  %v1040_v27 = vld [vmem:[%s1177_s29 + $0x24] sm:$0xf] }
  0x13   : > { %1030 = vmatmul.msk.bf16.vlgmr.msra.gmra.mxu3 %vm524_vm0, %v972_v10  ;;  %v1045_v24 = vld [vmem:[%s1177_s29 + $0x44] sm:$0xf0]  ;;  %v928_v25 = vor.u32 %v1037_v22, %v927_v21  ;;  %v945_v28 = vld [vmem:[%s1177_s29 + $0x28] sm:$0xf0]  ;;  %v1050_v30 = vld [vmem:[%s1177_s29 + $0x74] sm:$0xf] }
  0x14   : > { %v960_v26 = vor.u32 %v1045_v24, %v959_v23  ;;  %v948_v29 = vor.u32 %v1040_v27, %v945_v28  ;;  %v985_v31 = vld [vmem:[%s1177_s29 + $0x78] sm:$0xf0]  ;;  %v935_v33 = vld [vmem:[%s1177_s29 + $0x10] sm:$0xf]  ;;  %v1039_v34 = vld [vmem:[%s1177_s29 + $0x14] sm:$0xf0] }
  0x15   : > { %551 = vmatpush.bf16.msra.mxu0 %v1057_v3  ;;  %1063 = vmatpush.bf16.msra.mxu2 %v1057_v3  ;;  %v988_v32 = vor.u32 %v1050_v30, %v985_v31  ;;  %v967_v35 = vld [vmem:[%s1177_s29 + $0x50] sm:$0xf]  ;;  %v1047_v36 = vld [vmem:[%s1177_s29 + $0x54] sm:$0xf0]  ;;  %v936_v37 = vor.u32 %v1039_v34, %v935_v33  ;;  %v1042_v39 = vld [vmem:[%s1177_s29 + $0x34] sm:$0xf] }
  0x16   : > { %v968_v38 = vor.u32 %v1047_v36, %v967_v35  ;;  %v953_v40 = vld [vmem:[%s1177_s29 + $0x38] sm:$0xf0]  ;;  %v943_v42 = vld [vmem:[%s1177_s29 + $0x20] sm:$0xf]  ;;  %v1041_v43 = vld [vmem:[%s1177_s29 + $0x24] sm:$0xf0] }
  0x17   : > { %v956_v41 = vor.u32 %v1042_v39, %v953_v40  ;;  %v975_v44 = vld [vmem:[%s1177_s29 + $0x60] sm:$0xf]  ;;  %v1049_v45 = vld [vmem:[%s1177_s29 + $0x64] sm:$0xf0]  ;;  %v944_v46 = vor.u32 %v1041_v43, %v943_v42  ;;  %v1044_v48 = vld [vmem:[%s1177_s29 + $0x44] sm:$0xf] }
  0x18   : > { %v976_v47 = vor.u32 %v1049_v45, %v975_v44  ;;  %v961_v49 = vld [vmem:[%s1177_s29 + $0x48] sm:$0xf0]  ;;  %v951_v51 = vld [vmem:[%s1177_s29 + $0x30] sm:$0xf]  ;;  %v1043_v52 = vld [vmem:[%s1177_s29 + $0x34] sm:$0xf0] }
  0x19   : > { %552 = vmatpush.bf16.msra.mxu0 %v1056_v7  ;;  %1064 = vmatpush.bf16.msra.mxu2 %v1056_v7  ;;  %v964_v50 = vor.u32 %v1044_v48, %v961_v49  ;;  %v983_v53 = vld [vmem:[%s1177_s29 + $0x70] sm:$0xf]  ;;  %v1051_v54 = vld [vmem:[%s1177_s29 + $0x74] sm:$0xf0]  ;;  %v952_v55 = vor.u32 %v1043_v52, %v951_v51  ;;  %v1246_v60 = vld [vmem:[%s1316_s2] ss:$0 sm:$0xff] }
  0x1a   : > { %v984_v56 = vor.u32 %v1051_v54, %v983_v53  ;;  %v718_v0 = vld [vmem:[%s1241_s21] sm:$0xff]  ;;  %v719_v8 = vld [vmem:[%s1241_s21 + $0x8] sm:$0xff]  ;;  %v720_v17 = vld [vmem:[%s1241_s21 + $0x10] sm:$0xff] }
  0x1b   : > { %v722_v43 = vld [vmem:[%s1241_s21 + $0x20] sm:$0xff] }
  0x1c   : > { %v730_v52 = vld [vmem:[%s1241_s21 + $0x60] sm:$0xff] }
  0x1d   : > { %553 = vmatpush.bf16.msra.mxu0 %v1055_v11  ;;  %1065 = vmatpush.bf16.msra.mxu2 %v1055_v11 }
  0x21   : > { %554 = vmatpush.bf16.msra.mxu0 %v1054_v12  ;;  %1066 = vmatpush.bf16.msra.mxu2 %v1054_v12 }
  0x22   : > { %1026 = vmatmul.msk.bf16.gmra.mxu1 %vm524_vm0, %v940_v15 }
  0x23   : > { %1031 = vmatmul.msk.bf16.gmra.mxu3 %vm524_vm0, %v980_v19 }
  0x25   : > { %555 = vmatpush.bf16.msra.mxu0 %v1053_v16  ;;  %1067 = vmatpush.bf16.msra.mxu2 %v1053_v16 }
  0x29   : > { %556 = vmatpush.bf16.msra.mxu0 %v1052_v20  ;;  %1068 = vmatpush.bf16.msra.mxu2 %v1052_v20 }
  0x2c   : > { %557 = vmatmul.bf16.vlgmr.msra.gmra.mxu0 %v928_v25  ;;  %577 = vmatmul.bf16.vlgmr.msra.gmra.mxu2 %v960_v26  ;;  %v728_v25 = vld [vmem:[%s1241_s21 + $0x50] sm:$0xff] }
  0x32   : > { %1027 = vmatmul.msk.bf16.gmra.mxu1 %vm524_vm0, %v948_v29  ;;  %v721_v29 = vld [vmem:[%s1241_s21 + $0x18] sm:$0xff] }
  0x33   : > { %1032 = vmatmul.msk.bf16.gmra.mxu3 %vm524_vm0, %v988_v32 }
  0x3c   : > { %562 = vmatmul.bf16.gmra.mxu0 %v936_v37  ;;  %582 = vmatmul.bf16.gmra.mxu2 %v968_v38  ;;  %v729_v38 = vld [vmem:[%s1241_s21 + $0x58] sm:$0xff] }
  0x42   : > { %1028 = vmatmul.msk.bf16.gmra.mxu1 %vm524_vm0, %v956_v41 }
  0x4c   : > { %567 = vmatmul.bf16.gmra.mxu0 %v944_v46  ;;  %587 = vmatmul.bf16.gmra.mxu2 %v976_v47 }
  0x52   : > { %1029 = vmatmul.msk.bf16.gmra.mxu1 %vm524_vm0, %v964_v50 }
  0x5c   : > { %572 = vmatmul.bf16.gmra.mxu0 %v952_v55  ;;  %592 = vmatmul.bf16.gmra.mxu2 %v984_v56  ;;  %v723_v56 = vld [vmem:[%s1241_s21 + $0x28] sm:$0xff] }
  0x8f   : > { %v607_v57 = vpop.f32.mrf.mxu1 }
  0x96   : > { %v632_v11 = vpop.f32.mrf.mxu3 }
  0x97   : > { %v609_v58 = vpop.f32.mrf.mxu1 }
  0x9e   : > { %v634_v22 = vpop.f32.mrf.mxu3 }
  0x9f   : > { %v612_v59 = vpop.f32.mrf.mxu1 }
  0xa6   : > { %v637_v39 = vpop.f32.mrf.mxu3 }
  0xa7   : > { %v614_v63 = vpop.f32.mrf.mxu1 }
  0xa9   : > { %v558_v61 = vpop.f32.mrf.mxu0 }
  0xaa   : > { %v608_v62 = vadd.f32 %v607_v57, %v558_v61  ;;  %v726_v61 = vld [vmem:[%s1241_s21 + $0x40] sm:$0xff] }
  0xac   : > { %v702_v1 = vadd.f32 %v1246_v60, %v608_v62 }
  0xae   : > { %v734_v2 = vadd.f32 %v718_v0, %v702_v1 }
  0xaf   : > { %v578_v4 = vpop.f32.mrf.mxu2  ;;  %v617_v7 = vpop.f32.mrf.mxu1 }
  0xb0   : > { %v750_v3 = vmax.f32 %v734_v2, 0.0 }
  0xb1   : > { %v560_v5 = vpop.f32.mrf.mxu0 }
  0xb2   : > { %766 = vst [vmem:[%s1254_s27] sm:$0xff] %v750_v3  ;;  %v610_v6 = vadd.f32 %v609_v58, %v560_v5  ;;  %v639_v58 = vpop.f32.mrf.mxu3 }
  0xb4   : > { %v703_v9 = vadd.f32 %v1246_v60, %v610_v6 }
  0xb6   : > { %v735_v10 = vadd.f32 %v719_v8, %v703_v9  ;;  %v731_v8 = vld [vmem:[%s1241_s21 + $0x68] sm:$0xff] }
  0xb7   : > { %v1259_v13 = vpop.f32.mrf.mxu2  ;;  %v619_v16 = vpop.f32.mrf.mxu1 }
  0xb8   : > { %v751_v12 = vmax.f32 %v735_v10, 0.0 }
  0xb9   : > { %v563_v14 = vpop.f32.mrf.mxu0 }
  0xba   : > { %767 = vst [vmem:[%s1254_s27 + $0x8] sm:$0xff] %v751_v12  ;;  %v613_v15 = vadd.f32 %v612_v59, %v563_v14  ;;  %v724_v12 = vld [vmem:[%s1241_s21 + $0x30] sm:$0xff] }
  0xbc   : > { %v704_v18 = vadd.f32 %v1246_v60, %v613_v15 }
  0xbe   : > { %v736_v19 = vadd.f32 %v720_v17, %v704_v18 }
  0xbf   : > { %v583_v21 = vpop.f32.mrf.mxu2  ;;  %v622_v27 = vpop.f32.mrf.mxu1 }
  0xc0   : > { %v752_v20 = vmax.f32 %v736_v19, 0.0  ;;  %v633_v23 = vadd.f32 %v632_v11, %v583_v21  ;;  %v642_v19 = vpop.f32.mrf.mxu3 }
  0xc1   : > { %v565_v24 = vpop.f32.mrf.mxu0 }
  0xc2   : > { %768 = vst [vmem:[%s1254_s27 + $0x10] sm:$0xff] %v752_v20  ;;  %v615_v26 = vadd.f32 %v614_v63, %v565_v24  ;;  %v712_v28 = vadd.f32 %v1246_v60, %v633_v23 }
  0xc4   : > { %v705_v30 = vadd.f32 %v1246_v60, %v615_v26  ;;  %v744_v31 = vadd.f32 %v728_v25, %v712_v28 }
  0xc6   : > { %v737_v32 = vadd.f32 %v721_v29, %v705_v30  ;;  %v760_v33 = vmax.f32 %v744_v31, 0.0  ;;  %v725_v30 = vld [vmem:[%s1241_s21 + $0x38] sm:$0xff] }
  0xc7   : > { %v585_v35 = vpop.f32.mrf.mxu2  ;;  %v624_v41 = vpop.f32.mrf.mxu1 }
  0xc8   : > { %v753_v34 = vmax.f32 %v737_v32, 0.0  ;;  %776 = vst [vmem:[%s1254_s27 + $0x50] sm:$0xff] %v760_v33  ;;  %v635_v36 = vadd.f32 %v634_v22, %v585_v35  ;;  %v644_v35 = vpop.f32.mrf.mxu3 }
  0xc9   : > { %v568_v37 = vpop.f32.mrf.mxu0 }
  0xca   : > { %769 = vst [vmem:[%s1254_s27 + $0x18] sm:$0xff] %v753_v34  ;;  %v618_v40 = vadd.f32 %v617_v7, %v568_v37  ;;  %v713_v42 = vadd.f32 %v1246_v60, %v635_v36 }
  0xcc   : > { %v706_v44 = vadd.f32 %v1246_v60, %v618_v40  ;;  %v745_v45 = vadd.f32 %v729_v38, %v713_v42 }
  0xce   : > { %v738_v46 = vadd.f32 %v722_v43, %v706_v44  ;;  %v761_v47 = vmax.f32 %v745_v45, 0.0 }
  0xcf   : > { %v588_v49 = vpop.f32.mrf.mxu2  ;;  %v627_v54 = vpop.f32.mrf.mxu1 }
  0xd0   : > { %v754_v48 = vmax.f32 %v738_v46, 0.0  ;;  %777 = vst [vmem:[%s1254_s27 + $0x58] sm:$0xff] %v761_v47  ;;  %v638_v50 = vadd.f32 %v637_v39, %v588_v49  ;;  %v628_v57 = vadd.f32 %v627_v54, %v578_v4  ;;  %v733_v39 = vld [vmem:[%s1241_s21 + $0x78] sm:$0xff] }
  0xd1   : > { %v570_v51 = vpop.f32.mrf.mxu0 }
  0xd2   : > { %770 = vst [vmem:[%s1254_s27 + $0x20] sm:$0xff] %v754_v48  ;;  %v620_v53 = vadd.f32 %v619_v16, %v570_v51  ;;  %v714_v55 = vadd.f32 %v1246_v60, %v638_v50  ;;  %v710_v63 = vadd.f32 %v1246_v60, %v628_v57  ;;  %v727_v16 = vld [vmem:[%s1241_s21 + $0x48] sm:$0xff] }
  0xd4   : > { %v707_v59 = vadd.f32 %v1246_v60, %v620_v53  ;;  %v746_v62 = vadd.f32 %v730_v52, %v714_v55  ;;  %v742_v2 = vadd.f32 %v726_v61, %v710_v63 }
  0xd6   : > { %v739_v0 = vadd.f32 %v723_v56, %v707_v59  ;;  %v762_v1 = vmax.f32 %v746_v62, 0.0  ;;  %v758_v6 = vmax.f32 %v742_v2, 0.0 }
  0xd7   : > { %v590_v5 = vpop.f32.mrf.mxu2  ;;  %v629_v10 = vpop.f32.mrf.mxu1 }
  0xd8   : > { %v755_v3 = vmax.f32 %v739_v0, 0.0  ;;  %778 = vst [vmem:[%s1254_s27 + $0x60] sm:$0xff] %v762_v1  ;;  %v640_v7 = vadd.f32 %v639_v58, %v590_v5  ;;  %v630_v14 = vadd.f32 %v629_v10, %v1259_v13 }
  0xd9   : > { %v573_v4 = vpop.f32.mrf.mxu0  ;;  %774 = vst [vmem:[%s1254_s27 + $0x40] sm:$0xff] %v758_v6 }
  0xda   : > { %771 = vst [vmem:[%s1254_s27 + $0x28] sm:$0xff] %v755_v3  ;;  %v623_v9 = vadd.f32 %v622_v27, %v573_v4  ;;  %v715_v11 = vadd.f32 %v1246_v60, %v640_v7  ;;  %v711_v18 = vadd.f32 %v1246_v60, %v630_v14  ;;  %v732_v27 = vld [vmem:[%s1241_s21 + $0x70] sm:$0xff] }
  0xdc   : > { %v708_v15 = vadd.f32 %v1246_v60, %v623_v9  ;;  %v747_v17 = vadd.f32 %v731_v8, %v715_v11  ;;  %v743_v22 = vadd.f32 %v727_v16, %v711_v18 }
  0xde   : > { %v740_v20 = vadd.f32 %v724_v12, %v708_v15  ;;  %v763_v21 = vmax.f32 %v747_v17, 0.0  ;;  %v759_v25 = vmax.f32 %v743_v22, 0.0 }
  0xdf   : > { %v593_v24 = vpop.f32.mrf.mxu2 }
  0xe0   : > { %v756_v23 = vmax.f32 %v740_v20, 0.0  ;;  %779 = vst [vmem:[%s1254_s27 + $0x68] sm:$0xff] %v763_v21  ;;  %v643_v26 = vadd.f32 %v642_v19, %v593_v24 }
  0xe1   : > { %v575_v13 = vpop.f32.mrf.mxu0  ;;  %775 = vst [vmem:[%s1254_s27 + $0x48] sm:$0xff] %v759_v25 }
  0xe2   : > { %772 = vst [vmem:[%s1254_s27 + $0x30] sm:$0xff] %v756_v23  ;;  %v625_v28 = vadd.f32 %v624_v41, %v575_v13  ;;  %v716_v29 = vadd.f32 %v1246_v60, %v643_v26 }
  0xe4   : > { %v709_v31 = vadd.f32 %v1246_v60, %v625_v28  ;;  %v748_v32 = vadd.f32 %v732_v27, %v716_v29 }
  0xe6   : > { %v741_v33 = vadd.f32 %v725_v30, %v709_v31  ;;  %v764_v34 = vmax.f32 %v748_v32, 0.0 }
  0xe7   : > { %v595_v37 = vpop.f32.mrf.mxu2 }
  0xe8   : > { %v757_v36 = vmax.f32 %v741_v33, 0.0  ;;  %780 = vst [vmem:[%s1254_s27 + $0x70] sm:$0xff] %v764_v34  ;;  %v645_v38 = vadd.f32 %v644_v35, %v595_v37 }
  0xea   : > { %773 = vst [vmem:[%s1254_s27 + $0x38] sm:$0xff] %v757_v36  ;;  %v717_v40 = vadd.f32 %v1246_v60, %v645_v38 }
  0xec   : > { %v749_v41 = vadd.f32 %v733_v39, %v717_v40 }
  0xee   : > { %v765_v42 = vmax.f32 %v749_v41, 0.0 }
  0xf0   : > { %781 = vst [vmem:[%s1254_s27 + $0x78] sm:$0xff] %v765_v42 }
  0xf1 PF: > { %s14_s17 = sadd.s32 1, %s1117_s17   ;;  %s1319_s15 = smov %s1113_s16 }
  0xf2   : > { %p11_p5 = scmp.ge.s32.totalorder %s14_s17, 4   ;;  %s1320_s16 = smov %s1322_s18 }
  0xf4   :  { %13 = sbr.rel (!%p11_p5) target bundleno = 2 (0x2), region = 83 }

// kernel: _lambda_.35
= control target key start
LH: loop header
LB: loop body
LE: loop exit
PB: predicated region body
PF: predicated region fallthrough
CT: control target
= control target key end

     0   :  { %s1030_s12 = smov 0   ;;  %s1032_s13 = smov 0   ;;  %s1178_s0 = inlined_call_operand.vmem [shape: bf16[256,144], index: 0, kind: input, shape index: {}]   ;;  %s1179_s1 = inlined_call_operand.vmem [shape: bf16[144,128], index: 1, kind: input, shape index: {}]   ;;  %s1180_s2 = inlined_call_operand.vmem [shape: f32[1,128], index: 2, kind: input, shape index: {}]   ;;  %s1181_s3 = inlined_call_operand.vmem [shape: f32[256,128], index: 3, kind: output, shape index: {}]  }
   0x1   :  { %s1034_s14 = smov 0  }
   0x2 LB: > { %s32_s15 = sadd.s32 1, %s1004_s13  ;;  %p810_p0 = scmp.ge.s32.totalorder %s1008_s14, 1  ;;  %s1008_s14 = sphi %s1034_s14, %s13_s14   ;;  %s1004_s13 = sphi %s1032_s13, %s1183_s13   ;;  %s1000_s12 = sphi %s1030_s12, %s1182_s12  }
   0x3   : > { %p34_p1 = scmp.ge.s32.totalorder %s32_s15, 2  ;;  %p191_p2 = scmp.lt.s32.totalorder %s1008_s14, 3 }
   0x5   : > { %s1185_s15 = smov (%p34_p1, %s32_s15), 0  ;;  %p192_p3 = pnand %p810_p0, %p191_p2 }
   0x6   : > { %s811_s20 = sshll.u32 (!%p192_p3), %s1000_s12, 4 }
   0x7   : > { %195 = sbr.rel (%p192_p3) target bundleno = 239 (0xef), region = 32  ;;  %p236_p4 = scmp.lt.s32.totalorder (!%p192_p3), %s811_s20, 31 }
   0xc   : > { %v950_v0 = vld [vmem:[%s1179_s1 + $0x38] sm:$0xff]  ;;  %v951_v1 = vld [vmem:[%s1179_s1 + $0x40] sm:$0xff]  ;;  %v949_v2 = vld [vmem:[%s1179_s1 + $0x30] sm:$0xff]  ;;  %s1187_s20 = smov (!%p236_p4, %s811_s20), 31  ;;  %vm464_vm0 = vcmask 130048  }
   0xd   : > { %489 = vmatpush.bf16.msra.mxu0 %v950_v0  ;;  %952 = vmatpush.bf16.msra.mxu2 %v950_v0  ;;  %s926_s23 = sshll.u32 %s1187_s20, 3  ;;  %v948_v3 = vld [vmem:[%s1179_s1 + $0x28] sm:$0xff]  ;;  %v947_v7 = vld [vmem:[%s1179_s1 + $0x20] sm:$0xff]  ;;  %v946_v11 = vld [vmem:[%s1179_s1 + $0x18] sm:$0xff] }
   0xe   : > { %545 = vmatpush.bf16.msra.mxu1 %v951_v1  ;;  %960 = vmatpush.bf16.msra.mxu3 %v951_v1  ;;  %s1065_s26 = scalar_lea.vmem %s1178_s0, %s926_s23  ;;  %v945_v12 = vld [vmem:[%s1179_s1 + $0x10] sm:$0xff]  ;;  %v944_v16 = vld [vmem:[%s1179_s1 + $0x8] sm:$0xff]  ;;  %v943_v20 = vld [vmem:[%s1179_s1] sm:$0xff]  ;;  %s1136_s19 = scalar_lea.vmem %s1181_s3, %s926_s23 }
   0xf   : > { %v927_v4 = vld [vmem:[%s1065_s26 + $0x4] sm:$0xf]  ;;  %v820_v5 = vld [vmem:[%s1065_s26 + $0x8] sm:$0xf0]  ;;  %v937_v8 = vld [vmem:[%s1065_s26 + $0x54] sm:$0xf] }
  0x10   : > { %v823_v6 = vor.u32 %v927_v4, %v820_v5  ;;  %v860_v9 = vld [vmem:[%s1065_s26 + $0x58] sm:$0xf0]  ;;  %v929_v13 = vld [vmem:[%s1065_s26 + $0x14] sm:$0xf]  ;;  %v939_v17 = vld [vmem:[%s1065_s26 + $0x64] sm:$0xf] }
  0x11   : > { %490 = vmatpush.bf16.msra.mxu0 %v949_v2  ;;  %953 = vmatpush.bf16.msra.mxu2 %v949_v2  ;;  %v863_v10 = vor.u32 %v937_v8, %v860_v9  ;;  %v828_v14 = vld [vmem:[%s1065_s26 + $0x18] sm:$0xf0]  ;;  %v868_v18 = vld [vmem:[%s1065_s26 + $0x68] sm:$0xf0]  ;;  %v818_v21 = vld [vmem:[%s1065_s26] sm:$0xf] }
  0x12   : > { %916 = vmatmul.msk.bf16.vlgmr.msra.gmra.mxu1 %vm464_vm0, %v823_v6  ;;  %v831_v15 = vor.u32 %v929_v13, %v828_v14  ;;  %v871_v19 = vor.u32 %v939_v17, %v868_v18  ;;  %v928_v22 = vld [vmem:[%s1065_s26 + $0x4] sm:$0xf0]  ;;  %v850_v23 = vld [vmem:[%s1065_s26 + $0x40] sm:$0xf]  ;;  %v931_v27 = vld [vmem:[%s1065_s26 + $0x24] sm:$0xf] }
  0x13   : > { %921 = vmatmul.msk.bf16.vlgmr.msra.gmra.mxu3 %vm464_vm0, %v863_v10  ;;  %v936_v24 = vld [vmem:[%s1065_s26 + $0x44] sm:$0xf0]  ;;  %v819_v25 = vor.u32 %v928_v22, %v818_v21  ;;  %v836_v28 = vld [vmem:[%s1065_s26 + $0x28] sm:$0xf0]  ;;  %v941_v30 = vld [vmem:[%s1065_s26 + $0x74] sm:$0xf] }
  0x14   : > { %v851_v26 = vor.u32 %v936_v24, %v850_v23  ;;  %v839_v29 = vor.u32 %v931_v27, %v836_v28  ;;  %v876_v31 = vld [vmem:[%s1065_s26 + $0x78] sm:$0xf0]  ;;  %v826_v33 = vld [vmem:[%s1065_s26 + $0x10] sm:$0xf]  ;;  %v930_v34 = vld [vmem:[%s1065_s26 + $0x14] sm:$0xf0] }
  0x15   : > { %491 = vmatpush.bf16.msra.mxu0 %v948_v3  ;;  %954 = vmatpush.bf16.msra.mxu2 %v948_v3  ;;  %v879_v32 = vor.u32 %v941_v30, %v876_v31  ;;  %v858_v35 = vld [vmem:[%s1065_s26 + $0x50] sm:$0xf]  ;;  %v938_v36 = vld [vmem:[%s1065_s26 + $0x54] sm:$0xf0]  ;;  %v827_v37 = vor.u32 %v930_v34, %v826_v33  ;;  %v933_v39 = vld [vmem:[%s1065_s26 + $0x34] sm:$0xf] }
  0x16   : > { %v859_v38 = vor.u32 %v938_v36, %v858_v35  ;;  %v844_v40 = vld [vmem:[%s1065_s26 + $0x38] sm:$0xf0]  ;;  %v834_v42 = vld [vmem:[%s1065_s26 + $0x20] sm:$0xf]  ;;  %v932_v43 = vld [vmem:[%s1065_s26 + $0x24] sm:$0xf0] }
  0x17   : > { %v847_v41 = vor.u32 %v933_v39, %v844_v40  ;;  %v866_v44 = vld [vmem:[%s1065_s26 + $0x60] sm:$0xf]  ;;  %v940_v45 = vld [vmem:[%s1065_s26 + $0x64] sm:$0xf0]  ;;  %v835_v46 = vor.u32 %v932_v43, %v834_v42  ;;  %v935_v48 = vld [vmem:[%s1065_s26 + $0x44] sm:$0xf] }
  0x18   : > { %v867_v47 = vor.u32 %v940_v45, %v866_v44  ;;  %v852_v49 = vld [vmem:[%s1065_s26 + $0x48] sm:$0xf0]  ;;  %v842_v51 = vld [vmem:[%s1065_s26 + $0x30] sm:$0xf]  ;;  %v934_v52 = vld [vmem:[%s1065_s26 + $0x34] sm:$0xf0] }
  0x19   : > { %492 = vmatpush.bf16.msra.mxu0 %v947_v7  ;;  %955 = vmatpush.bf16.msra.mxu2 %v947_v7  ;;  %v855_v50 = vor.u32 %v935_v48, %v852_v49  ;;  %v874_v53 = vld [vmem:[%s1065_s26 + $0x70] sm:$0xf]  ;;  %v942_v54 = vld [vmem:[%s1065_s26 + $0x74] sm:$0xf0]  ;;  %v843_v55 = vor.u32 %v934_v52, %v842_v51  ;;  %v1128_v60 = vld [vmem:[%s1180_s2] ss:$0 sm:$0xff] }
  0x1a   : > { %v875_v56 = vor.u32 %v942_v54, %v874_v53 }
  0x1d   : > { %493 = vmatpush.bf16.msra.mxu0 %v946_v11  ;;  %956 = vmatpush.bf16.msra.mxu2 %v946_v11 }
  0x21   : > { %494 = vmatpush.bf16.msra.mxu0 %v945_v12  ;;  %957 = vmatpush.bf16.msra.mxu2 %v945_v12 }
  0x22   : > { %917 = vmatmul.msk.bf16.gmra.mxu1 %vm464_vm0, %v831_v15 }
  0x23   : > { %922 = vmatmul.msk.bf16.gmra.mxu3 %vm464_vm0, %v871_v19 }
  0x25   : > { %495 = vmatpush.bf16.msra.mxu0 %v944_v16  ;;  %958 = vmatpush.bf16.msra.mxu2 %v944_v16 }
  0x29   : > { %496 = vmatpush.bf16.msra.mxu0 %v943_v20  ;;  %959 = vmatpush.bf16.msra.mxu2 %v943_v20 }
  0x2c   : > { %497 = vmatmul.bf16.vlgmr.msra.gmra.mxu0 %v819_v25  ;;  %517 = vmatmul.bf16.vlgmr.msra.gmra.mxu2 %v851_v26 }
  0x32   : > { %918 = vmatmul.msk.bf16.gmra.mxu1 %vm464_vm0, %v839_v29 }
  0x33   : > { %923 = vmatmul.msk.bf16.gmra.mxu3 %vm464_vm0, %v879_v32 }
  0x3c   : > { %502 = vmatmul.bf16.gmra.mxu0 %v827_v37  ;;  %522 = vmatmul.bf16.gmra.mxu2 %v859_v38 }
  0x42   : > { %919 = vmatmul.msk.bf16.gmra.mxu1 %vm464_vm0, %v847_v41 }
  0x4c   : > { %507 = vmatmul.bf16.gmra.mxu0 %v835_v46  ;;  %527 = vmatmul.bf16.gmra.mxu2 %v867_v47 }
  0x52   : > { %920 = vmatmul.msk.bf16.gmra.mxu1 %vm464_vm0, %v855_v50 }
  0x5c   : > { %512 = vmatmul.bf16.gmra.mxu0 %v843_v55  ;;  %532 = vmatmul.bf16.gmra.mxu2 %v875_v56 }
  0x8f   : > { %v547_v57 = vpop.f32.mrf.mxu1 }
  0x96   : > { %v572_v8 = vpop.f32.mrf.mxu3 }
  0x97   : > { %v549_v58 = vpop.f32.mrf.mxu1 }
  0x9e   : > { %v574_v16 = vpop.f32.mrf.mxu3 }
  0x9f   : > { %v552_v59 = vpop.f32.mrf.mxu1 }
  0xa6   : > { %v577_v28 = vpop.f32.mrf.mxu3 }
  0xa7   : > { %v554_v63 = vpop.f32.mrf.mxu1 }
  0xa9   : > { %v498_v61 = vpop.f32.mrf.mxu0 }
  0xaa   : > { %v548_v62 = vadd.f32 %v547_v57, %v498_v61 }
  0xac   : > { %v642_v0 = vadd.f32 %v1128_v60, %v548_v62 }
  0xae   : > { %v658_v1 = vmax.f32 %v642_v0, 0.0  ;;  %v579_v42 = vpop.f32.mrf.mxu3 }
  0xaf   : > { %v518_v2 = vpop.f32.mrf.mxu2  ;;  %v557_v5 = vpop.f32.mrf.mxu1 }
  0xb0   : > { %674 = vst [vmem:[%s1136_s19] sm:$0xff] %v658_v1 }
  0xb1   : > { %v500_v3 = vpop.f32.mrf.mxu0 }
  0xb2   : > { %v550_v4 = vadd.f32 %v549_v58, %v500_v3 }
  0xb4   : > { %v643_v6 = vadd.f32 %v1128_v60, %v550_v4 }
  0xb6   : > { %v659_v7 = vmax.f32 %v643_v6, 0.0  ;;  %v582_v58 = vpop.f32.mrf.mxu3 }
  0xb7   : > { %v520_v9 = vpop.f32.mrf.mxu2  ;;  %v559_v12 = vpop.f32.mrf.mxu1 }
  0xb8   : > { %675 = vst [vmem:[%s1136_s19 + $0x8] sm:$0xff] %v659_v7 }
  0xb9   : > { %v503_v10 = vpop.f32.mrf.mxu0 }
  0xba   : > { %v553_v11 = vadd.f32 %v552_v59, %v503_v10 }
  0xbc   : > { %v644_v13 = vadd.f32 %v1128_v60, %v553_v11 }
  0xbe   : > { %v660_v14 = vmax.f32 %v644_v13, 0.0  ;;  %v584_v6 = vpop.f32.mrf.mxu3 }
  0xbf   : > { %v523_v15 = vpop.f32.mrf.mxu2  ;;  %v562_v20 = vpop.f32.mrf.mxu1 }
  0xc0   : > { %676 = vst [vmem:[%s1136_s19 + $0x10] sm:$0xff] %v660_v14  ;;  %v573_v17 = vadd.f32 %v572_v8, %v523_v15 }
  0xc1   : > { %v505_v18 = vpop.f32.mrf.mxu0 }
  0xc2   : > { %v555_v19 = vadd.f32 %v554_v63, %v505_v18  ;;  %v652_v21 = vadd.f32 %v1128_v60, %v573_v17 }
  0xc4   : > { %v645_v22 = vadd.f32 %v1128_v60, %v555_v19  ;;  %v668_v23 = vmax.f32 %v652_v21, 0.0 }
  0xc6   : > { %v661_v24 = vmax.f32 %v645_v22, 0.0  ;;  %684 = vst [vmem:[%s1136_s19 + $0x50] sm:$0xff] %v668_v23 }
  0xc7   : > { %v525_v25 = vpop.f32.mrf.mxu2  ;;  %v564_v30 = vpop.f32.mrf.mxu1 }
  0xc8   : > { %677 = vst [vmem:[%s1136_s19 + $0x18] sm:$0xff] %v661_v24  ;;  %v575_v26 = vadd.f32 %v574_v16, %v525_v25 }
  0xc9   : > { %v508_v27 = vpop.f32.mrf.mxu0 }
  0xca   : > { %v558_v29 = vadd.f32 %v557_v5, %v508_v27  ;;  %v653_v31 = vadd.f32 %v1128_v60, %v575_v26 }
  0xcc   : > { %v646_v32 = vadd.f32 %v1128_v60, %v558_v29  ;;  %v669_v33 = vmax.f32 %v653_v31, 0.0 }
  0xce   : > { %v662_v34 = vmax.f32 %v646_v32, 0.0  ;;  %685 = vst [vmem:[%s1136_s19 + $0x58] sm:$0xff] %v669_v33 }
  0xcf   : > { %v528_v35 = vpop.f32.mrf.mxu2  ;;  %v567_v39 = vpop.f32.mrf.mxu1 }
  0xd0   : > { %678 = vst [vmem:[%s1136_s19 + $0x20] sm:$0xff] %v662_v34  ;;  %v578_v36 = vadd.f32 %v577_v28, %v528_v35  ;;  %v568_v41 = vadd.f32 %v567_v39, %v518_v2 }
  0xd1   : > { %v510_v37 = vpop.f32.mrf.mxu0 }
  0xd2   : > { %v560_v38 = vadd.f32 %v559_v12, %v510_v37  ;;  %v654_v40 = vadd.f32 %v1128_v60, %v578_v36  ;;  %v650_v45 = vadd.f32 %v1128_v60, %v568_v41 }
  0xd4   : > { %v647_v43 = vadd.f32 %v1128_v60, %v560_v38  ;;  %v670_v44 = vmax.f32 %v654_v40, 0.0  ;;  %v666_v47 = vmax.f32 %v650_v45, 0.0 }
  0xd6   : > { %v663_v46 = vmax.f32 %v647_v43, 0.0  ;;  %686 = vst [vmem:[%s1136_s19 + $0x60] sm:$0xff] %v670_v44 }
  0xd7   : > { %v530_v48 = vpop.f32.mrf.mxu2  ;;  %682 = vst [vmem:[%s1136_s19 + $0x40] sm:$0xff] %v666_v47  ;;  %v569_v52 = vpop.f32.mrf.mxu1 }
  0xd8   : > { %679 = vst [vmem:[%s1136_s19 + $0x28] sm:$0xff] %v663_v46  ;;  %v580_v49 = vadd.f32 %v579_v42, %v530_v48  ;;  %v570_v54 = vadd.f32 %v569_v52, %v520_v9 }
  0xd9   : > { %v513_v50 = vpop.f32.mrf.mxu0 }
  0xda   : > { %v563_v51 = vadd.f32 %v562_v20, %v513_v50  ;;  %v655_v53 = vadd.f32 %v1128_v60, %v580_v49  ;;  %v651_v57 = vadd.f32 %v1128_v60, %v570_v54 }
  0xdc   : > { %v648_v55 = vadd.f32 %v1128_v60, %v563_v51  ;;  %v671_v56 = vmax.f32 %v655_v53, 0.0  ;;  %v667_v61 = vmax.f32 %v651_v57, 0.0 }
  0xde   : > { %v664_v59 = vmax.f32 %v648_v55, 0.0  ;;  %687 = vst [vmem:[%s1136_s19 + $0x68] sm:$0xff] %v671_v56 }
  0xdf   : > { %v533_v62 = vpop.f32.mrf.mxu2  ;;  %683 = vst [vmem:[%s1136_s19 + $0x48] sm:$0xff] %v667_v61 }
  0xe0   : > { %680 = vst [vmem:[%s1136_s19 + $0x30] sm:$0xff] %v664_v59  ;;  %v583_v63 = vadd.f32 %v582_v58, %v533_v62 }
  0xe1   : > { %v515_v0 = vpop.f32.mrf.mxu0 }
  0xe2   : > { %v565_v1 = vadd.f32 %v564_v30, %v515_v0  ;;  %v656_v2 = vadd.f32 %v1128_v60, %v583_v63 }
  0xe4   : > { %v649_v3 = vadd.f32 %v1128_v60, %v565_v1  ;;  %v672_v4 = vmax.f32 %v656_v2, 0.0 }
  0xe6   : > { %v665_v5 = vmax.f32 %v649_v3, 0.0  ;;  %688 = vst [vmem:[%s1136_s19 + $0x70] sm:$0xff] %v672_v4 }
  0xe7   : > { %v535_v7 = vpop.f32.mrf.mxu2 }
  0xe8   : > { %681 = vst [vmem:[%s1136_s19 + $0x38] sm:$0xff] %v665_v5  ;;  %v585_v8 = vadd.f32 %v584_v6, %v535_v7 }
  0xea   : > { %v657_v9 = vadd.f32 %v1128_v60, %v585_v8 }
  0xec   : > { %v673_v10 = vmax.f32 %v657_v9, 0.0 }
  0xee   : > { %689 = vst [vmem:[%s1136_s19 + $0x78] sm:$0xff] %v673_v10 }
  0xef PF: > { %s13_s14 = sadd.s32 1, %s1008_s14   ;;  %s1182_s12 = smov %s1004_s13 }
  0xf0   : > { %p10_p5 = scmp.ge.s32.totalorder %s13_s14, 4   ;;  %s1183_s13 = smov %s1185_s15 }
  0xf2   :  { %12 = sbr.rel (!%p10_p5) target bundleno = 2 (0x2), region = 76 }

// kernel: _lambda_.37
= control target key start
LH: loop header
LB: loop body
LE: loop exit
PB: predicated region body
PF: predicated region fallthrough
CT: control target
= control target key end

     0   :  { %vm136_vm0 = vcmask 130048   ;;  %s443_s1 = inlined_call_operand.vmem [shape: bf16[144,128], index: 1, kind: input, shape index: {}]   ;;  %s444_s0 = inlined_call_operand.vmem [shape: bf16[48,144], index: 0, kind: input, shape index: {}]   ;;  %s445_s2 = inlined_call_operand.vmem [shape: f32[1,128], index: 2, kind: input, shape index: {}]   ;;  %s446_s3 = inlined_call_operand.vmem [shape: f32[48,128], index: 3, kind: output, shape index: {}]  }
   0x1   :  { %v317_v0 = vld [vmem:[%s443_s1 + $0x38] sm:$0xff]  ;;  %v318_v1 = vld [vmem:[%s443_s1 + $0x40] sm:$0xff]  ;;  %v245_v3 = vld [vmem:[%s444_s0 + $0x8] sm:$0xf0] }
   0x2   :  { %v304_v2 = vld [vmem:[%s444_s0 + $0x4] sm:$0xf]  ;;  %146 = vmatpush.bf16.msra.mxu0 %v317_v0  ;;  %319 = vmatpush.bf16.msra.mxu2 %v317_v0  ;;  %v316_v5 = vld [vmem:[%s443_s1 + $0x30] sm:$0xff]  ;;  %v315_v6 = vld [vmem:[%s443_s1 + $0x28] sm:$0xff] }
   0x3   :  { %v248_v4 = vor.u32 %v304_v2, %v245_v3  ;;  %320 = vmatpush.bf16.msra.mxu3 %v317_v0  ;;  %177 = vmatpush.bf16.msra.mxu1 %v318_v1  ;;  %v314_v7 = vld [vmem:[%s443_s1 + $0x20] sm:$0xff]  ;;  %v313_v8 = vld [vmem:[%s443_s1 + $0x18] sm:$0xff]  ;;  %v306_v9 = vld [vmem:[%s444_s0 + $0x14] sm:$0xf] }
   0x4   :  { %v253_v10 = vld [vmem:[%s444_s0 + $0x18] sm:$0xf0]  ;;  %v312_v12 = vld [vmem:[%s443_s1 + $0x10] sm:$0xff]  ;;  %v311_v13 = vld [vmem:[%s443_s1 + $0x8] sm:$0xff] }
   0x5   :  { %v256_v11 = vor.u32 %v306_v9, %v253_v10  ;;  %v310_v14 = vld [vmem:[%s443_s1] sm:$0xff]  ;;  %v305_v16 = vld [vmem:[%s444_s0 + $0x4] sm:$0xf0]  ;;  %v251_v17 = vld [vmem:[%s444_s0 + $0x10] sm:$0xf] }
   0x6   :  { %301 = vmatmul.msk.bf16.vlgmr.msra.gmra.mxu1 %vm136_vm0, %v248_v4  ;;  %147 = vmatpush.bf16.msra.mxu0 %v316_v5  ;;  %v243_v15 = vld [vmem:[%s444_s0] sm:$0xf]  ;;  %v307_v18 = vld [vmem:[%s444_s0 + $0x14] sm:$0xf0]  ;;  %v309_v20 = vld [vmem:[%s444_s0 + $0x24] sm:$0xf0] }
   0x7   :  { %321 = vmatpush.bf16.msra.mxu2 %v316_v5  ;;  %322 = vmatpush.bf16.msra.mxu3 %v316_v5  ;;  %v259_v19 = vld [vmem:[%s444_s0 + $0x20] sm:$0xf]  ;;  %v244_v21 = vor.u32 %v305_v16, %v243_v15  ;;  %v252_v22 = vor.u32 %v307_v18, %v251_v17  ;;  %v308_v24 = vld [vmem:[%s444_s0 + $0x24] sm:$0xf]  ;;  %v261_v25 = vld [vmem:[%s444_s0 + $0x28] sm:$0xf0] }
   0x8   :  { %v260_v23 = vor.u32 %v309_v20, %v259_v19  ;;  %v264_v26 = vor.u32 %v308_v24, %v261_v25  ;;  %v335_v31 = vld [vmem:[%s445_s2] ss:$0 sm:$0xff] }
   0xa   :  { %148 = vmatpush.bf16.msra.mxu0 %v315_v6 }
   0xb   :  { %323 = vmatpush.bf16.msra.mxu2 %v315_v6  ;;  %324 = vmatpush.bf16.msra.mxu3 %v315_v6 }
   0xe   :  { %149 = vmatpush.bf16.msra.mxu0 %v314_v7 }
   0xf   :  { %325 = vmatpush.bf16.msra.mxu2 %v314_v7  ;;  %326 = vmatpush.bf16.msra.mxu3 %v314_v7 }
  0x12   :  { %150 = vmatpush.bf16.msra.mxu0 %v313_v8 }
  0x13   :  { %327 = vmatpush.bf16.msra.mxu2 %v313_v8  ;;  %328 = vmatpush.bf16.msra.mxu3 %v313_v8 }
  0x16   :  { %302 = vmatmul.msk.bf16.gmra.mxu1 %vm136_vm0, %v256_v11  ;;  %151 = vmatpush.bf16.msra.mxu0 %v312_v12 }
  0x17   :  { %329 = vmatpush.bf16.msra.mxu2 %v312_v12  ;;  %330 = vmatpush.bf16.msra.mxu3 %v312_v12 }
  0x1a   :  { %152 = vmatpush.bf16.msra.mxu0 %v311_v13 }
  0x1b   :  { %331 = vmatpush.bf16.msra.mxu2 %v311_v13  ;;  %332 = vmatpush.bf16.msra.mxu3 %v311_v13 }
  0x1e   :  { %153 = vmatpush.bf16.msra.mxu0 %v310_v14 }
  0x1f   :  { %333 = vmatpush.bf16.msra.mxu2 %v310_v14  ;;  %334 = vmatpush.bf16.msra.mxu3 %v310_v14 }
  0x21   :  { %154 = vmatmul.bf16.vlgmr.msra.gmra.mxu0 %v244_v21 }
  0x22   :  { %159 = vmatmul.bf16.vlgmr.msra.gmra.mxu2 %v252_v22  ;;  %164 = vmatmul.bf16.vlgmr.msra.gmra.mxu3 %v260_v23 }
  0x26   :  { %303 = vmatmul.msk.bf16.gmra.mxu1 %vm136_vm0, %v264_v26 }
  0x83   :  { %v179_v27 = vpop.f32.mrf.mxu1 }
  0x8b   :  { %v181_v28 = vpop.f32.mrf.mxu1 }
  0x93   :  { %v184_v29 = vpop.f32.mrf.mxu1 }
  0x9b   :  { %v186_v30 = vpop.f32.mrf.mxu1 }
  0x9e   :  { %v155_v32 = vpop.f32.mrf.mxu0 }
  0x9f   :  { %v180_v33 = vadd.f32 %v179_v27, %v155_v32 }
  0xa1   :  { %v219_v34 = vadd.f32 %v335_v31, %v180_v33 }
  0xa3   :  { %v225_v35 = vmax.f32 %v219_v34, 0.0  ;;  %v189_v36 = vpop.f32.mrf.mxu1 }
  0xa5   :  { %231 = vst [vmem:[%s446_s3] sm:$0xff] %v225_v35  ;;  %v160_v37 = vpop.f32.mrf.mxu2  ;;  %v165_v38 = vpop.f32.mrf.mxu3 }
  0xa6   :  { %v185_v39 = vadd.f32 %v184_v29, %v160_v37  ;;  %v190_v40 = vadd.f32 %v189_v36, %v165_v38  ;;  %v157_v41 = vpop.f32.mrf.mxu0 }
  0xa7   :  { %v182_v42 = vadd.f32 %v181_v28, %v157_v41 }
  0xa8   :  { %v221_v43 = vadd.f32 %v335_v31, %v185_v39  ;;  %v223_v44 = vadd.f32 %v335_v31, %v190_v40 }
  0xa9   :  { %v220_v45 = vadd.f32 %v335_v31, %v182_v42 }
  0xaa   :  { %v227_v46 = vmax.f32 %v221_v43, 0.0  ;;  %v229_v47 = vmax.f32 %v223_v44, 0.0 }
  0xab   :  { %v226_v48 = vmax.f32 %v220_v45, 0.0  ;;  %v191_v49 = vpop.f32.mrf.mxu1 }
  0xac   :  { %233 = vst [vmem:[%s446_s3 + $0x10] sm:$0xff] %v227_v46 }
  0xad   :  { %235 = vst [vmem:[%s446_s3 + $0x20] sm:$0xff] %v229_v47  ;;  %v162_v50 = vpop.f32.mrf.mxu2  ;;  %v167_v51 = vpop.f32.mrf.mxu3 }
  0xae   :  { %232 = vst [vmem:[%s446_s3 + $0x8] sm:$0xff] %v226_v48  ;;  %v187_v52 = vadd.f32 %v186_v30, %v162_v50  ;;  %v192_v53 = vadd.f32 %v191_v49, %v167_v51 }
  0xb0   :  { %v222_v54 = vadd.f32 %v335_v31, %v187_v52  ;;  %v224_v55 = vadd.f32 %v335_v31, %v192_v53 }
  0xb2   :  { %v228_v56 = vmax.f32 %v222_v54, 0.0  ;;  %v230_v57 = vmax.f32 %v224_v55, 0.0 }
  0xb4   :  { %234 = vst [vmem:[%s446_s3 + $0x18] sm:$0xff] %v228_v56 }
  0xb5   :  { %236 = vst [vmem:[%s446_s3 + $0x28] sm:$0xff] %v230_v57 }

// kernel: _lambda_.38
= control target key start
LH: loop header
LB: loop body
LE: loop exit
PB: predicated region body
PF: predicated region fallthrough
CT: control target
= control target key end

     0   :  { %vm60_vm0 = vcmask 130048   ;;  %s214_s1 = inlined_call_operand.vmem [shape: bf16[16,128], index: 1, kind: input, shape index: {}]   ;;  %s215_s0 = inlined_call_operand.vmem [shape: bf16[48,16], index: 0, kind: input, shape index: {}]   ;;  %s216_s2 = inlined_call_operand.vmem [shape: f32[1,128], index: 2, kind: input, shape index: {}]   ;;  %s217_s3 = inlined_call_operand.vmem [shape: f32[48,128], index: 3, kind: output, shape index: {}]  }
   0x1   :  { %v157_v0 = vld [vmem:[%s214_s1] sm:$0xff]  ;;  %v155_v2 = vld [vmem:[%s215_s0 + $0x8] sm:$0xff]  ;;  %v156_v3 = vld [vmem:[%s215_s0 + $0x10] sm:$0xff] }
   0x2   :  { %v154_v1 = vld [vmem:[%s215_s0] sm:$0xff]  ;;  %77 = vmatpush.bf16.msra.mxu0 %v157_v0  ;;  %158 = vmatpush.bf16.msra.mxu1 %v157_v0 }
   0x3   :  { %159 = vmatpush.bf16.msra.mxu2 %v157_v0  ;;  %v160_v4 = vld [vmem:[%s216_s2] ss:$0 sm:$0xff] }
   0x5   :  { %151 = vmatmul.msk.bf16.vlgmr.msra.gmra.mxu0 %vm60_vm0, %v154_v1  ;;  %152 = vmatmul.msk.bf16.vlgmr.msra.gmra.mxu1 %vm60_vm0, %v155_v2 }
   0x6   :  { %153 = vmatmul.msk.bf16.vlgmr.msra.gmra.mxu2 %vm60_vm0, %v156_v3 }
  0x82   :  { %v79_v5 = vpop.f32.mrf.mxu0  ;;  %v84_v6 = vpop.f32.mrf.mxu1 }
  0x83   :  { %v119_v7 = vadd.f32 %v160_v4, %v79_v5  ;;  %v121_v8 = vadd.f32 %v160_v4, %v84_v6 }
  0x85   :  { %125 = vst [vmem:[%s217_s3] sm:$0xff] %v119_v7 }
  0x86   :  { %127 = vst [vmem:[%s217_s3 + $0x10] sm:$0xff] %v121_v8 }
  0x89   :  { %v89_v9 = vpop.f32.mrf.mxu2 }
  0x8a   :  { %v123_v10 = vadd.f32 %v160_v4, %v89_v9  ;;  %v81_v11 = vpop.f32.mrf.mxu0  ;;  %v86_v12 = vpop.f32.mrf.mxu1 }
  0x8b   :  { %v120_v13 = vadd.f32 %v160_v4, %v81_v11  ;;  %v122_v14 = vadd.f32 %v160_v4, %v86_v12 }
  0x8c   :  { %129 = vst [vmem:[%s217_s3 + $0x20] sm:$0xff] %v123_v10 }
  0x8d   :  { %126 = vst [vmem:[%s217_s3 + $0x8] sm:$0xff] %v120_v13 }
  0x8e   :  { %128 = vst [vmem:[%s217_s3 + $0x18] sm:$0xff] %v122_v14 }
  0x91   :  { %v91_v15 = vpop.f32.mrf.mxu2 }
  0x92   :  { %v124_v16 = vadd.f32 %v160_v4, %v91_v15 }
  0x94   :  { %130 = vst [vmem:[%s217_s3 + $0x28] sm:$0xff] %v124_v16 }

// kernel: _lambda_.39
= control target key start
LH: loop header
LB: loop body
LE: loop exit
PB: predicated region body
PF: predicated region fallthrough
CT: control target
= control target key end

     0   :  { %vm235_vm0 = vcmask 261120   ;;  %s698_s1 = inlined_call_operand.vmem [shape: bf16[288,128], index: 1, kind: input, shape index: {}]   ;;  %s699_s0 = inlined_call_operand.vmem [shape: bf16[48,288], index: 0, kind: input, shape index: {}]   ;;  %s700_s2 = inlined_call_operand.vmem [shape: f32[1,128], index: 2, kind: input, shape index: {}]   ;;  %s701_s3 = inlined_call_operand.vmem [shape: f32[48,128], index: 3, kind: input, shape index: {}]   ;;  %s702_s4 = inlined_call_operand.vmem [shape: f32[48,128], index: 4, kind: output, shape index: {}]  }
   0x1   :  { %v503_v0 = vld [vmem:[%s698_s1 + $0x38] sm:$0xff]  ;;  %v502_v2 = vld [vmem:[%s698_s1 + $0x30] sm:$0xff]  ;;  %v513_v4 = vld [vmem:[%s698_s1 + $0x88] sm:$0xff] }
   0x2   :  { %v511_v1 = vld [vmem:[%s698_s1 + $0x78] sm:$0xff]  ;;  %245 = vmatpush.bf16.msra.mxu0 %v503_v0  ;;  %v510_v3 = vld [vmem:[%s698_s1 + $0x70] sm:$0xff]  ;;  %514 = vmatpush.bf16.msra.mxu3 %v503_v0  ;;  %v512_v5 = vld [vmem:[%s698_s1 + $0x80] sm:$0xff] }
   0x3   :  { %269 = vmatpush.bf16.msra.mxu1 %v511_v1  ;;  %299 = vmatpush.bf16.msra.mxu2 %v513_v4  ;;  %v386_v6 = vld [vmem:[%s699_s0 + $0x8] sm:$0xf]  ;;  %v489_v7 = vld [vmem:[%s699_s0 + $0x10] sm:$0xf0]  ;;  %v500_v11 = vld [vmem:[%s698_s1 + $0x20] sm:$0xff] }
   0x4   :  { %v501_v8 = vld [vmem:[%s698_s1 + $0x28] sm:$0xff]  ;;  %v387_v10 = vor.u32 %v489_v7, %v386_v6  ;;  %v508_v12 = vld [vmem:[%s698_s1 + $0x60] sm:$0xff]  ;;  %v499_v13 = vld [vmem:[%s698_s1 + $0x18] sm:$0xff] }
   0x5   :  { %v509_v9 = vld [vmem:[%s698_s1 + $0x68] sm:$0xff]  ;;  %v507_v14 = vld [vmem:[%s698_s1 + $0x58] sm:$0xff]  ;;  %v498_v15 = vld [vmem:[%s698_s1 + $0x10] sm:$0xff] }
   0x6   :  { %246 = vmatpush.bf16.msra.mxu0 %v502_v2  ;;  %515 = vmatpush.bf16.msra.mxu3 %v502_v2  ;;  %v506_v16 = vld [vmem:[%s698_s1 + $0x50] sm:$0xff]  ;;  %v398_v17 = vld [vmem:[%s699_s0 + $0x20] sm:$0xf]  ;;  %v492_v18 = vld [vmem:[%s699_s0 + $0x28] sm:$0xf0] }
   0x7   :  { %270 = vmatpush.bf16.msra.mxu1 %v510_v3  ;;  %300 = vmatpush.bf16.msra.mxu2 %v512_v5  ;;  %v497_v19 = vld [vmem:[%s698_s1 + $0x8] sm:$0xff]  ;;  %v399_v21 = vor.u32 %v492_v18, %v398_v17  ;;  %v496_v22 = vld [vmem:[%s698_s1] sm:$0xff]  ;;  %v380_v27 = vld [vmem:[%s699_s0 + $0xc] sm:$0xf0] }
   0x8   :  { %v505_v20 = vld [vmem:[%s698_s1 + $0x48] sm:$0xff]  ;;  %v504_v23 = vld [vmem:[%s698_s1 + $0x40] sm:$0xff]  ;;  %v390_v28 = vld [vmem:[%s699_s0 + $0x18] sm:$0xf] }
   0x9   :  { %v378_v24 = vld [vmem:[%s699_s0] sm:$0xf]  ;;  %v488_v25 = vld [vmem:[%s699_s0 + $0x8] sm:$0xf0]  ;;  %v487_v26 = vld [vmem:[%s699_s0 + $0x4] sm:$0xf] }
   0xa   :  { %247 = vmatpush.bf16.msra.mxu0 %v501_v8  ;;  %516 = vmatpush.bf16.msra.mxu3 %v501_v8  ;;  %v491_v29 = vld [vmem:[%s699_s0 + $0x20] sm:$0xf0]  ;;  %v379_v30 = vor.u32 %v488_v25, %v378_v24  ;;  %v383_v31 = vor.u32 %v487_v26, %v380_v27  ;;  %v410_v33 = vld [vmem:[%s699_s0 + $0x38] sm:$0xf]  ;;  %v490_v36 = vld [vmem:[%s699_s0 + $0x1c] sm:$0xf] }
   0xb   :  { %271 = vmatpush.bf16.msra.mxu1 %v509_v9  ;;  %484 = vmatmul.msk.bf16.vlgmr.msra.gmra.mxu2 %vm235_vm0, %v387_v10  ;;  %v391_v32 = vor.u32 %v491_v29, %v390_v28  ;;  %v495_v34 = vld [vmem:[%s699_s0 + $0x40] sm:$0xf0]  ;;  %v392_v37 = vld [vmem:[%s699_s0 + $0x24] sm:$0xf0]  ;;  %v402_v38 = vld [vmem:[%s699_s0 + $0x30] sm:$0xf] }
   0xc   :  { %v411_v35 = vor.u32 %v495_v34, %v410_v33  ;;  %v494_v39 = vld [vmem:[%s699_s0 + $0x38] sm:$0xf0]  ;;  %v395_v40 = vor.u32 %v490_v36, %v392_v37  ;;  %v493_v42 = vld [vmem:[%s699_s0 + $0x34] sm:$0xf]  ;;  %v404_v43 = vld [vmem:[%s699_s0 + $0x3c] sm:$0xf0] }
   0xd   :  { %v403_v41 = vor.u32 %v494_v39, %v402_v38  ;;  %v407_v44 = vor.u32 %v493_v42, %v404_v43  ;;  %v522_v49 = vld [vmem:[%s700_s2] ss:$0 sm:$0xff]  ;;  %v349_v61 = vld [vmem:[%s701_s3 + $0x8] sm:$0xff]  ;;  %v350_v6 = vld [vmem:[%s701_s3 + $0x10] sm:$0xff] }
   0xe   :  { %248 = vmatpush.bf16.msra.mxu0 %v500_v11  ;;  %517 = vmatpush.bf16.msra.mxu3 %v500_v11  ;;  %v348_v52 = vld [vmem:[%s701_s3] sm:$0xff] }
   0xf   :  { %272 = vmatpush.bf16.msra.mxu1 %v508_v12 }
  0x12   :  { %249 = vmatpush.bf16.msra.mxu0 %v499_v13  ;;  %518 = vmatpush.bf16.msra.mxu3 %v499_v13 }
  0x13   :  { %273 = vmatpush.bf16.msra.mxu1 %v507_v14  ;;  %v351_v14 = vld [vmem:[%s701_s3 + $0x18] sm:$0xff] }
  0x16   :  { %250 = vmatpush.bf16.msra.mxu0 %v498_v15  ;;  %519 = vmatpush.bf16.msra.mxu3 %v498_v15 }
  0x17   :  { %274 = vmatpush.bf16.msra.mxu1 %v506_v16 }
  0x1a   :  { %251 = vmatpush.bf16.msra.mxu0 %v497_v19  ;;  %520 = vmatpush.bf16.msra.mxu3 %v497_v19 }
  0x1b   :  { %275 = vmatpush.bf16.msra.mxu1 %v505_v20  ;;  %485 = vmatmul.msk.bf16.gmra.mxu2 %vm235_vm0, %v399_v21 }
  0x1e   :  { %252 = vmatpush.bf16.msra.mxu0 %v496_v22  ;;  %521 = vmatpush.bf16.msra.mxu3 %v496_v22 }
  0x1f   :  { %276 = vmatpush.bf16.msra.mxu1 %v504_v23  ;;  %v352_v23 = vld [vmem:[%s701_s3 + $0x20] sm:$0xff] }
  0x21   :  { %253 = vmatmul.bf16.vlgmr.msra.gmra.mxu0 %v379_v30  ;;  %258 = vmatmul.bf16.vlgmr.msra.gmra.mxu3 %v391_v32  ;;  %v353_v32 = vld [vmem:[%s701_s3 + $0x28] sm:$0xff] }
  0x22   :  { %277 = vmatmul.bf16.vlgmr.msra.gmra.mxu1 %v383_v31 }
  0x2b   :  { %486 = vmatmul.msk.bf16.gmra.mxu2 %vm235_vm0, %v411_v35 }
  0x31   :  { %263 = vmatmul.bf16.gmra.mxu3 %v403_v41 }
  0x32   :  { %282 = vmatmul.bf16.gmra.mxu1 %v395_v40 }
  0x42   :  { %287 = vmatmul.bf16.gmra.mxu1 %v407_v44 }
  0x8e   :  { %v302_v45 = vpop.f32.mrf.mxu2 }
  0x96   :  { %v304_v50 = vpop.f32.mrf.mxu2 }
  0x9e   :  { %v254_v46 = vpop.f32.mrf.mxu0  ;;  %v307_v62 = vpop.f32.mrf.mxu2 }
  0x9f   :  { %v278_v47 = vpop.f32.mrf.mxu1 }
  0xa0   :  { %v279_v48 = vadd.f32 %v278_v47, %v254_v46 }
  0xa2   :  { %v303_v51 = vadd.f32 %v302_v45, %v279_v48 }
  0xa4   :  { %v342_v53 = vadd.f32 %v522_v49, %v303_v51  ;;  %v259_v59 = vpop.f32.mrf.mxu3 }
  0xa6   :  { %v354_v54 = vadd.f32 %v348_v52, %v342_v53  ;;  %v256_v55 = vpop.f32.mrf.mxu0  ;;  %v309_v8 = vpop.f32.mrf.mxu2 }
  0xa7   :  { %v280_v56 = vpop.f32.mrf.mxu1 }
  0xa8   :  { %v360_v57 = vmax.f32 %v354_v54, 0.0  ;;  %v281_v58 = vadd.f32 %v280_v56, %v256_v55 }
  0xaa   :  { %366 = vst [vmem:[%s702_s4] sm:$0xff] %v360_v57  ;;  %v305_v60 = vadd.f32 %v304_v50, %v281_v58 }
  0xac   :  { %v343_v63 = vadd.f32 %v522_v49, %v305_v60  ;;  %v261_v5 = vpop.f32.mrf.mxu3 }
  0xae   :  { %v355_v0 = vadd.f32 %v349_v61, %v343_v63  ;;  %v312_v18 = vpop.f32.mrf.mxu2 }
  0xaf   :  { %v283_v1 = vpop.f32.mrf.mxu1 }
  0xb0   :  { %v361_v2 = vmax.f32 %v355_v0, 0.0  ;;  %v284_v3 = vadd.f32 %v283_v1, %v259_v59 }
  0xb2   :  { %367 = vst [vmem:[%s702_s4 + $0x8] sm:$0xff] %v361_v2  ;;  %v308_v4 = vadd.f32 %v307_v62, %v284_v3 }
  0xb4   :  { %v344_v7 = vadd.f32 %v522_v49, %v308_v4  ;;  %v264_v16 = vpop.f32.mrf.mxu3 }
  0xb6   :  { %v356_v9 = vadd.f32 %v350_v6, %v344_v7  ;;  %v314_v30 = vpop.f32.mrf.mxu2 }
  0xb7   :  { %v285_v10 = vpop.f32.mrf.mxu1 }
  0xb8   :  { %v362_v11 = vmax.f32 %v356_v9, 0.0  ;;  %v286_v12 = vadd.f32 %v285_v10, %v261_v5 }
  0xba   :  { %368 = vst [vmem:[%s702_s4 + $0x10] sm:$0xff] %v362_v11  ;;  %v310_v13 = vadd.f32 %v309_v8, %v286_v12 }
  0xbc   :  { %v345_v15 = vadd.f32 %v522_v49, %v310_v13  ;;  %v266_v26 = vpop.f32.mrf.mxu3 }
  0xbe   :  { %v357_v17 = vadd.f32 %v351_v14, %v345_v15 }
  0xbf   :  { %v288_v19 = vpop.f32.mrf.mxu1 }
  0xc0   :  { %v363_v20 = vmax.f32 %v357_v17, 0.0  ;;  %v289_v21 = vadd.f32 %v288_v19, %v264_v16 }
  0xc2   :  { %369 = vst [vmem:[%s702_s4 + $0x18] sm:$0xff] %v363_v20  ;;  %v313_v22 = vadd.f32 %v312_v18, %v289_v21 }
  0xc4   :  { %v346_v24 = vadd.f32 %v522_v49, %v313_v22 }
  0xc6   :  { %v358_v25 = vadd.f32 %v352_v23, %v346_v24 }
  0xc7   :  { %v290_v27 = vpop.f32.mrf.mxu1 }
  0xc8   :  { %v364_v28 = vmax.f32 %v358_v25, 0.0  ;;  %v291_v29 = vadd.f32 %v290_v27, %v266_v26 }
  0xca   :  { %370 = vst [vmem:[%s702_s4 + $0x20] sm:$0xff] %v364_v28  ;;  %v315_v31 = vadd.f32 %v314_v30, %v291_v29 }
  0xcc   :  { %v347_v33 = vadd.f32 %v522_v49, %v315_v31 }
  0xce   :  { %v359_v34 = vadd.f32 %v353_v32, %v347_v33 }
  0xd0   :  { %v365_v35 = vmax.f32 %v359_v34, 0.0 }
  0xd2   :  { %371 = vst [vmem:[%s702_s4 + $0x28] sm:$0xff] %v365_v35 }

// kernel: _lambda_.40
= control target key start
LH: loop header
LB: loop body
LE: loop exit
PB: predicated region body
PF: predicated region fallthrough
CT: control target
= control target key end

     0   :  { %vm232_vm0 = vcmask 261120   ;;  %s660_s1 = inlined_call_operand.vmem [shape: bf16[288,128], index: 1, kind: input, shape index: {}]   ;;  %s661_s0 = inlined_call_operand.vmem [shape: bf16[48,288], index: 0, kind: input, shape index: {}]   ;;  %s662_s2 = inlined_call_operand.vmem [shape: f32[1,128], index: 2, kind: input, shape index: {}]   ;;  %s663_s3 = inlined_call_operand.vmem [shape: f32[48,128], index: 3, kind: output, shape index: {}]  }
   0x1   :  { %v488_v0 = vld [vmem:[%s660_s1 + $0x38] sm:$0xff]  ;;  %v487_v2 = vld [vmem:[%s660_s1 + $0x30] sm:$0xff]  ;;  %v498_v4 = vld [vmem:[%s660_s1 + $0x88] sm:$0xff] }
   0x2   :  { %v496_v1 = vld [vmem:[%s660_s1 + $0x78] sm:$0xff]  ;;  %242 = vmatpush.bf16.msra.mxu0 %v488_v0  ;;  %v495_v3 = vld [vmem:[%s660_s1 + $0x70] sm:$0xff]  ;;  %499 = vmatpush.bf16.msra.mxu3 %v488_v0  ;;  %v497_v5 = vld [vmem:[%s660_s1 + $0x80] sm:$0xff] }
   0x3   :  { %266 = vmatpush.bf16.msra.mxu1 %v496_v1  ;;  %296 = vmatpush.bf16.msra.mxu2 %v498_v4  ;;  %v371_v6 = vld [vmem:[%s661_s0 + $0x8] sm:$0xf]  ;;  %v474_v7 = vld [vmem:[%s661_s0 + $0x10] sm:$0xf0]  ;;  %v485_v11 = vld [vmem:[%s660_s1 + $0x20] sm:$0xff] }
   0x4   :  { %v486_v8 = vld [vmem:[%s660_s1 + $0x28] sm:$0xff]  ;;  %v372_v10 = vor.u32 %v474_v7, %v371_v6  ;;  %v493_v12 = vld [vmem:[%s660_s1 + $0x60] sm:$0xff]  ;;  %v484_v13 = vld [vmem:[%s660_s1 + $0x18] sm:$0xff] }
   0x5   :  { %v494_v9 = vld [vmem:[%s660_s1 + $0x68] sm:$0xff]  ;;  %v492_v14 = vld [vmem:[%s660_s1 + $0x58] sm:$0xff]  ;;  %v483_v15 = vld [vmem:[%s660_s1 + $0x10] sm:$0xff] }
   0x6   :  { %243 = vmatpush.bf16.msra.mxu0 %v487_v2  ;;  %500 = vmatpush.bf16.msra.mxu3 %v487_v2  ;;  %v491_v16 = vld [vmem:[%s660_s1 + $0x50] sm:$0xff]  ;;  %v383_v17 = vld [vmem:[%s661_s0 + $0x20] sm:$0xf]  ;;  %v477_v18 = vld [vmem:[%s661_s0 + $0x28] sm:$0xf0] }
   0x7   :  { %267 = vmatpush.bf16.msra.mxu1 %v495_v3  ;;  %297 = vmatpush.bf16.msra.mxu2 %v497_v5  ;;  %v482_v19 = vld [vmem:[%s660_s1 + $0x8] sm:$0xff]  ;;  %v384_v21 = vor.u32 %v477_v18, %v383_v17  ;;  %v481_v22 = vld [vmem:[%s660_s1] sm:$0xff]  ;;  %v365_v27 = vld [vmem:[%s661_s0 + $0xc] sm:$0xf0] }
   0x8   :  { %v490_v20 = vld [vmem:[%s660_s1 + $0x48] sm:$0xff]  ;;  %v489_v23 = vld [vmem:[%s660_s1 + $0x40] sm:$0xff]  ;;  %v375_v28 = vld [vmem:[%s661_s0 + $0x18] sm:$0xf] }
   0x9   :  { %v363_v24 = vld [vmem:[%s661_s0] sm:$0xf]  ;;  %v473_v25 = vld [vmem:[%s661_s0 + $0x8] sm:$0xf0]  ;;  %v472_v26 = vld [vmem:[%s661_s0 + $0x4] sm:$0xf] }
   0xa   :  { %244 = vmatpush.bf16.msra.mxu0 %v486_v8  ;;  %501 = vmatpush.bf16.msra.mxu3 %v486_v8  ;;  %v476_v29 = vld [vmem:[%s661_s0 + $0x20] sm:$0xf0]  ;;  %v364_v30 = vor.u32 %v473_v25, %v363_v24  ;;  %v368_v31 = vor.u32 %v472_v26, %v365_v27  ;;  %v395_v33 = vld [vmem:[%s661_s0 + $0x38] sm:$0xf]  ;;  %v475_v36 = vld [vmem:[%s661_s0 + $0x1c] sm:$0xf] }
   0xb   :  { %268 = vmatpush.bf16.msra.mxu1 %v494_v9  ;;  %469 = vmatmul.msk.bf16.vlgmr.msra.gmra.mxu2 %vm232_vm0, %v372_v10  ;;  %v376_v32 = vor.u32 %v476_v29, %v375_v28  ;;  %v480_v34 = vld [vmem:[%s661_s0 + $0x40] sm:$0xf0]  ;;  %v377_v37 = vld [vmem:[%s661_s0 + $0x24] sm:$0xf0]  ;;  %v387_v38 = vld [vmem:[%s661_s0 + $0x30] sm:$0xf] }
   0xc   :  { %v396_v35 = vor.u32 %v480_v34, %v395_v33  ;;  %v479_v39 = vld [vmem:[%s661_s0 + $0x38] sm:$0xf0]  ;;  %v380_v40 = vor.u32 %v475_v36, %v377_v37  ;;  %v478_v42 = vld [vmem:[%s661_s0 + $0x34] sm:$0xf]  ;;  %v389_v43 = vld [vmem:[%s661_s0 + $0x3c] sm:$0xf0] }
   0xd   :  { %v388_v41 = vor.u32 %v479_v39, %v387_v38  ;;  %v392_v44 = vor.u32 %v478_v42, %v389_v43  ;;  %v507_v49 = vld [vmem:[%s662_s2] ss:$0 sm:$0xff] }
   0xe   :  { %245 = vmatpush.bf16.msra.mxu0 %v485_v11  ;;  %502 = vmatpush.bf16.msra.mxu3 %v485_v11 }
   0xf   :  { %269 = vmatpush.bf16.msra.mxu1 %v493_v12 }
  0x12   :  { %246 = vmatpush.bf16.msra.mxu0 %v484_v13  ;;  %503 = vmatpush.bf16.msra.mxu3 %v484_v13 }
  0x13   :  { %270 = vmatpush.bf16.msra.mxu1 %v492_v14 }
  0x16   :  { %247 = vmatpush.bf16.msra.mxu0 %v483_v15  ;;  %504 = vmatpush.bf16.msra.mxu3 %v483_v15 }
  0x17   :  { %271 = vmatpush.bf16.msra.mxu1 %v491_v16 }
  0x1a   :  { %248 = vmatpush.bf16.msra.mxu0 %v482_v19  ;;  %505 = vmatpush.bf16.msra.mxu3 %v482_v19 }
  0x1b   :  { %272 = vmatpush.bf16.msra.mxu1 %v490_v20  ;;  %470 = vmatmul.msk.bf16.gmra.mxu2 %vm232_vm0, %v384_v21 }
  0x1e   :  { %249 = vmatpush.bf16.msra.mxu0 %v481_v22  ;;  %506 = vmatpush.bf16.msra.mxu3 %v481_v22 }
  0x1f   :  { %273 = vmatpush.bf16.msra.mxu1 %v489_v23 }
  0x21   :  { %250 = vmatmul.bf16.vlgmr.msra.gmra.mxu0 %v364_v30  ;;  %255 = vmatmul.bf16.vlgmr.msra.gmra.mxu3 %v376_v32 }
  0x22   :  { %274 = vmatmul.bf16.vlgmr.msra.gmra.mxu1 %v368_v31 }
  0x2b   :  { %471 = vmatmul.msk.bf16.gmra.mxu2 %vm232_vm0, %v396_v35 }
  0x31   :  { %260 = vmatmul.bf16.gmra.mxu3 %v388_v41 }
  0x32   :  { %279 = vmatmul.bf16.gmra.mxu1 %v380_v40 }
  0x42   :  { %284 = vmatmul.bf16.gmra.mxu1 %v392_v44 }
  0x8e   :  { %v299_v45 = vpop.f32.mrf.mxu2 }
  0x96   :  { %v301_v50 = vpop.f32.mrf.mxu2 }
  0x9e   :  { %v251_v46 = vpop.f32.mrf.mxu0  ;;  %v304_v59 = vpop.f32.mrf.mxu2 }
  0x9f   :  { %v275_v47 = vpop.f32.mrf.mxu1 }
  0xa0   :  { %v276_v48 = vadd.f32 %v275_v47, %v251_v46 }
  0xa2   :  { %v300_v51 = vadd.f32 %v299_v45, %v276_v48 }
  0xa4   :  { %v339_v52 = vadd.f32 %v507_v49, %v300_v51  ;;  %v256_v57 = vpop.f32.mrf.mxu3 }
  0xa6   :  { %v345_v53 = vmax.f32 %v339_v52, 0.0  ;;  %v253_v54 = vpop.f32.mrf.mxu0  ;;  %v306_v3 = vpop.f32.mrf.mxu2 }
  0xa7   :  { %v277_v55 = vpop.f32.mrf.mxu1 }
  0xa8   :  { %351 = vst [vmem:[%s663_s3] sm:$0xff] %v345_v53  ;;  %v278_v56 = vadd.f32 %v277_v55, %v253_v54 }
  0xaa   :  { %v302_v58 = vadd.f32 %v301_v50, %v278_v56 }
  0xac   :  { %v340_v60 = vadd.f32 %v507_v49, %v302_v58  ;;  %v258_v1 = vpop.f32.mrf.mxu3 }
  0xae   :  { %v346_v61 = vmax.f32 %v340_v60, 0.0  ;;  %v309_v11 = vpop.f32.mrf.mxu2 }
  0xaf   :  { %v280_v62 = vpop.f32.mrf.mxu1 }
  0xb0   :  { %352 = vst [vmem:[%s663_s3 + $0x8] sm:$0xff] %v346_v61  ;;  %v281_v63 = vadd.f32 %v280_v62, %v256_v57 }
  0xb2   :  { %v305_v0 = vadd.f32 %v304_v59, %v281_v63 }
  0xb4   :  { %v341_v2 = vadd.f32 %v507_v49, %v305_v0  ;;  %v261_v9 = vpop.f32.mrf.mxu3 }
  0xb6   :  { %v347_v4 = vmax.f32 %v341_v2, 0.0  ;;  %v311_v20 = vpop.f32.mrf.mxu2 }
  0xb7   :  { %v282_v5 = vpop.f32.mrf.mxu1 }
  0xb8   :  { %353 = vst [vmem:[%s663_s3 + $0x10] sm:$0xff] %v347_v4  ;;  %v283_v6 = vadd.f32 %v282_v5, %v258_v1 }
  0xba   :  { %v307_v7 = vadd.f32 %v306_v3, %v283_v6 }
  0xbc   :  { %v342_v8 = vadd.f32 %v507_v49, %v307_v7  ;;  %v263_v17 = vpop.f32.mrf.mxu3 }
  0xbe   :  { %v348_v10 = vmax.f32 %v342_v8, 0.0 }
  0xbf   :  { %v285_v12 = vpop.f32.mrf.mxu1 }
  0xc0   :  { %354 = vst [vmem:[%s663_s3 + $0x18] sm:$0xff] %v348_v10  ;;  %v286_v13 = vadd.f32 %v285_v12, %v261_v9 }
  0xc2   :  { %v310_v14 = vadd.f32 %v309_v11, %v286_v13 }
  0xc4   :  { %v343_v15 = vadd.f32 %v507_v49, %v310_v14 }
  0xc6   :  { %v349_v16 = vmax.f32 %v343_v15, 0.0 }
  0xc7   :  { %v287_v18 = vpop.f32.mrf.mxu1 }
  0xc8   :  { %355 = vst [vmem:[%s663_s3 + $0x20] sm:$0xff] %v349_v16  ;;  %v288_v19 = vadd.f32 %v287_v18, %v263_v17 }
  0xca   :  { %v312_v21 = vadd.f32 %v311_v20, %v288_v19 }
  0xcc   :  { %v344_v22 = vadd.f32 %v507_v49, %v312_v21 }
  0xce   :  { %v350_v23 = vmax.f32 %v344_v22, 0.0 }
  0xd0   :  { %356 = vst [vmem:[%s663_s3 + $0x28] sm:$0xff] %v350_v23 }

// kernel: _lambda_.42
= control target key start
LH: loop header
LB: loop body
LE: loop exit
PB: predicated region body
PF: predicated region fallthrough
CT: control target
= control target key end

     0   :  { %vm232_vm0 = vcmask 261120   ;;  %s660_s1 = inlined_call_operand.vmem [shape: bf16[288,128], index: 1, kind: input, shape index: {}]   ;;  %s661_s0 = inlined_call_operand.vmem [shape: bf16[48,288], index: 0, kind: input, shape index: {}]   ;;  %s662_s2 = inlined_call_operand.vmem [shape: f32[1,128], index: 2, kind: input, shape index: {}]   ;;  %s663_s3 = inlined_call_operand.vmem [shape: f32[48,128], index: 3, kind: output, shape index: {}]  }
   0x1   :  { %v488_v0 = vld [vmem:[%s660_s1 + $0x38] sm:$0xff]  ;;  %v487_v2 = vld [vmem:[%s660_s1 + $0x30] sm:$0xff]  ;;  %v498_v4 = vld [vmem:[%s660_s1 + $0x88] sm:$0xff] }
   0x2   :  { %v496_v1 = vld [vmem:[%s660_s1 + $0x78] sm:$0xff]  ;;  %242 = vmatpush.bf16.msra.mxu0 %v488_v0  ;;  %v495_v3 = vld [vmem:[%s660_s1 + $0x70] sm:$0xff]  ;;  %499 = vmatpush.bf16.msra.mxu3 %v488_v0  ;;  %v497_v5 = vld [vmem:[%s660_s1 + $0x80] sm:$0xff] }
   0x3   :  { %266 = vmatpush.bf16.msra.mxu1 %v496_v1  ;;  %296 = vmatpush.bf16.msra.mxu2 %v498_v4  ;;  %v371_v6 = vld [vmem:[%s661_s0 + $0x8] sm:$0xf]  ;;  %v474_v7 = vld [vmem:[%s661_s0 + $0x10] sm:$0xf0]  ;;  %v485_v11 = vld [vmem:[%s660_s1 + $0x20] sm:$0xff] }
   0x4   :  { %v486_v8 = vld [vmem:[%s660_s1 + $0x28] sm:$0xff]  ;;  %v372_v10 = vor.u32 %v474_v7, %v371_v6  ;;  %v493_v12 = vld [vmem:[%s660_s1 + $0x60] sm:$0xff]  ;;  %v484_v13 = vld [vmem:[%s660_s1 + $0x18] sm:$0xff] }
   0x5   :  { %v494_v9 = vld [vmem:[%s660_s1 + $0x68] sm:$0xff]  ;;  %v492_v14 = vld [vmem:[%s660_s1 + $0x58] sm:$0xff]  ;;  %v483_v15 = vld [vmem:[%s660_s1 + $0x10] sm:$0xff] }
   0x6   :  { %243 = vmatpush.bf16.msra.mxu0 %v487_v2  ;;  %500 = vmatpush.bf16.msra.mxu3 %v487_v2  ;;  %v491_v16 = vld [vmem:[%s660_s1 + $0x50] sm:$0xff]  ;;  %v383_v17 = vld [vmem:[%s661_s0 + $0x20] sm:$0xf]  ;;  %v477_v18 = vld [vmem:[%s661_s0 + $0x28] sm:$0xf0] }
   0x7   :  { %267 = vmatpush.bf16.msra.mxu1 %v495_v3  ;;  %297 = vmatpush.bf16.msra.mxu2 %v497_v5  ;;  %v482_v19 = vld [vmem:[%s660_s1 + $0x8] sm:$0xff]  ;;  %v384_v21 = vor.u32 %v477_v18, %v383_v17  ;;  %v481_v22 = vld [vmem:[%s660_s1] sm:$0xff]  ;;  %v365_v27 = vld [vmem:[%s661_s0 + $0xc] sm:$0xf0] }
   0x8   :  { %v490_v20 = vld [vmem:[%s660_s1 + $0x48] sm:$0xff]  ;;  %v489_v23 = vld [vmem:[%s660_s1 + $0x40] sm:$0xff]  ;;  %v375_v28 = vld [vmem:[%s661_s0 + $0x18] sm:$0xf] }
   0x9   :  { %v363_v24 = vld [vmem:[%s661_s0] sm:$0xf]  ;;  %v473_v25 = vld [vmem:[%s661_s0 + $0x8] sm:$0xf0]  ;;  %v472_v26 = vld [vmem:[%s661_s0 + $0x4] sm:$0xf] }
   0xa   :  { %244 = vmatpush.bf16.msra.mxu0 %v486_v8  ;;  %501 = vmatpush.bf16.msra.mxu3 %v486_v8  ;;  %v476_v29 = vld [vmem:[%s661_s0 + $0x20] sm:$0xf0]  ;;  %v364_v30 = vor.u32 %v473_v25, %v363_v24  ;;  %v368_v31 = vor.u32 %v472_v26, %v365_v27  ;;  %v395_v33 = vld [vmem:[%s661_s0 + $0x38] sm:$0xf]  ;;  %v475_v36 = vld [vmem:[%s661_s0 + $0x1c] sm:$0xf] }
   0xb   :  { %268 = vmatpush.bf16.msra.mxu1 %v494_v9  ;;  %469 = vmatmul.msk.bf16.vlgmr.msra.gmra.mxu2 %vm232_vm0, %v372_v10  ;;  %v376_v32 = vor.u32 %v476_v29, %v375_v28  ;;  %v480_v34 = vld [vmem:[%s661_s0 + $0x40] sm:$0xf0]  ;;  %v377_v37 = vld [vmem:[%s661_s0 + $0x24] sm:$0xf0]  ;;  %v387_v38 = vld [vmem:[%s661_s0 + $0x30] sm:$0xf] }
   0xc   :  { %v396_v35 = vor.u32 %v480_v34, %v395_v33  ;;  %v479_v39 = vld [vmem:[%s661_s0 + $0x38] sm:$0xf0]  ;;  %v380_v40 = vor.u32 %v475_v36, %v377_v37  ;;  %v478_v42 = vld [vmem:[%s661_s0 + $0x34] sm:$0xf]  ;;  %v389_v43 = vld [vmem:[%s661_s0 + $0x3c] sm:$0xf0] }
   0xd   :  { %v388_v41 = vor.u32 %v479_v39, %v387_v38  ;;  %v392_v44 = vor.u32 %v478_v42, %v389_v43  ;;  %v507_v49 = vld [vmem:[%s662_s2] ss:$0 sm:$0xff] }
   0xe   :  { %245 = vmatpush.bf16.msra.mxu0 %v485_v11  ;;  %502 = vmatpush.bf16.msra.mxu3 %v485_v11 }
   0xf   :  { %269 = vmatpush.bf16.msra.mxu1 %v493_v12 }
  0x12   :  { %246 = vmatpush.bf16.msra.mxu0 %v484_v13  ;;  %503 = vmatpush.bf16.msra.mxu3 %v484_v13 }
  0x13   :  { %270 = vmatpush.bf16.msra.mxu1 %v492_v14 }
  0x16   :  { %247 = vmatpush.bf16.msra.mxu0 %v483_v15  ;;  %504 = vmatpush.bf16.msra.mxu3 %v483_v15 }
  0x17   :  { %271 = vmatpush.bf16.msra.mxu1 %v491_v16 }
  0x1a   :  { %248 = vmatpush.bf16.msra.mxu0 %v482_v19  ;;  %505 = vmatpush.bf16.msra.mxu3 %v482_v19 }
  0x1b   :  { %272 = vmatpush.bf16.msra.mxu1 %v490_v20  ;;  %470 = vmatmul.msk.bf16.gmra.mxu2 %vm232_vm0, %v384_v21 }
  0x1e   :  { %249 = vmatpush.bf16.msra.mxu0 %v481_v22  ;;  %506 = vmatpush.bf16.msra.mxu3 %v481_v22 }
  0x1f   :  { %273 = vmatpush.bf16.msra.mxu1 %v489_v23 }
  0x21   :  { %250 = vmatmul.bf16.vlgmr.msra.gmra.mxu0 %v364_v30  ;;  %255 = vmatmul.bf16.vlgmr.msra.gmra.mxu3 %v376_v32 }
  0x22   :  { %274 = vmatmul.bf16.vlgmr.msra.gmra.mxu1 %v368_v31 }
  0x2b   :  { %471 = vmatmul.msk.bf16.gmra.mxu2 %vm232_vm0, %v396_v35 }
  0x31   :  { %260 = vmatmul.bf16.gmra.mxu3 %v388_v41 }
  0x32   :  { %279 = vmatmul.bf16.gmra.mxu1 %v380_v40 }
  0x42   :  { %284 = vmatmul.bf16.gmra.mxu1 %v392_v44 }
  0x8e   :  { %v299_v45 = vpop.f32.mrf.mxu2 }
  0x96   :  { %v301_v50 = vpop.f32.mrf.mxu2 }
  0x9e   :  { %v251_v46 = vpop.f32.mrf.mxu0  ;;  %v304_v59 = vpop.f32.mrf.mxu2 }
  0x9f   :  { %v275_v47 = vpop.f32.mrf.mxu1 }
  0xa0   :  { %v276_v48 = vadd.f32 %v275_v47, %v251_v46 }
  0xa2   :  { %v300_v51 = vadd.f32 %v299_v45, %v276_v48 }
  0xa4   :  { %v339_v52 = vadd.f32 %v507_v49, %v300_v51  ;;  %v256_v57 = vpop.f32.mrf.mxu3 }
  0xa6   :  { %v345_v53 = vmax.f32 %v339_v52, 0.0  ;;  %v253_v54 = vpop.f32.mrf.mxu0  ;;  %v306_v3 = vpop.f32.mrf.mxu2 }
  0xa7   :  { %v277_v55 = vpop.f32.mrf.mxu1 }
  0xa8   :  { %351 = vst [vmem:[%s663_s3] sm:$0xff] %v345_v53  ;;  %v278_v56 = vadd.f32 %v277_v55, %v253_v54 }
  0xaa   :  { %v302_v58 = vadd.f32 %v301_v50, %v278_v56 }
  0xac   :  { %v340_v60 = vadd.f32 %v507_v49, %v302_v58  ;;  %v258_v1 = vpop.f32.mrf.mxu3 }
  0xae   :  { %v346_v61 = vmax.f32 %v340_v60, 0.0  ;;  %v309_v11 = vpop.f32.mrf.mxu2 }
  0xaf   :  { %v280_v62 = vpop.f32.mrf.mxu1 }
  0xb0   :  { %352 = vst [vmem:[%s663_s3 + $0x8] sm:$0xff] %v346_v61  ;;  %v281_v63 = vadd.f32 %v280_v62, %v256_v57 }
  0xb2   :  { %v305_v0 = vadd.f32 %v304_v59, %v281_v63 }
  0xb4   :  { %v341_v2 = vadd.f32 %v507_v49, %v305_v0  ;;  %v261_v9 = vpop.f32.mrf.mxu3 }
  0xb6   :  { %v347_v4 = vmax.f32 %v341_v2, 0.0  ;;  %v311_v20 = vpop.f32.mrf.mxu2 }
  0xb7   :  { %v282_v5 = vpop.f32.mrf.mxu1 }
  0xb8   :  { %353 = vst [vmem:[%s663_s3 + $0x10] sm:$0xff] %v347_v4  ;;  %v283_v6 = vadd.f32 %v282_v5, %v258_v1 }
  0xba   :  { %v307_v7 = vadd.f32 %v306_v3, %v283_v6 }
  0xbc   :  { %v342_v8 = vadd.f32 %v507_v49, %v307_v7  ;;  %v263_v17 = vpop.f32.mrf.mxu3 }
  0xbe   :  { %v348_v10 = vmax.f32 %v342_v8, 0.0 }
  0xbf   :  { %v285_v12 = vpop.f32.mrf.mxu1 }
  0xc0   :  { %354 = vst [vmem:[%s663_s3 + $0x18] sm:$0xff] %v348_v10  ;;  %v286_v13 = vadd.f32 %v285_v12, %v261_v9 }
  0xc2   :  { %v310_v14 = vadd.f32 %v309_v11, %v286_v13 }
  0xc4   :  { %v343_v15 = vadd.f32 %v507_v49, %v310_v14 }
  0xc6   :  { %v349_v16 = vmax.f32 %v343_v15, 0.0 }
  0xc7   :  { %v287_v18 = vpop.f32.mrf.mxu1 }
  0xc8   :  { %355 = vst [vmem:[%s663_s3 + $0x20] sm:$0xff] %v349_v16  ;;  %v288_v19 = vadd.f32 %v287_v18, %v263_v17 }
  0xca   :  { %v312_v21 = vadd.f32 %v311_v20, %v288_v19 }
  0xcc   :  { %v344_v22 = vadd.f32 %v507_v49, %v312_v21 }
  0xce   :  { %v350_v23 = vmax.f32 %v344_v22, 0.0 }
  0xd0   :  { %356 = vst [vmem:[%s663_s3 + $0x28] sm:$0xff] %v350_v23 }

// kernel: _lambda_.43
= control target key start
LH: loop header
LB: loop body
LE: loop exit
PB: predicated region body
PF: predicated region fallthrough
CT: control target
= control target key end

     0   :  { %vm68_vm0 = vcmask 261120   ;;  %s232_s1 = inlined_call_operand.vmem [shape: bf16[32,128], index: 1, kind: input, shape index: {}]   ;;  %s233_s2 = inlined_call_operand.vmem [shape: f32[1,128], index: 2, kind: input, shape index: {}]   ;;  %s234_s0 = inlined_call_operand.vmem [shape: bf16[48,32], index: 0, kind: input, shape index: {}]   ;;  %s235_s3 = inlined_call_operand.vmem [shape: f32[48,128], index: 3, kind: output, shape index: {}]  }
   0x1   :  { %v170_v0 = vld [vmem:[%s232_s1 + $0x8] sm:$0xff]  ;;  %v169_v1 = vld [vmem:[%s232_s1] sm:$0xff]  ;;  %v168_v4 = vld [vmem:[%s234_s0 + $0x10] sm:$0xff] }
   0x2   :  { %84 = vmatpush.bf16.msra.mxu0 %v170_v0  ;;  %171 = vmatpush.bf16.msra.mxu1 %v170_v0  ;;  %v166_v2 = vld [vmem:[%s234_s0] sm:$0xff]  ;;  %v167_v3 = vld [vmem:[%s234_s0 + $0x8] sm:$0xff] }
   0x3   :  { %172 = vmatpush.bf16.msra.mxu2 %v170_v0  ;;  %v175_v5 = vld [vmem:[%s233_s2] ss:$0 sm:$0xff] }
   0x6   :  { %85 = vmatpush.bf16.msra.mxu0 %v169_v1  ;;  %173 = vmatpush.bf16.msra.mxu1 %v169_v1 }
   0x7   :  { %174 = vmatpush.bf16.msra.mxu2 %v169_v1 }
   0x9   :  { %163 = vmatmul.msk.bf16.vlgmr.msra.gmra.mxu0 %vm68_vm0, %v166_v2  ;;  %164 = vmatmul.msk.bf16.vlgmr.msra.gmra.mxu1 %vm68_vm0, %v167_v3 }
   0xa   :  { %165 = vmatmul.msk.bf16.vlgmr.msra.gmra.mxu2 %vm68_vm0, %v168_v4 }
  0x86   :  { %v87_v6 = vpop.f32.mrf.mxu0  ;;  %v92_v7 = vpop.f32.mrf.mxu1 }
  0x87   :  { %v127_v8 = vadd.f32 %v175_v5, %v87_v6  ;;  %v129_v9 = vadd.f32 %v175_v5, %v92_v7 }
  0x89   :  { %133 = vst [vmem:[%s235_s3] sm:$0xff] %v127_v8 }
  0x8a   :  { %135 = vst [vmem:[%s235_s3 + $0x10] sm:$0xff] %v129_v9 }
  0x8d   :  { %v97_v10 = vpop.f32.mrf.mxu2 }
  0x8e   :  { %v131_v11 = vadd.f32 %v175_v5, %v97_v10  ;;  %v89_v12 = vpop.f32.mrf.mxu0  ;;  %v94_v13 = vpop.f32.mrf.mxu1 }
  0x8f   :  { %v128_v14 = vadd.f32 %v175_v5, %v89_v12  ;;  %v130_v15 = vadd.f32 %v175_v5, %v94_v13 }
  0x90   :  { %137 = vst [vmem:[%s235_s3 + $0x20] sm:$0xff] %v131_v11 }
  0x91   :  { %134 = vst [vmem:[%s235_s3 + $0x8] sm:$0xff] %v128_v14 }
  0x92   :  { %136 = vst [vmem:[%s235_s3 + $0x18] sm:$0xff] %v130_v15 }
  0x95   :  { %v99_v16 = vpop.f32.mrf.mxu2 }
  0x96   :  { %v132_v17 = vadd.f32 %v175_v5, %v99_v16 }
  0x98   :  { %138 = vst [vmem:[%s235_s3 + $0x28] sm:$0xff] %v132_v17 }

// kernel: _lambda_.44
= control target key start
LH: loop header
LB: loop body
LE: loop exit
PB: predicated region body
PF: predicated region fallthrough
CT: control target
= control target key end

     0   :  { %s1327_s15 = smov 0   ;;  %s1329_s16 = smov 0   ;;  %s1493_s0 = inlined_call_operand.vmem [shape: bf16[48,1024], index: 0, kind: input, shape index: {}]   ;;  %s1494_s1 = inlined_call_operand.vmem [shape: bf16[1024,128], index: 1, kind: input, shape index: {}]   ;;  %s1495_s2 = inlined_call_operand.vmem [shape: f32[1,128], index: 2, kind: input, shape index: {}]   ;;  %s1496_s3 = inlined_call_operand.vmem [shape: f32[48,128], index: 3, kind: input, shape index: {}]   ;;  %s1497_s4 = inlined_call_operand.vmem [shape: f32[48,128], index: 4, kind: output, shape index: {}]  }
   0x1   :  { %s1331_s17 = smov 0   ;;  %s1333_s18 = smov 0  }
   0x2   :  { %s1335_s19 = smov 0  }
   0x3 LB: > { %s26_s20 = sadd.s32 1, %s1295_s18  ;;  %p49_p1 = scmp.ne.s32.totalorder %s1287_s16, %s1283_s15  ;;  %s1299_s19 = sphi %s1335_s19, %s14_s19   ;;  %s1295_s18 = sphi %s1333_s18, %s1501_s18   ;;  %s1291_s17 = sphi %s1331_s17, %s1500_s17   ;;  %s1287_s16 = sphi %s1329_s16, %s1499_s16   ;;  %s1283_s15 = sphi %s1327_s15, %s1498_s15  }
   0x4   : > { %p27_p0 = scmp.ge.s32.totalorder %s26_s20, 2  ;;  %p50_p2 = scmp.eq.s32.totalorder %s1299_s19, 0 }
   0x5   : > { %s42_s22 = sadd.s32 1, %s1287_s16  ;;  %p984_p5 = scmp.ge.s32.totalorder %s1299_s19, 2 }
   0x6   : > { %s1503_s20 = smov (%p27_p0, %s26_s20), 0  ;;  %p51_p3 = por %p50_p2, %p49_p1 }
   0x7   : > { %s38_s21 = ssub.s32 %s1295_s18, %s1503_s20  ;;  %203 = sbr.rel (%p984_p5) target bundleno = 28 (0x1c), region = 24 }
   0x8   : > { %p40_p4 = scmp.eq.s32.totalorder %s38_s21, 0 }
   0xa   : > { %s1362_s23 = scalar_select %p40_p4, %s1287_s16, %s42_s22  }
   0xc   : > { %206 = sbr.rel (!%p51_p3) target bundleno = 28 (0x1c), region = 28  ;;  %s208_s24 = sand.u32 (%p51_p3), 1, %s1287_s16  }
   0xd   : > { %s1172_s25 = sshll.u32 (%p51_p3), %s1295_s18, 4  ;;  %s1217_s26 = smul.u32 (%p51_p3), 96, %s208_s24 }
   0xe   : > { %s216_s29 = scalar_lea.vmem (%p51_p3), %s1493_s0, %s1172_s25 }
   0xf   : > { %v229_v0 = vld [vmem:[%s216_s29] sm:$0xff] (%p51_p3)  ;;  %v231_v1 = vld [vmem:[%s216_s29 + $0x8] sm:$0xff] (%p51_p3)  ;;  %s210_s30 = scalar_lea.vmem (%p51_p3), [#allocation3], %s1217_s26 }
  0x10   : > { %v233_v2 = vld [vmem:[%s216_s29 + $0x20] sm:$0xff] (%p51_p3)  ;;  %230 = vst [vmem:[%s210_s30] sm:$0xff] (%p51_p3), %v229_v0  ;;  %v235_v3 = vld [vmem:[%s216_s29 + $0x28] sm:$0xff] (%p51_p3) }
  0x11   : > { %232 = vst [vmem:[%s210_s30 + $0x8] sm:$0xff] %v231_v1  ;;  %v237_v4 = vld [vmem:[%s216_s29 + $0x40] sm:$0xff]  ;;  %v239_v5 = vld [vmem:[%s216_s29 + $0x48] sm:$0xff] }
  0x12   : > { %234 = vst [vmem:[%s210_s30 + $0x10] sm:$0xff] %v233_v2  ;;  %v241_v6 = vld [vmem:[%s216_s29 + $0x60] sm:$0xff]  ;;  %v243_v7 = vld [vmem:[%s216_s29 + $0x68] sm:$0xff] }
  0x13   : > { %236 = vst [vmem:[%s210_s30 + $0x18] sm:$0xff] %v235_v3  ;;  %v245_v8 = vld [vmem:[%s216_s29 + $0x80] sm:$0xff]  ;;  %v247_v9 = vld [vmem:[%s216_s29 + $0x88] sm:$0xff] }
  0x14   : > { %238 = vst [vmem:[%s210_s30 + $0x20] sm:$0xff] %v237_v4  ;;  %v249_v10 = vld [vmem:[%s216_s29 + $0xa0] sm:$0xff]  ;;  %v251_v11 = vld [vmem:[%s216_s29 + $0xa8] sm:$0xff] }
  0x15   : > { %240 = vst [vmem:[%s210_s30 + $0x28] sm:$0xff] %v239_v5 }
  0x16   : > { %242 = vst [vmem:[%s210_s30 + $0x30] sm:$0xff] %v241_v6 }
  0x17   : > { %244 = vst [vmem:[%s210_s30 + $0x38] sm:$0xff] %v243_v7 }
  0x18   : > { %246 = vst [vmem:[%s210_s30 + $0x40] sm:$0xff] %v245_v8 }
  0x19   : > { %248 = vst [vmem:[%s210_s30 + $0x48] sm:$0xff] %v247_v9 }
  0x1a   : > { %250 = vst [vmem:[%s210_s30 + $0x50] sm:$0xff] %v249_v10 }
  0x1b   : > { %252 = vst [vmem:[%s210_s30 + $0x58] sm:$0xff] %v251_v11 }
  0x1c PF: > { %p987_p6 = scmp.ge.s32.totalorder %s1299_s19, 1  ;;  %p269_p7 = scmp.lt.s32.totalorder %s1299_s19, 3 }
  0x1e   : > { %p270_p8 = pnand %p987_p6, %p269_p7 }
  0x1f   : > { %s276_s5 = sand.u32 (!%p270_p8), 1, %s1283_s15   ;;  %s988_s6 = sshll.u32 (!%p270_p8), %s1291_s17, 6 }
  0x20   : > { %273 = sbr.rel (%p270_p8) target bundleno = 276 (0x114), region = 55  ;;  %p326_p9 = scmp.lt.s32.totalorder (!%p270_p8), %s988_s6, 127 }
  0x21   : > { %s1218_s7 = smul.u32 (!%p270_p8), 96, %s276_s5  ;;  %p990_p10 = scmp.ne.s32.totalorder (!%p270_p8), %s1291_s17, 0 }
  0x23   : > { %s1379_s12 = scalar_lea.vmem (!%p270_p8), [#allocation3], %s1218_s7 }
  0x25   : > { %s1505_s6 = smov (!%p326_p9, %s988_s6), 127  ;;  %358 = sbr.rel (%p990_p10) target bundleno = 49 (0x31), region = 63 }
  0x26   : > { %s989_s8 = sshll.u32 %s1505_s6, 2 }
  0x27   : > { %s1377_s11 = scalar_lea.vmem %s1494_s1, %s989_s8 }
  0x2a   : > { %v1301_v12 = vmov 0.0  }
  0x2b   : > { %359 = vst [vmem:[#allocation2 + $0x28] sm:$0xff] %v1301_v12 }
  0x2c   : > { %360 = vst [vmem:[#allocation2 + $0x10] sm:$0xff] %v1301_v12 }
  0x2d   : > { %361 = vst [vmem:[#allocation2 + $0x8] sm:$0xff] %v1301_v12 }
  0x2e   : > { %362 = vst [vmem:[#allocation2] sm:$0xff] %v1301_v12 }
  0x2f   : > { %363 = vst [vmem:[#allocation2 + $0x18] sm:$0xff] %v1301_v12 }
  0x30   : > { %364 = vst [vmem:[#allocation2 + $0x20] sm:$0xff] %v1301_v12 }
  0x31 PF: > { %v1192_v13 = vld [vmem:[%s1377_s11 + $0x38] sm:$0xff]  ;;  %v1191_v17 = vld [vmem:[%s1377_s11 + $0x30] sm:$0xff]  ;;  %v1190_v21 = vld [vmem:[%s1377_s11 + $0x28] sm:$0xff]  ;;  %p1167_p11 = scmp.ne.s32.totalorder %s1291_s17, 1 }
  0x32   : > { %v1200_v14 = vld [vmem:[%s1377_s11 + $0x78] sm:$0xff]  ;;  %699 = vmatpush.bf16.msra.mxu0 %v1192_v13  ;;  %v1199_v18 = vld [vmem:[%s1377_s11 + $0x70] sm:$0xff]  ;;  %v1198_v22 = vld [vmem:[%s1377_s11 + $0x68] sm:$0xff] }
  0x33   : > { %v1208_v15 = vld [vmem:[%s1377_s11 + $0xb8] sm:$0xff]  ;;  %723 = vmatpush.bf16.msra.mxu1 %v1200_v14  ;;  %v1207_v19 = vld [vmem:[%s1377_s11 + $0xb0] sm:$0xff]  ;;  %v1206_v23 = vld [vmem:[%s1377_s11 + $0xa8] sm:$0xff] }
  0x34   : > { %v1216_v16 = vld [vmem:[%s1377_s11 + $0xf8] sm:$0xff]  ;;  %747 = vmatpush.bf16.msra.mxu2 %v1208_v15  ;;  %v1215_v20 = vld [vmem:[%s1377_s11 + $0xf0] sm:$0xff]  ;;  %v1214_v24 = vld [vmem:[%s1377_s11 + $0xe8] sm:$0xff] }
  0x35   : > { %771 = vmatpush.bf16.msra.mxu3 %v1216_v16  ;;  %v1189_v25 = vld [vmem:[%s1377_s11 + $0x20] sm:$0xff]  ;;  %v1188_v29 = vld [vmem:[%s1377_s11 + $0x18] sm:$0xff]  ;;  %v1187_v33 = vld [vmem:[%s1377_s11 + $0x10] sm:$0xff] }
  0x36   : > { %700 = vmatpush.bf16.msra.mxu0 %v1191_v17  ;;  %v1197_v26 = vld [vmem:[%s1377_s11 + $0x60] sm:$0xff]  ;;  %v1196_v30 = vld [vmem:[%s1377_s11 + $0x58] sm:$0xff]  ;;  %v1195_v34 = vld [vmem:[%s1377_s11 + $0x50] sm:$0xff] }
  0x37   : > { %724 = vmatpush.bf16.msra.mxu1 %v1199_v18  ;;  %v1205_v27 = vld [vmem:[%s1377_s11 + $0xa0] sm:$0xff]  ;;  %v1204_v31 = vld [vmem:[%s1377_s11 + $0x98] sm:$0xff]  ;;  %v1203_v35 = vld [vmem:[%s1377_s11 + $0x90] sm:$0xff] }
  0x38   : > { %748 = vmatpush.bf16.msra.mxu2 %v1207_v19  ;;  %v1213_v28 = vld [vmem:[%s1377_s11 + $0xe0] sm:$0xff]  ;;  %v1212_v32 = vld [vmem:[%s1377_s11 + $0xd8] sm:$0xff]  ;;  %v1211_v36 = vld [vmem:[%s1377_s11 + $0xd0] sm:$0xff] }
  0x39   : > { %772 = vmatpush.bf16.msra.mxu3 %v1215_v20  ;;  %v1186_v37 = vld [vmem:[%s1377_s11 + $0x8] sm:$0xff]  ;;  %v1185_v41 = vld [vmem:[%s1377_s11] sm:$0xff]  ;;  %v993_v45 = vld [vmem:[%s1379_s12] sm:$0xf] }
  0x3a   : > { %701 = vmatpush.bf16.msra.mxu0 %v1190_v21  ;;  %v1194_v38 = vld [vmem:[%s1377_s11 + $0x48] sm:$0xff]  ;;  %v1193_v42 = vld [vmem:[%s1377_s11 + $0x40] sm:$0xff]  ;;  %v1173_v47 = vld [vmem:[%s1379_s12 + $0x4] sm:$0xf] }
  0x3b   : > { %725 = vmatpush.bf16.msra.mxu1 %v1198_v22  ;;  %v1202_v39 = vld [vmem:[%s1377_s11 + $0x88] sm:$0xff]  ;;  %v1201_v43 = vld [vmem:[%s1377_s11 + $0x80] sm:$0xff]  ;;  %v1001_v49 = vld [vmem:[%s1379_s12 + $0x8] sm:$0xf] }
  0x3c   : > { %749 = vmatpush.bf16.msra.mxu2 %v1206_v23  ;;  %v1210_v40 = vld [vmem:[%s1377_s11 + $0xc8] sm:$0xff]  ;;  %v1209_v44 = vld [vmem:[%s1377_s11 + $0xc0] sm:$0xff]  ;;  %v1174_v51 = vld [vmem:[%s1379_s12 + $0xc] sm:$0xf] }
  0x3d   : > { %773 = vmatpush.bf16.msra.mxu3 %v1214_v24  ;;  %v1175_v46 = vld [vmem:[%s1379_s12 + $0xc] sm:$0xf0]  ;;  %v995_v48 = vld [vmem:[%s1379_s12 + $0x10] sm:$0xf0]  ;;  %v1176_v50 = vld [vmem:[%s1379_s12 + $0x14] sm:$0xf0] }
  0x3e   : > { %702 = vmatpush.bf16.msra.mxu0 %v1189_v25  ;;  %v1003_v52 = vld [vmem:[%s1379_s12 + $0x18] sm:$0xf0]  ;;  %v994_v53 = vor.u32 %v1175_v46, %v993_v45  ;;  %v998_v54 = vor.u32 %v1173_v47, %v995_v48  ;;  %v1002_v55 = vor.u32 %v1176_v50, %v1001_v49  ;;  %v1009_v57 = vld [vmem:[%s1379_s12 + $0x20] sm:$0xf]  ;;  %v1179_v58 = vld [vmem:[%s1379_s12 + $0x2c] sm:$0xf0] }
  0x3f   : > { %726 = vmatpush.bf16.msra.mxu1 %v1197_v26  ;;  %v1006_v56 = vor.u32 %v1174_v51, %v1003_v52  ;;  %v1177_v59 = vld [vmem:[%s1379_s12 + $0x24] sm:$0xf]  ;;  %v1011_v60 = vld [vmem:[%s1379_s12 + $0x30] sm:$0xf0]  ;;  %v1017_v61 = vld [vmem:[%s1379_s12 + $0x28] sm:$0xf]  ;;  %v1010_v1 = vor.u32 %v1179_v58, %v1009_v57 }
  0x40   : > { %750 = vmatpush.bf16.msra.mxu2 %v1205_v27  ;;  %v1180_v62 = vld [vmem:[%s1379_s12 + $0x34] sm:$0xf0]  ;;  %v1178_v63 = vld [vmem:[%s1379_s12 + $0x2c] sm:$0xf]  ;;  %v1019_v0 = vld [vmem:[%s1379_s12 + $0x38] sm:$0xf0]  ;;  %v1014_v2 = vor.u32 %v1177_v59, %v1011_v60 }
  0x41   : > { %774 = vmatpush.bf16.msra.mxu3 %v1213_v28  ;;  %v1018_v3 = vor.u32 %v1180_v62, %v1017_v61  ;;  %v1022_v4 = vor.u32 %v1178_v63, %v1019_v0  ;;  %v1025_v5 = vld [vmem:[%s1379_s12 + $0x40] sm:$0xf]  ;;  %v1183_v6 = vld [vmem:[%s1379_s12 + $0x4c] sm:$0xf0]  ;;  %v1181_v7 = vld [vmem:[%s1379_s12 + $0x44] sm:$0xf] }
  0x42   : > { %703 = vmatpush.bf16.msra.mxu0 %v1188_v29  ;;  %v1027_v8 = vld [vmem:[%s1379_s12 + $0x50] sm:$0xf0]  ;;  %v1033_v9 = vld [vmem:[%s1379_s12 + $0x48] sm:$0xf]  ;;  %v1184_v10 = vld [vmem:[%s1379_s12 + $0x54] sm:$0xf0]  ;;  %v1026_v13 = vor.u32 %v1183_v6, %v1025_v5 }
  0x43   : > { %727 = vmatpush.bf16.msra.mxu1 %v1196_v30  ;;  %v1182_v11 = vld [vmem:[%s1379_s12 + $0x4c] sm:$0xf]  ;;  %v1035_v12 = vld [vmem:[%s1379_s12 + $0x58] sm:$0xf0]  ;;  %v1030_v14 = vor.u32 %v1181_v7, %v1027_v8  ;;  %v1034_v15 = vor.u32 %v1184_v10, %v1033_v9  ;;  %v368_v50 = vld [vmem:[#allocation2] sm:$0xff] }
  0x44   : > { %751 = vmatpush.bf16.msra.mxu2 %v1204_v31  ;;  %v1038_v16 = vor.u32 %v1182_v11, %v1035_v12  ;;  %v365_v25 = vld [vmem:[#allocation2 + $0x28] sm:$0xff]  ;;  %v369_v59 = vld [vmem:[#allocation2 + $0x18] sm:$0xff] }
  0x45   : > { %775 = vmatpush.bf16.msra.mxu3 %v1212_v32 }
  0x46   : > { %704 = vmatpush.bf16.msra.mxu0 %v1187_v33 }
  0x47   : > { %728 = vmatpush.bf16.msra.mxu1 %v1195_v34  ;;  %v366_v34 = vld [vmem:[#allocation2 + $0x10] sm:$0xff] }
  0x48   : > { %752 = vmatpush.bf16.msra.mxu2 %v1203_v35 }
  0x49   : > { %776 = vmatpush.bf16.msra.mxu3 %v1211_v36 }
  0x4a   : > { %705 = vmatpush.bf16.msra.mxu0 %v1186_v37 }
  0x4b   : > { %729 = vmatpush.bf16.msra.mxu1 %v1194_v38 }
  0x4c   : > { %753 = vmatpush.bf16.msra.mxu2 %v1202_v39 }
  0x4d   : > { %777 = vmatpush.bf16.msra.mxu3 %v1210_v40 }
  0x4e   : > { %706 = vmatpush.bf16.msra.mxu0 %v1185_v41 }
  0x4f   : > { %730 = vmatpush.bf16.msra.mxu1 %v1193_v42 }
  0x50   : > { %754 = vmatpush.bf16.msra.mxu2 %v1201_v43  ;;  %v367_v43 = vld [vmem:[#allocation2 + $0x8] sm:$0xff] }
  0x51   : > { %778 = vmatpush.bf16.msra.mxu3 %v1209_v44  ;;  %707 = vmatmul.bf16.vlgmr.msra.gmra.mxu0 %v994_v53 }
  0x52   : > { %731 = vmatmul.bf16.vlgmr.msra.gmra.mxu1 %v998_v54 }
  0x53   : > { %755 = vmatmul.bf16.vlgmr.msra.gmra.mxu2 %v1002_v55 }
  0x54   : > { %779 = vmatmul.bf16.vlgmr.msra.gmra.mxu3 %v1006_v56 }
  0x61   : > { %712 = vmatmul.bf16.gmra.mxu0 %v1010_v1 }
  0x62   : > { %736 = vmatmul.bf16.gmra.mxu1 %v1014_v2 }
  0x63   : > { %760 = vmatmul.bf16.gmra.mxu2 %v1018_v3  ;;  %v370_v3 = vld [vmem:[#allocation2 + $0x20] sm:$0xff] }
  0x64   : > { %784 = vmatmul.bf16.gmra.mxu3 %v1022_v4 }
  0x71   : > { %717 = vmatmul.bf16.gmra.mxu0 %v1026_v13 }
  0x72   : > { %741 = vmatmul.bf16.gmra.mxu1 %v1030_v14 }
  0x73   : > { %765 = vmatmul.bf16.gmra.mxu2 %v1034_v15 }
  0x74   : > { %789 = vmatmul.bf16.gmra.mxu3 %v1038_v16 }
  0xce   : > { %v708_v17 = vpop.f32.mrf.mxu0 }
  0xcf   : > { %v732_v18 = vpop.f32.mrf.mxu1 }
  0xd0   : > { %v733_v19 = vadd.f32 %v732_v18, %v708_v17 }
  0xd6   : > { %v756_v20 = vpop.f32.mrf.mxu2  ;;  %v710_v23 = vpop.f32.mrf.mxu0 }
  0xd7   : > { %v780_v21 = vpop.f32.mrf.mxu3  ;;  %v757_v22 = vadd.f32 %v756_v20, %v733_v19  ;;  %v734_v24 = vpop.f32.mrf.mxu1 }
  0xd8   : > { %v735_v28 = vadd.f32 %v734_v24, %v710_v23 }
  0xd9   : > { %v781_v26 = vadd.f32 %v780_v21, %v757_v22 }
  0xdb   : > { %v795_v27 = vadd.f32 %v781_v26, %v365_v25 }
  0xdd   : > { %801 = vst [vmem:[#allocation2 + $0x28] sm:$0xff] %v795_v27 }
  0xde   : > { %v758_v29 = vpop.f32.mrf.mxu2  ;;  %v713_v32 = vpop.f32.mrf.mxu0 }
  0xdf   : > { %v782_v30 = vpop.f32.mrf.mxu3  ;;  %v759_v31 = vadd.f32 %v758_v29, %v735_v28  ;;  %v737_v33 = vpop.f32.mrf.mxu1 }
  0xe0   : > { %v738_v37 = vadd.f32 %v737_v33, %v713_v32 }
  0xe1   : > { %v783_v35 = vadd.f32 %v782_v30, %v759_v31 }
  0xe3   : > { %v796_v36 = vadd.f32 %v783_v35, %v366_v34 }
  0xe5   : > { %802 = vst [vmem:[#allocation2 + $0x10] sm:$0xff] %v796_v36 }
  0xe6   : > { %v761_v38 = vpop.f32.mrf.mxu2  ;;  %v715_v41 = vpop.f32.mrf.mxu0 }
  0xe7   : > { %v785_v39 = vpop.f32.mrf.mxu3  ;;  %v762_v40 = vadd.f32 %v761_v38, %v738_v37  ;;  %v739_v42 = vpop.f32.mrf.mxu1 }
  0xe8   : > { %v740_v46 = vadd.f32 %v739_v42, %v715_v41 }
  0xe9   : > { %v786_v44 = vadd.f32 %v785_v39, %v762_v40 }
  0xeb   : > { %v797_v45 = vadd.f32 %v786_v44, %v367_v43 }
  0xed   : > { %803 = vst [vmem:[#allocation2 + $0x8] sm:$0xff] %v797_v45 }
  0xee   : > { %v763_v47 = vpop.f32.mrf.mxu2  ;;  %v718_v51 = vpop.f32.mrf.mxu0 }
  0xef   : > { %v787_v48 = vpop.f32.mrf.mxu3  ;;  %v764_v49 = vadd.f32 %v763_v47, %v740_v46  ;;  %v742_v52 = vpop.f32.mrf.mxu1 }
  0xf0   : > { %v743_v55 = vadd.f32 %v742_v52, %v718_v51 }
  0xf1   : > { %v788_v53 = vadd.f32 %v787_v48, %v764_v49 }
  0xf3   : > { %v798_v54 = vadd.f32 %v788_v53, %v368_v50 }
  0xf5   : > { %804 = vst [vmem:[#allocation2] sm:$0xff] %v798_v54 }
  0xf6   : > { %v766_v56 = vpop.f32.mrf.mxu2  ;;  %v720_v61 = vpop.f32.mrf.mxu0 }
  0xf7   : > { %v790_v57 = vpop.f32.mrf.mxu3  ;;  %v767_v58 = vadd.f32 %v766_v56, %v743_v55  ;;  %v744_v62 = vpop.f32.mrf.mxu1 }
  0xf8   : > { %v745_v0 = vadd.f32 %v744_v62, %v720_v61 }
  0xf9   : > { %v791_v60 = vadd.f32 %v790_v57, %v767_v58 }
  0xfb   : > { %v799_v63 = vadd.f32 %v791_v60, %v369_v59 }
  0xfd   : > { %805 = vst [vmem:[#allocation2 + $0x18] sm:$0xff] %v799_v63 }
  0xfe   : > { %v768_v1 = vpop.f32.mrf.mxu2 }
  0xff   : > { %v769_v2 = vadd.f32 %v768_v1, %v745_v0  ;;  %v792_v4 = vpop.f32.mrf.mxu3 }
 0x101   : > { %v793_v5 = vadd.f32 %v792_v4, %v769_v2  ;;  %810 = sbr.rel (%p1167_p11) target bundleno = 276 (0x114), region = 67 }
 0x103   : > { %v800_v6 = vadd.f32 %v793_v5, %v370_v3 }
 0x105   : > { %806 = vst [vmem:[#allocation2 + $0x20] sm:$0xff] %v800_v6 }
 0x106   : > { %v811_v7 = vld [vmem:[#allocation2 + $0x28] sm:$0xff]  ;;  %v1260_v8 = vld [vmem:[%s1495_s2] ss:$0 sm:$0xff]  ;;  %v812_v10 = vld [vmem:[#allocation2 + $0x10] sm:$0xff] }
 0x107   : > { %v827_v9 = vld [vmem:[%s1496_s3] sm:$0xff]  ;;  %v828_v11 = vld [vmem:[%s1496_s3 + $0x8] sm:$0xff]  ;;  %v821_v12 = vadd.f32 %v1260_v8, %v811_v7  ;;  %v822_v13 = vadd.f32 %v1260_v8, %v812_v10  ;;  %v829_v15 = vld [vmem:[%s1496_s3 + $0x10] sm:$0xff] }
 0x108   : > { %v813_v14 = vld [vmem:[#allocation2 + $0x8] sm:$0xff]  ;;  %v814_v16 = vld [vmem:[#allocation2] sm:$0xff]  ;;  %v830_v19 = vld [vmem:[%s1496_s3 + $0x18] sm:$0xff] }
 0x109   : > { %v823_v17 = vadd.f32 %v1260_v8, %v813_v14  ;;  %v824_v18 = vadd.f32 %v1260_v8, %v814_v16  ;;  %v815_v20 = vld [vmem:[#allocation2 + $0x18] sm:$0xff]  ;;  %v831_v21 = vld [vmem:[%s1496_s3 + $0x20] sm:$0xff]  ;;  %v833_v22 = vadd.f32 %v827_v9, %v821_v12  ;;  %v834_v23 = vadd.f32 %v828_v11, %v822_v13  ;;  %v832_v26 = vld [vmem:[%s1496_s3 + $0x28] sm:$0xff] }
 0x10a   : > { %v825_v24 = vadd.f32 %v1260_v8, %v815_v20 }
 0x10b   : > { %v835_v27 = vadd.f32 %v829_v15, %v823_v17  ;;  %v836_v28 = vadd.f32 %v830_v19, %v824_v18  ;;  %v839_v30 = vmax.f32 %v833_v22, 0.0  ;;  %v840_v31 = vmax.f32 %v834_v23, 0.0 }
 0x10c   : > { %v816_v25 = vld [vmem:[#allocation2 + $0x20] sm:$0xff]  ;;  %v837_v32 = vadd.f32 %v831_v21, %v825_v24 }
 0x10d   : > { %v826_v29 = vadd.f32 %v1260_v8, %v816_v25  ;;  %v841_v33 = vmax.f32 %v835_v27, 0.0  ;;  %v842_v34 = vmax.f32 %v836_v28, 0.0  ;;  %845 = vst [vmem:[%s1497_s4] sm:$0xff] %v839_v30 }
 0x10e   : > { %v843_v36 = vmax.f32 %v837_v32, 0.0  ;;  %846 = vst [vmem:[%s1497_s4 + $0x8] sm:$0xff] %v840_v31 }
 0x10f   : > { %v838_v35 = vadd.f32 %v832_v26, %v826_v29  ;;  %847 = vst [vmem:[%s1497_s4 + $0x10] sm:$0xff] %v841_v33 }
 0x110   : > { %848 = vst [vmem:[%s1497_s4 + $0x18] sm:$0xff] %v842_v34 }
 0x111   : > { %v844_v37 = vmax.f32 %v838_v35, 0.0  ;;  %849 = vst [vmem:[%s1497_s4 + $0x20] sm:$0xff] %v843_v36 }
 0x113   : > { %850 = vst [vmem:[%s1497_s4 + $0x28] sm:$0xff] %v844_v37 }
 0x114 PF: > { %s14_s19 = sadd.s32 1, %s1299_s19   ;;  %s1498_s15 = smov %s1287_s16 }
 0x115   : > { %p11_p12 = scmp.ge.s32.totalorder %s14_s19, 4   ;;  %s1499_s16 = smov %s1362_s23 }
 0x116   : > { %s1500_s17 = smov %s1295_s18  ;;  %s1501_s18 = smov %s1503_s20 }
 0x117   :  { %13 = sbr.rel (!%p11_p12) target bundleno = 3 (0x3), region = 111 }

// kernel: _lambda_.47
= control target key start
LH: loop header
LB: loop body
LE: loop exit
PB: predicated region body
PF: predicated region fallthrough
CT: control target
= control target key end

     0   :  { %vm84_vm0 = vcmask 523264   ;;  %s268_s1 = inlined_call_operand.vmem [shape: bf16[64,128], index: 1, kind: input, shape index: {}]   ;;  %s269_s2 = inlined_call_operand.vmem [shape: f32[1,128], index: 2, kind: input, shape index: {}]   ;;  %s270_s0 = inlined_call_operand.vmem [shape: bf16[48,64], index: 0, kind: input, shape index: {}]   ;;  %s271_s3 = inlined_call_operand.vmem [shape: f32[48,128], index: 3, kind: output, shape index: {}]  }
   0x1   :  { %v196_v0 = vld [vmem:[%s268_s1 + $0x18] sm:$0xff]  ;;  %v195_v1 = vld [vmem:[%s268_s1 + $0x10] sm:$0xff]  ;;  %v194_v2 = vld [vmem:[%s268_s1 + $0x8] sm:$0xff] }
   0x2   :  { %98 = vmatpush.bf16.msra.mxu0 %v196_v0  ;;  %197 = vmatpush.bf16.msra.mxu1 %v196_v0  ;;  %v193_v3 = vld [vmem:[%s268_s1] sm:$0xff]  ;;  %v191_v5 = vld [vmem:[%s270_s0 + $0x8] sm:$0xff]  ;;  %v192_v6 = vld [vmem:[%s270_s0 + $0x10] sm:$0xff] }
   0x3   :  { %198 = vmatpush.bf16.msra.mxu2 %v196_v0  ;;  %v190_v4 = vld [vmem:[%s270_s0] sm:$0xff] }
   0x4   :  { %v205_v7 = vld [vmem:[%s269_s2] ss:$0 sm:$0xff] }
   0x6   :  { %99 = vmatpush.bf16.msra.mxu0 %v195_v1  ;;  %199 = vmatpush.bf16.msra.mxu1 %v195_v1 }
   0x7   :  { %200 = vmatpush.bf16.msra.mxu2 %v195_v1 }
   0xa   :  { %100 = vmatpush.bf16.msra.mxu0 %v194_v2  ;;  %201 = vmatpush.bf16.msra.mxu1 %v194_v2 }
   0xb   :  { %202 = vmatpush.bf16.msra.mxu2 %v194_v2 }
   0xe   :  { %101 = vmatpush.bf16.msra.mxu0 %v193_v3  ;;  %203 = vmatpush.bf16.msra.mxu1 %v193_v3 }
   0xf   :  { %204 = vmatpush.bf16.msra.mxu2 %v193_v3 }
  0x11   :  { %187 = vmatmul.msk.bf16.vlgmr.msra.gmra.mxu0 %vm84_vm0, %v190_v4  ;;  %188 = vmatmul.msk.bf16.vlgmr.msra.gmra.mxu1 %vm84_vm0, %v191_v5 }
  0x12   :  { %189 = vmatmul.msk.bf16.vlgmr.msra.gmra.mxu2 %vm84_vm0, %v192_v6 }
  0x8e   :  { %v103_v8 = vpop.f32.mrf.mxu0  ;;  %v108_v9 = vpop.f32.mrf.mxu1 }
  0x8f   :  { %v143_v10 = vadd.f32 %v205_v7, %v103_v8  ;;  %v145_v11 = vadd.f32 %v205_v7, %v108_v9 }
  0x91   :  { %149 = vst [vmem:[%s271_s3] sm:$0xff] %v143_v10 }
  0x92   :  { %151 = vst [vmem:[%s271_s3 + $0x10] sm:$0xff] %v145_v11 }
  0x95   :  { %v113_v12 = vpop.f32.mrf.mxu2 }
  0x96   :  { %v147_v13 = vadd.f32 %v205_v7, %v113_v12  ;;  %v105_v14 = vpop.f32.mrf.mxu0  ;;  %v110_v15 = vpop.f32.mrf.mxu1 }
  0x97   :  { %v144_v16 = vadd.f32 %v205_v7, %v105_v14  ;;  %v146_v17 = vadd.f32 %v205_v7, %v110_v15 }
  0x98   :  { %153 = vst [vmem:[%s271_s3 + $0x20] sm:$0xff] %v147_v13 }
  0x99   :  { %150 = vst [vmem:[%s271_s3 + $0x8] sm:$0xff] %v144_v16 }
  0x9a   :  { %152 = vst [vmem:[%s271_s3 + $0x18] sm:$0xff] %v146_v17 }
  0x9d   :  { %v115_v18 = vpop.f32.mrf.mxu2 }
  0x9e   :  { %v148_v19 = vadd.f32 %v205_v7, %v115_v18 }
  0xa0   :  { %154 = vst [vmem:[%s271_s3 + $0x28] sm:$0xff] %v148_v19 }

// kernel: _lambda_.45
= control target key start
LH: loop header
LB: loop body
LE: loop exit
PB: predicated region body
PF: predicated region fallthrough
CT: control target
= control target key end

     0   :  { %s1231_s12 = smov 0   ;;  %s1233_s13 = smov 0   ;;  %s1379_s0 = inlined_call_operand.vmem [shape: bf16[48,1024], index: 0, kind: input, shape index: {}]   ;;  %s1380_s1 = inlined_call_operand.vmem [shape: bf16[1024,128], index: 1, kind: input, shape index: {}]   ;;  %s1381_s2 = inlined_call_operand.vmem [shape: f32[1,128], index: 2, kind: input, shape index: {}]   ;;  %s1382_s3 = inlined_call_operand.vmem [shape: f32[48,128], index: 3, kind: output, shape index: {}]  }
   0x1   :  { %s1235_s14 = smov 0   ;;  %s1237_s15 = smov 0  }
   0x2   :  { %s1239_s16 = smov 0  }
   0x3 LB: > { %s25_s17 = sadd.s32 1, %s1204_s15  ;;  %p48_p1 = scmp.ne.s32.totalorder %s1196_s13, %s1192_s12  ;;  %s1208_s16 = sphi %s1239_s16, %s13_s16   ;;  %s1204_s15 = sphi %s1237_s15, %s1386_s15   ;;  %s1200_s14 = sphi %s1235_s14, %s1385_s14   ;;  %s1196_s13 = sphi %s1233_s13, %s1384_s13   ;;  %s1192_s12 = sphi %s1231_s12, %s1383_s12  }
   0x4   : > { %p26_p0 = scmp.ge.s32.totalorder %s25_s17, 2  ;;  %p49_p2 = scmp.eq.s32.totalorder %s1208_s16, 0 }
   0x5   : > { %s41_s19 = sadd.s32 1, %s1196_s13  ;;  %p893_p5 = scmp.ge.s32.totalorder %s1208_s16, 2 }
   0x6   : > { %s1388_s17 = smov (%p26_p0, %s25_s17), 0  ;;  %p50_p3 = por %p49_p2, %p48_p1 }
   0x7   : > { %s37_s18 = ssub.s32 %s1204_s15, %s1388_s17  ;;  %162 = sbr.rel (%p893_p5) target bundleno = 28 (0x1c), region = 20 }
   0x8   : > { %p39_p4 = scmp.eq.s32.totalorder %s37_s18, 0 }
   0xa   : > { %s1266_s20 = scalar_select %p39_p4, %s1196_s13, %s41_s19  }
   0xc   : > { %165 = sbr.rel (!%p50_p3) target bundleno = 28 (0x1c), region = 24  ;;  %s167_s21 = sand.u32 (%p50_p3), 1, %s1196_s13  }
   0xd   : > { %s1081_s22 = sshll.u32 (%p50_p3), %s1204_s15, 4  ;;  %s1126_s23 = smul.u32 (%p50_p3), 96, %s167_s21 }
   0xe   : > { %s175_s26 = scalar_lea.vmem (%p50_p3), %s1379_s0, %s1081_s22 }
   0xf   : > { %v188_v0 = vld [vmem:[%s175_s26] sm:$0xff] (%p50_p3)  ;;  %v190_v1 = vld [vmem:[%s175_s26 + $0x8] sm:$0xff] (%p50_p3)  ;;  %s169_s27 = scalar_lea.vmem (%p50_p3), [#allocation3], %s1126_s23 }
  0x10   : > { %v192_v2 = vld [vmem:[%s175_s26 + $0x20] sm:$0xff] (%p50_p3)  ;;  %189 = vst [vmem:[%s169_s27] sm:$0xff] (%p50_p3), %v188_v0  ;;  %v194_v3 = vld [vmem:[%s175_s26 + $0x28] sm:$0xff] (%p50_p3) }
  0x11   : > { %191 = vst [vmem:[%s169_s27 + $0x8] sm:$0xff] %v190_v1  ;;  %v196_v4 = vld [vmem:[%s175_s26 + $0x40] sm:$0xff]  ;;  %v198_v5 = vld [vmem:[%s175_s26 + $0x48] sm:$0xff] }
  0x12   : > { %193 = vst [vmem:[%s169_s27 + $0x10] sm:$0xff] %v192_v2  ;;  %v200_v6 = vld [vmem:[%s175_s26 + $0x60] sm:$0xff]  ;;  %v202_v7 = vld [vmem:[%s175_s26 + $0x68] sm:$0xff] }
  0x13   : > { %195 = vst [vmem:[%s169_s27 + $0x18] sm:$0xff] %v194_v3  ;;  %v204_v8 = vld [vmem:[%s175_s26 + $0x80] sm:$0xff]  ;;  %v206_v9 = vld [vmem:[%s175_s26 + $0x88] sm:$0xff] }
  0x14   : > { %197 = vst [vmem:[%s169_s27 + $0x20] sm:$0xff] %v196_v4  ;;  %v208_v10 = vld [vmem:[%s175_s26 + $0xa0] sm:$0xff]  ;;  %v210_v11 = vld [vmem:[%s175_s26 + $0xa8] sm:$0xff] }
  0x15   : > { %199 = vst [vmem:[%s169_s27 + $0x28] sm:$0xff] %v198_v5 }
  0x16   : > { %201 = vst [vmem:[%s169_s27 + $0x30] sm:$0xff] %v200_v6 }
  0x17   : > { %203 = vst [vmem:[%s169_s27 + $0x38] sm:$0xff] %v202_v7 }
  0x18   : > { %205 = vst [vmem:[%s169_s27 + $0x40] sm:$0xff] %v204_v8 }
  0x19   : > { %207 = vst [vmem:[%s169_s27 + $0x48] sm:$0xff] %v206_v9 }
  0x1a   : > { %209 = vst [vmem:[%s169_s27 + $0x50] sm:$0xff] %v208_v10 }
  0x1b   : > { %211 = vst [vmem:[%s169_s27 + $0x58] sm:$0xff] %v210_v11 }
  0x1c PF: > { %p896_p6 = scmp.ge.s32.totalorder %s1208_s16, 1  ;;  %p228_p7 = scmp.lt.s32.totalorder %s1208_s16, 3 }
  0x1e   : > { %p229_p8 = pnand %p896_p6, %p228_p7 }
  0x1f   : > { %s235_s28 = sand.u32 (!%p229_p8), 1, %s1192_s12   ;;  %s897_s29 = sshll.u32 (!%p229_p8), %s1200_s14, 6 }
  0x20   : > { %232 = sbr.rel (%p229_p8) target bundleno = 274 (0x112), region = 51  ;;  %p275_p9 = scmp.lt.s32.totalorder (!%p229_p8), %s897_s29, 127 }
  0x21   : > { %s1127_s30 = smul.u32 (!%p229_p8), 96, %s235_s28  ;;  %p899_p10 = scmp.ne.s32.totalorder (!%p229_p8), %s1200_s14, 0 }
  0x23   : > { %s1283_s8 = scalar_lea.vmem (!%p229_p8), [#allocation3], %s1127_s30 }
  0x25   : > { %s1390_s29 = smov (!%p275_p9, %s897_s29), 127  ;;  %298 = sbr.rel (%p899_p10) target bundleno = 49 (0x31), region = 59 }
  0x26   : > { %s898_s4 = sshll.u32 %s1390_s29, 2 }
  0x27   : > { %s1281_s7 = scalar_lea.vmem %s1380_s1, %s898_s4 }
  0x2a   : > { %v1210_v12 = vmov 0.0  }
  0x2b   : > { %299 = vst [vmem:[#allocation2 + $0x28] sm:$0xff] %v1210_v12 }
  0x2c   : > { %300 = vst [vmem:[#allocation2 + $0x10] sm:$0xff] %v1210_v12 }
  0x2d   : > { %301 = vst [vmem:[#allocation2 + $0x8] sm:$0xff] %v1210_v12 }
  0x2e   : > { %302 = vst [vmem:[#allocation2] sm:$0xff] %v1210_v12 }
  0x2f   : > { %303 = vst [vmem:[#allocation2 + $0x18] sm:$0xff] %v1210_v12 }
  0x30   : > { %304 = vst [vmem:[#allocation2 + $0x20] sm:$0xff] %v1210_v12 }
  0x31 PF: > { %v1101_v13 = vld [vmem:[%s1281_s7 + $0x38] sm:$0xff]  ;;  %v1100_v17 = vld [vmem:[%s1281_s7 + $0x30] sm:$0xff]  ;;  %v1099_v21 = vld [vmem:[%s1281_s7 + $0x28] sm:$0xff]  ;;  %p1076_p11 = scmp.ne.s32.totalorder %s1200_s14, 1 }
  0x32   : > { %v1109_v14 = vld [vmem:[%s1281_s7 + $0x78] sm:$0xff]  ;;  %639 = vmatpush.bf16.msra.mxu0 %v1101_v13  ;;  %v1108_v18 = vld [vmem:[%s1281_s7 + $0x70] sm:$0xff]  ;;  %v1107_v22 = vld [vmem:[%s1281_s7 + $0x68] sm:$0xff] }
  0x33   : > { %v1117_v15 = vld [vmem:[%s1281_s7 + $0xb8] sm:$0xff]  ;;  %663 = vmatpush.bf16.msra.mxu1 %v1109_v14  ;;  %v1116_v19 = vld [vmem:[%s1281_s7 + $0xb0] sm:$0xff]  ;;  %v1115_v23 = vld [vmem:[%s1281_s7 + $0xa8] sm:$0xff] }
  0x34   : > { %v1125_v16 = vld [vmem:[%s1281_s7 + $0xf8] sm:$0xff]  ;;  %687 = vmatpush.bf16.msra.mxu2 %v1117_v15  ;;  %v1124_v20 = vld [vmem:[%s1281_s7 + $0xf0] sm:$0xff]  ;;  %v1123_v24 = vld [vmem:[%s1281_s7 + $0xe8] sm:$0xff] }
  0x35   : > { %711 = vmatpush.bf16.msra.mxu3 %v1125_v16  ;;  %v1098_v25 = vld [vmem:[%s1281_s7 + $0x20] sm:$0xff]  ;;  %v1097_v29 = vld [vmem:[%s1281_s7 + $0x18] sm:$0xff]  ;;  %v1096_v33 = vld [vmem:[%s1281_s7 + $0x10] sm:$0xff] }
  0x36   : > { %640 = vmatpush.bf16.msra.mxu0 %v1100_v17  ;;  %v1106_v26 = vld [vmem:[%s1281_s7 + $0x60] sm:$0xff]  ;;  %v1105_v30 = vld [vmem:[%s1281_s7 + $0x58] sm:$0xff]  ;;  %v1104_v34 = vld [vmem:[%s1281_s7 + $0x50] sm:$0xff] }
  0x37   : > { %664 = vmatpush.bf16.msra.mxu1 %v1108_v18  ;;  %v1114_v27 = vld [vmem:[%s1281_s7 + $0xa0] sm:$0xff]  ;;  %v1113_v31 = vld [vmem:[%s1281_s7 + $0x98] sm:$0xff]  ;;  %v1112_v35 = vld [vmem:[%s1281_s7 + $0x90] sm:$0xff] }
  0x38   : > { %688 = vmatpush.bf16.msra.mxu2 %v1116_v19  ;;  %v1122_v28 = vld [vmem:[%s1281_s7 + $0xe0] sm:$0xff]  ;;  %v1121_v32 = vld [vmem:[%s1281_s7 + $0xd8] sm:$0xff]  ;;  %v1120_v36 = vld [vmem:[%s1281_s7 + $0xd0] sm:$0xff] }
  0x39   : > { %712 = vmatpush.bf16.msra.mxu3 %v1124_v20  ;;  %v1095_v37 = vld [vmem:[%s1281_s7 + $0x8] sm:$0xff]  ;;  %v1094_v41 = vld [vmem:[%s1281_s7] sm:$0xff]  ;;  %v902_v45 = vld [vmem:[%s1283_s8] sm:$0xf] }
  0x3a   : > { %641 = vmatpush.bf16.msra.mxu0 %v1099_v21  ;;  %v1103_v38 = vld [vmem:[%s1281_s7 + $0x48] sm:$0xff]  ;;  %v1102_v42 = vld [vmem:[%s1281_s7 + $0x40] sm:$0xff]  ;;  %v1082_v47 = vld [vmem:[%s1283_s8 + $0x4] sm:$0xf] }
  0x3b   : > { %665 = vmatpush.bf16.msra.mxu1 %v1107_v22  ;;  %v1111_v39 = vld [vmem:[%s1281_s7 + $0x88] sm:$0xff]  ;;  %v1110_v43 = vld [vmem:[%s1281_s7 + $0x80] sm:$0xff]  ;;  %v910_v49 = vld [vmem:[%s1283_s8 + $0x8] sm:$0xf] }
  0x3c   : > { %689 = vmatpush.bf16.msra.mxu2 %v1115_v23  ;;  %v1119_v40 = vld [vmem:[%s1281_s7 + $0xc8] sm:$0xff]  ;;  %v1118_v44 = vld [vmem:[%s1281_s7 + $0xc0] sm:$0xff]  ;;  %v1083_v51 = vld [vmem:[%s1283_s8 + $0xc] sm:$0xf] }
  0x3d   : > { %713 = vmatpush.bf16.msra.mxu3 %v1123_v24  ;;  %v1084_v46 = vld [vmem:[%s1283_s8 + $0xc] sm:$0xf0]  ;;  %v904_v48 = vld [vmem:[%s1283_s8 + $0x10] sm:$0xf0]  ;;  %v1085_v50 = vld [vmem:[%s1283_s8 + $0x14] sm:$0xf0] }
  0x3e   : > { %642 = vmatpush.bf16.msra.mxu0 %v1098_v25  ;;  %v912_v52 = vld [vmem:[%s1283_s8 + $0x18] sm:$0xf0]  ;;  %v903_v53 = vor.u32 %v1084_v46, %v902_v45  ;;  %v907_v54 = vor.u32 %v1082_v47, %v904_v48  ;;  %v911_v55 = vor.u32 %v1085_v50, %v910_v49  ;;  %v918_v57 = vld [vmem:[%s1283_s8 + $0x20] sm:$0xf]  ;;  %v1088_v58 = vld [vmem:[%s1283_s8 + $0x2c] sm:$0xf0] }
  0x3f   : > { %666 = vmatpush.bf16.msra.mxu1 %v1106_v26  ;;  %v915_v56 = vor.u32 %v1083_v51, %v912_v52  ;;  %v1086_v59 = vld [vmem:[%s1283_s8 + $0x24] sm:$0xf]  ;;  %v920_v60 = vld [vmem:[%s1283_s8 + $0x30] sm:$0xf0]  ;;  %v926_v61 = vld [vmem:[%s1283_s8 + $0x28] sm:$0xf]  ;;  %v919_v1 = vor.u32 %v1088_v58, %v918_v57 }
  0x40   : > { %690 = vmatpush.bf16.msra.mxu2 %v1114_v27  ;;  %v1089_v62 = vld [vmem:[%s1283_s8 + $0x34] sm:$0xf0]  ;;  %v1087_v63 = vld [vmem:[%s1283_s8 + $0x2c] sm:$0xf]  ;;  %v928_v0 = vld [vmem:[%s1283_s8 + $0x38] sm:$0xf0]  ;;  %v923_v2 = vor.u32 %v1086_v59, %v920_v60 }
  0x41   : > { %714 = vmatpush.bf16.msra.mxu3 %v1122_v28  ;;  %v927_v3 = vor.u32 %v1089_v62, %v926_v61  ;;  %v931_v4 = vor.u32 %v1087_v63, %v928_v0  ;;  %v934_v5 = vld [vmem:[%s1283_s8 + $0x40] sm:$0xf]  ;;  %v1092_v6 = vld [vmem:[%s1283_s8 + $0x4c] sm:$0xf0]  ;;  %v1090_v7 = vld [vmem:[%s1283_s8 + $0x44] sm:$0xf] }
  0x42   : > { %643 = vmatpush.bf16.msra.mxu0 %v1097_v29  ;;  %v936_v8 = vld [vmem:[%s1283_s8 + $0x50] sm:$0xf0]  ;;  %v942_v9 = vld [vmem:[%s1283_s8 + $0x48] sm:$0xf]  ;;  %v1093_v10 = vld [vmem:[%s1283_s8 + $0x54] sm:$0xf0]  ;;  %v935_v13 = vor.u32 %v1092_v6, %v934_v5 }
  0x43   : > { %667 = vmatpush.bf16.msra.mxu1 %v1105_v30  ;;  %v1091_v11 = vld [vmem:[%s1283_s8 + $0x4c] sm:$0xf]  ;;  %v944_v12 = vld [vmem:[%s1283_s8 + $0x58] sm:$0xf0]  ;;  %v939_v14 = vor.u32 %v1090_v7, %v936_v8  ;;  %v943_v15 = vor.u32 %v1093_v10, %v942_v9  ;;  %v308_v50 = vld [vmem:[#allocation2] sm:$0xff] }
  0x44   : > { %691 = vmatpush.bf16.msra.mxu2 %v1113_v31  ;;  %v947_v16 = vor.u32 %v1091_v11, %v944_v12  ;;  %v305_v25 = vld [vmem:[#allocation2 + $0x28] sm:$0xff]  ;;  %v309_v59 = vld [vmem:[#allocation2 + $0x18] sm:$0xff] }
  0x45   : > { %715 = vmatpush.bf16.msra.mxu3 %v1121_v32 }
  0x46   : > { %644 = vmatpush.bf16.msra.mxu0 %v1096_v33 }
  0x47   : > { %668 = vmatpush.bf16.msra.mxu1 %v1104_v34  ;;  %v306_v34 = vld [vmem:[#allocation2 + $0x10] sm:$0xff] }
  0x48   : > { %692 = vmatpush.bf16.msra.mxu2 %v1112_v35 }
  0x49   : > { %716 = vmatpush.bf16.msra.mxu3 %v1120_v36 }
  0x4a   : > { %645 = vmatpush.bf16.msra.mxu0 %v1095_v37 }
  0x4b   : > { %669 = vmatpush.bf16.msra.mxu1 %v1103_v38 }
  0x4c   : > { %693 = vmatpush.bf16.msra.mxu2 %v1111_v39 }
  0x4d   : > { %717 = vmatpush.bf16.msra.mxu3 %v1119_v40 }
  0x4e   : > { %646 = vmatpush.bf16.msra.mxu0 %v1094_v41 }
  0x4f   : > { %670 = vmatpush.bf16.msra.mxu1 %v1102_v42 }
  0x50   : > { %694 = vmatpush.bf16.msra.mxu2 %v1110_v43  ;;  %v307_v43 = vld [vmem:[#allocation2 + $0x8] sm:$0xff] }
  0x51   : > { %718 = vmatpush.bf16.msra.mxu3 %v1118_v44  ;;  %647 = vmatmul.bf16.vlgmr.msra.gmra.mxu0 %v903_v53 }
  0x52   : > { %671 = vmatmul.bf16.vlgmr.msra.gmra.mxu1 %v907_v54 }
  0x53   : > { %695 = vmatmul.bf16.vlgmr.msra.gmra.mxu2 %v911_v55 }
  0x54   : > { %719 = vmatmul.bf16.vlgmr.msra.gmra.mxu3 %v915_v56 }
  0x61   : > { %652 = vmatmul.bf16.gmra.mxu0 %v919_v1 }
  0x62   : > { %676 = vmatmul.bf16.gmra.mxu1 %v923_v2 }
  0x63   : > { %700 = vmatmul.bf16.gmra.mxu2 %v927_v3  ;;  %v310_v3 = vld [vmem:[#allocation2 + $0x20] sm:$0xff] }
  0x64   : > { %724 = vmatmul.bf16.gmra.mxu3 %v931_v4 }
  0x71   : > { %657 = vmatmul.bf16.gmra.mxu0 %v935_v13 }
  0x72   : > { %681 = vmatmul.bf16.gmra.mxu1 %v939_v14 }
  0x73   : > { %705 = vmatmul.bf16.gmra.mxu2 %v943_v15 }
  0x74   : > { %729 = vmatmul.bf16.gmra.mxu3 %v947_v16 }
  0xce   : > { %v648_v17 = vpop.f32.mrf.mxu0 }
  0xcf   : > { %v672_v18 = vpop.f32.mrf.mxu1 }
  0xd0   : > { %v673_v19 = vadd.f32 %v672_v18, %v648_v17 }
  0xd6   : > { %v696_v20 = vpop.f32.mrf.mxu2  ;;  %v650_v23 = vpop.f32.mrf.mxu0 }
  0xd7   : > { %v720_v21 = vpop.f32.mrf.mxu3  ;;  %v697_v22 = vadd.f32 %v696_v20, %v673_v19  ;;  %v674_v24 = vpop.f32.mrf.mxu1 }
  0xd8   : > { %v675_v28 = vadd.f32 %v674_v24, %v650_v23 }
  0xd9   : > { %v721_v26 = vadd.f32 %v720_v21, %v697_v22 }
  0xdb   : > { %v735_v27 = vadd.f32 %v721_v26, %v305_v25 }
  0xdd   : > { %741 = vst [vmem:[#allocation2 + $0x28] sm:$0xff] %v735_v27 }
  0xde   : > { %v698_v29 = vpop.f32.mrf.mxu2  ;;  %v653_v32 = vpop.f32.mrf.mxu0 }
  0xdf   : > { %v722_v30 = vpop.f32.mrf.mxu3  ;;  %v699_v31 = vadd.f32 %v698_v29, %v675_v28  ;;  %v677_v33 = vpop.f32.mrf.mxu1 }
  0xe0   : > { %v678_v37 = vadd.f32 %v677_v33, %v653_v32 }
  0xe1   : > { %v723_v35 = vadd.f32 %v722_v30, %v699_v31 }
  0xe3   : > { %v736_v36 = vadd.f32 %v723_v35, %v306_v34 }
  0xe5   : > { %742 = vst [vmem:[#allocation2 + $0x10] sm:$0xff] %v736_v36 }
  0xe6   : > { %v701_v38 = vpop.f32.mrf.mxu2  ;;  %v655_v41 = vpop.f32.mrf.mxu0 }
  0xe7   : > { %v725_v39 = vpop.f32.mrf.mxu3  ;;  %v702_v40 = vadd.f32 %v701_v38, %v678_v37  ;;  %v679_v42 = vpop.f32.mrf.mxu1 }
  0xe8   : > { %v680_v46 = vadd.f32 %v679_v42, %v655_v41 }
  0xe9   : > { %v726_v44 = vadd.f32 %v725_v39, %v702_v40 }
  0xeb   : > { %v737_v45 = vadd.f32 %v726_v44, %v307_v43 }
  0xed   : > { %743 = vst [vmem:[#allocation2 + $0x8] sm:$0xff] %v737_v45 }
  0xee   : > { %v703_v47 = vpop.f32.mrf.mxu2  ;;  %v658_v51 = vpop.f32.mrf.mxu0 }
  0xef   : > { %v727_v48 = vpop.f32.mrf.mxu3  ;;  %v704_v49 = vadd.f32 %v703_v47, %v680_v46  ;;  %v682_v52 = vpop.f32.mrf.mxu1 }
  0xf0   : > { %v683_v55 = vadd.f32 %v682_v52, %v658_v51 }
  0xf1   : > { %v728_v53 = vadd.f32 %v727_v48, %v704_v49 }
  0xf3   : > { %v738_v54 = vadd.f32 %v728_v53, %v308_v50 }
  0xf5   : > { %744 = vst [vmem:[#allocation2] sm:$0xff] %v738_v54 }
  0xf6   : > { %v706_v56 = vpop.f32.mrf.mxu2  ;;  %v660_v61 = vpop.f32.mrf.mxu0 }
  0xf7   : > { %v730_v57 = vpop.f32.mrf.mxu3  ;;  %v707_v58 = vadd.f32 %v706_v56, %v683_v55  ;;  %v684_v62 = vpop.f32.mrf.mxu1 }
  0xf8   : > { %v685_v0 = vadd.f32 %v684_v62, %v660_v61 }
  0xf9   : > { %v731_v60 = vadd.f32 %v730_v57, %v707_v58 }
  0xfb   : > { %v739_v63 = vadd.f32 %v731_v60, %v309_v59 }
  0xfd   : > { %745 = vst [vmem:[#allocation2 + $0x18] sm:$0xff] %v739_v63 }
  0xfe   : > { %v708_v1 = vpop.f32.mrf.mxu2 }
  0xff   : > { %v709_v2 = vadd.f32 %v708_v1, %v685_v0  ;;  %v732_v4 = vpop.f32.mrf.mxu3 }
 0x101   : > { %v733_v5 = vadd.f32 %v732_v4, %v709_v2  ;;  %750 = sbr.rel (%p1076_p11) target bundleno = 274 (0x112), region = 63 }
 0x103   : > { %v740_v6 = vadd.f32 %v733_v5, %v310_v3 }
 0x105   : > { %746 = vst [vmem:[#allocation2 + $0x20] sm:$0xff] %v740_v6 }
 0x106   : > { %v751_v7 = vld [vmem:[#allocation2 + $0x28] sm:$0xff]  ;;  %v1169_v8 = vld [vmem:[%s1381_s2] ss:$0 sm:$0xff]  ;;  %v752_v9 = vld [vmem:[#allocation2 + $0x10] sm:$0xff] }
 0x107   : > { %v753_v10 = vld [vmem:[#allocation2 + $0x8] sm:$0xff]  ;;  %v754_v11 = vld [vmem:[#allocation2] sm:$0xff]  ;;  %v761_v12 = vadd.f32 %v1169_v8, %v751_v7  ;;  %v762_v13 = vadd.f32 %v1169_v8, %v752_v9  ;;  %v755_v16 = vld [vmem:[#allocation2 + $0x18] sm:$0xff] }
 0x108   : > { %v763_v14 = vadd.f32 %v1169_v8, %v753_v10  ;;  %v764_v15 = vadd.f32 %v1169_v8, %v754_v11  ;;  %v765_v18 = vadd.f32 %v1169_v8, %v755_v16 }
 0x109   : > { %v767_v20 = vmax.f32 %v761_v12, 0.0  ;;  %v768_v21 = vmax.f32 %v762_v13, 0.0 }
 0x10a   : > { %v769_v22 = vmax.f32 %v763_v14, 0.0  ;;  %v770_v23 = vmax.f32 %v764_v15, 0.0  ;;  %v771_v24 = vmax.f32 %v765_v18, 0.0 }
 0x10b   : > { %773 = vst [vmem:[%s1382_s3] sm:$0xff] %v767_v20 }
 0x10c   : > { %v756_v17 = vld [vmem:[#allocation2 + $0x20] sm:$0xff]  ;;  %774 = vst [vmem:[%s1382_s3 + $0x8] sm:$0xff] %v768_v21 }
 0x10d   : > { %v766_v19 = vadd.f32 %v1169_v8, %v756_v17  ;;  %775 = vst [vmem:[%s1382_s3 + $0x10] sm:$0xff] %v769_v22 }
 0x10e   : > { %776 = vst [vmem:[%s1382_s3 + $0x18] sm:$0xff] %v770_v23 }
 0x10f   : > { %v772_v25 = vmax.f32 %v766_v19, 0.0  ;;  %777 = vst [vmem:[%s1382_s3 + $0x20] sm:$0xff] %v771_v24 }
 0x111   : > { %778 = vst [vmem:[%s1382_s3 + $0x28] sm:$0xff] %v772_v25 }
 0x112 PF: > { %s13_s16 = sadd.s32 1, %s1208_s16   ;;  %s1383_s12 = smov %s1196_s13 }
 0x113   : > { %p10_p12 = scmp.ge.s32.totalorder %s13_s16, 4   ;;  %s1384_s13 = smov %s1266_s20 }
 0x114   : > { %s1385_s14 = smov %s1204_s15  ;;  %s1386_s15 = smov %s1388_s17 }
 0x115   :  { %12 = sbr.rel (!%p10_p12) target bundleno = 3 (0x3), region = 104 }

// kernel: _lambda_.48
= control target key start
LH: loop header
LB: loop body
LE: loop exit
PB: predicated region body
PF: predicated region fallthrough
CT: control target
= control target key end

     0   :  { %vm138_vm0 = vcmask 261120   ;;  %s423_s1 = inlined_call_operand.vmem [shape: bf16[160,128], index: 1, kind: input, shape index: {}]   ;;  %s424_s0 = inlined_call_operand.vmem [shape: bf16[40,160], index: 0, kind: input, shape index: {}]   ;;  %s425_s2 = inlined_call_operand.vmem [shape: f32[1,128], index: 2, kind: input, shape index: {}]   ;;  %s426_s3 = inlined_call_operand.vmem [shape: f32[40,128], index: 3, kind: output, shape index: {}]  }
   0x1   :  { %v305_v0 = vld [vmem:[%s423_s1 + $0x38] sm:$0xff]  ;;  %v307_v1 = vld [vmem:[%s423_s1 + $0x48] sm:$0xff]  ;;  %v304_v2 = vld [vmem:[%s423_s1 + $0x30] sm:$0xff] }
   0x2   :  { %148 = vmatpush.bf16.msra.mxu0 %v305_v0  ;;  %308 = vmatpush.bf16.msra.mxu2 %v305_v0  ;;  %v306_v3 = vld [vmem:[%s423_s1 + $0x40] sm:$0xff]  ;;  %v239_v5 = vld [vmem:[%s424_s0 + $0x8] sm:$0xf0]  ;;  %v301_v9 = vld [vmem:[%s423_s1 + $0x18] sm:$0xff] }
   0x3   :  { %309 = vmatpush.bf16.msra.mxu3 %v305_v0  ;;  %177 = vmatpush.bf16.msra.mxu1 %v307_v1  ;;  %v294_v4 = vld [vmem:[%s424_s0 + $0x4] sm:$0xf]  ;;  %v303_v7 = vld [vmem:[%s423_s1 + $0x28] sm:$0xff]  ;;  %v300_v10 = vld [vmem:[%s423_s1 + $0x10] sm:$0xff] }
   0x4   :  { %v242_v6 = vor.u32 %v294_v4, %v239_v5  ;;  %v302_v8 = vld [vmem:[%s423_s1 + $0x20] sm:$0xff]  ;;  %v296_v11 = vld [vmem:[%s424_s0 + $0x14] sm:$0xf]  ;;  %v247_v12 = vld [vmem:[%s424_s0 + $0x18] sm:$0xf0] }
   0x5   :  { %v250_v13 = vor.u32 %v296_v11, %v247_v12  ;;  %v299_v14 = vld [vmem:[%s423_s1 + $0x8] sm:$0xff]  ;;  %v33_v15 = vld [vmem:[%s424_s0 + $0x20] sm:$0xff]  ;;  %v245_v20 = vld [vmem:[%s424_s0 + $0x10] sm:$0xf] }
   0x6   :  { %149 = vmatpush.bf16.msra.mxu0 %v304_v2  ;;  %310 = vmatpush.bf16.msra.mxu2 %v304_v2  ;;  %v298_v16 = vld [vmem:[%s423_s1] sm:$0xff]  ;;  %v295_v18 = vld [vmem:[%s424_s0 + $0x4] sm:$0xf0]  ;;  %v67_v19 = vunpack.c.l.b16 %v33_v15  ;;  %v297_v21 = vld [vmem:[%s424_s0 + $0x14] sm:$0xf0]  ;;  %v68_v25 = vunpack.c.h.b16 %v33_v15 }
   0x7   :  { %311 = vmatpush.bf16.msra.mxu3 %v304_v2  ;;  %178 = vmatpush.bf16.msra.mxu1 %v306_v3  ;;  %v237_v17 = vld [vmem:[%s424_s0] sm:$0xf]  ;;  %v246_v23 = vor.u32 %v297_v21, %v245_v20 }
   0x8   :  { %v238_v22 = vor.u32 %v295_v18, %v237_v17  ;;  %v73_v24 = vpack.c.b16 %v67_v19, %v67_v19  ;;  %v74_v26 = vpack.c.b16 %v68_v25, %v68_v25  ;;  %v324_v30 = vld [vmem:[%s425_s2] ss:$0 sm:$0xff] }
   0xa   :  { %291 = vmatmul.msk.bf16.vlgmr.msra.gmra.mxu1 %vm138_vm0, %v242_v6  ;;  %150 = vmatpush.bf16.msra.mxu0 %v303_v7 }
   0xb   :  { %312 = vmatpush.bf16.msra.mxu2 %v303_v7  ;;  %313 = vmatpush.bf16.msra.mxu3 %v303_v7 }
   0xe   :  { %151 = vmatpush.bf16.msra.mxu0 %v302_v8 }
   0xf   :  { %314 = vmatpush.bf16.msra.mxu2 %v302_v8  ;;  %315 = vmatpush.bf16.msra.mxu3 %v302_v8 }
  0x12   :  { %152 = vmatpush.bf16.msra.mxu0 %v301_v9 }
  0x13   :  { %316 = vmatpush.bf16.msra.mxu2 %v301_v9  ;;  %317 = vmatpush.bf16.msra.mxu3 %v301_v9 }
  0x16   :  { %153 = vmatpush.bf16.msra.mxu0 %v300_v10 }
  0x17   :  { %318 = vmatpush.bf16.msra.mxu2 %v300_v10  ;;  %319 = vmatpush.bf16.msra.mxu3 %v300_v10 }
  0x1a   :  { %292 = vmatmul.msk.bf16.gmra.mxu1 %vm138_vm0, %v250_v13  ;;  %154 = vmatpush.bf16.msra.mxu0 %v299_v14 }
  0x1b   :  { %320 = vmatpush.bf16.msra.mxu2 %v299_v14  ;;  %321 = vmatpush.bf16.msra.mxu3 %v299_v14 }
  0x1e   :  { %155 = vmatpush.bf16.msra.mxu0 %v298_v16 }
  0x1f   :  { %322 = vmatpush.bf16.msra.mxu2 %v298_v16  ;;  %323 = vmatpush.bf16.msra.mxu3 %v298_v16 }
  0x21   :  { %156 = vmatmul.bf16.vlgmr.msra.gmra.mxu0 %v238_v22 }
  0x22   :  { %161 = vmatmul.bf16.vlgmr.msra.gmra.mxu2 %v246_v23  ;;  %166 = vmatmul.bf16.vlgmr.msra.gmra.mxu3 %v73_v24 }
  0x2a   :  { %293 = vmatmul.msk.bf16.gmra.mxu1 %vm138_vm0, %v74_v26 }
  0x87   :  { %v180_v27 = vpop.f32.mrf.mxu1 }
  0x8f   :  { %v182_v28 = vpop.f32.mrf.mxu1 }
  0x97   :  { %v185_v29 = vpop.f32.mrf.mxu1 }
  0x9e   :  { %v157_v31 = vpop.f32.mrf.mxu0 }
  0x9f   :  { %v181_v32 = vadd.f32 %v180_v27, %v157_v31  ;;  %v187_v33 = vpop.f32.mrf.mxu1 }
  0xa1   :  { %v216_v34 = vadd.f32 %v324_v30, %v181_v32 }
  0xa3   :  { %v221_v35 = vmax.f32 %v216_v34, 0.0 }
  0xa5   :  { %226 = vst [vmem:[%s426_s3] sm:$0xff] %v221_v35  ;;  %v162_v36 = vpop.f32.mrf.mxu2  ;;  %v167_v37 = vpop.f32.mrf.mxu3 }
  0xa6   :  { %v186_v38 = vadd.f32 %v185_v29, %v162_v36  ;;  %v159_v39 = vpop.f32.mrf.mxu0 }
  0xa7   :  { %v183_v40 = vadd.f32 %v182_v28, %v159_v39  ;;  %v190_v41 = vpop.f32.mrf.mxu1 }
  0xa8   :  { %v218_v42 = vadd.f32 %v324_v30, %v186_v38  ;;  %v191_v43 = vadd.f32 %v190_v41, %v167_v37 }
  0xa9   :  { %v217_v44 = vadd.f32 %v324_v30, %v183_v40 }
  0xaa   :  { %v223_v45 = vmax.f32 %v218_v42, 0.0  ;;  %v220_v46 = vadd.f32 %v324_v30, %v191_v43 }
  0xab   :  { %v222_v47 = vmax.f32 %v217_v44, 0.0 }
  0xac   :  { %228 = vst [vmem:[%s426_s3 + $0x10] sm:$0xff] %v223_v45  ;;  %v225_v48 = vmax.f32 %v220_v46, 0.0 }
  0xad   :  { %227 = vst [vmem:[%s426_s3 + $0x8] sm:$0xff] %v222_v47  ;;  %v164_v49 = vpop.f32.mrf.mxu2  ;;  %v169_v50 = vpop.f32.mrf.mxu3 }
  0xae   :  { %230 = vst [vmem:[%s426_s3 + $0x20] sm:$0xff] %v225_v48  ;;  %v188_v51 = vadd.f32 %v187_v33, %v164_v49 }
  0xaf   :  { %v192_v52 = vpop.f32.mrf.mxu1 }
  0xb0   :  { %v219_v53 = vadd.f32 %v324_v30, %v188_v51 }
  0xb2   :  { %v224_v54 = vmax.f32 %v219_v53, 0.0 }
  0xb4   :  { %229 = vst [vmem:[%s426_s3 + $0x18] sm:$0xff] %v224_v54 }

// kernel: _lambda_.49
= control target key start
LH: loop header
LB: loop body
LE: loop exit
PB: predicated region body
PF: predicated region fallthrough
CT: control target
= control target key end

     0   :  { %vm114_vm0 = vcmask 261120   ;;  %s302_s1 = inlined_call_operand.vmem [shape: bf16[160,128], index: 1, kind: input, shape index: {}]   ;;  %s303_s0 = inlined_call_operand.vmem [shape: bf16[16,160], index: 0, kind: input, shape index: {}]   ;;  %s304_s2 = inlined_call_operand.vmem [shape: f32[1,128], index: 2, kind: input, shape index: {}]   ;;  %s305_s3 = inlined_call_operand.vmem [shape: f32[16,128], index: 3, kind: output, shape index: {}]  }
   0x1   :  { %v227_v0 = vld [vmem:[%s302_s1 + $0x38] sm:$0xff]  ;;  %v229_v1 = vld [vmem:[%s302_s1 + $0x48] sm:$0xff]  ;;  %v226_v2 = vld [vmem:[%s302_s1 + $0x30] sm:$0xff] }
   0x2   :  { %118 = vmatpush.bf16.msra.mxu0 %v227_v0  ;;  %138 = vmatpush.bf16.msra.mxu1 %v229_v1  ;;  %v228_v3 = vld [vmem:[%s302_s1 + $0x40] sm:$0xff]  ;;  %v173_v5 = vld [vmem:[%s303_s0 + $0x8] sm:$0xf0]  ;;  %v223_v9 = vld [vmem:[%s302_s1 + $0x18] sm:$0xff] }
   0x3   :  { %v218_v4 = vld [vmem:[%s303_s0 + $0x4] sm:$0xf]  ;;  %v225_v6 = vld [vmem:[%s302_s1 + $0x28] sm:$0xff]  ;;  %v222_v10 = vld [vmem:[%s302_s1 + $0x10] sm:$0xff] }
   0x4   :  { %v176_v7 = vor.u32 %v218_v4, %v173_v5  ;;  %v224_v8 = vld [vmem:[%s302_s1 + $0x20] sm:$0xff]  ;;  %v221_v11 = vld [vmem:[%s302_s1 + $0x8] sm:$0xff] }
   0x5   :  { %v220_v12 = vld [vmem:[%s302_s1] sm:$0xff]  ;;  %v219_v14 = vld [vmem:[%s303_s0 + $0x4] sm:$0xf0] }
   0x6   :  { %119 = vmatpush.bf16.msra.mxu0 %v226_v2  ;;  %139 = vmatpush.bf16.msra.mxu1 %v228_v3  ;;  %v171_v13 = vld [vmem:[%s303_s0] sm:$0xf] }
   0x7   :  { %v172_v15 = vor.u32 %v219_v14, %v171_v13  ;;  %v230_v17 = vld [vmem:[%s304_s2] ss:$0 sm:$0xff] }
   0x9   :  { %217 = vmatmul.msk.bf16.vlgmr.msra.gmra.mxu1 %vm114_vm0, %v176_v7 }
   0xa   :  { %120 = vmatpush.bf16.msra.mxu0 %v225_v6 }
   0xe   :  { %121 = vmatpush.bf16.msra.mxu0 %v224_v8 }
  0x12   :  { %122 = vmatpush.bf16.msra.mxu0 %v223_v9 }
  0x16   :  { %123 = vmatpush.bf16.msra.mxu0 %v222_v10 }
  0x1a   :  { %124 = vmatpush.bf16.msra.mxu0 %v221_v11 }
  0x1e   :  { %125 = vmatpush.bf16.msra.mxu0 %v220_v12 }
  0x21   :  { %126 = vmatmul.bf16.vlgmr.msra.gmra.mxu0 %v172_v15 }
  0x86   :  { %v141_v16 = vpop.f32.mrf.mxu1 }
  0x8e   :  { %v143_v22 = vpop.f32.mrf.mxu1 }
  0x9e   :  { %v127_v18 = vpop.f32.mrf.mxu0 }
  0x9f   :  { %v142_v19 = vadd.f32 %v141_v16, %v127_v18 }
  0xa1   :  { %v159_v20 = vadd.f32 %v230_v17, %v142_v19 }
  0xa3   :  { %v161_v21 = vmax.f32 %v159_v20, 0.0 }
  0xa5   :  { %163 = vst [vmem:[%s305_s3] sm:$0xff] %v161_v21 }
  0xa6   :  { %v129_v23 = vpop.f32.mrf.mxu0 }
  0xa7   :  { %v144_v24 = vadd.f32 %v143_v22, %v129_v23 }
  0xa9   :  { %v160_v25 = vadd.f32 %v230_v17, %v144_v24 }
  0xab   :  { %v162_v26 = vmax.f32 %v160_v25, 0.0 }
  0xad   :  { %164 = vst [vmem:[%s305_s3 + $0x8] sm:$0xff] %v162_v26 }

// kernel: _lambda_.51
= control target key start
LH: loop header
LB: loop body
LE: loop exit
PB: predicated region body
PF: predicated region fallthrough
CT: control target
= control target key end

     0   :  { %s644_s12 = smov 0   ;;  %s646_s13 = smov 0   ;;  %s715_s0 = inlined_call_operand.vmem [shape: bf16[8,32], index: 0, kind: input, shape index: {}]   ;;  %s716_s1 = inlined_call_operand.vmem [shape: bf16[32,1024], index: 1, kind: input, shape index: {}]   ;;  %s717_s2 = inlined_call_operand.vmem [shape: f32[1,1024], index: 2, kind: input, shape index: {}]   ;;  %s718_s3 = inlined_call_operand.vmem [shape: f32[8,1024], index: 3, kind: output, shape index: {}]  }
   0x1   :  { %s648_s14 = smov 0   ;;  %s650_s15 = smov 0  }
   0x2   :  { %s652_s16 = smov 0  }
   0x3 LB: > { %s28_s17 = sadd.s32 1, %s618_s15  ;;  %p76_p1 = scmp.ne.s32.totalorder %s610_s13, %s606_s12  ;;  %s622_s16 = sphi %s652_s16, %s13_s16   ;;  %s618_s15 = sphi %s650_s15, %s722_s15   ;;  %s614_s14 = sphi %s648_s14, %s721_s14   ;;  %s610_s13 = sphi %s646_s13, %s720_s13   ;;  %s606_s12 = sphi %s644_s12, %s719_s12  }
   0x4   : > { %p30_p0 = scmp.ge.s32.totalorder %s28_s17, 4  ;;  %p77_p2 = scmp.eq.s32.totalorder %s622_s16, 0 }
   0x5   : > { %s69_s19 = sadd.s32 1, %s610_s13  ;;  %p510_p5 = scmp.ge.s32.totalorder %s622_s16, 4 }
   0x6   : > { %s724_s17 = smov (%p30_p0, %s28_s17), 0  ;;  %p78_p3 = por %p77_p2, %p76_p1 }
   0x7   : > { %s65_s18 = ssub.s32 %s618_s15, %s724_s17  ;;  %166 = sbr.rel (%p510_p5) target bundleno = 20 (0x14), region = 20 }
   0x8   : > { %p67_p4 = scmp.eq.s32.totalorder %s65_s18, 0 }
   0xa   : > { %s679_s20 = scalar_select %p67_p4, %s610_s13, %s69_s19  }
   0xc   : > { %169 = sbr.rel (!%p78_p3) target bundleno = 20 (0x14), region = 24  ;;  %s171_s21 = sand.u32 (%p78_p3), 1, %s610_s13  }
   0xd   : > { %s539_s22 = sshll.u32 (%p78_p3), %s618_s15, 3  ;;  %s511_s23 = sshll.u32 (%p78_p3), %s171_s21, 5 }
   0xe   : > { %s179_s26 = scalar_lea.vmem (%p78_p3), %s716_s1, %s539_s22  ;;  %s173_s27 = scalar_lea.vmem (%p78_p3), [#allocation3], %s511_s23 }
   0xf   : > { %v214_v0 = vld [vmem:[%s179_s26] sm:$0xff] (%p78_p3) }
  0x10   : > { %v216_v1 = vld [vmem:[%s179_s26 + $0x20] sm:$0xff] (%p78_p3)  ;;  %215 = vst [vmem:[%s173_s27] sm:$0xff] (%p78_p3), %v214_v0 }
  0x11   : > { %v218_v2 = vld [vmem:[%s179_s26 + $0x40] sm:$0xff]  ;;  %217 = vst [vmem:[%s173_s27 + $0x8] sm:$0xff] %v216_v1 }
  0x12   : > { %v220_v3 = vld [vmem:[%s179_s26 + $0x60] sm:$0xff]  ;;  %219 = vst [vmem:[%s173_s27 + $0x10] sm:$0xff] %v218_v2 }
  0x13   : > { %221 = vst [vmem:[%s173_s27 + $0x18] sm:$0xff] %v220_v3 }
  0x14 PF: > { %p514_p6 = scmp.ge.s32.totalorder %s622_s16, 1  ;;  %p234_p7 = scmp.lt.s32.totalorder %s622_s16, 5 }
  0x16   : > { %p235_p8 = pnand %p514_p6, %p234_p7 }
  0x17   : > { %s241_s28 = sand.u32 (!%p235_p8), 1, %s606_s12   ;;  %s516_s6 = sshll.u32 (!%p235_p8), %s614_s14, 1 }
  0x18   : > { %238 = sbr.rel (%p235_p8) target bundleno = 174 (0xae), region = 66  ;;  %s515_s29 = sshll.u32 (!%p235_p8), %s241_s28, 5 }
  0x19   : > { %s243_s30 = scalar_lea.vmem (!%p235_p8), [#allocation3], %s515_s29  ;;  %p289_p9 = scmp.lt.s32.totalorder (!%p235_p8), %s516_s6, 7 }
  0x1d   : > { %v529_v4 = vld [vmem:[%s243_s30 + $0x10] sm:$0xf]  ;;  %v543_v5 = vld [vmem:[%s243_s30 + $0x14] sm:$0xf0]  ;;  %v542_v6 = vld [vmem:[%s243_s30 + $0x14] sm:$0xf] }
  0x1e   : > { %v530_v7 = vor.u32 %v543_v5, %v529_v4  ;;  %v531_v8 = vld [vmem:[%s243_s30 + $0x18] sm:$0xf0]  ;;  %v521_v9 = vld [vmem:[%s243_s30] sm:$0xf]  ;;  %v541_v10 = vld [vmem:[%s243_s30 + $0x4] sm:$0xf0] }
  0x1f   : > { %v534_v11 = vor.u32 %v542_v6, %v531_v8  ;;  %v540_v12 = vld [vmem:[%s243_s30 + $0x4] sm:$0xf]  ;;  %v523_v13 = vld [vmem:[%s243_s30 + $0x8] sm:$0xf0]  ;;  %v522_v14 = vor.u32 %v541_v10, %v521_v9  ;;  %v312_v16 = vld [vmem:[%s715_s0] sm:$0xf] }
  0x20   : > { %347 = vmatpush.bf16.msra.mxu0 %v530_v7  ;;  %v526_v15 = vor.u32 %v540_v12, %v523_v13  ;;  %vm337_vm0 = vcmask 261120   ;;  %s726_s6 = smov (!%p289_p9, %s516_s6), 7 }
  0x21   : > { %360 = vmatpush.bf16.msra.mxu1 %v534_v11  ;;  %s291_s9 = scalar_lea.vmem %s717_s2, %s726_s6  ;;  %s518_s10 = sshll.u32 %s726_s6, 3 }
  0x22   : > { %v376_v17 = vld [vmem:[%s291_s9] sm:$0x3]  ;;  %s301_s18 = scalar_lea.vmem %s718_s3, %s518_s10 }
  0x23   : > { %v378_v18 = vperm.slane %v376_v17, 0  ;;  %v379_v19 = vperm.slane %v376_v17, 1 }
  0x24   : > { %348 = vmatpush.bf16.msra.mxu0 %v522_v14 }
  0x25   : > { %361 = vmatpush.bf16.msra.mxu1 %v526_v15 }
  0x27   : > { %535 = vmatmul.msk.bf16.vlgmr.msra.gmra.mxu0 %vm337_vm0, %v312_v16 }
  0x28   : > { %536 = vmatmul.msk.bf16.vlgmr.msra.gmra.mxu1 %vm337_vm0, %v312_v16 }
  0xa4   : > { %v350_v20 = vpop.f32.mrf.mxu0 }
  0xa5   : > { %v382_v21 = vadd.f32 %v378_v18, %v350_v20  ;;  %v363_v22 = vpop.f32.mrf.mxu1 }
  0xa6   : > { %v383_v23 = vadd.f32 %v379_v19, %v363_v22 }
  0xa7   : > { %384 = vst [vmem:[%s301_s18] sm:$0xff] %v382_v21 }
  0xa8   : > { %385 = vst [vmem:[%s301_s18 + $0x8] sm:$0xff] %v383_v23 }
  0xac   : > { %v352_v24 = vpop.f32.mrf.mxu0 }
  0xad   : > { %v365_v25 = vpop.f32.mrf.mxu1 }
  0xae PF: > { %s13_s16 = sadd.s32 1, %s622_s16   ;;  %s719_s12 = smov %s610_s13 }
  0xaf   : > { %p10_p10 = scmp.ge.s32.totalorder %s13_s16, 6   ;;  %s720_s13 = smov %s679_s20 }
  0xb0   : > { %s721_s14 = smov %s618_s15  ;;  %s722_s15 = smov %s724_s17 }
  0xb1   :  { %12 = sbr.rel (!%p10_p10) target bundleno = 3 (0x3), region = 119 }

// kernel: _lambda_.52
= control target key start
LH: loop header
LB: loop body
LE: loop exit
PB: predicated region body
PF: predicated region fallthrough
CT: control target
= control target key end

     0   :  { %s732_s9 = smov 0   ;;  %s1167_s0 = inlined_call_operand.vmem [shape: f32[3,2,8,512], index: 0, kind: input, shape index: {}]   ;;  %s1168_s1 = inlined_call_operand.vmem [shape: f32[2,128,512], index: 1, kind: input, shape index: {}]   ;;  %s1169_s2 = inlined_call_operand.vmem [shape: f32[3,2,8,128], index: 2, kind: output, shape index: {}]  }
   0x1 LB: > { %s647_s10 = sadd.s32 4294967295, %s714_s9   ;;  %p651_p0 = scmp.ge.s32.totalorder %s714_s9, 1  ;;  %s714_s9 = sphi %s732_s9, %s12_s9  }
   0x2   : > { %p112_p1 = scmp.lt.s32.totalorder %s714_s9, 4 }
   0x4   : > { %p113_p2 = pnand %p651_p0, %p112_p1 }
   0x5   : > { %p134_p3 = scmp.lt.s32.totalorder (!%p113_p2), %s647_s10, 2  ;;  %p656_p4 = scmp.ne.s32.totalorder (!%p113_p2), %s647_s10, 0 }
   0x6   : > { %116 = sbr.rel (%p113_p2) target bundleno = 259 (0x103), region = 28 }
   0xb   : > { %s135_s11 = scalar_select %p134_p3, %s647_s10, 2 }
   0xc   : > { %147 = sbr.rel (%p656_p4) target bundleno = 22 (0x16), region = 32 }
   0xd   : > { %s665_s12 = sshll.u32 %s135_s11, 6  ;;  %s666_s13 = sshll.u32 %s135_s11, 4 }
   0xe   : > { %s743_s16 = scalar_lea.vmem %s1167_s0, %s665_s12  ;;  %s748_s19 = scalar_lea.vmem %s1169_s2, %s666_s13 }
  0x11   : > { %v716_v0 = vmov 0.0  }
  0x12   : > { %148 = vst [vmem:[#allocation2] sm:$0xff] %v716_v0 }
  0x13   : > { %149 = vst [vmem:[#allocation2 + $0x8] sm:$0xff] %v716_v0 }
  0x14   : > { %150 = vst [vmem:[#allocation3 + $0x8] sm:$0xff] %v716_v0 }
  0x15   : > { %151 = vst [vmem:[#allocation3] sm:$0xff] %v716_v0 }
  0x16 PF: > { %v224_v1 = vld [vmem:[%s1168_s1 + $0x1e0] sm:$0xff]  ;;  %v225_v2 = vld [vmem:[%s1168_s1 + $0x1e8] sm:$0xff]  ;;  %v227_v3 = vld [vmem:[%s1168_s1 + $0x1f8] sm:$0xff] }
  0x17   : > { %292 = vmatpush.msra.mxu0 %v224_v1  ;;  %312 = vmatpush.msra.mxu1 %v225_v2  ;;  %v220_v4 = vld [vmem:[%s1168_s1 + $0x1c0] sm:$0xff]  ;;  %v221_v5 = vld [vmem:[%s1168_s1 + $0x1c8] sm:$0xff]  ;;  %v223_v6 = vld [vmem:[%s1168_s1 + $0x1d8] sm:$0xff] }
  0x18   : > { %352 = vmatpush.msra.mxu3 %v227_v3  ;;  %v216_v7 = vld [vmem:[%s1168_s1 + $0x1a0] sm:$0xff]  ;;  %v217_v8 = vld [vmem:[%s1168_s1 + $0x1a8] sm:$0xff]  ;;  %v219_v9 = vld [vmem:[%s1168_s1 + $0x1b8] sm:$0xff] }
  0x19   : > { %293 = vmatpush.msra.mxu0 %v220_v4  ;;  %313 = vmatpush.msra.mxu1 %v221_v5  ;;  %v212_v10 = vld [vmem:[%s1168_s1 + $0x180] sm:$0xff]  ;;  %v213_v11 = vld [vmem:[%s1168_s1 + $0x188] sm:$0xff]  ;;  %v215_v12 = vld [vmem:[%s1168_s1 + $0x198] sm:$0xff] }
  0x1a   : > { %353 = vmatpush.msra.mxu3 %v223_v6  ;;  %v208_v13 = vld [vmem:[%s1168_s1 + $0x160] sm:$0xff]  ;;  %v209_v14 = vld [vmem:[%s1168_s1 + $0x168] sm:$0xff]  ;;  %v211_v15 = vld [vmem:[%s1168_s1 + $0x178] sm:$0xff] }
  0x1b   : > { %294 = vmatpush.msra.mxu0 %v216_v7  ;;  %314 = vmatpush.msra.mxu1 %v217_v8  ;;  %v204_v16 = vld [vmem:[%s1168_s1 + $0x140] sm:$0xff]  ;;  %v205_v17 = vld [vmem:[%s1168_s1 + $0x148] sm:$0xff]  ;;  %v226_v18 = vld [vmem:[%s1168_s1 + $0x1f0] sm:$0xff] }
  0x1c   : > { %354 = vmatpush.msra.mxu3 %v219_v9  ;;  %v207_v19 = vld [vmem:[%s1168_s1 + $0x158] sm:$0xff]  ;;  %v222_v20 = vld [vmem:[%s1168_s1 + $0x1d0] sm:$0xff]  ;;  %v200_v21 = vld [vmem:[%s1168_s1 + $0x120] sm:$0xff]  ;;  %332 = vmatpush.msra.mxu2 %v226_v18 }
  0x1d   : > { %295 = vmatpush.msra.mxu0 %v212_v10  ;;  %315 = vmatpush.msra.mxu1 %v213_v11  ;;  %v201_v22 = vld [vmem:[%s1168_s1 + $0x128] sm:$0xff]  ;;  %v203_v23 = vld [vmem:[%s1168_s1 + $0x138] sm:$0xff]  ;;  %v218_v24 = vld [vmem:[%s1168_s1 + $0x1b0] sm:$0xff] }
  0x1e   : > { %355 = vmatpush.msra.mxu3 %v215_v12  ;;  %v196_v25 = vld [vmem:[%s1168_s1 + $0x100] sm:$0xff]  ;;  %v197_v26 = vld [vmem:[%s1168_s1 + $0x108] sm:$0xff]  ;;  %333 = vmatpush.msra.mxu2 %v222_v20  ;;  %v199_v27 = vld [vmem:[%s1168_s1 + $0x118] sm:$0xff] }
  0x1f   : > { %296 = vmatpush.msra.mxu0 %v208_v13  ;;  %316 = vmatpush.msra.mxu1 %v209_v14  ;;  %v214_v28 = vld [vmem:[%s1168_s1 + $0x190] sm:$0xff]  ;;  %v192_v29 = vld [vmem:[%s1168_s1 + $0xe0] sm:$0xff]  ;;  %v193_v30 = vld [vmem:[%s1168_s1 + $0xe8] sm:$0xff] }
  0x20   : > { %356 = vmatpush.msra.mxu3 %v211_v15  ;;  %334 = vmatpush.msra.mxu2 %v218_v24  ;;  %v195_v31 = vld [vmem:[%s1168_s1 + $0xf8] sm:$0xff]  ;;  %v210_v32 = vld [vmem:[%s1168_s1 + $0x170] sm:$0xff]  ;;  %v188_v33 = vld [vmem:[%s1168_s1 + $0xc0] sm:$0xff] }
  0x21   : > { %297 = vmatpush.msra.mxu0 %v204_v16  ;;  %317 = vmatpush.msra.mxu1 %v205_v17  ;;  %v189_v34 = vld [vmem:[%s1168_s1 + $0xc8] sm:$0xff]  ;;  %v191_v35 = vld [vmem:[%s1168_s1 + $0xd8] sm:$0xff]  ;;  %v206_v36 = vld [vmem:[%s1168_s1 + $0x150] sm:$0xff] }
  0x22   : > { %357 = vmatpush.msra.mxu3 %v207_v19  ;;  %335 = vmatpush.msra.mxu2 %v214_v28  ;;  %v184_v37 = vld [vmem:[%s1168_s1 + $0xa0] sm:$0xff]  ;;  %v185_v38 = vld [vmem:[%s1168_s1 + $0xa8] sm:$0xff]  ;;  %v187_v39 = vld [vmem:[%s1168_s1 + $0xb8] sm:$0xff] }
  0x23   : > { %298 = vmatpush.msra.mxu0 %v200_v21  ;;  %318 = vmatpush.msra.mxu1 %v201_v22  ;;  %v202_v40 = vld [vmem:[%s1168_s1 + $0x130] sm:$0xff]  ;;  %v180_v41 = vld [vmem:[%s1168_s1 + $0x80] sm:$0xff]  ;;  %v181_v42 = vld [vmem:[%s1168_s1 + $0x88] sm:$0xff] }
  0x24   : > { %358 = vmatpush.msra.mxu3 %v203_v23  ;;  %336 = vmatpush.msra.mxu2 %v210_v32  ;;  %v183_v43 = vld [vmem:[%s1168_s1 + $0x98] sm:$0xff]  ;;  %v198_v44 = vld [vmem:[%s1168_s1 + $0x110] sm:$0xff]  ;;  %v176_v45 = vld [vmem:[%s1168_s1 + $0x60] sm:$0xff] }
  0x25   : > { %299 = vmatpush.msra.mxu0 %v196_v25  ;;  %319 = vmatpush.msra.mxu1 %v197_v26  ;;  %v177_v46 = vld [vmem:[%s1168_s1 + $0x68] sm:$0xff]  ;;  %v179_v47 = vld [vmem:[%s1168_s1 + $0x78] sm:$0xff]  ;;  %v194_v48 = vld [vmem:[%s1168_s1 + $0xf0] sm:$0xff] }
  0x26   : > { %359 = vmatpush.msra.mxu3 %v199_v27  ;;  %337 = vmatpush.msra.mxu2 %v206_v36  ;;  %v172_v49 = vld [vmem:[%s1168_s1 + $0x40] sm:$0xff]  ;;  %v173_v50 = vld [vmem:[%s1168_s1 + $0x48] sm:$0xff]  ;;  %v175_v51 = vld [vmem:[%s1168_s1 + $0x58] sm:$0xff] }
  0x27   : > { %300 = vmatpush.msra.mxu0 %v192_v29  ;;  %320 = vmatpush.msra.mxu1 %v193_v30  ;;  %v190_v52 = vld [vmem:[%s1168_s1 + $0xd0] sm:$0xff]  ;;  %v168_v53 = vld [vmem:[%s1168_s1 + $0x20] sm:$0xff]  ;;  %v169_v54 = vld [vmem:[%s1168_s1 + $0x28] sm:$0xff] }
  0x28   : > { %360 = vmatpush.msra.mxu3 %v195_v31  ;;  %338 = vmatpush.msra.mxu2 %v202_v40  ;;  %v171_v55 = vld [vmem:[%s1168_s1 + $0x38] sm:$0xff]  ;;  %v186_v56 = vld [vmem:[%s1168_s1 + $0xb0] sm:$0xff]  ;;  %v164_v57 = vld [vmem:[%s1168_s1] sm:$0xff] }
  0x29   : > { %301 = vmatpush.msra.mxu0 %v188_v33  ;;  %321 = vmatpush.msra.mxu1 %v189_v34  ;;  %v165_v58 = vld [vmem:[%s1168_s1 + $0x8] sm:$0xff]  ;;  %v167_v59 = vld [vmem:[%s1168_s1 + $0x18] sm:$0xff]  ;;  %v288_v60 = vld [vmem:[%s1168_s1 + $0x3e0] sm:$0xff] }
  0x2a   : > { %361 = vmatpush.msra.mxu3 %v191_v35  ;;  %339 = vmatpush.msra.mxu2 %v198_v44  ;;  %v289_v61 = vld [vmem:[%s1168_s1 + $0x3e8] sm:$0xff]  ;;  %v291_v62 = vld [vmem:[%s1168_s1 + $0x3f8] sm:$0xff]  ;;  %v284_v63 = vld [vmem:[%s1168_s1 + $0x3c0] sm:$0xff] }
  0x2b   : > { %302 = vmatpush.msra.mxu0 %v184_v37  ;;  %322 = vmatpush.msra.mxu1 %v185_v38  ;;  %v182_v0 = vld [vmem:[%s1168_s1 + $0x90] sm:$0xff]  ;;  %v285_v1 = vld [vmem:[%s1168_s1 + $0x3c8] sm:$0xff]  ;;  %v287_v2 = vld [vmem:[%s1168_s1 + $0x3d8] sm:$0xff] }
  0x2c   : > { %362 = vmatpush.msra.mxu3 %v187_v39  ;;  %340 = vmatpush.msra.mxu2 %v194_v48  ;;  %v280_v3 = vld [vmem:[%s1168_s1 + $0x3a0] sm:$0xff]  ;;  %v178_v4 = vld [vmem:[%s1168_s1 + $0x70] sm:$0xff]  ;;  %v281_v5 = vld [vmem:[%s1168_s1 + $0x3a8] sm:$0xff] }
  0x2d   : > { %303 = vmatpush.msra.mxu0 %v180_v41  ;;  %323 = vmatpush.msra.mxu1 %v181_v42  ;;  %v283_v6 = vld [vmem:[%s1168_s1 + $0x3b8] sm:$0xff]  ;;  %v276_v7 = vld [vmem:[%s1168_s1 + $0x380] sm:$0xff]  ;;  %v277_v9 = vld [vmem:[%s1168_s1 + $0x388] sm:$0xff] }
  0x2e   : > { %363 = vmatpush.msra.mxu3 %v183_v43  ;;  %341 = vmatpush.msra.mxu2 %v190_v52  ;;  %v963_v8 = vld [vmem:[#allocation2] sm:$0xff]  ;;  %v279_v10 = vld [vmem:[%s1168_s1 + $0x398] sm:$0xff]  ;;  %v174_v12 = vld [vmem:[%s1168_s1 + $0x50] sm:$0xff] }
  0x2f   : > { %304 = vmatpush.msra.mxu0 %v176_v45  ;;  %324 = vmatpush.msra.mxu1 %v177_v46  ;;  %v272_v11 = vld [vmem:[%s1168_s1 + $0x360] sm:$0xff]  ;;  %v273_v13 = vld [vmem:[%s1168_s1 + $0x368] sm:$0xff]  ;;  %v275_v14 = vld [vmem:[%s1168_s1 + $0x378] sm:$0xff] }
  0x30   : > { %364 = vmatpush.msra.mxu3 %v179_v47  ;;  %342 = vmatpush.msra.mxu2 %v186_v56  ;;  %v170_v15 = vld [vmem:[%s1168_s1 + $0x30] sm:$0xff]  ;;  %v268_v16 = vld [vmem:[%s1168_s1 + $0x340] sm:$0xff]  ;;  %v269_v17 = vld [vmem:[%s1168_s1 + $0x348] sm:$0xff] }
  0x31   : > { %305 = vmatpush.msra.mxu0 %v172_v49  ;;  %325 = vmatpush.msra.mxu1 %v173_v50  ;;  %v271_v18 = vld [vmem:[%s1168_s1 + $0x358] sm:$0xff]  ;;  %v166_v19 = vld [vmem:[%s1168_s1 + $0x10] sm:$0xff]  ;;  %v264_v20 = vld [vmem:[%s1168_s1 + $0x320] sm:$0xff] }
  0x32   : > { %365 = vmatpush.msra.mxu3 %v175_v51  ;;  %343 = vmatpush.msra.mxu2 %v182_v0  ;;  %v265_v21 = vld [vmem:[%s1168_s1 + $0x328] sm:$0xff]  ;;  %v267_v22 = vld [vmem:[%s1168_s1 + $0x338] sm:$0xff]  ;;  %v290_v23 = vld [vmem:[%s1168_s1 + $0x3f0] sm:$0xff] }
  0x33   : > { %306 = vmatpush.msra.mxu0 %v168_v53  ;;  %326 = vmatpush.msra.mxu1 %v169_v54  ;;  %v260_v24 = vld [vmem:[%s1168_s1 + $0x300] sm:$0xff]  ;;  %v261_v25 = vld [vmem:[%s1168_s1 + $0x308] sm:$0xff]  ;;  %v263_v26 = vld [vmem:[%s1168_s1 + $0x318] sm:$0xff] }
  0x34   : > { %366 = vmatpush.msra.mxu3 %v171_v55  ;;  %344 = vmatpush.msra.mxu2 %v178_v4  ;;  %v286_v27 = vld [vmem:[%s1168_s1 + $0x3d0] sm:$0xff]  ;;  %v256_v28 = vld [vmem:[%s1168_s1 + $0x2e0] sm:$0xff]  ;;  %v257_v29 = vld [vmem:[%s1168_s1 + $0x2e8] sm:$0xff] }
  0x35   : > { %307 = vmatpush.msra.mxu0 %v164_v57  ;;  %327 = vmatpush.msra.mxu1 %v165_v58  ;;  %v259_v30 = vld [vmem:[%s1168_s1 + $0x2f8] sm:$0xff]  ;;  %v252_v31 = vld [vmem:[%s1168_s1 + $0x2c0] sm:$0xff]  ;;  %v282_v32 = vld [vmem:[%s1168_s1 + $0x3b0] sm:$0xff] }
  0x36   : > { %367 = vmatpush.msra.mxu3 %v167_v59  ;;  %328 = vmatmul.f32.vlgmr.msra.gmra.mxu1 %v963_v8  ;;  %v253_v33 = vld [vmem:[%s1168_s1 + $0x2c8] sm:$0xff]  ;;  %v255_v34 = vld [vmem:[%s1168_s1 + $0x2d8] sm:$0xff]  ;;  %v248_v35 = vld [vmem:[%s1168_s1 + $0x2a0] sm:$0xff] }
  0x37   : > { %372 = vmatpush.msrb.mxu0 %v288_v60  ;;  %392 = vmatpush.msrb.mxu1 %v289_v61  ;;  %v278_v36 = vld [vmem:[%s1168_s1 + $0x390] sm:$0xff]  ;;  %v249_v37 = vld [vmem:[%s1168_s1 + $0x2a8] sm:$0xff]  ;;  %v251_v38 = vld [vmem:[%s1168_s1 + $0x2b8] sm:$0xff] }
  0x38   : > { %432 = vmatpush.msrb.mxu3 %v291_v62  ;;  %345 = vmatpush.msra.mxu2 %v174_v12  ;;  %v244_v39 = vld [vmem:[%s1168_s1 + $0x280] sm:$0xff]  ;;  %v274_v40 = vld [vmem:[%s1168_s1 + $0x370] sm:$0xff]  ;;  %v245_v41 = vld [vmem:[%s1168_s1 + $0x288] sm:$0xff] }
  0x39   : > { %373 = vmatpush.msrb.mxu0 %v284_v63  ;;  %393 = vmatpush.msrb.mxu1 %v285_v1  ;;  %v247_v42 = vld [vmem:[%s1168_s1 + $0x298] sm:$0xff]  ;;  %v240_v43 = vld [vmem:[%s1168_s1 + $0x260] sm:$0xff]  ;;  %v241_v44 = vld [vmem:[%s1168_s1 + $0x268] sm:$0xff] }
  0x3a   : > { %433 = vmatpush.msrb.mxu3 %v287_v2  ;;  %308 = vmatmul.f32.vlgmr.msra.gmra.mxu0 %v963_v8  ;;  %v243_v45 = vld [vmem:[%s1168_s1 + $0x278] sm:$0xff]  ;;  %v270_v46 = vld [vmem:[%s1168_s1 + $0x350] sm:$0xff]  ;;  %v236_v47 = vld [vmem:[%s1168_s1 + $0x240] sm:$0xff] }
  0x3b   : > { %374 = vmatpush.msrb.mxu0 %v280_v3  ;;  %394 = vmatpush.msrb.mxu1 %v281_v5  ;;  %v237_v48 = vld [vmem:[%s1168_s1 + $0x248] sm:$0xff]  ;;  %v239_v49 = vld [vmem:[%s1168_s1 + $0x258] sm:$0xff]  ;;  %v266_v50 = vld [vmem:[%s1168_s1 + $0x330] sm:$0xff] }
  0x3c   : > { %434 = vmatpush.msrb.mxu3 %v283_v6  ;;  %346 = vmatpush.msra.mxu2 %v170_v15  ;;  %v232_v51 = vld [vmem:[%s1168_s1 + $0x220] sm:$0xff]  ;;  %v233_v52 = vld [vmem:[%s1168_s1 + $0x228] sm:$0xff]  ;;  %v235_v53 = vld [vmem:[%s1168_s1 + $0x238] sm:$0xff] }
  0x3d   : > { %375 = vmatpush.msrb.mxu0 %v276_v7  ;;  %395 = vmatpush.msrb.mxu1 %v277_v9  ;;  %v262_v54 = vld [vmem:[%s1168_s1 + $0x310] sm:$0xff]  ;;  %v228_v55 = vld [vmem:[%s1168_s1 + $0x200] sm:$0xff]  ;;  %v229_v56 = vld [vmem:[%s1168_s1 + $0x208] sm:$0xff] }
  0x3e   : > { %435 = vmatpush.msrb.mxu3 %v279_v10  ;;  %347 = vmatpush.msra.mxu2 %v166_v19  ;;  %v231_v57 = vld [vmem:[%s1168_s1 + $0x218] sm:$0xff]  ;;  %v153_v58 = vld [vmem:[#allocation2 + $0x8] sm:$0xff]  ;;  %v258_v59 = vld [vmem:[%s1168_s1 + $0x2f0] sm:$0xff] }
  0x3f   : > { %376 = vmatpush.msrb.mxu0 %v272_v11  ;;  %396 = vmatpush.msrb.mxu1 %v273_v13  ;;  %v254_v60 = vld [vmem:[%s1168_s1 + $0x2d0] sm:$0xff]  ;;  %v157_v3 = vld [vmem:[%s743_s16 + $0x8] sm:$0xff]  ;;  %v156_v6 = vld [vmem:[%s743_s16] sm:$0xff] }
  0x40   : > { %436 = vmatpush.msrb.mxu3 %v275_v14  ;;  %412 = vmatpush.msrb.mxu2 %v290_v23  ;;  %v250_v61 = vld [vmem:[%s1168_s1 + $0x2b0] sm:$0xff]  ;;  %v159_v14 = vld [vmem:[%s743_s16 + $0x18] sm:$0xff] }
  0x41   : > { %377 = vmatpush.msrb.mxu0 %v268_v16  ;;  %397 = vmatpush.msrb.mxu1 %v269_v17  ;;  %v246_v62 = vld [vmem:[%s1168_s1 + $0x290] sm:$0xff] }
  0x42   : > { %437 = vmatpush.msrb.mxu3 %v271_v18  ;;  %413 = vmatpush.msrb.mxu2 %v286_v27  ;;  %v242_v63 = vld [vmem:[%s1168_s1 + $0x270] sm:$0xff] }
  0x43   : > { %378 = vmatpush.msrb.mxu0 %v264_v20  ;;  %398 = vmatpush.msrb.mxu1 %v265_v21  ;;  %v238_v0 = vld [vmem:[%s1168_s1 + $0x250] sm:$0xff] }
  0x44   : > { %438 = vmatpush.msrb.mxu3 %v267_v22  ;;  %414 = vmatpush.msrb.mxu2 %v282_v32  ;;  %v234_v1 = vld [vmem:[%s1168_s1 + $0x230] sm:$0xff] }
  0x45   : > { %379 = vmatpush.msrb.mxu0 %v260_v24  ;;  %399 = vmatpush.msrb.mxu1 %v261_v25  ;;  %v230_v2 = vld [vmem:[%s1168_s1 + $0x210] sm:$0xff] }
  0x46   : > { %439 = vmatpush.msrb.mxu3 %v263_v26  ;;  %415 = vmatpush.msrb.mxu2 %v278_v36  ;;  %v158_v24 = vld [vmem:[%s743_s16 + $0x10] sm:$0xff] }
  0x47   : > { %368 = vmatmul.f32.vlgmr.msra.gmra.mxu3 %v963_v8  ;;  %380 = vmatpush.msrb.mxu0 %v256_v28 }
  0x48   : > { %400 = vmatpush.msrb.mxu1 %v257_v29  ;;  %440 = vmatpush.msrb.mxu3 %v259_v30  ;;  %v160_v29 = vld [vmem:[%s743_s16 + $0x20] sm:$0xff]  ;;  %v161_v30 = vld [vmem:[%s743_s16 + $0x28] sm:$0xff] }
  0x49   : > { %381 = vmatpush.msrb.mxu0 %v252_v31  ;;  %416 = vmatpush.msrb.mxu2 %v274_v40 }
  0x4a   : > { %401 = vmatpush.msrb.mxu1 %v253_v33  ;;  %441 = vmatpush.msrb.mxu3 %v255_v34 }
  0x4b   : > { %382 = vmatpush.msrb.mxu0 %v248_v35  ;;  %348 = vmatmul.f32.vlgmr.msra.gmra.mxu2 %v963_v8 }
  0x4c   : > { %402 = vmatpush.msrb.mxu1 %v249_v37  ;;  %442 = vmatpush.msrb.mxu3 %v251_v38 }
  0x4d   : > { %383 = vmatpush.msrb.mxu0 %v244_v39  ;;  %417 = vmatpush.msrb.mxu2 %v270_v46 }
  0x4e   : > { %403 = vmatpush.msrb.mxu1 %v245_v41  ;;  %443 = vmatpush.msrb.mxu3 %v247_v42 }
  0x4f   : > { %384 = vmatpush.msrb.mxu0 %v240_v43  ;;  %418 = vmatpush.msrb.mxu2 %v266_v50 }
  0x50   : > { %404 = vmatpush.msrb.mxu1 %v241_v44  ;;  %444 = vmatpush.msrb.mxu3 %v243_v45 }
  0x51   : > { %385 = vmatpush.msrb.mxu0 %v236_v47  ;;  %419 = vmatpush.msrb.mxu2 %v262_v54 }
  0x52   : > { %405 = vmatpush.msrb.mxu1 %v237_v48  ;;  %445 = vmatpush.msrb.mxu3 %v239_v49  ;;  %v154_v49 = vld [vmem:[#allocation3 + $0x8] sm:$0xff] }
  0x53   : > { %386 = vmatpush.msrb.mxu0 %v232_v51  ;;  %420 = vmatpush.msrb.mxu2 %v258_v59 }
  0x54   : > { %406 = vmatpush.msrb.mxu1 %v233_v52  ;;  %446 = vmatpush.msrb.mxu3 %v235_v53  ;;  %v163_v53 = vld [vmem:[%s743_s16 + $0x38] sm:$0xff] }
  0x55   : > { %387 = vmatpush.msrb.mxu0 %v228_v55  ;;  %421 = vmatpush.msrb.mxu2 %v254_v60 }
  0x56   : > { %407 = vmatpush.msrb.mxu1 %v229_v56  ;;  %447 = vmatpush.msrb.mxu3 %v231_v57 }
  0x57   : > { %388 = vmatmul.f32.vlgmr.msrb.gmra.mxu0 %v153_v58  ;;  %408 = vmatmul.f32.vlgmr.msrb.gmra.mxu1 %v153_v58 }
  0x58   : > { %448 = vmatmul.f32.vlgmr.msrb.gmra.mxu3 %v153_v58  ;;  %422 = vmatpush.msrb.mxu2 %v250_v61 }
  0x5a   : > { %423 = vmatpush.msrb.mxu2 %v246_v62 }
  0x5c   : > { %424 = vmatpush.msrb.mxu2 %v242_v63 }
  0x5e   : > { %425 = vmatpush.msrb.mxu2 %v238_v0 }
  0x60   : > { %426 = vmatpush.msrb.mxu2 %v234_v1 }
  0x62   : > { %427 = vmatpush.msrb.mxu2 %v230_v2 }
  0x63   : > { %428 = vmatmul.f32.vlgmr.msrb.gmra.mxu2 %v153_v58 }
  0xb3   : > { %v329_v4 = vpop.f32.mrf.mxu1 }
  0xb4   : > { %v453_v5 = vadd.f32 %v329_v4, %v157_v3 }
  0xb6   : > { %v659_v7 = vmul.f32 -1.442695, %v453_v5 }
  0xb7   : > { %v309_v8 = vpop.f32.mrf.mxu0 }
  0xb8   : > { %v452_v9 = vadd.f32 %v309_v8, %v156_v6  ;;  %676 = vpow2.f32 %v659_v7 }
  0xba   : > { %v657_v10 = vmul.f32 -1.442695, %v452_v9 }
  0xbc   : > { %678 = vpow2.f32 %v657_v10 }
  0xbe   : > { %v677_v11 = vpop.eup %676 }
  0xbf   : > { %v504_v12 = vadd.f32 1.0, %v677_v11 }
  0xc1   : > { %680 = vrcp.f32 %v504_v12  ;;  %v517_v21 = vand.u32 2147483648, %v504_v12  ;;  %v515_v22 = vand.u32 2147483647, %v504_v12  ;;  %vm511_vm0 = vweird.f32 %v504_v12 }
  0xc2   : > { %v679_v13 = vpop.eup %678 }
  0xc3   : > { %v466_v15 = vadd.f32 1.0, %v679_v13  ;;  %v518_v32 = vor.u32 1.1754944e-38, %v517_v21  ;;  %vm1150_vm4 = vcmp.eq.f32.partialorder %v515_v22, 8.507059e+37 }
  0xc5   : > { %682 = vrcp.f32 %v466_v15  ;;  %vm473_vm3 = vweird.f32 %v466_v15  ;;  %v477_v36 = vand.u32 2147483647, %v466_v15  ;;  %v479_v37 = vand.u32 2147483648, %v466_v15 }
  0xc7   : > { %v681_v18 = vpop.eup %680  ;;  %v480_v50 = vor.u32 1.1754944e-38, %v479_v37  ;;  %vm478_vm7 = vcmp.eq.f32.partialorder %v477_v36, 8.507059e+37 }
  0xc8   : > { %v507_v20 = vmul.f32 %v681_v18, %v504_v12  ;;  %vm512_vm1 = vweird.f32 %v681_v18 }
  0xc9   : > { %vm1146_vm2 = vmor %vm511_vm0, %vm512_vm1 }
  0xca   : > { %v369_v16 = vpop.f32.mrf.mxu3  ;;  %v508_v23 = vsub.f32 1.0, %v507_v20 }
  0xcb   : > { %v455_v17 = vadd.f32 %v369_v16, %v159_v14  ;;  %v683_v25 = vpop.eup %682 }
  0xcc   : > { %v469_v26 = vmul.f32 %v683_v25, %v466_v15  ;;  %v509_v27 = vmul.f32 %v681_v18, %v508_v23  ;;  %vm474_vm5 = vweird.f32 %v683_v25 }
  0xcd   : > { %v661_v19 = vmul.f32 -1.442695, %v455_v17  ;;  %vm475_vm6 = vmor %vm473_vm3, %vm474_vm5  ;;  %v162_v17 = vld [vmem:[%s743_s16 + $0x30] sm:$0xff] }
  0xce   : > { %v349_v28 = vpop.f32.mrf.mxu2  ;;  %v470_v35 = vsub.f32 1.0, %v469_v26  ;;  %v510_v38 = vadd.f32 %v681_v18, %v509_v27 }
  0xcf   : > { %684 = vpow2.f32 %v661_v19  ;;  %v454_v33 = vadd.f32 %v349_v28, %v158_v24 }
  0xd0   : > { %v471_v45 = vmul.f32 %v683_v25, %v470_v35  ;;  %v514_v46 = vsel %vm1146_vm2, %v681_v18, %v510_v38  ;;  %v155_v38 = vld [vmem:[#allocation3] sm:$0xff] }
  0xd1   : > { %686 = vtanh.f32 %v454_v33  ;;  %v519_v51 = vsel %vm1150_vm4, %v518_v32, %v514_v46 }
  0xd2   : > { %v472_v52 = vadd.f32 %v683_v25, %v471_v45  ;;  %v576_v56 = vmul.f32 %v519_v51, %v154_v49 }
  0xd4   : > { %v389_v39 = vpop.f32.mrf.mxu0  ;;  %v409_v40 = vpop.f32.mrf.mxu1  ;;  %v476_v55 = vsel %vm475_vm6, %v683_v25, %v472_v52 }
  0xd5   : > { %v685_v41 = vpop.eup %684  ;;  %v456_v42 = vadd.f32 %v389_v39, %v160_v29  ;;  %v457_v43 = vadd.f32 %v409_v40, %v161_v30  ;;  %v481_v58 = vsel %vm478_vm7, %v480_v50, %v476_v55 }
  0xd6   : > { %v544_v44 = vadd.f32 1.0, %v685_v41 }
  0xd7   : > { %v658_v47 = vmul.f32 -1.442695, %v456_v42  ;;  %v660_v48 = vmul.f32 -1.442695, %v457_v43  ;;  %v687_v54 = vpop.eup %686 }
  0xd8   : > { %688 = vrcp.f32 %v544_v44  ;;  %v578_v60 = vmul.f32 %v687_v54, %v481_v58  ;;  %vm551_vm8 = vweird.f32 %v544_v44  ;;  %v555_v3 = vand.u32 2147483647, %v544_v44 }
  0xd9   : > { %690 = vpow2.f32 %v658_v47  ;;  %v557_v4 = vand.u32 2147483648, %v544_v44 }
  0xda   : > { %692 = vpow2.f32 %v660_v48  ;;  %v580_v1 = vadd.f32 %v578_v60, %v576_v56  ;;  %vm556_vm11 = vcmp.eq.f32.partialorder %v555_v3, 8.507059e+37 }
  0xdb   : > { %v449_v57 = vpop.f32.mrf.mxu3  ;;  %v558_v9 = vor.u32 1.1754944e-38, %v557_v4 }
  0xdc   : > { %v459_v59 = vadd.f32 %v449_v57, %v163_v53  ;;  %588 = vst [vmem:[#allocation3 + $0x8] sm:$0xff] %v580_v1 }
  0xde   : > { %v689_v61 = vpop.eup %688  ;;  %v662_v62 = vmul.f32 -1.442695, %v459_v59 }
  0xdf   : > { %v691_v63 = vpop.eup %690  ;;  %v547_v0 = vmul.f32 %v689_v61, %v544_v44  ;;  %vm552_vm9 = vweird.f32 %v689_v61 }
  0xe0   : > { %v693_v2 = vpop.eup %692  ;;  %v467_v5 = vadd.f32 1.0, %v691_v63  ;;  %694 = vpow2.f32 %v662_v62  ;;  %vm553_vm10 = vmor %vm551_vm8, %vm552_vm9 }
  0xe1   : > { %v548_v6 = vsub.f32 1.0, %v547_v0  ;;  %696 = vtanh.f32 %v580_v1  ;;  %v505_v7 = vadd.f32 1.0, %v693_v2 }
  0xe2   : > { %698 = vrcp.f32 %v467_v5  ;;  %v492_v26 = vand.u32 2147483647, %v467_v5  ;;  %v494_v27 = vand.u32 2147483648, %v467_v5  ;;  %vm488_vm14 = vweird.f32 %v467_v5 }
  0xe3   : > { %v549_v8 = vmul.f32 %v689_v61, %v548_v6  ;;  %700 = vrcp.f32 %v505_v7  ;;  %v532_v28 = vand.u32 2147483648, %v505_v7  ;;  %v530_v31 = vand.u32 2147483647, %v505_v7 }
  0xe4   : > { %vm526_vm15 = vweird.f32 %v505_v7  ;;  %v495_v35 = vor.u32 1.1754944e-38, %v494_v27  ;;  %vm493_vm2 = vcmp.eq.f32.partialorder %v492_v26, 8.507059e+37 }
  0xe5   : > { %v550_v10 = vadd.f32 %v689_v61, %v549_v8  ;;  %v533_v37 = vor.u32 1.1754944e-38, %v532_v28  ;;  %vm531_vm3 = vcmp.eq.f32.partialorder %v530_v31, 8.507059e+37 }
  0xe6   : > { %v695_v11 = vpop.eup %694  ;;  %v429_v22 = vpop.f32.mrf.mxu2 }
  0xe7   : > { %v697_v12 = vpop.eup %696  ;;  %v554_v13 = vsel %vm553_vm10, %v689_v61, %v550_v10  ;;  %v545_v14 = vadd.f32 1.0, %v695_v11  ;;  %v458_v24 = vadd.f32 %v429_v22, %v162_v17 }
  0xe8   : > { %v699_v15 = vpop.eup %698  ;;  %v559_v16 = vsel %vm556_vm11, %v558_v9, %v554_v13 }
  0xe9   : > { %v701_v18 = vpop.eup %700  ;;  %v584_v19 = vmul.f32 %v697_v12, %v559_v16  ;;  %v484_v20 = vmul.f32 %v699_v15, %v467_v5  ;;  %702 = vrcp.f32 %v545_v14  ;;  %vm489_vm12 = vweird.f32 %v699_v15 }
  0xea   : > { %v522_v21 = vmul.f32 %v701_v18, %v505_v7  ;;  %704 = vtanh.f32 %v458_v24  ;;  %vm527_vm13 = vweird.f32 %v701_v18  ;;  %vm490_vm0 = vmor %vm488_vm14, %vm489_vm12  ;;  %v572_v50 = vand.u32 2147483648, %v545_v14 }
  0xeb   : > { %586 = vst [vmem:[#allocation2] sm:$0xff] %v584_v19  ;;  %v485_v23 = vsub.f32 1.0, %v484_v20  ;;  %vm528_vm1 = vmor %vm526_vm15, %vm527_vm13  ;;  %vm566_vm5 = vweird.f32 %v545_v14  ;;  %v570_v51 = vand.u32 2147483647, %v545_v14 }
  0xec   : > { %590 = vst [vmem:[%s748_s19] sm:$0xff] %v584_v19  ;;  %v523_v25 = vsub.f32 1.0, %v522_v21  ;;  %v573_v53 = vor.u32 1.1754944e-38, %v572_v50 }
  0xed   : > { %v486_v29 = vmul.f32 %v699_v15, %v485_v23  ;;  %vm571_vm7 = vcmp.eq.f32.partialorder %v570_v51, 8.507059e+37 }
  0xee   : > { %v524_v30 = vmul.f32 %v701_v18, %v523_v25 }
  0xef   : > { %v703_v32 = vpop.eup %702  ;;  %v487_v33 = vadd.f32 %v699_v15, %v486_v29 }
  0xf0   : > { %v562_v34 = vmul.f32 %v703_v32, %v545_v14  ;;  %v525_v36 = vadd.f32 %v701_v18, %v524_v30  ;;  %v705_v43 = vpop.eup %704  ;;  %vm567_vm4 = vweird.f32 %v703_v32 }
  0xf1   : > { %v491_v39 = vsel %vm490_vm0, %v699_v15, %v487_v33  ;;  %vm568_vm6 = vmor %vm566_vm5, %vm567_vm4 }
  0xf2   : > { %v563_v40 = vsub.f32 1.0, %v562_v34  ;;  %v496_v41 = vsel %vm493_vm2, %v495_v35, %v491_v39  ;;  %v529_v42 = vsel %vm528_vm1, %v701_v18, %v525_v36 }
  0xf3   : > { %v534_v44 = vsel %vm531_vm3, %v533_v37, %v529_v42  ;;  %v579_v47 = vmul.f32 %v705_v43, %v496_v41 }
  0xf4   : > { %v564_v45 = vmul.f32 %v703_v32, %v563_v40  ;;  %v577_v46 = vmul.f32 %v534_v44, %v155_v38 }
  0xf6   : > { %v581_v48 = vadd.f32 %v579_v47, %v577_v46  ;;  %v565_v49 = vadd.f32 %v703_v32, %v564_v45 }
  0xf8   : > { %706 = vtanh.f32 %v581_v48  ;;  %589 = vst [vmem:[#allocation3] sm:$0xff] %v581_v48  ;;  %v569_v52 = vsel %vm568_vm6, %v703_v32, %v565_v49 }
  0xf9   : > { %v574_v55 = vsel %vm571_vm7, %v573_v53, %v569_v52 }
  0xfe   : > { %v707_v54 = vpop.eup %706 }
  0xff   : > { %v585_v56 = vmul.f32 %v707_v54, %v574_v55 }
 0x101   : > { %587 = vst [vmem:[#allocation2 + $0x8] sm:$0xff] %v585_v56 }
 0x102   : > { %591 = vst [vmem:[%s748_s19 + $0x8] sm:$0xff] %v585_v56 }
 0x103 PF: > { %s12_s9 = sadd.s32 1, %s714_s9  }
 0x104   : > { %p9_p5 = scmp.ge.s32.totalorder %s12_s9, 5  }
 0x106   :  { %11 = sbr.rel (!%p9_p5) target bundleno = 1 (0x1), region = 62 }

// kernel: _lambda_.53
= control target key start
LH: loop header
LB: loop body
LE: loop exit
PB: predicated region body
PF: predicated region fallthrough
CT: control target
= control target key end

     0   :  { %vm38_vm0 = vcmask 261120   ;;  %s118_s1 = inlined_call_operand.vmem [shape: bf16[32,128], index: 1, kind: input, shape index: {}]   ;;  %s119_s2 = inlined_call_operand.vmem [shape: f32[1,128], index: 2, kind: input, shape index: {}]   ;;  %s120_s0 = inlined_call_operand.vmem [shape: bf16[8,32], index: 0, kind: input, shape index: {}]   ;;  %s121_s3 = inlined_call_operand.vmem [shape: f32[8,128], index: 3, kind: output, shape index: {}]  }
   0x1   :  { %v81_v0 = vld [vmem:[%s118_s1 + $0x8] sm:$0xff]  ;;  %v80_v1 = vld [vmem:[%s118_s1] sm:$0xff] }
   0x2   :  { %48 = vmatpush.bf16.msra.mxu0 %v81_v0  ;;  %v21_v2 = vld [vmem:[%s120_s0] sm:$0xf] }
   0x3   :  { %v82_v3 = vld [vmem:[%s119_s2] ss:$0 sm:$0xff] }
   0x6   :  { %49 = vmatpush.bf16.msra.mxu0 %v80_v1 }
   0x9   :  { %79 = vmatmul.msk.bf16.vlgmr.msra.gmra.mxu0 %vm38_vm0, %v21_v2 }
  0x86   :  { %v51_v4 = vpop.f32.mrf.mxu0 }
  0x87   :  { %v65_v5 = vadd.f32 %v82_v3, %v51_v4 }
  0x89   :  { %66 = vst [vmem:[%s121_s3] sm:$0xff] %v65_v5 }
  0x8e   :  { %v53_v6 = vpop.f32.mrf.mxu0 }

// kernel: _lambda_.50
= control target key start
LH: loop header
LB: loop body
LE: loop exit
PB: predicated region body
PF: predicated region fallthrough
CT: control target
= control target key end

     0   :  { %vm38_vm0 = vcmask 261120   ;;  %s118_s1 = inlined_call_operand.vmem [shape: bf16[32,128], index: 1, kind: input, shape index: {}]   ;;  %s119_s2 = inlined_call_operand.vmem [shape: f32[1,128], index: 2, kind: input, shape index: {}]   ;;  %s120_s0 = inlined_call_operand.vmem [shape: bf16[8,32], index: 0, kind: input, shape index: {}]   ;;  %s121_s3 = inlined_call_operand.vmem [shape: f32[8,128], index: 3, kind: output, shape index: {}]  }
   0x1   :  { %v81_v0 = vld [vmem:[%s118_s1 + $0x8] sm:$0xff]  ;;  %v80_v1 = vld [vmem:[%s118_s1] sm:$0xff] }
   0x2   :  { %48 = vmatpush.bf16.msra.mxu0 %v81_v0  ;;  %v21_v2 = vld [vmem:[%s120_s0] sm:$0xf] }
   0x3   :  { %v82_v3 = vld [vmem:[%s119_s2] ss:$0 sm:$0xff] }
   0x6   :  { %49 = vmatpush.bf16.msra.mxu0 %v80_v1 }
   0x9   :  { %79 = vmatmul.msk.bf16.vlgmr.msra.gmra.mxu0 %vm38_vm0, %v21_v2 }
  0x86   :  { %v51_v4 = vpop.f32.mrf.mxu0 }
  0x87   :  { %v65_v5 = vadd.f32 %v82_v3, %v51_v4 }
  0x89   :  { %66 = vst [vmem:[%s121_s3] sm:$0xff] %v65_v5 }
  0x8e   :  { %v53_v6 = vpop.f32.mrf.mxu0 }

</bundles_post_ra>
